<compile_context>
chip_gen: v7x
topology: tpu7x:2x2x1
jax: 0.10.0
libtpu: 0.0.40
codegen_flags: <defaults>
</compile_context>

<pallas_src>
import jax
import jax.numpy as jnp
import numpy as np
from jax.experimental import pallas as pl
from jax.experimental.pallas import tpu as pltpu


def _conv3x3_im2col(src_pad_bf16, w_mat_bf16):
    """3x3 'same' conv as a single lane-dense MXU matmul.

    src_pad_bf16: (nb, H+2, W+2, Cin) bf16, spatially pre-padded.
    w_mat_bf16:   (9*Cin, C) bf16, taps folded into K (kh-major, kw, cin).
    Returns       (nb*H*W, C) f32.
    """
    nb, Hp, Wp, Cin = src_pad_bf16.shape
    H, W = Hp - 2, Wp - 2
    taps = []
    for kh in range(3):
        for kw in range(3):
            taps.append(src_pad_bf16[:, kh:kh + H, kw:kw + W, :])   # bf16 taps
    col = jnp.concatenate(taps, axis=-1)            # (nb, H, W, 9*Cin) bf16
    col = col.reshape(nb * H * W, 9 * Cin)          # major-dim merge (W%8==0)
    return jnp.dot(col, w_mat_bf16, preferred_element_type=jnp.float32)


def _write_padded(dst_ref, interior_bf16):
    """Zero only the 1-wide halo strips and write the interior (bf16)."""
    nb, H, W, C = interior_bf16.shape
    zrow = jnp.zeros((nb, 1, W + 2, C), jnp.bfloat16)
    zcol = jnp.zeros((nb, H + 2, 1, C), jnp.bfloat16)
    dst_ref[:, 0:1, :, :] = zrow
    dst_ref[:, H + 1:H + 2, :, :] = zrow
    dst_ref[:, :, 0:1, :] = zcol
    dst_ref[:, :, W + 1:W + 2, :] = zcol
    dst_ref[:, 1:H + 1, 1:W + 1, :] = interior_bf16


def basic_block_kernel(x_ref, w1_ref, w2_ref, sb_ref, out_ref, xpad_ref, mid_ref):
    nb, H, W, C = out_ref.shape

    s1 = sb_ref[0:1, :]                        # (1, C) folded BN1 scale
    b1 = sb_ref[1:2, :]                        # (1, C) folded BN1 bias
    s2 = sb_ref[2:3, :]
    b2 = sb_ref[3:4, :]

    x = x_ref[...]                             # (nb, H, W, C) f32, unpadded

    # ---- conv1 padded input built in VMEM (bf16), halo strips re-zeroed per
    #      step (cheap; keeps the batch axis "parallel"/megacore-safe).
    _write_padded(xpad_ref, x.astype(jnp.bfloat16))

    # ---- conv1 (3x3, s=1, p=1) + BN1 + ReLU; epilogue in f32.
    acc1 = _conv3x3_im2col(xpad_ref[...], w1_ref[...])        # (nb*H*W, C) f32
    out1 = jnp.maximum(acc1 * s1 + b1, 0.0)

    # ---- conv2 padded input: cast out1 to bf16 exactly once on the write.
    _write_padded(mid_ref, out1.astype(jnp.bfloat16).reshape(nb, H, W, C))

    # ---- conv2 (3x3, s=1, p=1) + BN2; epilogue in f32.
    acc2 = _conv3x3_im2col(mid_ref[...], w2_ref[...])         # (nb*H*W, C) f32
    out2 = acc2 * s2 + b2

    # ---- identity residual (stride=1, no downsample) + ReLU, all f32.
    #      Tile-aligned read from the unpadded input block.
    residual = x.reshape(nb * H * W, C)
    y = jnp.maximum(out2 + residual, 0.0)
    out_ref[...] = y.reshape(nb, H, W, C).astype(out_ref.dtype)


def _vmem_estimate_bytes(nb, H, W, C):
    io_blocks = 2 * 2 * nb * H * W * C * 4            # x + out blocks, double-buffered
    weights = 2 * (2 * 9 * C * C * 2 + 4 * C * 4)     # bf16 w1/w2 + f32 sb, double-buffered
    pads = 2 * nb * (H + 2) * (W + 2) * C * 2         # two bf16 pad scratches
    col = nb * H * W * 9 * C * 2                      # bf16 im2col (one live at a time)
    f32_tmp = 4 * nb * H * W * C * 4                  # acc/out1/out2/residual headroom
    return io_blocks + weights + pads + col + f32_tmp


def _pick_batch_tile(N, H, W, C, budget_bytes=24 << 20):
    """Largest divisor of N whose per-step working set fits the VMEM budget."""
    nb = 1
    for d in range(1, N + 1):
        if N % d == 0 and _vmem_estimate_bytes(d, H, W, C) <= budget_bytes:
            nb = d
    return nb


def basic_block(x_nchw, w1, s1, b1, w2, s2, b2, *, batch_tile=None):
    """x_nchw: (N, C, H, W) f32.  w1/w2: (3,3,Cin,C) HWIO f32.  s*/b*: (C,)."""
    N, Cin, H, W = x_nchw.shape
    C = w1.shape[-1]
    assert Cin == C, "identity residual requires Cin == C (stride=1, no downsample)"
    assert W % 8 == 0, "W must be a multiple of 8 for layout-preserving reshapes"

    x = jnp.transpose(x_nchw, (0, 2, 3, 1))                      # NHWC, no HBM pad pass

    # im2col-folded weights (kh-major, kw, cin), bf16 for the MXU.
    w1_mat = w1.reshape(9 * Cin, C).astype(jnp.bfloat16)
    w2_mat = w2.reshape(9 * C, C).astype(jnp.bfloat16)

    # Folded BN affine params, rows = [s1, b1, s2, b2]; applied in f32.
    sb = jnp.stack([s1, b1, s2, b2]).astype(jnp.float32)         # (4, C)

    nb = batch_tile if batch_tile is not None else _pick_batch_tile(N, H, W, C)
    assert N % nb == 0
    grid = (N // nb,)

    est = _vmem_estimate_bytes(nb, H, W, C)
    vmem_limit = int(min(48 << 20, max(16 << 20, est + est // 2)))  # << v7x's 64 MiB

    out_nhwc = pl.pallas_call(
        basic_block_kernel,
        out_shape=jax.ShapeDtypeStruct((N, H, W, C), jnp.float32),
        grid_spec=pltpu.PrefetchScalarGridSpec(
            num_scalar_prefetch=0,
            grid=grid,
            in_specs=[
                pl.BlockSpec((nb, H, W, Cin), lambda g: (g, 0, 0, 0)),
                pl.BlockSpec((9 * Cin, C), lambda g: (0, 0)),
                pl.BlockSpec((9 * C, C), lambda g: (0, 0)),
                pl.BlockSpec((4, C), lambda g: (0, 0)),
            ],
            out_specs=pl.BlockSpec((nb, H, W, C), lambda g: (g, 0, 0, 0)),
            scratch_shapes=[
                pltpu.VMEM((nb, H + 2, W + 2, C), jnp.bfloat16),   # conv1 padded input
                pltpu.VMEM((nb, H + 2, W + 2, C), jnp.bfloat16),   # conv2 padded input
            ],
        ),
        compiler_params=pltpu.CompilerParams(
            dimension_semantics=("parallel",),
            vmem_limit_bytes=vmem_limit,
        ),
    )(x, w1_mat, w2_mat, sb)

    return jnp.transpose(out_nhwc, (0, 3, 1, 2))                 # back to NCHW


def _reference(x_nchw, w1, s1, b1, w2, s2, b2):
    """Pure-JAX f32 reference (NHWC convs) for validation."""
    x = jnp.transpose(x_nchw, (0, 2, 3, 1))
    dn = ('NHWC', 'HWIO', 'NHWC')
    hp = jax.lax.Precision.HIGHEST
    y = jax.lax.conv_general_dilated(x, w1, (1, 1), 'SAME',
                                     dimension_numbers=dn, precision=hp)
    y = jnp.maximum(y * s1 + b1, 0.0)
    y = jax.lax.conv_general_dilated(y, w2, (1, 1), 'SAME',
                                     dimension_numbers=dn, precision=hp)
    y = y * s2 + b2
    y = jnp.maximum(y + x, 0.0)
    return jnp.transpose(y, (0, 3, 1, 2))


if __name__ == "__main__":
    key = jax.random.PRNGKey(0)
    kx, kw1, kw2, kg1, kb1, km1, kv1, kg2, kb2, km2, kv2 = jax.random.split(key, 11)

    N, C, H, W = 2, 4, 16, 16          # inplanes == planes == 4 (identity shortcut)
    eps = 1e-5

    x = jax.random.normal(kx, (N, C, H, W), jnp.float32)

    # conv weights (HWIO); equivalent to torch (Cout, Cin, 3, 3) re-laid-out.
    w1 = jax.random.normal(kw1, (3, 3, C, C), jnp.float32) * 0.1
    w2 = jax.random.normal(kw2, (3, 3, C, C), jnp.float32) * 0.1

    # BatchNorm (eval mode) params, folded to per-channel scale/bias.
    gamma1 = jax.random.uniform(kg1, (C,), jnp.float32, 0.5, 1.5)
    beta1 = jax.random.normal(kb1, (C,), jnp.float32) * 0.1
    mean1 = jax.random.normal(km1, (C,), jnp.float32) * 0.1
    var1 = jax.random.uniform(kv1, (C,), jnp.float32, 0.5, 1.5)
    gamma2 = jax.random.uniform(kg2, (C,), jnp.float32, 0.5, 1.5)
    beta2 = jax.random.normal(kb2, (C,), jnp.float32) * 0.1
    mean2 = jax.random.normal(km2, (C,), jnp.float32) * 0.1
    var2 = jax.random.uniform(kv2, (C,), jnp.float32, 0.5, 1.5)

    s1 = gamma1 / jnp.sqrt(var1 + eps)
    b1 = beta1 - mean1 * s1
    s2 = gamma2 / jnp.sqrt(var2 + eps)
    b2 = beta2 - mean2 * s2

    out = jax.block_until_ready(basic_block(x, w1, s1, b1, w2, s2, b2))
    ref = jax.block_until_ready(_reference(x, w1, s1, b1, w2, s2, b2))

    # bf16 MXU operands (f32 accumulation) vs. an f32 reference -> loosened
    # per-block tolerance.  TODO(synk): validate end-to-end for stacked blocks.
    np.testing.assert_allclose(np.asarray(out), np.asarray(ref), rtol=5e-2, atol=5e-2)

    print("KERNEL_OK")
</pallas_src>

<mosaic_0001>
module attributes {stable_mosaic.version = 11 : i64} {
  func.func @basic_block_kernel(%arg0: i32, %arg1: memref<2x16x16x4xf32, #tpu.memory_space<vmem>>, %arg2: memref<36x4xbf16, #tpu.memory_space<vmem>>, %arg3: memref<36x4xbf16, #tpu.memory_space<vmem>>, %arg4: memref<4x4xf32, #tpu.memory_space<vmem>>, %arg5: memref<2x16x16x4xf32, #tpu.memory_space<vmem>>, %arg6: memref<2x18x18x4xbf16, #tpu.memory_space<vmem>>, %arg7: memref<2x18x18x4xbf16, #tpu.memory_space<vmem>>) attributes {dimension_semantics = [#tpu.dimension_semantics<parallel>], iteration_bounds = array<i64: 1>, scalar_prefetch = 0 : i64, scratch_operands = 2 : i64, tpu.core_type = #tpu.core_type<tc>, window_params = [{transform_indices = @transform_0, window_bounds = array<i64: 2, 16, 16, 4>}, {pipeline_mode = #tpu.pipeline_mode<synchronous>, transform_indices = @transform_1, window_bounds = array<i64: 36, 4>}, {pipeline_mode = #tpu.pipeline_mode<synchronous>, transform_indices = @transform_2, window_bounds = array<i64: 36, 4>}, {pipeline_mode = #tpu.pipeline_mode<synchronous>, transform_indices = @transform_3, window_bounds = array<i64: 4, 4>}, {transform_indices = @transform_4, window_bounds = array<i64: 2, 16, 16, 4>}]} {
    %c0 = arith.constant 0 : index
    %c0_0 = arith.constant 0 : index
    %0 = vector.load %arg4[%c0, %c0_0] : memref<4x4xf32, #tpu.memory_space<vmem>>, vector<1x4xf32>
    %c1 = arith.constant 1 : index
    %c0_1 = arith.constant 0 : index
    %1 = vector.load %arg4[%c1, %c0_1] : memref<4x4xf32, #tpu.memory_space<vmem>>, vector<1x4xf32>
    %c2 = arith.constant 2 : index
    %c0_2 = arith.constant 0 : index
    %2 = vector.load %arg4[%c2, %c0_2] : memref<4x4xf32, #tpu.memory_space<vmem>>, vector<1x4xf32>
    %c3 = arith.constant 3 : index
    %c0_3 = arith.constant 0 : index
    %3 = vector.load %arg4[%c3, %c0_3] : memref<4x4xf32, #tpu.memory_space<vmem>>, vector<1x4xf32>
    %c0_4 = arith.constant 0 : index
    %c0_5 = arith.constant 0 : index
    %c0_6 = arith.constant 0 : index
    %c0_7 = arith.constant 0 : index
    %4 = vector.load %arg1[%c0_4, %c0_5, %c0_6, %c0_7] : memref<2x16x16x4xf32, #tpu.memory_space<vmem>>, vector<2x16x16x4xf32>
    %5 = arith.truncf %4 : vector<2x16x16x4xf32> to vector<2x16x16x4xbf16>
    %cst = arith.constant 0.000000e+00 : bf16
    %6 = vector.broadcast %cst : bf16 to vector<2x1x18x4xbf16>
    %cst_8 = arith.constant 0.000000e+00 : bf16
    %7 = vector.broadcast %cst_8 : bf16 to vector<2x18x1x4xbf16>
    %c0_9 = arith.constant 0 : index
    %c0_10 = arith.constant 0 : index
    %c0_11 = arith.constant 0 : index
    %c0_12 = arith.constant 0 : index
    %8 = vector.load %arg6[%c0_9, %c0_10, %c0_11, %c0_12] : memref<2x18x18x4xbf16, #tpu.memory_space<vmem>>, vector<2x1x18x4xbf16>
    tpu.vector_store %arg6[%c0_9, %c0_10, %c0_11, %c0_12], %6 {strides = array<i32>} : memref<2x18x18x4xbf16, #tpu.memory_space<vmem>>, vector<2x1x18x4xbf16>,
    %c0_13 = arith.constant 0 : index
    %c17 = arith.constant 17 : index
    %c0_14 = arith.constant 0 : index
    %c0_15 = arith.constant 0 : index
    %9 = vector.load %arg6[%c0_13, %c17, %c0_14, %c0_15] : memref<2x18x18x4xbf16, #tpu.memory_space<vmem>>, vector<2x1x18x4xbf16>
    tpu.vector_store %arg6[%c0_13, %c17, %c0_14, %c0_15], %6 {strides = array<i32>} : memref<2x18x18x4xbf16, #tpu.memory_space<vmem>>, vector<2x1x18x4xbf16>,
    %c0_16 = arith.constant 0 : index
    %c0_17 = arith.constant 0 : index
    %c0_18 = arith.constant 0 : index
    %c0_19 = arith.constant 0 : index
    %10 = vector.load %arg6[%c0_16, %c0_17, %c0_18, %c0_19] : memref<2x18x18x4xbf16, #tpu.memory_space<vmem>>, vector<2x18x1x4xbf16>
    tpu.vector_store %arg6[%c0_16, %c0_17, %c0_18, %c0_19], %7 {strides = array<i32>} : memref<2x18x18x4xbf16, #tpu.memory_space<vmem>>, vector<2x18x1x4xbf16>,
    %c0_20 = arith.constant 0 : index
    %c0_21 = arith.constant 0 : index
    %c17_22 = arith.constant 17 : index
    %c0_23 = arith.constant 0 : index
    %11 = vector.load %arg6[%c0_20, %c0_21, %c17_22, %c0_23] : memref<2x18x18x4xbf16, #tpu.memory_space<vmem>>, vector<2x18x1x4xbf16>
    tpu.vector_store %arg6[%c0_20, %c0_21, %c17_22, %c0_23], %7 {strides = array<i32>} : memref<2x18x18x4xbf16, #tpu.memory_space<vmem>>, vector<2x18x1x4xbf16>,
    %c0_24 = arith.constant 0 : index
    %c1_25 = arith.constant 1 : index
    %c1_26 = arith.constant 1 : index
    %c0_27 = arith.constant 0 : index
    %12 = vector.load %arg6[%c0_24, %c1_25, %c1_26, %c0_27] : memref<2x18x18x4xbf16, #tpu.memory_space<vmem>>, vector<2x16x16x4xbf16>
    tpu.vector_store %arg6[%c0_24, %c1_25, %c1_26, %c0_27], %5 {strides = array<i32>} : memref<2x18x18x4xbf16, #tpu.memory_space<vmem>>, vector<2x16x16x4xbf16>,
    %c0_28 = arith.constant 0 : index
    %c0_29 = arith.constant 0 : index
    %c0_30 = arith.constant 0 : index
    %c0_31 = arith.constant 0 : index
    %13 = vector.load %arg6[%c0_28, %c0_29, %c0_30, %c0_31] : memref<2x18x18x4xbf16, #tpu.memory_space<vmem>>, vector<2x18x18x4xbf16>
    %c0_32 = arith.constant 0 : index
    %c0_33 = arith.constant 0 : index
    %14 = vector.load %arg2[%c0_32, %c0_33] : memref<36x4xbf16, #tpu.memory_space<vmem>>, vector<36x4xbf16>
    %15 = vector.extract_strided_slice %13 {offsets = [0, 0, 0, 0], sizes = [2, 16, 16, 4], strides = [1, 1, 1, 1]} : vector<2x18x18x4xbf16> to vector<2x16x16x4xbf16>
    %16 = vector.extract_strided_slice %13 {offsets = [0, 0, 1, 0], sizes = [2, 16, 16, 4], strides = [1, 1, 1, 1]} : vector<2x18x18x4xbf16> to vector<2x16x16x4xbf16>
    %17 = vector.extract_strided_slice %13 {offsets = [0, 0, 2, 0], sizes = [2, 16, 16, 4], strides = [1, 1, 1, 1]} : vector<2x18x18x4xbf16> to vector<2x16x16x4xbf16>
    %18 = vector.extract_strided_slice %13 {offsets = [0, 1, 0, 0], sizes = [2, 16, 16, 4], strides = [1, 1, 1, 1]} : vector<2x18x18x4xbf16> to vector<2x16x16x4xbf16>
    %19 = vector.extract_strided_slice %13 {offsets = [0, 1, 1, 0], sizes = [2, 16, 16, 4], strides = [1, 1, 1, 1]} : vector<2x18x18x4xbf16> to vector<2x16x16x4xbf16>
    %20 = vector.extract_strided_slice %13 {offsets = [0, 1, 2, 0], sizes = [2, 16, 16, 4], strides = [1, 1, 1, 1]} : vector<2x18x18x4xbf16> to vector<2x16x16x4xbf16>
    %21 = vector.extract_strided_slice %13 {offsets = [0, 2, 0, 0], sizes = [2, 16, 16, 4], strides = [1, 1, 1, 1]} : vector<2x18x18x4xbf16> to vector<2x16x16x4xbf16>
    %22 = vector.extract_strided_slice %13 {offsets = [0, 2, 1, 0], sizes = [2, 16, 16, 4], strides = [1, 1, 1, 1]} : vector<2x18x18x4xbf16> to vector<2x16x16x4xbf16>
    %23 = vector.extract_strided_slice %13 {offsets = [0, 2, 2, 0], sizes = [2, 16, 16, 4], strides = [1, 1, 1, 1]} : vector<2x18x18x4xbf16> to vector<2x16x16x4xbf16>
    %24 = tpu.concatenate %15, %16, %17, %18, %19, %20, %21, %22, %23 in 3 : vector<2x16x16x4xbf16>, vector<2x16x16x4xbf16>, vector<2x16x16x4xbf16>, vector<2x16x16x4xbf16>, vector<2x16x16x4xbf16>, vector<2x16x16x4xbf16>, vector<2x16x16x4xbf16>, vector<2x16x16x4xbf16>, vector<2x16x16x4xbf16> -> vector<2x16x16x36xbf16>
    %25 = vector.shape_cast %24 : vector<2x16x16x36xbf16> to vector<512x36xbf16>
    %cst_34 = arith.constant dense<0.000000e+00> : vector<512x4xf32>
    %26 = tpu.matmul %25, %14, %cst_34 {dimension_numbers = #tpu.dot_dimension_numbers<[1], [0], [0], [1], [0, 0, 1, 1], [], []>} : vector<512x36xbf16>, vector<36x4xbf16>, vector<512x4xf32> -> vector<512x4xf32>
    %27 = vector.broadcast %0 : vector<1x4xf32> to vector<512x4xf32>
    %28 = arith.mulf %26, %27 : vector<512x4xf32>
    %29 = vector.broadcast %1 : vector<1x4xf32> to vector<512x4xf32>
    %30 = arith.addf %28, %29 : vector<512x4xf32>
    %cst_35 = arith.constant 0.000000e+00 : f32
    %31 = vector.broadcast %cst_35 : f32 to vector<512x4xf32>
    %32 = arith.maximumf %30, %31 : vector<512x4xf32>
    %33 = arith.truncf %32 : vector<512x4xf32> to vector<512x4xbf16>
    %34 = vector.shape_cast %33 : vector<512x4xbf16> to vector<2x16x16x4xbf16>
    %cst_36 = arith.constant 0.000000e+00 : bf16
    %35 = vector.broadcast %cst_36 : bf16 to vector<2x1x18x4xbf16>
    %cst_37 = arith.constant 0.000000e+00 : bf16
    %36 = vector.broadcast %cst_37 : bf16 to vector<2x18x1x4xbf16>
    %c0_38 = arith.constant 0 : index
    %c0_39 = arith.constant 0 : index
    %c0_40 = arith.constant 0 : index
    %c0_41 = arith.constant 0 : index
    %37 = vector.load %arg7[%c0_38, %c0_39, %c0_40, %c0_41] : memref<2x18x18x4xbf16, #tpu.memory_space<vmem>>, vector<2x1x18x4xbf16>
    tpu.vector_store %arg7[%c0_38, %c0_39, %c0_40, %c0_41], %35 {strides = array<i32>} : memref<2x18x18x4xbf16, #tpu.memory_space<vmem>>, vector<2x1x18x4xbf16>,
    %c0_42 = arith.constant 0 : index
    %c17_43 = arith.constant 17 : index
    %c0_44 = arith.constant 0 : index
    %c0_45 = arith.constant 0 : index
    %38 = vector.load %arg7[%c0_42, %c17_43, %c0_44, %c0_45] : memref<2x18x18x4xbf16, #tpu.memory_space<vmem>>, vector<2x1x18x4xbf16>
    tpu.vector_store %arg7[%c0_42, %c17_43, %c0_44, %c0_45], %35 {strides = array<i32>} : memref<2x18x18x4xbf16, #tpu.memory_space<vmem>>, vector<2x1x18x4xbf16>,
    %c0_46 = arith.constant 0 : index
    %c0_47 = arith.constant 0 : index
    %c0_48 = arith.constant 0 : index
    %c0_49 = arith.constant 0 : index
    %39 = vector.load %arg7[%c0_46, %c0_47, %c0_48, %c0_49] : memref<2x18x18x4xbf16, #tpu.memory_space<vmem>>, vector<2x18x1x4xbf16>
    tpu.vector_store %arg7[%c0_46, %c0_47, %c0_48, %c0_49], %36 {strides = array<i32>} : memref<2x18x18x4xbf16, #tpu.memory_space<vmem>>, vector<2x18x1x4xbf16>,
    %c0_50 = arith.constant 0 : index
    %c0_51 = arith.constant 0 : index
    %c17_52 = arith.constant 17 : index
    %c0_53 = arith.constant 0 : index
    %40 = vector.load %arg7[%c0_50, %c0_51, %c17_52, %c0_53] : memref<2x18x18x4xbf16, #tpu.memory_space<vmem>>, vector<2x18x1x4xbf16>
    tpu.vector_store %arg7[%c0_50, %c0_51, %c17_52, %c0_53], %36 {strides = array<i32>} : memref<2x18x18x4xbf16, #tpu.memory_space<vmem>>, vector<2x18x1x4xbf16>,
    %c0_54 = arith.constant 0 : index
    %c1_55 = arith.constant 1 : index
    %c1_56 = arith.constant 1 : index
    %c0_57 = arith.constant 0 : index
    %41 = vector.load %arg7[%c0_54, %c1_55, %c1_56, %c0_57] : memref<2x18x18x4xbf16, #tpu.memory_space<vmem>>, vector<2x16x16x4xbf16>
    tpu.vector_store %arg7[%c0_54, %c1_55, %c1_56, %c0_57], %34 {strides = array<i32>} : memref<2x18x18x4xbf16, #tpu.memory_space<vmem>>, vector<2x16x16x4xbf16>,
    %c0_58 = arith.constant 0 : index
    %c0_59 = arith.constant 0 : index
    %c0_60 = arith.constant 0 : index
    %c0_61 = arith.constant 0 : index
    %42 = vector.load %arg7[%c0_58, %c0_59, %c0_60, %c0_61] : memref<2x18x18x4xbf16, #tpu.memory_space<vmem>>, vector<2x18x18x4xbf16>
    %c0_62 = arith.constant 0 : index
    %c0_63 = arith.constant 0 : index
    %43 = vector.load %arg3[%c0_62, %c0_63] : memref<36x4xbf16, #tpu.memory_space<vmem>>, vector<36x4xbf16>
    %44 = vector.extract_strided_slice %42 {offsets = [0, 0, 0, 0], sizes = [2, 16, 16, 4], strides = [1, 1, 1, 1]} : vector<2x18x18x4xbf16> to vector<2x16x16x4xbf16>
    %45 = vector.extract_strided_slice %42 {offsets = [0, 0, 1, 0], sizes = [2, 16, 16, 4], strides = [1, 1, 1, 1]} : vector<2x18x18x4xbf16> to vector<2x16x16x4xbf16>
    %46 = vector.extract_strided_slice %42 {offsets = [0, 0, 2, 0], sizes = [2, 16, 16, 4], strides = [1, 1, 1, 1]} : vector<2x18x18x4xbf16> to vector<2x16x16x4xbf16>
    %47 = vector.extract_strided_slice %42 {offsets = [0, 1, 0, 0], sizes = [2, 16, 16, 4], strides = [1, 1, 1, 1]} : vector<2x18x18x4xbf16> to vector<2x16x16x4xbf16>
    %48 = vector.extract_strided_slice %42 {offsets = [0, 1, 1, 0], sizes = [2, 16, 16, 4], strides = [1, 1, 1, 1]} : vector<2x18x18x4xbf16> to vector<2x16x16x4xbf16>
    %49 = vector.extract_strided_slice %42 {offsets = [0, 1, 2, 0], sizes = [2, 16, 16, 4], strides = [1, 1, 1, 1]} : vector<2x18x18x4xbf16> to vector<2x16x16x4xbf16>
    %50 = vector.extract_strided_slice %42 {offsets = [0, 2, 0, 0], sizes = [2, 16, 16, 4], strides = [1, 1, 1, 1]} : vector<2x18x18x4xbf16> to vector<2x16x16x4xbf16>
    %51 = vector.extract_strided_slice %42 {offsets = [0, 2, 1, 0], sizes = [2, 16, 16, 4], strides = [1, 1, 1, 1]} : vector<2x18x18x4xbf16> to vector<2x16x16x4xbf16>
    %52 = vector.extract_strided_slice %42 {offsets = [0, 2, 2, 0], sizes = [2, 16, 16, 4], strides = [1, 1, 1, 1]} : vector<2x18x18x4xbf16> to vector<2x16x16x4xbf16>
    %53 = tpu.concatenate %44, %45, %46, %47, %48, %49, %50, %51, %52 in 3 : vector<2x16x16x4xbf16>, vector<2x16x16x4xbf16>, vector<2x16x16x4xbf16>, vector<2x16x16x4xbf16>, vector<2x16x16x4xbf16>, vector<2x16x16x4xbf16>, vector<2x16x16x4xbf16>, vector<2x16x16x4xbf16>, vector<2x16x16x4xbf16> -> vector<2x16x16x36xbf16>
    %54 = vector.shape_cast %53 : vector<2x16x16x36xbf16> to vector<512x36xbf16>
    %cst_64 = arith.constant dense<0.000000e+00> : vector<512x4xf32>
    %55 = tpu.matmul %54, %43, %cst_64 {dimension_numbers = #tpu.dot_dimension_numbers<[1], [0], [0], [1], [0, 0, 1, 1], [], []>} : vector<512x36xbf16>, vector<36x4xbf16>, vector<512x4xf32> -> vector<512x4xf32>
    %56 = vector.broadcast %2 : vector<1x4xf32> to vector<512x4xf32>
    %57 = arith.mulf %55, %56 : vector<512x4xf32>
    %58 = vector.broadcast %3 : vector<1x4xf32> to vector<512x4xf32>
    %59 = arith.addf %57, %58 : vector<512x4xf32>
    %60 = vector.shape_cast %4 : vector<2x16x16x4xf32> to vector<512x4xf32>
    %61 = arith.addf %59, %60 : vector<512x4xf32>
    %cst_65 = arith.constant 0.000000e+00 : f32
    %62 = vector.broadcast %cst_65 : f32 to vector<512x4xf32>
    %63 = arith.maximumf %61, %62 : vector<512x4xf32>
    %64 = vector.shape_cast %63 : vector<512x4xf32> to vector<2x16x16x4xf32>
    %c0_66 = arith.constant 0 : index
    %c0_67 = arith.constant 0 : index
    %c0_68 = arith.constant 0 : index
    %c0_69 = arith.constant 0 : index
    %65 = vector.load %arg5[%c0_66, %c0_67, %c0_68, %c0_69] : memref<2x16x16x4xf32, #tpu.memory_space<vmem>>, vector<2x16x16x4xf32>
    tpu.vector_store %arg5[%c0_66, %c0_67, %c0_68, %c0_69], %64 {strides = array<i32>} : memref<2x16x16x4xf32, #tpu.memory_space<vmem>>, vector<2x16x16x4xf32>,
    return
  }
  func.func @transform_0(%arg0: i32) -> (i32, i32, i32, i32) {
    %c0_i32 = arith.constant 0 : i32
    %c0_i32_0 = arith.constant 0 : i32
    %c0_i32_1 = arith.constant 0 : i32
    %c0_i32_2 = arith.constant 0 : i32
    return %arg0, %c0_i32, %c0_i32_0, %c0_i32_1 : i32, i32, i32, i32
  }
  func.func @transform_1(%arg0: i32) -> (i32, i32) {
    %c0_i32 = arith.constant 0 : i32
    %c0_i32_0 = arith.constant 0 : i32
    %c0_i32_1 = arith.constant 0 : i32
    return %c0_i32, %c0_i32_0 : i32, i32
  }
  func.func @transform_2(%arg0: i32) -> (i32, i32) {
    %c0_i32 = arith.constant 0 : i32
    %c0_i32_0 = arith.constant 0 : i32
    %c0_i32_1 = arith.constant 0 : i32
    return %c0_i32, %c0_i32_0 : i32, i32
  }
  func.func @transform_3(%arg0: i32) -> (i32, i32) {
    %c0_i32 = arith.constant 0 : i32
    %c0_i32_0 = arith.constant 0 : i32
    %c0_i32_1 = arith.constant 0 : i32
    return %c0_i32, %c0_i32_0 : i32, i32
  }
  func.func @transform_4(%arg0: i32) -> (i32, i32, i32, i32) {
    %c0_i32 = arith.constant 0 : i32
    %c0_i32_0 = arith.constant 0 : i32
    %c0_i32_1 = arith.constant 0 : i32
    %c0_i32_2 = arith.constant 0 : i32
    return %arg0, %c0_i32, %c0_i32_0, %c0_i32_1 : i32, i32, i32, i32
  }
}

</mosaic_0001>

<bundles_post_ra>
// kernel: tpu_custom_call.1
= control target key start
LH: loop header
LB: loop body
LE: loop exit
PB: predicated region body
PF: predicated region fallthrough
CT: control target
= control target key end

     0   :  { %vm118_vm0 = vcmask 27648   ;;  %vm121_vm1 = vcmask 24576   ;;  %vm134_vm2 = vsmask.f32 256  ;;  %v8949_v0 = vmov 0   ;;  %s8950_s13 = smov 4   ;;  %s13860_s0 = inlined_call_operand.vmem [shape: f32[2,16,16,4], index: 0, kind: input, shape index: {}]   ;;  %s13861_s1 = inlined_call_operand.vmem [shape: bf16[36,4], index: 1, kind: input, shape index: {}]   ;;  %s13862_s3 = inlined_call_operand.vmem [shape: f32[4,4], index: 3, kind: input, shape index: {}]   ;;  %s13863_s2 = inlined_call_operand.vmem [shape: bf16[36,4], index: 2, kind: input, shape index: {}]   ;;  %s13864_s4 = inlined_call_operand.vmem [shape: f32[2,16,16,4], index: 4, kind: output, shape index: {}]  }
   0x1   :  { %119 = vst.msk [vmem:[#allocation2] sm:$0xf] %vm118_vm0, %v8949_v0  ;;  %120 = vst.msk [vmem:[#allocation2 + $0x4] sm:$0xf] %vm118_vm0, %v8949_v0  ;;  %v14002_v1 = vmov 0  ;;  %v24_v2 = vld [vmem:[%s13860_s0 + $0x10] sm:$0xff] }
   0x2   :  { %122 = vst.msk [vmem:[#allocation2 + $0x8] sm:$0x1] %vm121_vm1, %v8949_v0  ;;  %vm8988_vm3 = vmand %vm121_vm1, %vm134_vm2  ;;  %vm244_vm4 = vsmask.f32 7938  ;;  %v25_v3 = vld [vmem:[%s13860_s0 + $0x18] sm:$0xff]  ;;  %v14005_v4 = vmov 0  ;;  %v8233_v7 = vpack.c.bf16 %v24_v2, %v24_v2 }
   0x3   :  { %v14003_v1 = vsel %vm8988_vm3, 4294967295, %v14002_v1  ;;  %123 = vst.msk [vmem:[#allocation2 + $0xd8] sm:$0xf] %vm118_vm0, %v8949_v0  ;;  %124 = vst.msk [vmem:[#allocation2 + $0xdc] sm:$0xf] %vm118_vm0, %v8949_v0  ;;  %v8234_v8 = vpack.c.bf16 %v25_v3, %v25_v3  ;;  %v22_v11 = vld [vmem:[%s13860_s0] sm:$0xff] }
   0x4   :  { %14004 = vst [vmem:[#allocation4_spill] sm:$0xff] %v14003_v1  ;;  %125 = vst.msk [vmem:[#allocation2 + $0xe0] sm:$0x1] %vm121_vm1, %v8949_v0  ;;  %v142_v5 = vld [vmem:[#allocation2 + $0x18] sm:$0x1]  ;;  %v23_v12 = vld [vmem:[%s13860_s0 + $0x8] sm:$0xff]  ;;  %v8231_v20 = vpack.c.bf16 %v22_v11, %v22_v11 }
   0x5   :  { %127 = vst.msk [vmem:[#allocation2 + $0xcc] sm:$0xf] %vm118_vm0, %v8949_v0  ;;  %128 = vst.msk [vmem:[#allocation2 + $0xd0] sm:$0xf] %vm118_vm0, %v8949_v0  ;;  %v252_v6 = vld [vmem:[#allocation2 + $0x20] sm:$0x1]  ;;  %v8232_v21 = vpack.c.bf16 %v23_v12, %v23_v12 }
   0x6   :  { %129 = vst.msk [vmem:[#allocation2 + $0xd4] sm:$0x1] %vm121_vm1, %v8949_v0  ;;  %132 = vst.msk [vmem:[#allocation2 + $0x1ac] sm:$0x1] %vm121_vm1, %v8949_v0  ;;  %v143_v9 = vsel %vm8988_vm3, 0, %v142_v5  ;;  %v534_v13 = vshrl.u32 %v8233_v7, 16 }
   0x7   :  { %130 = vst.msk [vmem:[#allocation2 + $0x1a4] sm:$0xf] %vm118_vm0, %v8949_v0  ;;  %131 = vst.msk [vmem:[#allocation2 + $0x1a8] sm:$0xf] %vm118_vm0, %v8949_v0  ;;  %vm514_vm6 = vsmask.f32 4368 }
   0x8   :  { %3963 = vst.msk [vmem:[#allocation3] sm:$0xf] %vm118_vm0, %v8949_v0  ;;  %3964 = vst.msk [vmem:[#allocation3 + $0x4] sm:$0xf] %vm118_vm0, %v8949_v0  ;;  %v537_v14 = vshll.u32 %v8233_v7, 16  ;;  %v542_v15 = vshrl.u32 %v8234_v8, 16 }
   0x9   :  { %3965 = vst.msk [vmem:[#allocation3 + $0x8] sm:$0x1] %vm121_vm1, %v8949_v0  ;;  %3968 = vst.msk [vmem:[#allocation3 + $0xe0] sm:$0x1] %vm121_vm1, %v8949_v0  ;;  %v545_v16 = vshll.u32 %v8234_v8, 16  ;;  %v26_v22 = vld [vmem:[%s13860_s0 + $0x20] sm:$0xff] }
   0xa   :  { %3966 = vst.msk [vmem:[#allocation3 + $0xd8] sm:$0xf] %vm118_vm0, %v8949_v0  ;;  %3967 = vst.msk [vmem:[#allocation3 + $0xdc] sm:$0xf] %vm118_vm0, %v8949_v0  ;;  %v139_v17 = vld [vmem:[#allocation2 + $0xc] sm:$0x1]  ;;  %v8235_v28 = vpack.c.bf16 %v26_v22, %v26_v22 }
   0xb   :  { %3970 = vst.msk [vmem:[#allocation3 + $0xcc] sm:$0xf] %vm118_vm0, %v8949_v0  ;;  %3971 = vst.msk [vmem:[#allocation3 + $0xd0] sm:$0xf] %vm118_vm0, %v8949_v0  ;;  %v140_v18 = vsel %vm8988_vm3, 0, %v139_v17  ;;  %v27_v23 = vld [vmem:[%s13860_s0 + $0x28] sm:$0xff] }
   0xc   :  { %3972 = vst.msk [vmem:[#allocation3 + $0xd4] sm:$0x1] %vm121_vm1, %v8949_v0  ;;  %3975 = vst.msk [vmem:[#allocation3 + $0x1ac] sm:$0x1] %vm121_vm1, %v8949_v0  ;;  %v249_v19 = vld [vmem:[#allocation2 + $0x14] sm:$0x1]  ;;  %v8236_v40 = vpack.c.bf16 %v27_v23, %v27_v23 }
   0xd   :  { %3973 = vst.msk [vmem:[#allocation3 + $0x1a4] sm:$0xf] %vm118_vm0, %v8949_v0  ;;  %3974 = vst.msk [vmem:[#allocation3 + $0x1a8] sm:$0xf] %vm118_vm0, %v8949_v0  ;;  %v536_v24 = vrot.slane %v534_v13, 7  ;;  %v544_v25 = vrot.slane %v542_v15, 7 }
   0xe   :  { %vm9021_vm5 = vmand %vm121_vm1, %vm244_vm4  ;;  %144 = vst [vmem:[#allocation2 + $0x18] sm:$0x1] %v143_v9  ;;  %v145_v27 = vld [vmem:[#allocation2 + $0x24] sm:$0x1]  ;;  %v28_v29 = vld [vmem:[%s13860_s0 + $0x30] sm:$0xff]  ;;  %v14008_v30 = vmov 0 }
   0xf   :  { %v14006_v4 = vsel %vm9021_vm5, 4294967295, %v14005_v4  ;;  %v253_v10 = vsel %vm9021_vm5, 0, %v252_v6  ;;  %141 = vst [vmem:[#allocation2 + $0xc] sm:$0x1] %v140_v18  ;;  %v250_v26 = vsel %vm9021_vm5, 0, %v249_v19  ;;  %vm9050_vm7 = vmor %vm134_vm2, %vm514_vm6  ;;  %v517_v31 = vshrl.u32 %v8231_v20, 16 }
  0x10   :  { %14007 = vst [vmem:[#allocation5_spill] sm:$0xff] %v14006_v4  ;;  %254 = vst [vmem:[#allocation2 + $0x20] sm:$0x1] %v253_v10  ;;  %v14009_v30 = vsel %vm9050_vm7, 4294967295, %v14008_v30  ;;  %v520_v32 = vshll.u32 %v8231_v20, 16  ;;  %v525_v33 = vshrl.u32 %v8232_v21, 16  ;;  %v539_v38 = vor.u32 %v537_v14, %v536_v24 }
  0x11   :  { %14010 = vst [vmem:[#allocation6_spill] sm:$0xff] %v14009_v30  ;;  %251 = vst [vmem:[#allocation2 + $0x14] sm:$0x1] %v250_v26  ;;  %v528_v34 = vshll.u32 %v8232_v21, 16  ;;  %v255_v35 = vld [vmem:[#allocation2 + $0x2c] sm:$0x1]  ;;  %v547_v39 = vor.u32 %v545_v16, %v544_v25  ;;  %v9054_v41 = vpack.c.bf16 %v28_v29, %v28_v29 }
  0x12   :  { %v136_v36 = vld [vmem:[#allocation2] sm:$0x1]  ;;  %v246_v37 = vld [vmem:[#allocation2 + $0x8] sm:$0x1]  ;;  %v540_v44 = vrot.slane %v536_v24, 4  ;;  %v549_v45 = vrot.slane %v544_v25, 4  ;;  %vm9062_vm8 = vmand %vm118_vm0, %vm244_vm4 }
  0x13   :  { %v137_v42 = vsel %vm8988_vm3, 0, %v136_v36  ;;  %v247_v43 = vsel %vm9021_vm5, 0, %v246_v37  ;;  %v14011_v46 = vmov 0  ;;  %v29_v47 = vld [vmem:[%s13860_s0 + $0x38] sm:$0xff]  ;;  %v519_v48 = vrot.slane %v517_v31, 7  ;;  %v30_v20 = vld [vmem:[%s13860_s0 + $0x40] sm:$0xff] }
  0x14   :  { %v14012_v46 = vsel %vm9062_vm8, 4294967295, %v14011_v46  ;;  %138 = vst [vmem:[#allocation2] sm:$0x1] %v137_v42  ;;  %248 = vst [vmem:[#allocation2 + $0x8] sm:$0x1] %v247_v43  ;;  %v527_v49 = vrot.slane %v525_v33, 7  ;;  %v548_v53 = vsel %vm9050_vm7, %v540_v44, %v547_v39  ;;  %v9075_v58 = vpack.c.bf16 %v29_v47, %v29_v47 }
  0x15   :  { %14013 = vst [vmem:[#allocation7_spill] sm:$0xff] %v14012_v46  ;;  %v146_v50 = vsel %vm8988_vm3, 0, %v145_v27  ;;  %v256_v51 = vsel %vm9021_vm5, 0, %v255_v35  ;;  %v148_v52 = vld [vmem:[#allocation2 + $0x30] sm:$0x1]  ;;  %v551_v56 = vshrl.u32 %v8235_v28, 16  ;;  %v522_v61 = vor.u32 %v520_v32, %v519_v48 }
  0x16   :  { %v1166_v54 = vld [vmem:[#allocation2 + $0x18] sm:$0xf]  ;;  %147 = vst [vmem:[#allocation2 + $0x24] sm:$0x1] %v146_v50  ;;  %257 = vst [vmem:[#allocation2 + $0x2c] sm:$0x1] %v256_v51  ;;  %v530_v0 = vor.u32 %v528_v34, %v527_v49  ;;  %v8239_v42 = vpack.c.bf16 %v30_v20, %v30_v20 }
  0x17   :  { %v1170_v55 = vld [vmem:[#allocation2 + $0x20] sm:$0x1]  ;;  %v554_v57 = vshll.u32 %v8235_v28, 16  ;;  %v1167_v59 = vsel %vm9062_vm8, %v539_v38, %v1166_v54  ;;  %1169 = vst.msk [vmem:[#allocation2 + $0x1c] sm:$0xf] %vm118_vm0, %v548_v53  ;;  %v523_v62 = vrot.slane %v519_v48, 4 }
  0x18   :  { %v1171_v60 = vsel %vm8988_vm3, %v549_v45, %v1170_v55  ;;  %v258_v63 = vld [vmem:[#allocation2 + $0x38] sm:$0x1]  ;;  %1168 = vst [vmem:[#allocation2 + $0x18] sm:$0xf] %v1167_v59  ;;  %v532_v2 = vrot.slane %v527_v49, 4  ;;  %v553_v5 = vrot.slane %v551_v56, 7 }
  0x19   :  { %1172 = vst [vmem:[#allocation2 + $0x20] sm:$0x1] %v1171_v60  ;;  %v1159_v3 = vld [vmem:[#allocation2 + $0xc] sm:$0xf]  ;;  %v559_v6 = vshrl.u32 %v8236_v40, 16  ;;  %v562_v9 = vshll.u32 %v8236_v40, 16  ;;  %v531_v12 = vsel %vm9050_vm7, %v523_v62, %v530_v0 }
  0x1a   :  { %vm1752_vm9 = vsmask.f32 7424  ;;  %v1160_v7 = vsel %vm9062_vm8, %v522_v61, %v1159_v3  ;;  %v1163_v8 = vld [vmem:[#allocation2 + $0x14] sm:$0x1]  ;;  %v149_v10 = vsel %vm8988_vm3, 0, %v148_v52  ;;  %v259_v11 = vsel %vm9021_vm5, 0, %v258_v63 }
  0x1b   :  { %1161 = vst [vmem:[#allocation2 + $0xc] sm:$0xf] %v1160_v7  ;;  %v1164_v13 = vsel %vm8988_vm3, %v532_v2, %v1163_v8  ;;  %v556_v14 = vor.u32 %v554_v57, %v553_v5  ;;  %v557_v15 = vrot.slane %v553_v5, 4  ;;  %150 = vst [vmem:[#allocation2 + $0x30] sm:$0x1] %v149_v10  ;;  %v561_v16 = vrot.slane %v559_v6, 7 }
  0x1c   :  { %260 = vst [vmem:[#allocation2 + $0x38] sm:$0x1] %v259_v11  ;;  %1162 = vst.msk [vmem:[#allocation2 + $0x10] sm:$0xf] %vm118_vm0, %v531_v12  ;;  %v568_v17 = vshrl.u32 %v9054_v41, 16  ;;  %v571_v18 = vshll.u32 %v9054_v41, 16 }
  0x1d   :  { %1165 = vst [vmem:[#allocation2 + $0x14] sm:$0x1] %v1164_v13  ;;  %v576_v19 = vshrl.u32 %v9075_v58, 16  ;;  %v8580_v21 = vld [vmem:[#allocation2] sm:$0xff]   ;;  %v579_v22 = vshll.u32 %v9075_v58, 16  ;;  %v564_v25 = vor.u32 %v562_v9, %v561_v16  ;;  %v566_v26 = vrot.slane %v561_v16, 4 }
  0x1e   :  { %v151_v23 = vld [vmem:[#allocation2 + $0x3c] sm:$0x1]  ;;  %v8581_v24 = vld [vmem:[#allocation2 + $0x8] ss:$0 sps:$4 sm:$0x11]   ;;  %v1754_v28 = vshrl.u32 %v8580_v21, 16 }
  0x1f   :  { %v1173_v27 = vld [vmem:[#allocation2 + $0x24] sm:$0xf]  ;;  %v1756_v29 = vshll.u32 %v8580_v21, 16  ;;  %v1177_v32 = vld [vmem:[#allocation2 + $0x2c] sm:$0x1]  ;;  %v1761_v34 = vshll.u32 %v8581_v24, 16  ;;  %v565_v36 = vsel %vm9050_vm7, %v557_v15, %v564_v25 }
  0x20   :  { %v1174_v31 = vsel %vm9062_vm8, %v556_v14, %v1173_v27  ;;  %v31_v33 = vld [vmem:[%s13860_s0 + $0x48] sm:$0xff]  ;;  %v8582_v35 = vld [vmem:[#allocation2 + $0x18] sm:$0xff]   ;;  %v1178_v37 = vsel %vm8988_vm3, %v566_v26, %v1177_v32  ;;  %v8583_v39 = vld [vmem:[#allocation2 + $0x20] ss:$0 sps:$4 sm:$0x11]   ;;  %v570_v40 = vrot.slane %v568_v17, 7 }
  0x21   :  { %1175 = vst [vmem:[#allocation2 + $0x24] sm:$0xf] %v1174_v31  ;;  %v1758_v38 = vrot.slane %v1756_v29, 1  ;;  %1176 = vst.msk [vmem:[#allocation2 + $0x28] sm:$0xf] %vm118_vm0, %v565_v36  ;;  %v578_v41 = vrot.slane %v576_v19, 7  ;;  %v9115_v59 = vpack.c.bf16 %v31_v33, %v31_v33 }
  0x22   :  { %1179 = vst [vmem:[#allocation2 + $0x2c] sm:$0x1] %v1178_v37  ;;  %v1763_v43 = vrot.slane %v1761_v34, 1  ;;  %v1778_v44 = vshrl.u32 %v8582_v35, 16  ;;  %v1780_v45 = vshll.u32 %v8582_v35, 16  ;;  %v152_v47 = vsel %vm8988_vm3, 0, %v151_v23 }
  0x23   :  { %v261_v48 = vld [vmem:[#allocation2 + $0x44] sm:$0x1]  ;;  %v1759_v49 = vor.u32 %v1758_v38, %v1754_v28  ;;  %v1785_v50 = vshll.u32 %v8583_v39, 16  ;;  %v8584_v51 = vld [vmem:[#allocation2 + $0xc] sm:$0xff]   ;;  %v573_v52 = vor.u32 %v571_v18, %v570_v40  ;;  %v581_v53 = vor.u32 %v579_v22, %v578_v41  ;;  %153 = vst [vmem:[#allocation2 + $0x3c] sm:$0x1] %v152_v47 }
  0x24   :  { %v32_v54 = vld [vmem:[%s13860_s0 + $0x50] sm:$0xff]  ;;  %v1782_v55 = vrot.slane %v1780_v45, 1  ;;  %v574_v57 = vrot.slane %v570_v40, 4  ;;  %v583_v58 = vrot.slane %v578_v41, 4  ;;  %v1766_v62 = vshrl.u32 %v8584_v51, 16  ;;  %v33_v2 = vld [vmem:[%s13860_s0 + $0x58] sm:$0xff] }
  0x25   :  { %v8585_v56 = vld [vmem:[#allocation2 + $0x14] ss:$0 sps:$4 sm:$0x11]   ;;  %v1764_v60 = vsel %vm1752_vm9, %v1759_v49, %v1763_v43  ;;  %v1787_v61 = vrot.slane %v1785_v50, 1  ;;  %v1768_v63 = vshll.u32 %v8584_v51, 16  ;;  %v262_v12 = vsel %vm9021_vm5, 0, %v261_v48 }
  0x26   :  { %v1180_v0 = vld [vmem:[#allocation2 + $0x30] sm:$0xf]  ;;  %2137 = vrot.lane.b32.xlu0 %v1764_v60, %s8950_s13  ;;  %v1783_v3 = vor.u32 %v1782_v55, %v1778_v44  ;;  %v1773_v5 = vshll.u32 %v8585_v56, 16  ;;  %v582_v6 = vsel %vm9050_vm7, %v574_v57, %v581_v53  ;;  %v1184_v8 = vld [vmem:[#allocation2 + $0x38] sm:$0x1]  ;;  %v585_v13 = vshrl.u32 %v8239_v42, 16 }
  0x27   :  { %v1181_v7 = vsel %vm9062_vm8, %v573_v52, %v1180_v0  ;;  %v154_v9 = vld [vmem:[#allocation2 + $0x48] sm:$0x1]  ;;  %v1770_v10 = vrot.slane %v1768_v63, 1  ;;  %1183 = vst.msk [vmem:[#allocation2 + $0x34] sm:$0xf] %vm118_vm0, %v582_v6  ;;  %v1185_v11 = vsel %vm8988_vm3, %v583_v58, %v1184_v8  ;;  %v8241_v18 = vpack.c.bf16 %v32_v54, %v32_v54  ;;  %v34_v35 = vld [vmem:[%s13860_s0 + $0x60] sm:$0xff] }
  0x28   :  { %1182 = vst [vmem:[#allocation2 + $0x30] sm:$0xf] %v1181_v7  ;;  %v264_v14 = vld [vmem:[#allocation2 + $0x50] sm:$0x1]  ;;  %v9132_v15 = vsel %vm1752_vm9, %v1783_v3, %v1787_v61  ;;  %v1775_v16 = vrot.slane %v1773_v5, 1  ;;  %v8586_v17 = vld [vmem:[#allocation2 + $0x24] sm:$0xff]   ;;  %v9134_v19 = vpack.c.bf16 %v33_v2, %v33_v2  ;;  %v8243_v53 = vpack.c.bf16 %v34_v35, %v34_v35 }
  0x29   :  { %14014 = vst [vmem:[#allocation8_spill] sm:$0xff] %v9132_v15  ;;  %1186 = vst [vmem:[#allocation2 + $0x38] sm:$0x1] %v1185_v11  ;;  %2141 = vrot.lane.b32.xlu1 %v9132_v15, %s8950_s13  ;;  %v1771_v20 = vor.u32 %v1770_v10, %v1766_v62  ;;  %v8587_v21 = vld [vmem:[#allocation2 + $0x2c] ss:$0 sps:$4 sm:$0x11]  }
  0x2a   :  { %263 = vst [vmem:[#allocation2 + $0x44] sm:$0x1] %v262_v12  ;;  %v587_v22 = vrot.slane %v585_v13, 7  ;;  %v588_v23 = vshll.u32 %v8239_v42, 16  ;;  %v593_v24 = vshrl.u32 %v9115_v59, 16  ;;  %v1790_v25 = vshrl.u32 %v8586_v17, 16 }
  0x2b   :  { %v1792_v26 = vshll.u32 %v8586_v17, 16  ;;  %v596_v27 = vshll.u32 %v9115_v59, 16  ;;  %v1187_v28 = vld [vmem:[#allocation2 + $0x3c] sm:$0xf]  ;;  %v155_v29 = vsel %vm8988_vm3, 0, %v154_v9  ;;  %v9143_v31 = vsel %vm1752_vm9, %v1771_v20, %v1775_v16  ;;  %v35_v36 = vld [vmem:[%s13860_s0 + $0x68] sm:$0xff] }
  0x2c   :  { %14015 = vst [vmem:[#allocation9_spill] sm:$0xff] %v9143_v31  ;;  %v1797_v32 = vshll.u32 %v8587_v21, 16  ;;  %v590_v33 = vor.u32 %v588_v23, %v587_v22  ;;  %v591_v34 = vrot.slane %v587_v22, 4  ;;  %156 = vst [vmem:[#allocation2 + $0x48] sm:$0x1] %v155_v29  ;;  %2139 = vrot.lane.b32.xlu0 %v9143_v31, %s8950_s13  ;;  %v595_v38 = vrot.slane %v593_v24, 7 }
  0x2d   :  { %v1794_v37 = vrot.slane %v1792_v26, 1  ;;  %v265_v39 = vsel %vm9021_vm5, 0, %v264_v14  ;;  %v602_v40 = vshrl.u32 %v8241_v18, 16  ;;  %v36_v41 = vld [vmem:[%s13860_s0 + $0x70] sm:$0xff]  ;;  %v37_v42 = vld [vmem:[%s13860_s0 + $0x78] sm:$0xff]  ;;  %v605_v45 = vshll.u32 %v8241_v18, 16 }
  0x2e   :  { %v1799_v43 = vrot.slane %v1797_v32, 1  ;;  %v1188_v44 = vsel %vm9062_vm8, %v590_v33, %v1187_v28  ;;  %266 = vst [vmem:[#allocation2 + $0x50] sm:$0x1] %v265_v39  ;;  %v610_v47 = vshrl.u32 %v9134_v19, 16  ;;  %v157_v48 = vld [vmem:[#allocation2 + $0x54] sm:$0x1]  ;;  %v598_v51 = vor.u32 %v596_v27, %v595_v38 }
  0x2f   :  { %v1795_v49 = vor.u32 %v1794_v37, %v1790_v25  ;;  %v8588_v50 = vld [vmem:[#allocation2 + $0x30] sm:$0xff]   ;;  %v600_v52 = vrot.slane %v595_v38, 4  ;;  %1189 = vst [vmem:[#allocation2 + $0x3c] sm:$0xf] %v1188_v44  ;;  %v604_v55 = vrot.slane %v602_v40, 7  ;;  %v8244_v56 = vpack.c.bf16 %v35_v36, %v35_v36  ;;  %v39_v35 = vld [vmem:[%s13860_s0 + $0x88] sm:$0xff] }
  0x30   :  { %v8589_v54 = vld [vmem:[#allocation2 + $0x38] ss:$0 sps:$4 sm:$0x11]   ;;  %v9164_v57 = vpack.c.bf16 %v36_v41, %v36_v41  ;;  %v9166_v58 = vpack.c.bf16 %v37_v42, %v37_v42  ;;  %v1802_v60 = vshrl.u32 %v8588_v50, 16  ;;  %v1804_v61 = vshll.u32 %v8588_v50, 16  ;;  %s8951_s9 = smov 8  }
  0x31   :  { %v9169_v59 = vsel %vm1752_vm9, %v1795_v49, %v1799_v43  ;;  %v599_v62 = vsel %vm9050_vm7, %v591_v34, %v598_v51  ;;  %v1191_v63 = vld [vmem:[#allocation2 + $0x44] sm:$0x1]  ;;  %v267_v0 = vld [vmem:[#allocation2 + $0x5c] sm:$0x1]  ;;  %v1809_v2 = vshll.u32 %v8589_v54, 16  ;;  %v607_v5 = vor.u32 %v605_v45, %v604_v55  ;;  %s8952_s19 = smov 12  }
  0x32   :  { %14016 = vst [vmem:[#allocation10_spill] sm:$0xff] %v9169_v59  ;;  %2143 = vrot.lane.b32.xlu1 %v9169_v59, %s8950_s13  ;;  %1190 = vst.msk [vmem:[#allocation2 + $0x40] sm:$0xf] %vm118_vm0, %v599_v62  ;;  %v1192_v3 = vsel %vm8988_vm3, %v600_v52, %v1191_v63  ;;  %v608_v6 = vrot.slane %v604_v55, 4  ;;  %v160_v7 = vld [vmem:[#allocation2 + $0x60] sm:$0x1]  ;;  %v9209_v51 = vpack.c.bf16 %v39_v35, %v39_v35 }
  0x33   :  { %v1806_v8 = vrot.slane %v1804_v61, 1  ;;  %1193 = vst [vmem:[#allocation2 + $0x44] sm:$0x1] %v1192_v3  ;;  %v612_v9 = vrot.slane %v610_v47, 7  ;;  %v613_v10 = vshll.u32 %v9134_v19, 16  ;;  %v158_v12 = vsel %vm8988_vm3, 0, %v157_v48 }
  0x34   :  { %v1194_v11 = vld [vmem:[#allocation2 + $0x48] sm:$0xf]  ;;  %v1811_v13 = vrot.slane %v1809_v2, 1  ;;  %159 = vst [vmem:[#allocation2 + $0x54] sm:$0x1] %v158_v12  ;;  %v268_v16 = vsel %vm9021_vm5, 0, %v267_v0 }
  0x35   :  { %v1195_v14 = vsel %vm9062_vm8, %v607_v5, %v1194_v11  ;;  %v619_v17 = vshrl.u32 %v8243_v53, 16  ;;  %v270_v18 = vld [vmem:[#allocation2 + $0x68] sm:$0x1]  ;;  %v1807_v20 = vor.u32 %v1806_v8, %v1802_v60  ;;  %v615_v21 = vor.u32 %v613_v10, %v612_v9  ;;  %v1198_v23 = vld [vmem:[#allocation2 + $0x50] sm:$0x1]  ;;  %v38_v34 = vld [vmem:[%s13860_s0 + $0x80] sm:$0xff] }
  0x36   :  { %v617_v22 = vrot.slane %v612_v9, 4  ;;  %1196 = vst [vmem:[#allocation2 + $0x48] sm:$0xf] %v1195_v14  ;;  %269 = vst [vmem:[#allocation2 + $0x5c] sm:$0x1] %v268_v16  ;;  %v622_v19 = vshll.u32 %v8243_v53, 16  ;;  %v8247_v50 = vpack.c.bf16 %v38_v34, %v38_v34 }
  0x37   :  { %v621_v24 = vrot.slane %v619_v17, 7  ;;  %v627_v25 = vshrl.u32 %v8244_v56, 16  ;;  %v630_v26 = vshll.u32 %v8244_v56, 16  ;;  %v161_v27 = vsel %vm8988_vm3, 0, %v160_v7  ;;  %v163_v40 = vld [vmem:[#allocation2 + $0x6c] sm:$0x1] }
  0x38   :  { %v9188_v28 = vsel %vm1752_vm9, %v1807_v20, %v1811_v13  ;;  %v616_v29 = vsel %vm9050_vm7, %v608_v6, %v615_v21  ;;  %v1199_v32 = vsel %vm8988_vm3, %v617_v22, %v1198_v23  ;;  %162 = vst [vmem:[#allocation2 + $0x60] sm:$0x1] %v161_v27  ;;  %v271_v33 = vsel %vm9021_vm5, 0, %v270_v18  ;;  %v273_v45 = vld [vmem:[#allocation2 + $0x74] sm:$0x1]  ;;  %v41_v27 = vld [vmem:[%s13860_s0 + $0x98] sm:$0xff] }
  0x39   :  { %14017 = vst [vmem:[#allocation11_spill] sm:$0xff] %v9188_v28  ;;  %2145 = vrot.lane.b32.xlu0 %v9188_v28, %s8950_s13  ;;  %1197 = vst.msk [vmem:[#allocation2 + $0x4c] sm:$0xf] %vm118_vm0, %v616_v29  ;;  %v624_v36 = vor.u32 %v622_v19, %v621_v24  ;;  %v625_v37 = vrot.slane %v621_v24, 4  ;;  %v629_v38 = vrot.slane %v627_v25, 7  ;;  %v636_v39 = vshrl.u32 %v9164_v57, 16 }
  0x3a   :  { %1200 = vst [vmem:[#allocation2 + $0x50] sm:$0x1] %v1199_v32  ;;  %272 = vst [vmem:[#allocation2 + $0x68] sm:$0x1] %v271_v33  ;;  %v8590_v41 = vld [vmem:[#allocation2 + $0x3c] sm:$0xff]   ;;  %v639_v42 = vshll.u32 %v9164_v57, 16 }
  0x3b   :  { %v644_v43 = vshrl.u32 %v9166_v58, 16  ;;  %v647_v44 = vshll.u32 %v9166_v58, 16  ;;  %v8591_v47 = vld [vmem:[#allocation2 + $0x44] ss:$0 sps:$4 sm:$0x11]   ;;  %v632_v48 = vor.u32 %v630_v26, %v629_v38  ;;  %v634_v49 = vrot.slane %v629_v38, 4 }
  0x3c   :  { %v40_v52 = vld [vmem:[%s13860_s0 + $0x90] sm:$0xff]  ;;  %v1814_v53 = vshrl.u32 %v8590_v41, 16  ;;  %v1816_v54 = vshll.u32 %v8590_v41, 16  ;;  %v638_v56 = vrot.slane %v636_v39, 7  ;;  %v1821_v60 = vshll.u32 %v8591_v47, 16  ;;  %v42_v35 = vld [vmem:[%s13860_s0 + $0xa0] sm:$0xff] }
  0x3d   :  { %v1201_v55 = vld [vmem:[#allocation2 + $0x54] sm:$0xf]  ;;  %v646_v57 = vrot.slane %v644_v43, 7  ;;  %v633_v58 = vsel %vm9050_vm7, %v625_v37, %v632_v48  ;;  %v1205_v62 = vld [vmem:[#allocation2 + $0x5c] sm:$0x1]  ;;  %v164_v63 = vsel %vm8988_vm3, 0, %v163_v40  ;;  %v8249_v18 = vpack.c.bf16 %v40_v52, %v40_v52 }
  0x3e   :  { %v1202_v61 = vsel %vm9062_vm8, %v624_v36, %v1201_v55  ;;  %v1818_v0 = vrot.slane %v1816_v54, 1  ;;  %1204 = vst.msk [vmem:[#allocation2 + $0x58] sm:$0xf] %vm118_vm0, %v633_v58  ;;  %v1206_v2 = vsel %vm8988_vm3, %v634_v49, %v1205_v62  ;;  %v641_v3 = vor.u32 %v639_v42, %v638_v56  ;;  %165 = vst [vmem:[#allocation2 + $0x6c] sm:$0x1] %v164_v63  ;;  %v43_v36 = vld [vmem:[%s13860_s0 + $0xa8] sm:$0xff] }
  0x3f   :  { %1203 = vst [vmem:[#allocation2 + $0x54] sm:$0xf] %v1202_v61  ;;  %v642_v5 = vrot.slane %v638_v56, 4  ;;  %v1823_v6 = vrot.slane %v1821_v60, 1  ;;  %1207 = vst [vmem:[#allocation2 + $0x5c] sm:$0x1] %v1206_v2  ;;  %v649_v7 = vor.u32 %v647_v44, %v646_v57  ;;  %v9252_v44 = vpack.c.bf16 %v41_v27, %v41_v27 }
  0x40   :  { %v651_v8 = vrot.slane %v646_v57, 4  ;;  %v1208_v9 = vld [vmem:[#allocation2 + $0x60] sm:$0xf]  ;;  %v274_v10 = vsel %vm9021_vm5, 0, %v273_v45  ;;  %v166_v11 = vld [vmem:[#allocation2 + $0x78] sm:$0x1]  ;;  %v1819_v13 = vor.u32 %v1818_v0, %v1814_v53  ;;  %v9262_v52 = vpack.c.bf16 %v43_v36, %v43_v36 }
  0x41   :  { %v276_v12 = vld [vmem:[#allocation2 + $0x80] sm:$0x1]  ;;  %v8592_v14 = vld [vmem:[#allocation2 + $0x48] sm:$0xff]   ;;  %v1209_v16 = vsel %vm9062_vm8, %v641_v3, %v1208_v9  ;;  %275 = vst [vmem:[#allocation2 + $0x74] sm:$0x1] %v274_v10  ;;  %v653_v17 = vshrl.u32 %v8247_v50, 16  ;;  %v650_v21 = vsel %vm9050_vm7, %v642_v5, %v649_v7 }
  0x42   :  { %v8593_v20 = vld [vmem:[#allocation2 + $0x50] ss:$0 sps:$4 sm:$0x11]   ;;  %1210 = vst [vmem:[#allocation2 + $0x60] sm:$0xf] %v1209_v16  ;;  %v656_v23 = vshll.u32 %v8247_v50, 16  ;;  %v9230_v19 = vsel %vm1752_vm9, %v1819_v13, %v1823_v6 }
  0x43   :  { %v1212_v22 = vld [vmem:[#allocation2 + $0x68] sm:$0x1]  ;;  %14018 = vst [vmem:[#allocation12_spill] sm:$0xff] %v9230_v19  ;;  %v1826_v24 = vshrl.u32 %v8592_v14, 16  ;;  %v1828_v25 = vshll.u32 %v8592_v14, 16  ;;  %2147 = vrot.lane.b32.xlu1 %v9230_v19, %s8950_s13  ;;  %v1833_v29 = vshll.u32 %v8593_v20, 16 }
  0x44   :  { %1211 = vst.msk [vmem:[#allocation2 + $0x64] sm:$0xf] %vm118_vm0, %v650_v21  ;;  %v1213_v26 = vsel %vm8988_vm3, %v651_v8, %v1212_v22  ;;  %v655_v32 = vrot.slane %v653_v17, 7  ;;  %v661_v33 = vshrl.u32 %v9209_v51, 16  ;;  %v664_v34 = vshll.u32 %v9209_v51, 16  ;;  %v44_v45 = vld [vmem:[%s13860_s0 + $0xb0] sm:$0xff] }
  0x45   :  { %1214 = vst [vmem:[#allocation2 + $0x68] sm:$0x1] %v1213_v26  ;;  %v1830_v37 = vrot.slane %v1828_v25, 1  ;;  %v167_v38 = vsel %vm8988_vm3, 0, %v166_v11  ;;  %v277_v39 = vsel %vm9021_vm5, 0, %v276_v12  ;;  %v670_v40 = vshrl.u32 %v8249_v18, 16 }
  0x46   :  { %v1835_v41 = vrot.slane %v1833_v29, 1  ;;  %v8594_v42 = vld [vmem:[#allocation2 + $0x54] sm:$0xff]   ;;  %v658_v43 = vor.u32 %v656_v23, %v655_v32  ;;  %168 = vst [vmem:[#allocation2 + $0x78] sm:$0x1] %v167_v38  ;;  %278 = vst [vmem:[#allocation2 + $0x80] sm:$0x1] %v277_v39  ;;  %v9260_v51 = vpack.c.bf16 %v42_v35, %v42_v35  ;;  %v9275_v11 = vpack.c.bf16 %v44_v45, %v44_v45 }
  0x47   :  { %v45_v47 = vld [vmem:[%s13860_s0 + $0xb8] sm:$0xff]  ;;  %v1831_v48 = vor.u32 %v1830_v37, %v1826_v24  ;;  %v659_v50 = vrot.slane %v655_v32, 4  ;;  %v1838_v53 = vshrl.u32 %v8594_v42, 16  ;;  %v1840_v54 = vshll.u32 %v8594_v42, 16  ;;  %v1215_v56 = vld [vmem:[#allocation2 + $0x6c] sm:$0xf] }
  0x48   :  { %v8595_v49 = vld [vmem:[#allocation2 + $0x5c] ss:$0 sps:$4 sm:$0x11]   ;;  %v663_v55 = vrot.slane %v661_v33, 7  ;;  %v9264_v57 = vrot.slane %v670_v40, 7  ;;  %v1216_v61 = vsel %vm9062_vm8, %v658_v43, %v1215_v56  ;;  %v673_v63 = vshll.u32 %v8249_v18, 16 }
  0x49   :  { %v9267_v60 = vsel %vm1752_vm9, %v1831_v48, %v1835_v41  ;;  %v1845_v58 = vshll.u32 %v8595_v49, 16  ;;  %v1219_v62 = vld [vmem:[#allocation2 + $0x74] sm:$0x1]  ;;  %v169_v0 = vld [vmem:[#allocation2 + $0x84] sm:$0x1]  ;;  %v1842_v2 = vrot.slane %v1840_v54, 1  ;;  %v9277_v12 = vpack.c.bf16 %v45_v47, %v45_v47 }
  0x4a   :  { %14019 = vst [vmem:[#allocation13_spill] sm:$0xff] %v9267_v60  ;;  %2149 = vrot.lane.b32.xlu0 %v9267_v60, %s8950_s13  ;;  %v666_v5 = vor.u32 %v664_v34, %v663_v55  ;;  %v668_v6 = vrot.slane %v663_v55, 4  ;;  %1217 = vst [vmem:[#allocation2 + $0x6c] sm:$0xf] %v1216_v61  ;;  %v676_v7 = vrot.slane %v9264_v57, 4  ;;  %v675_v10 = vor.u32 %v673_v63, %v9264_v57  ;;  %s8953_s20 = smov 16  }
  0x4b   :  { %v8596_v3 = vld [vmem:[#allocation2 + $0x60] sm:$0xff]   ;;  %v1847_v8 = vrot.slane %v1845_v58, 1  ;;  %v1843_v13 = vor.u32 %v1842_v2, %v1838_v53  ;;  %v279_v18 = vld [vmem:[#allocation2 + $0x8c] sm:$0x1]  ;;  %v678_v22 = vshrl.u32 %v9252_v44, 16  ;;  %v681_v23 = vshll.u32 %v9252_v44, 16 }
  0x4c   :  { %v8597_v9 = vld [vmem:[#allocation2 + $0x68] ss:$0 sps:$4 sm:$0x11]   ;;  %v1850_v14 = vshrl.u32 %v8596_v3, 16  ;;  %v1852_v16 = vshll.u32 %v8596_v3, 16  ;;  %v667_v17 = vsel %vm9050_vm7, %v659_v50, %v666_v5  ;;  %v1220_v21 = vsel %vm8988_vm3, %v668_v6, %v1219_v62  ;;  %s8954_s21 = smov 20  }
  0x4d   :  { %v1857_v20 = vshll.u32 %v8597_v9, 16  ;;  %1218 = vst.msk [vmem:[#allocation2 + $0x70] sm:$0xf] %vm118_vm0, %v667_v17  ;;  %v1222_v24 = vld [vmem:[#allocation2 + $0x78] sm:$0xf]  ;;  %v9287_v25 = vsel %vm1752_vm9, %v1843_v13, %v1847_v8  ;;  %v170_v29 = vsel %vm8988_vm3, 0, %v169_v0 }
  0x4e   :  { %14020 = vst [vmem:[#allocation14_spill] sm:$0xff] %v9287_v25  ;;  %v1854_v26 = vrot.slane %v1852_v16, 1  ;;  %1221 = vst [vmem:[#allocation2 + $0x74] sm:$0x1] %v1220_v21  ;;  %v1223_v27 = vsel %vm9062_vm8, %v675_v10, %v1222_v24  ;;  %v172_v32 = vld [vmem:[#allocation2 + $0x90] sm:$0x1]  ;;  %2151 = vrot.lane.b32.xlu1 %v9287_v25, %s8950_s13 }
  0x4f   :  { %v1859_v33 = vrot.slane %v1857_v20, 1  ;;  %v680_v34 = vrot.slane %v678_v22, 7  ;;  %1224 = vst [vmem:[#allocation2 + $0x78] sm:$0xf] %v1223_v27  ;;  %171 = vst [vmem:[#allocation2 + $0x84] sm:$0x1] %v170_v29 }
  0x50   :  { %v280_v35 = vsel %vm9021_vm5, 0, %v279_v18  ;;  %v687_v36 = vshrl.u32 %v9260_v51, 16  ;;  %v282_v37 = vld [vmem:[#allocation2 + $0x98] sm:$0x1]  ;;  %v1855_v38 = vor.u32 %v1854_v26, %v1850_v14  ;;  %v1226_v39 = vld [vmem:[#allocation2 + $0x80] sm:$0x1] }
  0x51   :  { %281 = vst [vmem:[#allocation2 + $0x8c] sm:$0x1] %v280_v35  ;;  %v690_v40 = vshll.u32 %v9260_v51, 16  ;;  %v695_v41 = vshrl.u32 %v9262_v52, 16  ;;  %v698_v42 = vshll.u32 %v9262_v52, 16  ;;  %v683_v43 = vor.u32 %v681_v23, %v680_v34  ;;  %v46_v52 = vld [vmem:[%s13860_s0 + $0xc0] sm:$0xff] }
  0x52   :  { %v685_v44 = vrot.slane %v680_v34, 4  ;;  %v689_v45 = vrot.slane %v687_v36, 7  ;;  %v173_v47 = vsel %vm8988_vm3, 0, %v172_v32  ;;  %v9304_v48 = vsel %vm1752_vm9, %v1855_v38, %v1859_v33  ;;  %v47_v53 = vld [vmem:[%s13860_s0 + $0xc8] sm:$0xff]  ;;  %v175_v58 = vld [vmem:[#allocation2 + $0x9c] sm:$0x1] }
  0x53   :  { %14021 = vst [vmem:[#allocation15_spill] sm:$0xff] %v9304_v48  ;;  %v697_v49 = vrot.slane %v695_v41, 7  ;;  %174 = vst [vmem:[#allocation2 + $0x90] sm:$0x1] %v173_v47  ;;  %v283_v50 = vsel %vm9021_vm5, 0, %v282_v37  ;;  %v704_v51 = vshrl.u32 %v9275_v11, 16  ;;  %2153 = vrot.lane.b32.xlu0 %v9304_v48, %s8950_s13  ;;  %v684_v54 = vsel %vm9050_vm7, %v676_v7, %v683_v43 }
  0x54   :  { %v1227_v55 = vsel %vm8988_vm3, %v685_v44, %v1226_v39  ;;  %v692_v56 = vor.u32 %v690_v40, %v689_v45  ;;  %v693_v57 = vrot.slane %v689_v45, 4  ;;  %284 = vst [vmem:[#allocation2 + $0x98] sm:$0x1] %v283_v50  ;;  %v8598_v61 = vld [vmem:[#allocation2 + $0x6c] sm:$0xff]   ;;  %1225 = vst.msk [vmem:[#allocation2 + $0x7c] sm:$0xf] %vm118_vm0, %v684_v54  ;;  %v8255_v7 = vpack.c.bf16 %v46_v52, %v46_v52 }
  0x55   :  { %1228 = vst [vmem:[#allocation2 + $0x80] sm:$0x1] %v1227_v55  ;;  %v700_v62 = vor.u32 %v698_v42, %v697_v49  ;;  %v702_v63 = vrot.slane %v697_v49, 4  ;;  %v706_v0 = vrot.slane %v704_v51, 7  ;;  %v707_v2 = vshll.u32 %v9275_v11, 16  ;;  %v48_v27 = vld [vmem:[%s13860_s0 + $0xd0] sm:$0xff] }
  0x56   :  { %v285_v3 = vld [vmem:[#allocation2 + $0xa4] sm:$0x1]  ;;  %v8599_v5 = vld [vmem:[#allocation2 + $0x74] ss:$0 sps:$4 sm:$0x11]   ;;  %v712_v6 = vshrl.u32 %v9277_v12, 16  ;;  %v9324_v8 = vpack.c.bf16 %v47_v53, %v47_v53  ;;  %v8257_v45 = vpack.c.bf16 %v48_v27, %v48_v27 }
  0x57   :  { %v1862_v9 = vshrl.u32 %v8598_v61, 16  ;;  %v1864_v10 = vshll.u32 %v8598_v61, 16  ;;  %v701_v13 = vsel %vm9050_vm7, %v693_v57, %v700_v62  ;;  %v1229_v14 = vld [vmem:[#allocation2 + $0x84] sm:$0xf]  ;;  %v709_v16 = vor.u32 %v707_v2, %v706_v0  ;;  %v178_v36 = vld [vmem:[#allocation2 + $0xa8] sm:$0x1] }
  0x58   :  { %v1869_v17 = vshll.u32 %v8599_v5, 16  ;;  %v1230_v18 = vsel %vm9062_vm8, %v692_v56, %v1229_v14  ;;  %1232 = vst.msk [vmem:[#allocation2 + $0x88] sm:$0xf] %vm118_vm0, %v701_v13  ;;  %v1233_v11 = vld [vmem:[#allocation2 + $0x8c] sm:$0x1]  ;;  %v710_v20 = vrot.slane %v706_v0, 4 }
  0x59   :  { %v714_v21 = vrot.slane %v712_v6, 7  ;;  %v1866_v22 = vrot.slane %v1864_v10, 1  ;;  %1231 = vst [vmem:[#allocation2 + $0x84] sm:$0xf] %v1230_v18  ;;  %v1234_v23 = vsel %vm8988_vm3, %v702_v63, %v1233_v11  ;;  %v715_v24 = vshll.u32 %v9277_v12, 16  ;;  %v49_v53 = vld [vmem:[%s13860_s0 + $0xd8] sm:$0xff] }
  0x5a   :  { %v176_v26 = vsel %vm8988_vm3, 0, %v175_v58  ;;  %v1871_v29 = vrot.slane %v1869_v17, 1  ;;  %1235 = vst [vmem:[#allocation2 + $0x8c] sm:$0x1] %v1234_v23  ;;  %v1236_v33 = vld [vmem:[#allocation2 + $0x90] sm:$0xf] }
  0x5b   :  { %v719_v32 = vrot.slane %v714_v21, 4  ;;  %177 = vst [vmem:[#allocation2 + $0x9c] sm:$0x1] %v176_v26  ;;  %v286_v34 = vsel %vm9021_vm5, 0, %v285_v3  ;;  %v721_v35 = vshrl.u32 %v8255_v7, 16  ;;  %v1867_v37 = vor.u32 %v1866_v22, %v1862_v9  ;;  %v8600_v42 = vld [vmem:[#allocation2 + $0x78] sm:$0xff]  }
  0x5c   :  { %v717_v38 = vor.u32 %v715_v24, %v714_v21  ;;  %v1237_v12 = vsel %vm9062_vm8, %v709_v16, %v1236_v33  ;;  %v1240_v39 = vld [vmem:[#allocation2 + $0x98] sm:$0x1]  ;;  %287 = vst [vmem:[#allocation2 + $0xa4] sm:$0x1] %v286_v34  ;;  %v724_v40 = vshll.u32 %v8255_v7, 16  ;;  %v729_v51 = vshrl.u32 %v9324_v8, 16 }
  0x5d   :  { %v288_v41 = vld [vmem:[#allocation2 + $0xb0] sm:$0x1]  ;;  %1238 = vst [vmem:[#allocation2 + $0x90] sm:$0xf] %v1237_v12  ;;  %v1241_v43 = vsel %vm8988_vm3, %v719_v32, %v1240_v39  ;;  %v723_v44 = vrot.slane %v721_v35, 7  ;;  %v9346_v47 = vsel %vm1752_vm9, %v1867_v37, %v1871_v29  ;;  %v732_v52 = vshll.u32 %v9324_v8, 16 }
  0x5e   :  { %14022 = vst [vmem:[#allocation16_spill] sm:$0xff] %v9346_v47  ;;  %v8601_v49 = vld [vmem:[#allocation2 + $0x80] ss:$0 sps:$4 sm:$0x11]   ;;  %v718_v50 = vsel %vm9050_vm7, %v710_v20, %v717_v38  ;;  %1242 = vst [vmem:[#allocation2 + $0x98] sm:$0x1] %v1241_v43  ;;  %2155 = vrot.lane.b32.xlu1 %v9346_v47, %s8950_s13  ;;  %v8258_v7 = vpack.c.bf16 %v49_v53, %v49_v53 }
  0x5f   :  { %v1874_v54 = vshrl.u32 %v8600_v42, 16  ;;  %v1876_v55 = vshll.u32 %v8600_v42, 16  ;;  %1239 = vst.msk [vmem:[#allocation2 + $0x94] sm:$0xf] %vm118_vm0, %v718_v50  ;;  %v726_v56 = vor.u32 %v724_v40, %v723_v44  ;;  %v727_v57 = vrot.slane %v723_v44, 4  ;;  %v50_v58 = vld [vmem:[%s13860_s0 + $0xe0] sm:$0xff] }
  0x60   :  { %v51_v61 = vld [vmem:[%s13860_s0 + $0xe8] sm:$0xff]  ;;  %v1881_v62 = vshll.u32 %v8601_v49, 16  ;;  %v731_v63 = vrot.slane %v729_v51, 7  ;;  %v179_v0 = vsel %vm8988_vm3, 0, %v178_v36  ;;  %v289_v2 = vsel %vm9021_vm5, 0, %v288_v41  ;;  %v54_v3 = vld [vmem:[%s13860_s0 + $0x100] sm:$0xff] }
  0x61   :  { %v1878_v5 = vrot.slane %v1876_v55, 1  ;;  %v8602_v6 = vld [vmem:[#allocation2 + $0x84] sm:$0xff]   ;;  %180 = vst [vmem:[#allocation2 + $0xa8] sm:$0x1] %v179_v0  ;;  %290 = vst [vmem:[#allocation2 + $0xb0] sm:$0x1] %v289_v2  ;;  %v9371_v17 = vpack.c.bf16 %v50_v58, %v50_v58  ;;  %v9373_v18 = vpack.c.bf16 %v51_v61, %v51_v61  ;;  %v9385_v38 = vpack.c.bf16 %v54_v3, %v54_v3 }
  0x62   :  { %v738_v8 = vshrl.u32 %v8257_v45, 16  ;;  %v741_v9 = vshll.u32 %v8257_v45, 16  ;;  %v1883_v10 = vrot.slane %v1881_v62, 1  ;;  %v8603_v13 = vld [vmem:[#allocation2 + $0x8c] ss:$0 sps:$4 sm:$0x11]   ;;  %v734_v14 = vor.u32 %v732_v52, %v731_v63 }
  0x63   :  { %v181_v16 = vld [vmem:[#allocation2 + $0xb4] sm:$0x1]  ;;  %v1879_v11 = vor.u32 %v1878_v5, %v1874_v54  ;;  %v1886_v20 = vshrl.u32 %v8602_v6, 16  ;;  %v1888_v21 = vshll.u32 %v8602_v6, 16  ;;  %v736_v22 = vrot.slane %v731_v63, 4  ;;  %v55_v6 = vld [vmem:[%s13860_s0 + $0x108] sm:$0xff] }
  0x64   :  { %v1243_v23 = vld [vmem:[#allocation2 + $0x9c] sm:$0xf]  ;;  %v1893_v26 = vshll.u32 %v8603_v13, 16  ;;  %v735_v27 = vsel %vm9050_vm7, %v727_v57, %v734_v14  ;;  %v1247_v32 = vld [vmem:[#allocation2 + $0xa4] sm:$0x1]  ;;  %v740_v33 = vrot.slane %v738_v8, 7 }
  0x65   :  { %v291_v24 = vld [vmem:[#allocation2 + $0xbc] sm:$0x1]  ;;  %v1244_v29 = vsel %vm9062_vm8, %v726_v56, %v1243_v23  ;;  %v9380_v34 = vsel %vm1752_vm9, %v1879_v11, %v1883_v10  ;;  %v1890_v35 = vrot.slane %v1888_v21, 1  ;;  %v8605_v36 = vld [vmem:[#allocation2 + $0x98] ss:$0 sps:$4 sm:$0x11]   ;;  %v1248_v37 = vsel %vm8988_vm3, %v736_v22, %v1247_v32 }
  0x66   :  { %14023 = vst [vmem:[#allocation17_spill] sm:$0xff] %v9380_v34  ;;  %1245 = vst [vmem:[#allocation2 + $0x9c] sm:$0xf] %v1244_v29  ;;  %2157 = vrot.lane.b32.xlu0 %v9380_v34, %s8950_s13  ;;  %v1895_v12 = vrot.slane %v1893_v26, 1  ;;  %v8604_v39 = vld [vmem:[#allocation2 + $0x90] sm:$0xff]   ;;  %v743_v40 = vor.u32 %v741_v9, %v740_v33  ;;  %v744_v41 = vrot.slane %v740_v33, 4 }
  0x67   :  { %1246 = vst.msk [vmem:[#allocation2 + $0xa0] sm:$0xf] %vm118_vm0, %v735_v27  ;;  %1249 = vst [vmem:[#allocation2 + $0xa4] sm:$0x1] %v1248_v37  ;;  %v746_v42 = vshrl.u32 %v8258_v7, 16  ;;  %v1891_v43 = vor.u32 %v1890_v35, %v1886_v20  ;;  %v1905_v44 = vshll.u32 %v8605_v36, 16 }
  0x68   :  { %v749_v45 = vshll.u32 %v8258_v7, 16  ;;  %v182_v49 = vsel %vm8988_vm3, 0, %v181_v16  ;;  %v190_v50 = vld [vmem:[#allocation2 + $0xd8] sm:$0x1]  ;;  %v1898_v51 = vshrl.u32 %v8604_v39, 16  ;;  %v1900_v52 = vshll.u32 %v8604_v39, 16 }
  0x69   :  { %v748_v53 = vrot.slane %v746_v42, 7  ;;  %v1250_v54 = vld [vmem:[#allocation2 + $0xa8] sm:$0xf]  ;;  %183 = vst [vmem:[#allocation2 + $0xb4] sm:$0x1] %v182_v49  ;;  %v292_v55 = vsel %vm9021_vm5, 0, %v291_v24  ;;  %v9394_v56 = vsel %vm1752_vm9, %v1891_v43, %v1895_v12  ;;  %v8264_v24 = vpack.c.bf16 %v55_v6, %v55_v6 }
  0x6a   :  { %14024 = vst [vmem:[#allocation18_spill] sm:$0xff] %v9394_v56  ;;  %v1907_v57 = vrot.slane %v1905_v44, 1  ;;  %v1251_v58 = vsel %vm9062_vm8, %v743_v40, %v1250_v54  ;;  %v1254_v61 = vld [vmem:[#allocation2 + $0xb0] sm:$0x1]  ;;  %293 = vst [vmem:[#allocation2 + $0xbc] sm:$0x1] %v292_v55  ;;  %2159 = vrot.lane.b32.xlu1 %v9394_v56, %s8950_s13 }
  0x6b   :  { %v755_v62 = vshrl.u32 %v9371_v17, 16  ;;  %v300_v63 = vld [vmem:[#allocation2 + $0xe0] sm:$0x1]  ;;  %v1902_v0 = vrot.slane %v1900_v52, 1  ;;  %v751_v2 = vor.u32 %v749_v45, %v748_v53  ;;  %v753_v3 = vrot.slane %v748_v53, 4  ;;  %v56_v45 = vld [vmem:[%s13860_s0 + $0x110] sm:$0xff] }
  0x6c   :  { %1252 = vst [vmem:[#allocation2 + $0xa8] sm:$0xf] %v1251_v58  ;;  %v758_v5 = vshll.u32 %v9371_v17, 16  ;;  %v193_v7 = vld [vmem:[#allocation2 + $0xe4] sm:$0x1]  ;;  %v763_v9 = vshrl.u32 %v9373_v18, 16 }
  0x6d   :  { %v757_v8 = vrot.slane %v755_v62, 7  ;;  %v766_v10 = vshll.u32 %v9373_v18, 16  ;;  %v191_v13 = vsel %vm8988_vm3, 0, %v190_v50  ;;  %v303_v14 = vld [vmem:[#allocation2 + $0xec] sm:$0x1]  ;;  %v1903_v16 = vor.u32 %v1902_v0, %v1898_v51  ;;  %v58_v62 = vld [vmem:[%s13860_s0 + $0x120] sm:$0xff] }
  0x6e   :  { %v8606_v11 = vld [vmem:[#allocation2 + $0x9c] sm:$0xff]   ;;  %v752_v20 = vsel %vm9050_vm7, %v744_v41, %v751_v2  ;;  %v1255_v17 = vsel %vm8988_vm3, %v753_v3, %v1254_v61  ;;  %192 = vst [vmem:[#allocation2 + $0xd8] sm:$0x1] %v191_v13  ;;  %v301_v21 = vsel %vm9021_vm5, 0, %v300_v63  ;;  %v765_v32 = vrot.slane %v763_v9, 7  ;;  %s8955_s28 = smov 24  }
  0x6f   :  { %v8607_v22 = vld [vmem:[#allocation2 + $0xa4] ss:$0 sps:$4 sm:$0x11]   ;;  %1253 = vst.msk [vmem:[#allocation2 + $0xac] sm:$0xf] %vm118_vm0, %v752_v20  ;;  %v760_v18 = vor.u32 %v758_v5, %v757_v8  ;;  %v761_v23 = vrot.slane %v757_v8, 4  ;;  %v9417_v26 = vsel %vm1752_vm9, %v1903_v16, %v1907_v57 }
  0x70   :  { %1256 = vst [vmem:[#allocation2 + $0xb0] sm:$0x1] %v1255_v17  ;;  %302 = vst [vmem:[#allocation2 + $0xe0] sm:$0x1] %v301_v21  ;;  %v1910_v27 = vshrl.u32 %v8606_v11, 16  ;;  %v1912_v29 = vshll.u32 %v8606_v11, 16  ;;  %2161 = vrot.lane.b32.xlu0 %v9417_v26, %s8950_s13  ;;  %v768_v41 = vor.u32 %v766_v10, %v765_v32 }
  0x71   :  { %14025 = vst [vmem:[#allocation19_spill] sm:$0xff] %v9417_v26  ;;  %v196_v33 = vld [vmem:[#allocation2 + $0xf0] sm:$0x1]  ;;  %v1917_v35 = vshll.u32 %v8607_v22, 16  ;;  %v1257_v36 = vld [vmem:[#allocation2 + $0xb4] sm:$0xf] }
  0x72   :  { %v194_v37 = vsel %vm8988_vm3, 0, %v193_v7  ;;  %v304_v12 = vsel %vm9021_vm5, 0, %v303_v14  ;;  %v789_v39 = vshrl.u32 %v9385_v38, 16  ;;  %v1914_v40 = vrot.slane %v1912_v29, 1  ;;  %v1261_v44 = vld [vmem:[#allocation2 + $0xbc] sm:$0x1] }
  0x73   :  { %v770_v42 = vrot.slane %v765_v32, 4  ;;  %v1258_v43 = vsel %vm9062_vm8, %v760_v18, %v1257_v36  ;;  %195 = vst [vmem:[#allocation2 + $0xe4] sm:$0x1] %v194_v37  ;;  %305 = vst [vmem:[#allocation2 + $0xec] sm:$0x1] %v304_v12  ;;  %v1919_v50 = vrot.slane %v1917_v35, 1  ;;  %v769_v55 = vsel %vm9050_vm7, %v761_v23, %v768_v41 }
  0x74   :  { %v306_v49 = vld [vmem:[#allocation2 + $0xf8] sm:$0x1]  ;;  %1259 = vst [vmem:[#allocation2 + $0xb4] sm:$0xf] %v1258_v43  ;;  %v791_v51 = vrot.slane %v789_v39, 7  ;;  %v792_v52 = vshll.u32 %v9385_v38, 16  ;;  %v1915_v54 = vor.u32 %v1914_v40, %v1910_v27  ;;  %v8265_v14 = vpack.c.bf16 %v56_v45, %v56_v45 }
  0x75   :  { %v797_v53 = vshrl.u32 %v8264_v24, 16  ;;  %v1262_v57 = vsel %vm8988_vm3, %v770_v42, %v1261_v44  ;;  %v800_v58 = vshll.u32 %v8264_v24, 16  ;;  %v57_v61 = vld [vmem:[%s13860_s0 + $0x118] sm:$0xff]  ;;  %v59_v38 = vld [vmem:[%s13860_s0 + $0x128] sm:$0xff]  ;;  %1260 = vst.msk [vmem:[#allocation2 + $0xb8] sm:$0xf] %vm118_vm0, %v769_v55  ;;  %v9458_v18 = vpack.c.bf16 %v58_v62, %v58_v62 }
  0x76   :  { %1263 = vst [vmem:[#allocation2 + $0xbc] sm:$0x1] %v1262_v57  ;;  %v8612_v63 = vld [vmem:[#allocation2 + $0xd8] sm:$0xff]   ;;  %v795_v0 = vrot.slane %v791_v51, 4  ;;  %v197_v3 = vsel %vm8988_vm3, 0, %v196_v33  ;;  %v9449_v5 = vsel %vm1752_vm9, %v1915_v54, %v1919_v50  ;;  %v8608_v6 = vld [vmem:[#allocation2 + $0xa8] sm:$0xff]   ;;  %v794_v7 = vor.u32 %v792_v52, %v791_v51 }
  0x77   :  { %v799_v2 = vrot.slane %v797_v53, 7  ;;  %14026 = vst [vmem:[#allocation20_spill] sm:$0xff] %v9449_v5  ;;  %198 = vst [vmem:[#allocation2 + $0xf0] sm:$0x1] %v197_v3  ;;  %v307_v8 = vsel %vm9021_vm5, 0, %v306_v49  ;;  %2163 = vrot.lane.b32.xlu1 %v9449_v5, %s8950_s13  ;;  %v1946_v10 = vshrl.u32 %v8612_v63, 16  ;;  %v8266_v16 = vpack.c.bf16 %v57_v61, %v57_v61 }
  0x78   :  { %v8609_v9 = vld [vmem:[#allocation2 + $0xb0] ss:$0 sps:$4 sm:$0x11]   ;;  %308 = vst [vmem:[#allocation2 + $0xf8] sm:$0x1] %v307_v8  ;;  %v1922_v20 = vshrl.u32 %v8608_v6, 16  ;;  %v9462_v33 = vpack.c.bf16 %v59_v38, %v59_v38 }
  0x79   :  { %v802_v13 = vor.u32 %v800_v58, %v799_v2  ;;  %v60_v11 = vld [vmem:[%s13860_s0 + $0x130] sm:$0xff]  ;;  %v1924_v17 = vshll.u32 %v8608_v6, 16  ;;  %v8613_v21 = vld [vmem:[#allocation2 + $0xe0] ss:$0 sps:$4 sm:$0x11]   ;;  %v1948_v22 = vshll.u32 %v8612_v63, 16 }
  0x7a   :  { %v1929_v23 = vshll.u32 %v8609_v9, 16  ;;  %v804_v27 = vrot.slane %v799_v2, 4  ;;  %v1271_v29 = vld [vmem:[#allocation2 + $0xe4] sm:$0xf]  ;;  %v1275_v32 = vld [vmem:[#allocation2 + $0xec] sm:$0x1]  ;;  %v9472_v53 = vpack.c.bf16 %v60_v11, %v60_v11 }
  0x7b   :  { %v803_v24 = vsel %vm9050_vm7, %v795_v0, %v802_v13  ;;  %v1926_v35 = vrot.slane %v1924_v17, 1  ;;  %v1950_v36 = vrot.slane %v1948_v22, 1  ;;  %v1953_v37 = vshll.u32 %v8613_v21, 16  ;;  %v61_v39 = vld [vmem:[%s13860_s0 + $0x138] sm:$0xff]  ;;  %v309_v45 = vld [vmem:[#allocation2 + $0x104] sm:$0x1] }
  0x7c   :  { %v1272_v12 = vsel %vm9062_vm8, %v794_v7, %v1271_v29  ;;  %1274 = vst.msk [vmem:[#allocation2 + $0xe8] sm:$0xf] %vm118_vm0, %v803_v24  ;;  %v1931_v40 = vrot.slane %v1929_v23, 1  ;;  %v1276_v41 = vsel %vm8988_vm3, %v804_v27, %v1275_v32  ;;  %v806_v42 = vshrl.u32 %v8265_v14, 16  ;;  %v199_v44 = vld [vmem:[#allocation2 + $0xfc] sm:$0x1] }
  0x7d   :  { %1273 = vst [vmem:[#allocation2 + $0xe4] sm:$0xf] %v1272_v12  ;;  %v809_v43 = vshll.u32 %v8265_v14, 16  ;;  %v1927_v49 = vor.u32 %v1926_v35, %v1922_v20  ;;  %v8610_v50 = vld [vmem:[#allocation2 + $0xb4] sm:$0xff]   ;;  %v1951_v51 = vor.u32 %v1950_v36, %v1946_v10  ;;  %v1955_v52 = vrot.slane %v1953_v37, 1  ;;  %v62_v9 = vld [vmem:[%s13860_s0 + $0x140] sm:$0xff] }
  0x7e   :  { %1277 = vst [vmem:[#allocation2 + $0xec] sm:$0x1] %v1276_v41  ;;  %v8611_v54 = vld [vmem:[#allocation2 + $0xbc] ss:$0 sps:$4 sm:$0x11]   ;;  %v808_v55 = vrot.slane %v806_v42, 7  ;;  %v9474_v61 = vpack.c.bf16 %v61_v39, %v61_v39  ;;  %v9500_v41 = vpack.c.bf16 %v62_v9, %v62_v9 }
  0x7f   :  { %v814_v57 = vshrl.u32 %v8266_v16, 16  ;;  %v817_v58 = vshll.u32 %v8266_v16, 16  ;;  %v9477_v62 = vsel %vm1752_vm9, %v1927_v49, %v1931_v40  ;;  %v1934_v38 = vshrl.u32 %v8610_v50, 16  ;;  %v1278_v2 = vld [vmem:[#allocation2 + $0xf0] sm:$0xf]  ;;  %s8957_s29 = smov 32  }
  0x80   :  { %14027 = vst [vmem:[#allocation21_spill] sm:$0xff] %v9477_v62  ;;  %v1936_v63 = vshll.u32 %v8610_v50, 16  ;;  %v1956_v0 = vsel %vm1752_vm9, %v1951_v51, %v1955_v52  ;;  %2165 = vrot.lane.b32.xlu0 %v9477_v62, %s8950_s13  ;;  %v1941_v3 = vshll.u32 %v8611_v54, 16  ;;  %v811_v6 = vor.u32 %v809_v43, %v808_v55  ;;  %v1282_v13 = vld [vmem:[#allocation2 + $0xf8] sm:$0x1]  ;;  %v63_v51 = vld [vmem:[%s13860_s0 + $0x148] sm:$0xff] }
  0x81   :  { %v812_v7 = vrot.slane %v808_v55, 4  ;;  %v816_v8 = vrot.slane %v814_v57, 7  ;;  %v200_v14 = vsel %vm8988_vm3, 0, %v199_v44  ;;  %v310_v16 = vsel %vm9021_vm5, 0, %v309_v45  ;;  %v202_v20 = vld [vmem:[#allocation2 + $0x108] sm:$0x1] }
  0x82   :  { %v1938_v10 = vrot.slane %v1936_v63, 1  ;;  %v823_v11 = vshrl.u32 %v9458_v18, 16  ;;  %v1943_v17 = vrot.slane %v1941_v3, 1  ;;  %v1279_v23 = vsel %vm9062_vm8, %v811_v6, %v1278_v2  ;;  %201 = vst [vmem:[#allocation2 + $0xfc] sm:$0x1] %v200_v14  ;;  %v64_v3 = vld [vmem:[%s13860_s0 + $0x150] sm:$0xff] }
  0x83   :  { %v819_v21 = vor.u32 %v817_v58, %v816_v8  ;;  %v821_v22 = vrot.slane %v816_v8, 4  ;;  %311 = vst [vmem:[#allocation2 + $0x104] sm:$0x1] %v310_v16  ;;  %v312_v24 = vld [vmem:[#allocation2 + $0x110] sm:$0x1]  ;;  %v826_v35 = vshll.u32 %v9458_v18, 16 }
  0x84   :  { %v1939_v27 = vor.u32 %v1938_v10, %v1934_v38  ;;  %v8614_v29 = vld [vmem:[#allocation2 + $0xe4] sm:$0xff]   ;;  %1280 = vst [vmem:[#allocation2 + $0xf0] sm:$0xf] %v1279_v23  ;;  %v825_v32 = vrot.slane %v823_v11, 7  ;;  %v831_v36 = vshrl.u32 %v9462_v33, 16  ;;  %2169 = vrot.lane.b32.xlu0 %v1956_v0, %s8950_s13  ;;  %v834_v40 = vshll.u32 %v9462_v33, 16 }
  0x85   :  { %v8615_v37 = vld [vmem:[#allocation2 + $0xec] ss:$0 sps:$4 sm:$0x11]   ;;  %v820_v12 = vsel %vm9050_vm7, %v812_v7, %v819_v21  ;;  %v1283_v39 = vsel %vm8988_vm3, %v821_v22, %v1282_v13  ;;  %v1958_v43 = vshrl.u32 %v8614_v29, 16  ;;  %v1960_v18 = vshll.u32 %v8614_v29, 16 }
  0x86   :  { %v9503_v42 = vsel %vm1752_vm9, %v1939_v27, %v1943_v17  ;;  %1281 = vst.msk [vmem:[#allocation2 + $0xf4] sm:$0xf] %vm118_vm0, %v820_v12  ;;  %1284 = vst [vmem:[#allocation2 + $0xf8] sm:$0x1] %v1283_v39  ;;  %v828_v44 = vor.u32 %v826_v35, %v825_v32  ;;  %v1965_v45 = vshll.u32 %v8615_v37, 16  ;;  %v829_v49 = vrot.slane %v825_v32, 4 }
  0x87   :  { %14028 = vst [vmem:[#allocation22_spill] sm:$0xff] %v9503_v42  ;;  %2167 = vrot.lane.b32.xlu1 %v9503_v42, %s8950_s13  ;;  %v833_v50 = vrot.slane %v831_v36, 7  ;;  %v203_v33 = vsel %vm8988_vm3, 0, %v202_v20  ;;  %v1962_v52 = vrot.slane %v1960_v18, 1  ;;  %v313_v54 = vsel %vm9021_vm5, 0, %v312_v24  ;;  %v65_v17 = vld [vmem:[%s13860_s0 + $0x158] sm:$0xff] }
  0x88   :  { %204 = vst [vmem:[#allocation2 + $0x108] sm:$0x1] %v203_v33  ;;  %v840_v55 = vshrl.u32 %v9472_v53, 16  ;;  %v843_v57 = vshll.u32 %v9472_v53, 16  ;;  %v1967_v58 = vrot.slane %v1965_v45, 1  ;;  %v848_v0 = vshrl.u32 %v9474_v61, 16 }
  0x89   :  { %v836_v38 = vor.u32 %v834_v40, %v833_v50  ;;  %v838_v63 = vrot.slane %v833_v50, 4  ;;  %314 = vst [vmem:[#allocation2 + $0x110] sm:$0x1] %v313_v54  ;;  %v205_v2 = vld [vmem:[#allocation2 + $0x114] sm:$0x1]  ;;  %v1963_v6 = vor.u32 %v1962_v52, %v1958_v43  ;;  %v851_v10 = vshll.u32 %v9474_v61, 16 }
  0x8a   :  { %v1285_v7 = vld [vmem:[#allocation2 + $0xfc] sm:$0xf]  ;;  %v1289_v8 = vld [vmem:[#allocation2 + $0x104] sm:$0x1]  ;;  %v842_v9 = vrot.slane %v840_v55, 7  ;;  %v8272_v13 = vpack.c.bf16 %v63_v51, %v63_v51  ;;  %v850_v11 = vrot.slane %v848_v0, 7  ;;  %v9539_v36 = vpack.c.bf16 %v64_v3, %v64_v3 }
  0x8b   :  { %v837_v53 = vsel %vm9050_vm7, %v829_v49, %v836_v38  ;;  %v1286_v14 = vsel %vm9062_vm8, %v828_v44, %v1285_v7  ;;  %v1290_v16 = vsel %vm8988_vm3, %v838_v63, %v1289_v8  ;;  %v315_v20 = vld [vmem:[#allocation2 + $0x11c] sm:$0x1]  ;;  %v9532_v21 = vsel %vm1752_vm9, %v1963_v6, %v1967_v58  ;;  %v208_v24 = vld [vmem:[#allocation2 + $0x120] sm:$0x1]  ;;  %v318_v35 = vld [vmem:[#allocation2 + $0x128] sm:$0x1] }
  0x8c   :  { %14029 = vst [vmem:[#allocation23_spill] sm:$0xff] %v9532_v21  ;;  %1287 = vst [vmem:[#allocation2 + $0xfc] sm:$0xf] %v1286_v14  ;;  %v845_v61 = vor.u32 %v843_v57, %v842_v9  ;;  %v846_v22 = vrot.slane %v842_v9, 4  ;;  %v206_v23 = vsel %vm8988_vm3, 0, %v205_v2  ;;  %2171 = vrot.lane.b32.xlu1 %v9532_v21, %s8950_s13  ;;  %v853_v29 = vor.u32 %v851_v10, %v850_v11  ;;  %v66_v63 = vld [vmem:[%s13860_s0 + $0x160] sm:$0xff] }
  0x8d   :  { %1288 = vst.msk [vmem:[#allocation2 + $0x100] sm:$0xf] %vm118_vm0, %v837_v53  ;;  %1291 = vst [vmem:[#allocation2 + $0x104] sm:$0x1] %v1290_v16  ;;  %v8616_v27 = vld [vmem:[#allocation2 + $0xf0] sm:$0xff]   ;;  %v855_v32 = vrot.slane %v850_v11, 4  ;;  %v9545_v43 = vpack.c.bf16 %v65_v17, %v65_v17  ;;  %v9565_v16 = vpack.c.bf16 %v66_v63, %v66_v63 }
  0x8e   :  { %207 = vst [vmem:[#allocation2 + $0x114] sm:$0x1] %v206_v23  ;;  %v8617_v37 = vld [vmem:[#allocation2 + $0xf8] ss:$0 sps:$4 sm:$0x11]   ;;  %v316_v12 = vsel %vm9021_vm5, 0, %v315_v20  ;;  %v854_v45 = vsel %vm9050_vm7, %v846_v22, %v853_v29 }
  0x8f   :  { %v857_v39 = vshrl.u32 %v9500_v41, 16  ;;  %v860_v40 = vshll.u32 %v9500_v41, 16  ;;  %v1970_v18 = vshrl.u32 %v8616_v27, 16  ;;  %v1972_v44 = vshll.u32 %v8616_v27, 16  ;;  %v1292_v49 = vld [vmem:[#allocation2 + $0x108] sm:$0xf] }
  0x90   :  { %317 = vst [vmem:[#allocation2 + $0x11c] sm:$0x1] %v316_v12  ;;  %v865_v50 = vshrl.u32 %v8272_v13, 16  ;;  %v1977_v33 = vshll.u32 %v8617_v37, 16  ;;  %v1293_v51 = vsel %vm9062_vm8, %v845_v61, %v1292_v49  ;;  %1295 = vst.msk [vmem:[#allocation2 + $0x10c] sm:$0xf] %vm118_vm0, %v854_v45 }
  0x91   :  { %v1296_v52 = vld [vmem:[#allocation2 + $0x110] sm:$0x1]  ;;  %v859_v54 = vrot.slane %v857_v39, 7  ;;  %v868_v55 = vshll.u32 %v8272_v13, 16  ;;  %v1974_v41 = vrot.slane %v1972_v44, 1  ;;  %v209_v38 = vsel %vm8988_vm3, 0, %v208_v24 }
  0x92   :  { %1294 = vst [vmem:[#allocation2 + $0x108] sm:$0xf] %v1293_v51  ;;  %v1297_v57 = vsel %vm8988_vm3, %v855_v32, %v1296_v52  ;;  %v867_v58 = vrot.slane %v865_v50, 7  ;;  %v1979_v0 = vrot.slane %v1977_v33, 1  ;;  %210 = vst [vmem:[#allocation2 + $0x120] sm:$0x1] %v209_v38 }
  0x93   :  { %1298 = vst [vmem:[#allocation2 + $0x110] sm:$0x1] %v1297_v57  ;;  %v862_v2 = vor.u32 %v860_v40, %v859_v54  ;;  %v863_v3 = vrot.slane %v859_v54, 4  ;;  %v319_v6 = vsel %vm9021_vm5, 0, %v318_v35  ;;  %v1975_v7 = vor.u32 %v1974_v41, %v1970_v18  ;;  %v67_v9 = vld [vmem:[%s13860_s0 + $0x168] sm:$0xff]  ;;  %v85_v42 = vld [vmem:[%s13860_s0 + $0x1f8] sm:$0xff] }
  0x94   :  { %v870_v8 = vor.u32 %v868_v55, %v867_v58  ;;  %320 = vst [vmem:[#allocation2 + $0x128] sm:$0x1] %v319_v6  ;;  %v8618_v10 = vld [vmem:[#allocation2 + $0xfc] sm:$0xff]   ;;  %v8619_v13 = vld [vmem:[#allocation2 + $0x104] ss:$0 sps:$4 sm:$0x11]   ;;  %v8276_v33 = vpack.c.bf16 %v67_v9, %v67_v9  ;;  %v8294_v47 = vpack.c.bf16 %v85_v42, %v85_v42 }
  0x95   :  { %v872_v53 = vrot.slane %v867_v58, 4  ;;  %v874_v14 = vshrl.u32 %v9539_v36, 16  ;;  %v9568_v11 = vsel %vm1752_vm9, %v1975_v7, %v1979_v0  ;;  %v1299_v17 = vld [vmem:[#allocation2 + $0x114] sm:$0xf]  ;;  %v877_v61 = vshll.u32 %v9539_v36, 16 }
  0x96   :  { %14030 = vst [vmem:[#allocation24_spill] sm:$0xff] %v9568_v11  ;;  %v871_v20 = vsel %vm9050_vm7, %v863_v3, %v870_v8  ;;  %v882_v22 = vshrl.u32 %v9545_v43, 16  ;;  %v211_v23 = vld [vmem:[#allocation2 + $0x12c] sm:$0x1]  ;;  %2173 = vrot.lane.b32.xlu0 %v9568_v11, %s8950_s13  ;;  %v1982_v24 = vshrl.u32 %v8618_v10, 16  ;;  %v1984_v27 = vshll.u32 %v8618_v10, 16 }
  0x97   :  { %v1989_v29 = vshll.u32 %v8619_v13, 16  ;;  %v1300_v32 = vsel %vm9062_vm8, %v862_v2, %v1299_v17  ;;  %1302 = vst.msk [vmem:[#allocation2 + $0x118] sm:$0xf] %vm118_vm0, %v871_v20  ;;  %v1303_v35 = vld [vmem:[#allocation2 + $0x11c] sm:$0x1]  ;;  %v68_v36 = vld [vmem:[%s13860_s0 + $0x170] sm:$0xff] }
  0x98   :  { %v321_v37 = vld [vmem:[#allocation2 + $0x134] sm:$0x1]  ;;  %1301 = vst [vmem:[#allocation2 + $0x114] sm:$0xf] %v1300_v32  ;;  %v1304_v12 = vsel %vm8988_vm3, %v872_v53, %v1303_v35  ;;  %v876_v39 = vrot.slane %v874_v14, 7  ;;  %v884_v40 = vrot.slane %v882_v22, 7  ;;  %v9587_v57 = vpack.c.bf16 %v68_v36, %v68_v36 }
  0x99   :  { %v885_v18 = vshll.u32 %v9545_v43, 16  ;;  %v1986_v44 = vrot.slane %v1984_v27, 1  ;;  %v1991_v45 = vrot.slane %v1989_v29, 1  ;;  %v8620_v49 = vld [vmem:[#allocation2 + $0x108] sm:$0xff]   ;;  %1305 = vst [vmem:[#allocation2 + $0x11c] sm:$0x1] %v1304_v12 }
  0x9a   :  { %v212_v50 = vsel %vm8988_vm3, 0, %v211_v23  ;;  %v8621_v51 = vld [vmem:[#allocation2 + $0x110] ss:$0 sps:$4 sm:$0x11]   ;;  %v879_v52 = vor.u32 %v877_v61, %v876_v39  ;;  %v880_v54 = vrot.slane %v876_v39, 4  ;;  %v1994_v38 = vshrl.u32 %v8620_v49, 16 }
  0x9b   :  { %v887_v55 = vor.u32 %v885_v18, %v884_v40  ;;  %213 = vst [vmem:[#allocation2 + $0x12c] sm:$0x1] %v212_v50  ;;  %v214_v41 = vld [vmem:[#allocation2 + $0x138] sm:$0x1]  ;;  %v1987_v58 = vor.u32 %v1986_v44, %v1982_v24  ;;  %v1996_v63 = vshll.u32 %v8620_v49, 16  ;;  %v889_v43 = vrot.slane %v884_v40, 4 }
  0x9c   :  { %v1306_v0 = vld [vmem:[#allocation2 + $0x120] sm:$0xf]  ;;  %v2001_v2 = vshll.u32 %v8621_v51, 16  ;;  %v1310_v7 = vld [vmem:[#allocation2 + $0x128] sm:$0x1]  ;;  %v322_v8 = vsel %vm9021_vm5, 0, %v321_v37 }
  0x9d   :  { %v888_v3 = vsel %vm9050_vm7, %v880_v54, %v887_v55  ;;  %v1307_v6 = vsel %vm9062_vm8, %v879_v52, %v1306_v0  ;;  %v324_v9 = vld [vmem:[#allocation2 + $0x140] sm:$0x1]  ;;  %v9596_v10 = vsel %vm1752_vm9, %v1987_v58, %v1991_v45  ;;  %v1998_v13 = vrot.slane %v1996_v63, 1  ;;  %323 = vst [vmem:[#allocation2 + $0x134] sm:$0x1] %v322_v8  ;;  %v69_v20 = vld [vmem:[%s13860_s0 + $0x178] sm:$0xff] }
  0x9e   :  { %14031 = vst [vmem:[#allocation25_spill] sm:$0xff] %v9596_v10  ;;  %1308 = vst [vmem:[#allocation2 + $0x120] sm:$0xf] %v1307_v6  ;;  %v1311_v53 = vsel %vm8988_vm3, %v889_v43, %v1310_v7  ;;  %v891_v14 = vshrl.u32 %v9565_v16, 16  ;;  %2175 = vrot.lane.b32.xlu1 %v9596_v10, %s8950_s13  ;;  %v2003_v17 = vrot.slane %v2001_v2, 1  ;;  %v894_v61 = vshll.u32 %v9565_v16, 16 }
  0x9f   :  { %1309 = vst.msk [vmem:[#allocation2 + $0x124] sm:$0xf] %vm118_vm0, %v888_v3  ;;  %1312 = vst [vmem:[#allocation2 + $0x128] sm:$0x1] %v1311_v53  ;;  %v899_v22 = vshrl.u32 %v8276_v33, 16  ;;  %v902_v23 = vshll.u32 %v8276_v33, 16  ;;  %v1999_v24 = vor.u32 %v1998_v13, %v1994_v38  ;;  %v8278_v12 = vpack.c.bf16 %v69_v20, %v69_v20 }
  0xa0   :  { %v8622_v27 = vld [vmem:[#allocation2 + $0x114] sm:$0xff]   ;;  %v893_v29 = vrot.slane %v891_v14, 7  ;;  %v215_v32 = vsel %vm8988_vm3, 0, %v214_v41  ;;  %v325_v35 = vsel %vm9021_vm5, 0, %v324_v9  ;;  %v70_v45 = vld [vmem:[%s13860_s0 + $0x180] sm:$0xff]  ;;  %v71_v49 = vld [vmem:[%s13860_s0 + $0x188] sm:$0xff] }
  0xa1   :  { %v8623_v37 = vld [vmem:[#allocation2 + $0x11c] ss:$0 sps:$4 sm:$0x11]   ;;  %v901_v36 = vrot.slane %v899_v22, 7  ;;  %216 = vst [vmem:[#allocation2 + $0x138] sm:$0x1] %v215_v32  ;;  %v9613_v39 = vsel %vm1752_vm9, %v1999_v24, %v2003_v17  ;;  %v8279_v7 = vpack.c.bf16 %v70_v45, %v70_v45  ;;  %v9637_v8 = vpack.c.bf16 %v71_v49, %v71_v49 }
  0xa2   :  { %326 = vst [vmem:[#allocation2 + $0x140] sm:$0x1] %v325_v35  ;;  %14032 = vst [vmem:[#allocation26_spill] sm:$0xff] %v9613_v39  ;;  %v2006_v16 = vshrl.u32 %v8622_v27, 16  ;;  %v2008_v40 = vshll.u32 %v8622_v27, 16  ;;  %v896_v18 = vor.u32 %v894_v61, %v893_v29  ;;  %2177 = vrot.lane.b32.xlu0 %v9613_v39, %s8950_s13  ;;  %v2013_v50 = vshll.u32 %v8623_v37, 16 }
  0xa3   :  { %v1313_v44 = vld [vmem:[#allocation2 + $0x12c] sm:$0xf]  ;;  %v897_v33 = vrot.slane %v893_v29, 4  ;;  %v904_v51 = vor.u32 %v902_v23, %v901_v36  ;;  %v906_v52 = vrot.slane %v901_v36, 4  ;;  %v72_v54 = vld [vmem:[%s13860_s0 + $0x190] sm:$0xff]  ;;  %v73_v55 = vld [vmem:[%s13860_s0 + $0x198] sm:$0xff] }
  0xa4   :  { %v2010_v41 = vrot.slane %v2008_v40, 1  ;;  %v1314_v58 = vsel %vm9062_vm8, %v896_v18, %v1313_v44  ;;  %v908_v38 = vshrl.u32 %v9587_v57, 16  ;;  %v911_v63 = vshll.u32 %v9587_v57, 16  ;;  %v217_v43 = vld [vmem:[#allocation2 + $0x144] sm:$0x1] }
  0xa5   :  { %v2015_v0 = vrot.slane %v2013_v50, 1  ;;  %v905_v3 = vsel %vm9050_vm7, %v897_v33, %v904_v51  ;;  %1315 = vst [vmem:[#allocation2 + $0x12c] sm:$0xf] %v1314_v58  ;;  %v327_v6 = vld [vmem:[#allocation2 + $0x14c] sm:$0x1]  ;;  %v9642_v14 = vpack.c.bf16 %v72_v54, %v72_v54  ;;  %v9644_v57 = vpack.c.bf16 %v73_v55, %v73_v55  ;;  %v9995_v11 = vld [vmem:[#allocation2 + $0x84] sm:$0xff]  }
  0xa6   :  { %v9633_v2 = vld [vmem:[#allocation2 + $0x120] sm:$0xff]   ;;  %v2011_v9 = vor.u32 %v2010_v41, %v2006_v16  ;;  %v9639_v13 = vld [vmem:[#allocation2 + $0x128] ss:$0 sps:$4 sm:$0x11]   ;;  %1316 = vst.msk [vmem:[#allocation2 + $0x130] sm:$0xf] %vm118_vm0, %v905_v3 }
  0xa7   :  { %v910_v53 = vrot.slane %v908_v38, 7  ;;  %v2018_v20 = vshrl.u32 %v9633_v2, 16  ;;  %v2020_v17 = vshll.u32 %v9633_v2, 16  ;;  %v1317_v61 = vld [vmem:[#allocation2 + $0x134] sm:$0x1]  ;;  %v916_v22 = vshrl.u32 %v8278_v12, 16 }
  0xa8   :  { %v919_v23 = vshll.u32 %v8278_v12, 16  ;;  %v220_v24 = vld [vmem:[#allocation2 + $0x150] sm:$0x1]  ;;  %v9649_v27 = vsel %vm1752_vm9, %v2011_v9, %v2015_v0  ;;  %v2025_v29 = vshll.u32 %v9639_v13, 16  ;;  %v1318_v32 = vsel %vm8988_vm3, %v906_v52, %v1317_v61  ;;  %v1320_v37 = vld [vmem:[#allocation2 + $0x138] sm:$0xf] }
  0xa9   :  { %14033 = vst [vmem:[#allocation27_spill] sm:$0xff] %v9649_v27  ;;  %v913_v35 = vor.u32 %v911_v63, %v910_v53  ;;  %v1324_v36 = vld [vmem:[#allocation2 + $0x140] sm:$0x1]  ;;  %v330_v16 = vld [vmem:[#allocation2 + $0x158] sm:$0x1]  ;;  %2179 = vrot.lane.b32.xlu1 %v9649_v27, %s8950_s13  ;;  %v2022_v40 = vrot.slane %v2020_v17, 1 }
  0xaa   :  { %1319 = vst [vmem:[#allocation2 + $0x134] sm:$0x1] %v1318_v32  ;;  %v914_v18 = vrot.slane %v910_v53, 4  ;;  %v918_v12 = vrot.slane %v916_v22, 7  ;;  %v218_v44 = vsel %vm8988_vm3, 0, %v217_v43  ;;  %v2027_v45 = vrot.slane %v2025_v29, 1 }
  0xab   :  { %v1321_v49 = vsel %vm9062_vm8, %v913_v35, %v1320_v37  ;;  %219 = vst [vmem:[#allocation2 + $0x144] sm:$0x1] %v218_v44  ;;  %v328_v50 = vsel %vm9021_vm5, 0, %v327_v6  ;;  %v925_v33 = vshrl.u32 %v8279_v7, 16  ;;  %v2023_v51 = vor.u32 %v2022_v40, %v2018_v20  ;;  %v74_v41 = vld [vmem:[%s13860_s0 + $0x1a0] sm:$0xff]  ;;  %v75_v58 = vld [vmem:[%s13860_s0 + $0x1a8] sm:$0xff] }
  0xac   :  { %v921_v52 = vor.u32 %v919_v23, %v918_v12  ;;  %v923_v54 = vrot.slane %v918_v12, 4  ;;  %1322 = vst [vmem:[#allocation2 + $0x138] sm:$0xf] %v1321_v49  ;;  %329 = vst [vmem:[#allocation2 + $0x14c] sm:$0x1] %v328_v50  ;;  %v928_v55 = vshll.u32 %v8279_v7, 16  ;;  %v9693_v40 = vpack.c.bf16 %v74_v41, %v74_v41 }
  0xad   :  { %v927_v38 = vrot.slane %v925_v33, 7  ;;  %v933_v63 = vshrl.u32 %v9637_v8, 16  ;;  %v936_v43 = vshll.u32 %v9637_v8, 16  ;;  %v221_v0 = vsel %vm8988_vm3, 0, %v220_v24  ;;  %v9675_v6 = vld [vmem:[#allocation2 + $0x12c] sm:$0xff]  }
  0xae   :  { %v9673_v3 = vsel %vm1752_vm9, %v2023_v51, %v2027_v45  ;;  %v922_v7 = vsel %vm9050_vm7, %v914_v18, %v921_v52  ;;  %v1325_v9 = vsel %vm8988_vm3, %v923_v54, %v1324_v36  ;;  %222 = vst [vmem:[#allocation2 + $0x150] sm:$0x1] %v221_v0  ;;  %v331_v53 = vsel %vm9021_vm5, 0, %v330_v16  ;;  %v223_v22 = vld [vmem:[#allocation2 + $0x15c] sm:$0x1] }
  0xaf   :  { %14034 = vst [vmem:[#allocation28_spill] sm:$0xff] %v9673_v3  ;;  %2181 = vrot.lane.b32.xlu0 %v9673_v3, %s8950_s13  ;;  %1323 = vst.msk [vmem:[#allocation2 + $0x13c] sm:$0xf] %vm118_vm0, %v922_v7  ;;  %v930_v8 = vor.u32 %v928_v55, %v927_v38  ;;  %v931_v20 = vrot.slane %v927_v38, 4  ;;  %v935_v17 = vrot.slane %v933_v63, 7  ;;  %v942_v61 = vshrl.u32 %v9642_v14, 16 }
  0xb0   :  { %1326 = vst [vmem:[#allocation2 + $0x140] sm:$0x1] %v1325_v9  ;;  %332 = vst [vmem:[#allocation2 + $0x158] sm:$0x1] %v331_v53  ;;  %v2030_v23 = vshrl.u32 %v9675_v6, 16  ;;  %v2032_v24 = vshll.u32 %v9675_v6, 16  ;;  %v9695_v18 = vpack.c.bf16 %v75_v58, %v75_v58 }
  0xb1   :  { %v945_v29 = vshll.u32 %v9642_v14, 16  ;;  %v950_v32 = vshrl.u32 %v9644_v57, 16  ;;  %v333_v35 = vld [vmem:[#allocation2 + $0x164] sm:$0x1]  ;;  %v938_v36 = vor.u32 %v936_v43, %v935_v17  ;;  %v940_v16 = vrot.slane %v935_v17, 4  ;;  %v76_v53 = vld [vmem:[%s13860_s0 + $0x1b0] sm:$0xff] }
  0xb2   :  { %v9691_v37 = vld [vmem:[#allocation2 + $0x134] ss:$0 sps:$4 sm:$0x11]   ;;  %v2034_v12 = vrot.slane %v2032_v24, 1  ;;  %v1327_v44 = vld [vmem:[#allocation2 + $0x144] sm:$0xf] }
  0xb3   :  { %v944_v45 = vrot.slane %v942_v61, 7  ;;  %v952_v49 = vrot.slane %v950_v32, 7  ;;  %v953_v50 = vshll.u32 %v9644_v57, 16  ;;  %v2037_v33 = vshll.u32 %v9691_v37, 16  ;;  %v1331_v52 = vld [vmem:[#allocation2 + $0x14c] sm:$0x1] }
  0xb4   :  { %v939_v14 = vsel %vm9050_vm7, %v931_v20, %v938_v36  ;;  %v1328_v51 = vsel %vm9062_vm8, %v930_v8, %v1327_v44  ;;  %v224_v54 = vsel %vm8988_vm3, 0, %v223_v22  ;;  %v2035_v55 = vor.u32 %v2034_v12, %v2030_v23  ;;  %v226_v38 = vld [vmem:[#allocation2 + $0x168] sm:$0x1]  ;;  %v336_v8 = vld [vmem:[#allocation2 + $0x170] sm:$0x1]  ;;  %v77_v44 = vld [vmem:[%s13860_s0 + $0x1b8] sm:$0xff] }
  0xb5   :  { %1329 = vst [vmem:[#allocation2 + $0x144] sm:$0xf] %v1328_v51  ;;  %1330 = vst.msk [vmem:[#allocation2 + $0x148] sm:$0xf] %vm118_vm0, %v939_v14  ;;  %v1332_v41 = vsel %vm8988_vm3, %v940_v16, %v1331_v52  ;;  %v947_v57 = vor.u32 %v945_v29, %v944_v45  ;;  %v948_v58 = vrot.slane %v944_v45, 4  ;;  %v2039_v63 = vrot.slane %v2037_v33, 1 }
  0xb6   :  { %225 = vst [vmem:[#allocation2 + $0x15c] sm:$0x1] %v224_v54  ;;  %1333 = vst [vmem:[#allocation2 + $0x14c] sm:$0x1] %v1332_v41  ;;  %v955_v43 = vor.u32 %v953_v50, %v952_v49  ;;  %v957_v0 = vrot.slane %v952_v49, 4  ;;  %v334_v9 = vsel %vm9021_vm5, 0, %v333_v35  ;;  %v8285_v33 = vpack.c.bf16 %v76_v53, %v76_v53 }
  0xb7   :  { %v1334_v7 = vld [vmem:[#allocation2 + $0x150] sm:$0xf]  ;;  %v9713_v20 = vld [vmem:[#allocation2 + $0x138] sm:$0xff]   ;;  %335 = vst [vmem:[#allocation2 + $0x164] sm:$0x1] %v334_v9  ;;  %v959_v61 = vshrl.u32 %v9693_v40, 16  ;;  %v9719_v22 = vsel %vm1752_vm9, %v2035_v55, %v2039_v63 }
  0xb8   :  { %v1335_v17 = vsel %vm9062_vm8, %v947_v57, %v1334_v7  ;;  %14035 = vst [vmem:[#allocation29_spill] sm:$0xff] %v9719_v22  ;;  %v9721_v23 = vld [vmem:[#allocation2 + $0x140] ss:$0 sps:$4 sm:$0x11]   ;;  %v956_v24 = vsel %vm9050_vm7, %v948_v58, %v955_v43  ;;  %v1338_v29 = vld [vmem:[#allocation2 + $0x158] sm:$0x1]  ;;  %2183 = vrot.lane.b32.xlu1 %v9719_v22, %s8950_s13 }
  0xb9   :  { %1336 = vst [vmem:[#allocation2 + $0x150] sm:$0xf] %v1335_v17  ;;  %v962_v32 = vshll.u32 %v9693_v40, 16  ;;  %v2042_v35 = vshrl.u32 %v9713_v20, 16  ;;  %v2044_v36 = vshll.u32 %v9713_v20, 16  ;;  %v1339_v16 = vsel %vm8988_vm3, %v957_v0, %v1338_v29  ;;  %v78_v40 = vld [vmem:[%s13860_s0 + $0x1c0] sm:$0xff] }
  0xba   :  { %1337 = vst.msk [vmem:[#allocation2 + $0x154] sm:$0xf] %vm118_vm0, %v956_v24  ;;  %v961_v12 = vrot.slane %v959_v61, 7  ;;  %v2049_v45 = vshll.u32 %v9721_v23, 16  ;;  %1340 = vst [vmem:[#allocation2 + $0x158] sm:$0x1] %v1339_v16  ;;  %v8286_v0 = vpack.c.bf16 %v77_v44, %v77_v44  ;;  %v9760_v7 = vpack.c.bf16 %v78_v40, %v78_v40 }
  0xbb   :  { %v967_v49 = vshrl.u32 %v9695_v18, 16  ;;  %v227_v50 = vsel %vm8988_vm3, 0, %v226_v38  ;;  %v79_v14 = vld [vmem:[%s13860_s0 + $0x1c8] sm:$0xff]  ;;  %v80_v51 = vld [vmem:[%s13860_s0 + $0x1d0] sm:$0xff]  ;;  %v2046_v52 = vrot.slane %v2044_v36, 1  ;;  %v970_v55 = vshll.u32 %v9695_v18, 16 }
  0xbc   :  { %v965_v54 = vrot.slane %v961_v12, 4  ;;  %228 = vst [vmem:[#allocation2 + $0x168] sm:$0x1] %v227_v50  ;;  %v337_v41 = vsel %vm9021_vm5, 0, %v336_v8  ;;  %v81_v57 = vld [vmem:[%s13860_s0 + $0x1d8] sm:$0xff]  ;;  %v82_v58 = vld [vmem:[%s13860_s0 + $0x1e0] sm:$0xff]  ;;  %v964_v43 = vor.u32 %v962_v32, %v961_v12  ;;  %v9767_v17 = vpack.c.bf16 %v79_v14, %v79_v14 }
  0xbd   :  { %v2051_v38 = vrot.slane %v2049_v45, 1  ;;  %v9758_v63 = vld [vmem:[#allocation2 + $0x144] sm:$0xff]   ;;  %338 = vst [vmem:[#allocation2 + $0x170] sm:$0x1] %v337_v41  ;;  %v2047_v9 = vor.u32 %v2046_v52, %v2042_v35  ;;  %v969_v8 = vrot.slane %v967_v49, 7  ;;  %v9769_v61 = vpack.c.bf16 %v80_v51, %v80_v51 }
  0xbe   :  { %v83_v18 = vld [vmem:[%s13860_s0 + $0x1e8] sm:$0xff]  ;;  %v2054_v24 = vshrl.u32 %v9758_v63, 16  ;;  %v2056_v29 = vshll.u32 %v9758_v63, 16  ;;  %v1341_v32 = vld [vmem:[#allocation2 + $0x15c] sm:$0xf]  ;;  %v9773_v16 = vpack.c.bf16 %v81_v57, %v81_v57  ;;  %v9775_v12 = vpack.c.bf16 %v82_v58, %v82_v58 }
  0xbf   :  { %v9765_v53 = vld [vmem:[#allocation2 + $0x14c] ss:$0 sps:$4 sm:$0x11]   ;;  %v1345_v36 = vld [vmem:[#allocation2 + $0x164] sm:$0x1]  ;;  %v9778_v44 = vsel %vm1752_vm9, %v2047_v9, %v2051_v38  ;;  %v972_v40 = vor.u32 %v970_v55, %v969_v8  ;;  %v974_v45 = vrot.slane %v969_v8, 4  ;;  %v1342_v51 = vsel %vm9062_vm8, %v964_v43, %v1341_v32 }
  0xc0   :  { %14036 = vst [vmem:[#allocation30_spill] sm:$0xff] %v9778_v44  ;;  %v2061_v35 = vshll.u32 %v9765_v53, 16  ;;  %v229_v49 = vld [vmem:[#allocation2 + $0x174] sm:$0x1]  ;;  %2185 = vrot.lane.b32.xlu0 %v9778_v44, %s8950_s13  ;;  %v2058_v50 = vrot.slane %v2056_v29, 1  ;;  %v976_v52 = vshrl.u32 %v8285_v33, 16  ;;  %v9793_v9 = vpack.c.bf16 %v83_v18, %v83_v18 }
  0xc1   :  { %v9783_v14 = vld [vmem:[#allocation2 + $0x150] sm:$0xff]   ;;  %v979_v41 = vshll.u32 %v8285_v33, 16  ;;  %v9787_v58 = vld [vmem:[#allocation2 + $0x158] ss:$0 sps:$4 sm:$0x11]   ;;  %v973_v38 = vsel %vm9050_vm7, %v965_v54, %v972_v40  ;;  %v1346_v55 = vsel %vm8988_vm3, %v974_v45, %v1345_v36  ;;  %v987_v54 = vshll.u32 %v8286_v0, 16 }
  0xc2   :  { %v2063_v57 = vrot.slane %v2061_v35, 1  ;;  %1343 = vst [vmem:[#allocation2 + $0x15c] sm:$0xf] %v1342_v51  ;;  %v2059_v8 = vor.u32 %v2058_v50, %v2054_v24  ;;  %v2066_v29 = vshrl.u32 %v9783_v14, 16  ;;  %v2068_v44 = vshll.u32 %v9783_v14, 16 }
  0xc3   :  { %1344 = vst.msk [vmem:[#allocation2 + $0x160] sm:$0xf] %vm118_vm0, %v973_v38  ;;  %1347 = vst [vmem:[#allocation2 + $0x164] sm:$0x1] %v1346_v55  ;;  %v978_v33 = vrot.slane %v976_v52, 7  ;;  %v2073_v32 = vshll.u32 %v9787_v58, 16 }
  0xc4   :  { %v339_v43 = vld [vmem:[#allocation2 + $0x17c] sm:$0x1]  ;;  %v984_v35 = vshrl.u32 %v8286_v0, 16  ;;  %v1348_v40 = vld [vmem:[#allocation2 + $0x168] sm:$0xf]  ;;  %v230_v36 = vsel %vm8988_vm3, 0, %v229_v49  ;;  %v9802_v18 = vsel %vm1752_vm9, %v2059_v8, %v2063_v57 }
  0xc5   :  { %14037 = vst [vmem:[#allocation31_spill] sm:$0xff] %v9802_v18  ;;  %v2070_v24 = vrot.slane %v2068_v44, 1  ;;  %v981_v45 = vor.u32 %v979_v41, %v978_v33  ;;  %v982_v50 = vrot.slane %v978_v33, 4  ;;  %231 = vst [vmem:[#allocation2 + $0x174] sm:$0x1] %v230_v36  ;;  %2187 = vrot.lane.b32.xlu1 %v9802_v18, %s8950_s13  ;;  %v2075_v52 = vrot.slane %v2073_v32, 1 }
  0xc6   :  { %v232_v51 = vld [vmem:[#allocation2 + $0x180] sm:$0x1]  ;;  %v986_v38 = vrot.slane %v984_v35, 7  ;;  %v340_v0 = vsel %vm9021_vm5, 0, %v339_v43  ;;  %v993_v55 = vshrl.u32 %v9760_v7, 16  ;;  %v996_v41 = vshll.u32 %v9760_v7, 16 }
  0xc7   :  { %v342_v3 = vld [vmem:[#allocation2 + $0x188] sm:$0x1]  ;;  %v2071_v49 = vor.u32 %v2070_v24, %v2066_v29  ;;  %v1349_v57 = vsel %vm9062_vm8, %v981_v45, %v1348_v40  ;;  %v1352_v44 = vld [vmem:[#allocation2 + $0x170] sm:$0x1]  ;;  %341 = vst [vmem:[#allocation2 + $0x17c] sm:$0x1] %v340_v0 }
  0xc8   :  { %v1001_v8 = vshrl.u32 %v9767_v17, 16  ;;  %v989_v33 = vor.u32 %v987_v54, %v986_v38  ;;  %v991_v36 = vrot.slane %v986_v38, 4  ;;  %1350 = vst [vmem:[#allocation2 + $0x168] sm:$0xf] %v1349_v57  ;;  %v995_v32 = vrot.slane %v993_v55, 7 }
  0xc9   :  { %v1004_v35 = vshll.u32 %v9767_v17, 16  ;;  %v9815_v43 = vsel %vm1752_vm9, %v2071_v49, %v2075_v52  ;;  %v233_v29 = vsel %vm8988_vm3, 0, %v232_v51  ;;  %v343_v40 = vsel %vm9021_vm5, 0, %v342_v3  ;;  %v235_v24 = vld [vmem:[#allocation2 + $0x18c] sm:$0x1] }
  0xca   :  { %14038 = vst [vmem:[#allocation32_spill] sm:$0xff] %v9815_v43  ;;  %v1003_v18 = vrot.slane %v1001_v8, 7  ;;  %v345_v7 = vld [vmem:[#allocation2 + $0x194] sm:$0x1]  ;;  %2189 = vrot.lane.b32.xlu0 %v9815_v43, %s8950_s13  ;;  %v9823_v54 = vld [vmem:[#allocation2 + $0x15c] sm:$0xff]   ;;  %v990_v17 = vsel %vm9050_vm7, %v982_v50, %v989_v33  ;;  %v1353_v45 = vsel %vm8988_vm3, %v991_v36, %v1352_v44  ;;  %v998_v52 = vor.u32 %v996_v41, %v995_v32 }
  0xcb   :  { %v999_v38 = vrot.slane %v995_v32, 4  ;;  %234 = vst [vmem:[#allocation2 + $0x180] sm:$0x1] %v233_v29  ;;  %344 = vst [vmem:[#allocation2 + $0x188] sm:$0x1] %v343_v40  ;;  %v1010_v55 = vshrl.u32 %v9769_v61, 16 }
  0xcc   :  { %v9829_v51 = vld [vmem:[#allocation2 + $0x164] ss:$0 sps:$4 sm:$0x11]   ;;  %1351 = vst.msk [vmem:[#allocation2 + $0x16c] sm:$0xf] %vm118_vm0, %v990_v17  ;;  %v1006_v3 = vor.u32 %v1004_v35, %v1003_v18  ;;  %v1008_v0 = vrot.slane %v1003_v18, 4 }
  0xcd   :  { %1354 = vst [vmem:[#allocation2 + $0x170] sm:$0x1] %v1353_v45  ;;  %v1013_v49 = vshll.u32 %v9769_v61, 16  ;;  %v2078_v50 = vshrl.u32 %v9823_v54, 16  ;;  %v2080_v57 = vshll.u32 %v9823_v54, 16  ;;  %v1018_v41 = vshrl.u32 %v9773_v16, 16 }
  0xce   :  { %v1355_v44 = vld [vmem:[#allocation2 + $0x174] sm:$0xf]  ;;  %v1021_v8 = vshll.u32 %v9773_v16, 16  ;;  %v2085_v33 = vshll.u32 %v9829_v51, 16  ;;  %v1007_v36 = vsel %vm9050_vm7, %v999_v38, %v1006_v3  ;;  %v1012_v32 = vrot.slane %v1010_v55, 7 }
  0xcf   :  { %v1356_v18 = vsel %vm9062_vm8, %v998_v52, %v1355_v44  ;;  %v2082_v35 = vrot.slane %v2080_v57, 1  ;;  %1358 = vst.msk [vmem:[#allocation2 + $0x178] sm:$0xf] %vm118_vm0, %v1007_v36  ;;  %v1359_v61 = vld [vmem:[#allocation2 + $0x17c] sm:$0x1]  ;;  %v1020_v29 = vrot.slane %v1018_v41, 7 }
  0xd0   :  { %1357 = vst [vmem:[#allocation2 + $0x174] sm:$0xf] %v1356_v18  ;;  %v236_v40 = vsel %vm8988_vm3, 0, %v235_v24  ;;  %v346_v16 = vsel %vm9021_vm5, 0, %v345_v7  ;;  %v2087_v17 = vrot.slane %v2085_v33, 1  ;;  %v1360_v45 = vsel %vm8988_vm3, %v1008_v0, %v1359_v61 }
  0xd1   :  { %v1015_v38 = vor.u32 %v1013_v49, %v1012_v32  ;;  %v1016_v3 = vrot.slane %v1012_v32, 4  ;;  %237 = vst [vmem:[#allocation2 + $0x18c] sm:$0x1] %v236_v40  ;;  %347 = vst [vmem:[#allocation2 + $0x194] sm:$0x1] %v346_v16  ;;  %v2083_v52 = vor.u32 %v2082_v35, %v2078_v50  ;;  %v1023_v55 = vor.u32 %v1021_v8, %v1020_v29 }
  0xd2   :  { %1361 = vst [vmem:[#allocation2 + $0x17c] sm:$0x1] %v1360_v45  ;;  %v1025_v57 = vrot.slane %v1020_v29, 4  ;;  %v1027_v44 = vshrl.u32 %v9775_v12, 16  ;;  %v1362_v41 = vld [vmem:[#allocation2 + $0x180] sm:$0xf] }
  0xd3   :  { %v1366_v36 = vld [vmem:[#allocation2 + $0x188] sm:$0x1]  ;;  %v1030_v24 = vshll.u32 %v9775_v12, 16  ;;  %v1035_v7 = vshrl.u32 %v9793_v9, 16  ;;  %v9854_v33 = vsel %vm1752_vm9, %v2083_v52, %v2087_v17  ;;  %v1024_v49 = vsel %vm9050_vm7, %v1016_v3, %v1023_v55  ;;  %v184_v34 = vld [vmem:[#allocation2 + $0xc0] sm:$0x1] }
  0xd4   :  { %14039 = vst [vmem:[#allocation33_spill] sm:$0xff] %v9854_v33  ;;  %v9856_v0 = vld [vmem:[#allocation2 + $0x168] sm:$0xff]   ;;  %v1363_v50 = vsel %vm9062_vm8, %v1015_v38, %v1362_v41  ;;  %v1367_v8 = vsel %vm8988_vm3, %v1025_v57, %v1366_v36  ;;  %2191 = vrot.lane.b32.xlu1 %v9854_v33, %s8950_s13  ;;  %v9866_v12 = vld [vmem:[#allocation2 + $0x170] ss:$0 sps:$4 sm:$0x11]   ;;  %v1029_v18 = vrot.slane %v1027_v44, 7 }
  0xd5   :  { %1364 = vst [vmem:[#allocation2 + $0x180] sm:$0xf] %v1363_v50  ;;  %1365 = vst.msk [vmem:[#allocation2 + $0x184] sm:$0xf] %vm118_vm0, %v1024_v49  ;;  %v1037_v32 = vrot.slane %v1035_v7, 7  ;;  %v1038_v35 = vshll.u32 %v9793_v9, 16 }
  0xd6   :  { %1368 = vst [vmem:[#allocation2 + $0x188] sm:$0x1] %v1367_v8  ;;  %v2090_v61 = vshrl.u32 %v9856_v0, 16  ;;  %v2092_v29 = vshll.u32 %v9856_v0, 16  ;;  %v2097_v40 = vshll.u32 %v9866_v12, 16  ;;  %v1032_v17 = vor.u32 %v1030_v24, %v1029_v18 }
  0xd7   :  { %v9873_v16 = vld [vmem:[#allocation2 + $0x174] sm:$0xff]   ;;  %v1040_v45 = vor.u32 %v1038_v35, %v1037_v32  ;;  %v1033_v3 = vrot.slane %v1029_v18, 4  ;;  %v1042_v52 = vrot.slane %v1037_v32, 4  ;;  %vm2201_vm10 = vcmask 1046528   ;;  %v294_v31 = vld [vmem:[#allocation2 + $0xc8] sm:$0x1] }
  0xd8   :  { %v2094_v38 = vrot.slane %v2092_v29, 1  ;;  %v1369_v55 = vld [vmem:[#allocation2 + $0x18c] sm:$0xf]  ;;  %v2099_v57 = vrot.slane %v2097_v40, 1  ;;  %v2102_v36 = vshrl.u32 %v9873_v16, 16  ;;  %v2104_v7 = vshll.u32 %v9873_v16, 16 }
  0xd9   :  { %v9875_v41 = vld [vmem:[#allocation2 + $0x17c] ss:$0 sps:$4 sm:$0x11]   ;;  %v1370_v9 = vsel %vm9062_vm8, %v1032_v17, %v1369_v55  ;;  %v1041_v49 = vsel %vm9050_vm7, %v1033_v3, %v1040_v45  ;;  %v1373_v24 = vld [vmem:[#allocation2 + $0x194] sm:$0x1]  ;;  %v2235_v10 = vrot.slane %v9995_v11, 1 }
  0xda   :  { %v2095_v44 = vor.u32 %v2094_v38, %v2090_v61  ;;  %1371 = vst [vmem:[#allocation2 + $0x18c] sm:$0xf] %v1370_v9  ;;  %v2109_v50 = vshll.u32 %v9875_v41, 16  ;;  %1372 = vst.msk [vmem:[#allocation2 + $0x190] sm:$0xf] %vm118_vm0, %v1041_v49  ;;  %v1374_v8 = vsel %vm8988_vm3, %v1042_v52, %v1373_v24  ;;  %v2106_v32 = vrot.slane %v2104_v7, 1 }
  0xdb   :  { %1375 = vst [vmem:[#allocation2 + $0x194] sm:$0x1] %v1374_v8  ;;  %v8753_v21 = vld [vmem:[#allocation2 + $0x8c] ss:$0 sps:$4 sm:$0x11]   ;;  %v2275_v30 = vrot.slane %v9721_v23, 1 }
  0xdc   :  { %v9888_v18 = vsel %vm1752_vm9, %v2095_v44, %v2099_v57  ;;  %v9890_v35 = vld [vmem:[#allocation2 + $0x180] sm:$0xff]   ;;  %v2111_v61 = vrot.slane %v2109_v50, 1  ;;  %v2107_v40 = vor.u32 %v2106_v32, %v2102_v36  ;;  %v8731_v36 = vld [vmem:[#allocation2 + $0x8] ss:$0 sps:$4 sm:$0x11]   ;;  %v2236_v62 = vrot.slane %v8753_v21, 1 }
  0xdd   :  { %14040 = vst [vmem:[#allocation34_spill] sm:$0xff] %v9888_v18  ;;  %2193 = vrot.lane.b32.xlu0 %v9888_v18, %s8950_s13  ;;  %v9894_v29 = vld [vmem:[#allocation2 + $0x188] ss:$0 sps:$4 sm:$0x11]   ;;  %v2114_v17 = vshrl.u32 %v9890_v35, 16  ;;  %v2116_v45 = vshll.u32 %v9890_v35, 16 }
  0xde   :  { %v2121_v38 = vshll.u32 %v9894_v29, 16  ;;  %v9900_v3 = vsel %vm1752_vm9, %v2107_v40, %v2111_v61  ;;  %v8730_v44 = vld [vmem:[#allocation2] sm:$0xff]   ;;  %v2203_v49 = vrot.slane %v8731_v36, 1  ;;  %v9920_v36 = vld [vmem:[#allocation2 + $0xc] sm:$0xff]   ;;  %vm13972_vm11 = vcmask 1041408  }
  0xdf   :  { %14041 = vst [vmem:[#allocation35_spill] sm:$0xff] %v9900_v3  ;;  %v2118_v52 = vrot.slane %v2116_v45, 1  ;;  %2195 = vrot.lane.b32.xlu1 %v9900_v3, %s8950_s13  ;;  %v2202_v7 = vrot.slane %v8730_v44, 1  ;;  %v9917_v45 = vld [vmem:[#allocation2 + $0x18] sm:$0xff]   ;;  %v2205_v18 = vrot.slane %v9920_v36, 1  ;;  %vm2838_vm12 = vcmask 31744  }
  0xe0   :  { %v2123_v55 = vrot.slane %v2121_v38, 1  ;;  %v2208_v38 = vrot.slane %v9917_v45, 1  ;;  %v8735_v3 = vld [vmem:[#allocation2 + $0x14] ss:$0 sps:$4 sm:$0x11]   ;;  %vm2903_vm13 = vcmask 64512  }
  0xe1   :  { %v2119_v57 = vor.u32 %v2118_v52, %v2114_v17  ;;  %v9904_v9 = vld [vmem:[#allocation2 + $0x18c] sm:$0xff]   ;;  %v2204_v17 = vsel %vm2201_vm10, %v2202_v7, %v2203_v49  ;;  %v8733_v52 = vld [vmem:[#allocation2 + $0x20] ss:$0 sps:$4 sm:$0x11]   ;;  %v2206_v43 = vrot.slane %v8735_v3, 1  ;;  %vm2968_vm14 = vcmask 97280  }
  0xe2   :  { %v9906_v24 = vld [vmem:[#allocation2 + $0x194] ss:$0 sps:$4 sm:$0x11]   ;;  %v2126_v8 = vshrl.u32 %v9904_v9, 16  ;;  %v2128_v32 = vshll.u32 %v9904_v9, 16  ;;  %v2209_v44 = vrot.slane %v8733_v52, 1 }
  0xe3   :  { %v9909_v50 = vsel %vm1752_vm9, %v2119_v57, %v2123_v55  ;;  %v2133_v61 = vshll.u32 %v9906_v24, 16  ;;  %v9930_v49 = vld [vmem:[#allocation2 + $0x30] sm:$0xff]   ;;  %v9936_v3 = vsel %vm2201_vm10, %v2205_v18, %v2206_v43  ;;  %v9938_v52 = vld [vmem:[#allocation2 + $0x24] sm:$0xff]   ;;  %v9954_v18 = vld [vmem:[#allocation2 + $0x3c] sm:$0xff]   ;;  %vm3033_vm15 = vcmask 130048  }
  0xe4   :  { %14042 = vst [vmem:[#allocation36_spill] sm:$0xff] %v9909_v50  ;;  %2197 = vrot.lane.b32.xlu0 %v9909_v50, %s8950_s13  ;;  %v2130_v40 = vrot.slane %v2128_v32, 1  ;;  %v9928_v7 = vsel %vm2201_vm10, %v2208_v38, %v2209_v44  ;;  %14045 = vst [vmem:[#allocation39_spill] sm:$0xff] %v9936_v3  ;;  %v9946_v44 = vld [vmem:[#allocation2 + $0x48] sm:$0xff]   ;;  %v348_v46 = vld [vmem:[#allocation2 + $0x1a0] sm:$0x1] }
  0xe5   :  { %v2135_v55 = vrot.slane %v2133_v61, 1  ;;  %14044 = vst [vmem:[#allocation38_spill] sm:$0xff] %v9928_v7  ;;  %v2214_v61 = vrot.slane %v9930_v49, 1  ;;  %v8741_v50 = vld [vmem:[#allocation2 + $0x50] ss:$0 sps:$4 sm:$0x11]  }
  0xe6   :  { %v2131_v57 = vor.u32 %v2130_v40, %v2126_v8  ;;  %v8737_v8 = vld [vmem:[#allocation2 + $0x38] ss:$0 sps:$4 sm:$0x11]   ;;  %vm3098_vm1 = vcmask 162816   ;;  %vm3163_vm2 = vcmask 195584   ;;  %vm3228_vm4 = vcmask 228352  }
  0xe7   :  { %v2215_v40 = vrot.slane %v8737_v8, 1  ;;  %v2220_v8 = vrot.slane %v9946_v44, 1  ;;  %v8755_v21 = vld [vmem:[#allocation2 + $0x98] ss:$0 sps:$4 sm:$0x11]   ;;  %vm3293_vm6 = vcmask 261120  }
  0xe8   :  { %2298 = vrot.lane.b32.xlu0 %v2204_v17, %s8951_s9  ;;  %v9925_v32 = vsel %vm1752_vm9, %v2131_v57, %v2135_v55  ;;  %v2211_v17 = vrot.slane %v9938_v52, 1  ;;  %v8739_v55 = vld [vmem:[#allocation2 + $0x2c] ss:$0 sps:$4 sm:$0x11]   ;;  %v2239_v5 = vrot.slane %v8755_v21, 1 }
  0xe9   :  { %14043 = vst [vmem:[#allocation37_spill] sm:$0xff] %v9925_v32  ;;  %2199 = vrot.lane.b32.xlu1 %v9925_v32, %s8950_s13  ;;  %v2212_v57 = vrot.slane %v8739_v55, 1  ;;  %v9944_v38 = vsel %vm2201_vm10, %v2214_v61, %v2215_v40  ;;  %v2221_v32 = vrot.slane %v8741_v50, 1  ;;  %v2217_v55 = vrot.slane %v9954_v18, 1  ;;  %v9962_v40 = vld [vmem:[#allocation2 + $0x60] sm:$0xff]  }
  0xea   :  { %14046 = vst [vmem:[#allocation40_spill] sm:$0xff] %v9944_v38  ;;  %v2226_v50 = vrot.slane %v9962_v40, 1  ;;  %v238_v21 = vld [vmem:[#allocation2 + $0x198] sm:$0x1] }
  0xeb   :  { %v9952_v43 = vsel %vm2201_vm10, %v2211_v17, %v2212_v57  ;;  %v9960_v61 = vsel %vm2201_vm10, %v2220_v8, %v2221_v32  ;;  %v9970_v57 = vld [vmem:[#allocation2 + $0x54] sm:$0xff]  }
  0xec   :  { %2302 = vrot.lane.b32.xlu0 %v9928_v7, %s8951_s9  ;;  %14047 = vst [vmem:[#allocation41_spill] sm:$0xff] %v9952_v43  ;;  %v8743_v7 = vld [vmem:[#allocation2 + $0x44] ss:$0 sps:$4 sm:$0x11]   ;;  %14048 = vst [vmem:[#allocation42_spill] sm:$0xff] %v9960_v61  ;;  %v9978_v8 = vld [vmem:[#allocation2 + $0x78] sm:$0xff]  }
  0xed   :  { %2300 = vrot.lane.b32.xlu1 %v9936_v3, %s8951_s9  ;;  %v2218_v33 = vrot.slane %v8743_v7, 1  ;;  %v8745_v3 = vld [vmem:[#allocation2 + $0x68] ss:$0 sps:$4 sm:$0x11]   ;;  %v2223_v7 = vrot.slane %v9970_v57, 1 }
  0xee   :  { %v2227_v22 = vrot.slane %v8745_v3, 1  ;;  %v2232_v3 = vrot.slane %v9978_v8, 1 }
  0xef   :  { %v9968_v17 = vsel %vm2201_vm10, %v2217_v55, %v2218_v33  ;;  %v52_v33 = vld [vmem:[%s13860_s0 + $0xf0] sm:$0xff] }
  0xf0   :  { %2306 = vrot.lane.b32.xlu0 %v9944_v38, %s8951_s9  ;;  %14049 = vst [vmem:[#allocation43_spill] sm:$0xff] %v9968_v17  ;;  %v8747_v38 = vld [vmem:[#allocation2 + $0x5c] ss:$0 sps:$4 sm:$0x11]   ;;  %v9976_v32 = vsel %vm2201_vm10, %v2226_v50, %v2227_v22 }
  0xf1   :  { %2304 = vrot.lane.b32.xlu1 %v9952_v43, %s8951_s9  ;;  %v2224_v39 = vrot.slane %v8747_v38, 1  ;;  %14050 = vst [vmem:[#allocation44_spill] sm:$0xff] %v9976_v32  ;;  %v8749_v43 = vld [vmem:[#allocation2 + $0x80] ss:$0 sps:$4 sm:$0x11]   ;;  %v9986_v38 = vld [vmem:[#allocation2 + $0x6c] sm:$0xff]  }
  0xf2   :  { %v2233_v27 = vrot.slane %v8749_v43, 1  ;;  %v2229_v55 = vrot.slane %v9986_v38, 1  ;;  %v53_v22 = vld [vmem:[%s13860_s0 + $0xf8] sm:$0xff] }
  0xf3   :  { %v9993_v50 = vsel %vm2201_vm10, %v2223_v7, %v2224_v39  ;;  %v8261_v39 = vpack.c.bf16 %v52_v33, %v52_v33  ;;  %v10009_v7 = vld [vmem:[#allocation2 + $0x90] sm:$0xff]   ;;  %v8262_v56 = vpack.c.bf16 %v53_v22, %v53_v22  ;;  %v10018_v33 = vsel %vm2201_vm10, %v2235_v10, %v2236_v62  ;;  %v10025_v22 = vld [vmem:[#allocation2 + $0xa8] sm:$0xff]  }
  0xf4   :  { %2310 = vrot.lane.b32.xlu0 %v9960_v61, %s8951_s9  ;;  %14051 = vst [vmem:[#allocation45_spill] sm:$0xff] %v9993_v50  ;;  %v8751_v61 = vld [vmem:[#allocation2 + $0x74] ss:$0 sps:$4 sm:$0x11]   ;;  %14053 = vst [vmem:[#allocation47_spill] sm:$0xff] %v10009_v7  ;;  %v2238_v26 = vrot.slane %v10009_v7, 1 }
  0xf5   :  { %2308 = vrot.lane.b32.xlu1 %v9968_v17, %s8951_s9  ;;  %v2230_v43 = vrot.slane %v8751_v61, 1  ;;  %v84_v17 = vld [vmem:[%s13860_s0 + $0x1f0] sm:$0xff]  ;;  %v10007_v61 = vsel %vm2201_vm10, %v2232_v3, %v2233_v27  ;;  %v10020_v27 = vld [vmem:[#allocation2 + $0x9c] sm:$0xff]   ;;  %14055 = vst [vmem:[#allocation49_spill] sm:$0xff] %v10025_v22  ;;  %v2244_v42 = vrot.slane %v10025_v22, 1  ;;  %v185_v62 = vsel %vm8988_vm3, 0, %v184_v34 }
  0xf6   :  { %14052 = vst [vmem:[#allocation46_spill] sm:$0xff] %v10007_v61  ;;  %v8293_v48 = vpack.c.bf16 %v84_v17, %v84_v17  ;;  %v2241_v3 = vrot.slane %v10020_v27, 1  ;;  %v8759_v17 = vld [vmem:[#allocation2 + $0xb0] ss:$0 sps:$4 sm:$0x11]   ;;  %v772_v10 = vshrl.u32 %v8261_v39, 16 }
  0xf7   :  { %v10015_v60 = vsel %vm2201_vm10, %v2229_v55, %v2230_v43  ;;  %v2245_v55 = vrot.slane %v8759_v17, 1  ;;  %v10028_v43 = vpop.permute.xlu0 %2137  ;;  %186 = vst [vmem:[#allocation2 + $0xc0] sm:$0x1] %v185_v62  ;;  %v780_v28 = vshrl.u32 %v8262_v56, 16  ;;  %v783_v19 = vshll.u32 %v8262_v56, 16 }
  0xf8   :  { %2314 = vrot.lane.b32.xlu0 %v9976_v32, %s8951_s9  ;;  %14054 = vst [vmem:[#allocation48_spill] sm:$0xff] %v10015_v60  ;;  %v8757_v32 = vld [vmem:[#allocation2 + $0xa4] ss:$0 sps:$4 sm:$0x11]   ;;  %14056 = vst [vmem:[#allocation50_spill] sm:$0xff] %v10028_v43  ;;  %v774_v59 = vrot.slane %v772_v10, 7 }
  0xf9   :  { %2312 = vrot.lane.b32.xlu1 %v9993_v50, %s8951_s9  ;;  %v2242_v25 = vrot.slane %v8757_v32, 1  ;;  %v10033_v50 = vsel %vm2201_vm10, %v2238_v26, %v2239_v5  ;;  %v775_v32 = vshll.u32 %v8261_v39, 16  ;;  %v239_v17 = vsel %vm8988_vm3, 0, %v238_v21  ;;  %v8761_v39 = vld [vmem:[#allocation2 + $0xe0] ss:$0 sps:$4 sm:$0x11]  }
  0xfa   :  { %v1044_v43 = vshrl.u32 %v8293_v48, 16  ;;  %v782_v34 = vrot.slane %v780_v28, 7  ;;  %240 = vst [vmem:[#allocation2 + $0x198] sm:$0x1] %v239_v17  ;;  %v1047_v22 = vshll.u32 %v8293_v48, 16  ;;  %v1052_v26 = vshrl.u32 %v8294_v47, 16  ;;  %v10053_v17 = vpop.permute.xlu1 %2141 }
  0xfb   :  { %v1055_v5 = vshll.u32 %v8294_v47, 16  ;;  %v10042_v56 = vsel %vm2201_vm10, %v2244_v42, %v2245_v55  ;;  %v2251_v62 = vrot.slane %v8761_v39, 1  ;;  %v295_v28 = vsel %vm9021_vm5, 0, %v294_v31  ;;  %v10050_v48 = vld [vmem:[#allocation2 + $0xb4] sm:$0xff]   ;;  %14057 = vst [vmem:[#allocation51_spill] sm:$0xff] %v10053_v17  ;;  %v10055_v39 = vpop.permute.xlu0 %2139 }
  0xfc   :  { %2318 = vrot.lane.b32.xlu0 %v10007_v61, %s8951_s9  ;;  %v8760_v61 = vld [vmem:[#allocation2 + $0xd8] sm:$0xff]   ;;  %v1046_v10 = vrot.slane %v1044_v43, 7  ;;  %v785_v7 = vor.u32 %v783_v19, %v782_v34  ;;  %v10044_v21 = vrot.slane %v1052_v26, 7  ;;  %v2247_v47 = vrot.slane %v10050_v48, 1  ;;  %14058 = vst [vmem:[#allocation52_spill] sm:$0xff] %v10055_v39  ;;  %v10065_v26 = vld [vmem:[#allocation2 + $0xf0] sm:$0xff]  }
  0xfd   :  { %2316 = vrot.lane.b32.xlu1 %v10015_v60, %s8951_s9  ;;  %v2250_v15 = vrot.slane %v8760_v61, 1  ;;  %v778_v61 = vrot.slane %v774_v59, 4  ;;  %v777_v60 = vor.u32 %v775_v32, %v774_v59  ;;  %v8763_v42 = vld [vmem:[#allocation2 + $0xbc] ss:$0 sps:$4 sm:$0x11]   ;;  %v10058_v19 = vsel %vm2201_vm10, %v2241_v3, %v2242_v25 }
  0xfe   :  { %v2248_v55 = vrot.slane %v8763_v42, 1  ;;  %v1050_v59 = vrot.slane %v1046_v10, 4  ;;  %296 = vst [vmem:[#allocation2 + $0xc8] sm:$0x1] %v295_v28  ;;  %v1049_v43 = vor.u32 %v1047_v22, %v1046_v10  ;;  %v1057_v32 = vor.u32 %v1055_v5, %v10044_v21  ;;  %v1264_v17 = vld [vmem:[#allocation2 + $0xc0] sm:$0xf] }
  0xff   :  { %v786_v31 = vsel %vm9050_vm7, %v778_v61, %v785_v7  ;;  %v2256_v42 = vrot.slane %v10065_v26, 1  ;;  %v2252_v28 = vsel %vm2201_vm10, %v2250_v15, %v2251_v62  ;;  %v8765_v25 = vld [vmem:[#allocation2 + $0xf8] ss:$0 sps:$4 sm:$0x11]   ;;  %v1265_v7 = vsel %vm9062_vm8, %v777_v60, %v1264_v17  ;;  %v10080_v15 = vld [vmem:[#allocation2 + $0xe4] sm:$0xff]  }
 0x100   :  { %2322 = vrot.lane.b32.xlu0 %v10033_v50, %s8951_s9  ;;  %1267 = vst.msk [vmem:[#allocation2 + $0xc4] sm:$0xf] %vm118_vm0, %v786_v31  ;;  %v2257_v3 = vrot.slane %v8765_v25, 1  ;;  %v1058_v22 = vsel %vm9050_vm7, %v1050_v59, %v1057_v32  ;;  %1266 = vst [vmem:[#allocation2 + $0xc0] sm:$0xf] %v1265_v7  ;;  %v787_v61 = vrot.slane %v782_v34, 4  ;;  %v10078_v10 = vsel %vm2201_vm10, %v2247_v47, %v2248_v55  ;;  %v10086_v59 = vpop.permute.xlu1 %2143  ;;  %v10088_v32 = vpop.permute.xlu0 %2145 }
 0x101   :  { %2320 = vrot.lane.b32.xlu1 %v10018_v33, %s8951_s9  ;;  %v1376_v5 = vld [vmem:[#allocation2 + $0x198] sm:$0xf]  ;;  %1379 = vst.msk [vmem:[#allocation2 + $0x19c] sm:$0xf] %vm118_vm0, %v1058_v22  ;;  %v2253_v62 = vrot.slane %v10080_v15, 1  ;;  %14059 = vst [vmem:[#allocation53_spill] sm:$0xff] %v10086_v59 }
 0x102   :  { %v8767_v31 = vld [vmem:[#allocation2 + $0xec] ss:$0 sps:$4 sm:$0x11]   ;;  %v1377_v17 = vsel %vm9062_vm8, %v1049_v43, %v1376_v5  ;;  %14060 = vst [vmem:[#allocation54_spill] sm:$0xff] %v10088_v32  ;;  %v10091_v34 = vsel %vm2201_vm10, %v2256_v42, %v2257_v3  ;;  %v10103_v5 = vld [vmem:[#allocation2 + $0xfc] sm:$0xff]  }
 0x103   :  { %v2254_v60 = vrot.slane %v8767_v31, 1  ;;  %1378 = vst [vmem:[#allocation2 + $0x198] sm:$0xf] %v1377_v17  ;;  %v10093_v47 = vld [vmem:[#allocation2 + $0x108] sm:$0xff]   ;;  %14062 = vst [vmem:[#allocation56_spill] sm:$0xff] %v10103_v5  ;;  %v2259_v42 = vrot.slane %v10103_v5, 1 }
 0x104   :  { %2326 = vrot.lane.b32.xlu0 %v10042_v56, %s8951_s9  ;;  %14061 = vst [vmem:[#allocation55_spill] sm:$0xff] %v10093_v47  ;;  %v2262_v55 = vrot.slane %v10093_v47, 1  ;;  %v8769_v25 = vld [vmem:[#allocation2 + $0x110] ss:$0 sps:$4 sm:$0x11]  }
 0x105   :  { %2324 = vrot.lane.b32.xlu1 %v10058_v19, %s8951_s9  ;;  %v2263_v7 = vrot.slane %v8769_v25, 1  ;;  %v1268_v22 = vld [vmem:[#allocation2 + $0xc8] sm:$0x1]  ;;  %v8771_v3 = vld [vmem:[#allocation2 + $0x104] ss:$0 sps:$4 sm:$0x11]  }
 0x106   :  { %v1269_v43 = vsel %vm8988_vm3, %v787_v61, %v1268_v22  ;;  %v2260_v31 = vrot.slane %v8771_v3, 1  ;;  %v2268_v25 = vrot.slane %v9633_v2, 1  ;;  %v2269_v61 = vrot.slane %v9639_v13, 1 }
 0x107   :  { %1270 = vst [vmem:[#allocation2 + $0xc8] sm:$0x1] %v1269_v43  ;;  %v10109_v17 = vsel %vm2201_vm10, %v2262_v55, %v2263_v7  ;;  %v10122_v43 = vld [vmem:[#allocation2 + $0x114] sm:$0xff]   ;;  %v8773_v55 = vld [vmem:[#allocation2 + $0x11c] ss:$0 sps:$4 sm:$0x11]  }
 0x108   :  { %2330 = vrot.lane.b32.xlu0 %v2252_v28, %s8951_s9  ;;  %v10101_v28 = vsel %vm2201_vm10, %v2253_v62, %v2254_v60  ;;  %v10115_v62 = vpop.permute.xlu1 %2147  ;;  %v10117_v60 = vpop.permute.xlu0 %2149  ;;  %v10120_v22 = vsel %vm2201_vm10, %v2259_v42, %v2260_v31  ;;  %14065 = vst [vmem:[#allocation59_spill] sm:$0xff] %v10122_v43  ;;  %v2265_v3 = vrot.slane %v10122_v43, 1  ;;  %v2266_v7 = vrot.slane %v8773_v55, 1 }
 0x109   :  { %2328 = vrot.lane.b32.xlu1 %v10078_v10, %s8951_s9  ;;  %14063 = vst [vmem:[#allocation57_spill] sm:$0xff] %v10115_v62  ;;  %14064 = vst [vmem:[#allocation58_spill] sm:$0xff] %v10117_v60  ;;  %v10128_v2 = vsel %vm2201_vm10, %v2268_v25, %v2269_v61  ;;  %v2274_v13 = vrot.slane %v9713_v20, 1  ;;  %v349_v42 = vsel %vm9021_vm5, 0, %v348_v46  ;;  %v2271_v55 = vrot.slane %v9675_v6, 1 }
 0x10a   :  { %v10137_v31 = vsel %vm2201_vm10, %v2265_v3, %v2266_v7  ;;  %v2272_v60 = vrot.slane %v9691_v37, 1  ;;  %350 = vst [vmem:[#allocation2 + $0x1a0] sm:$0x1] %v349_v42  ;;  %v2280_v46 = vrot.slane %v9783_v14, 1  ;;  %v2281_v3 = vrot.slane %v9787_v58, 1 }
 0x10b   :  { %v10148_v61 = vsel %vm2201_vm10, %v2274_v13, %v2275_v30  ;;  %v2277_v37 = vrot.slane %v9758_v63, 1  ;;  %v2278_v7 = vrot.slane %v9765_v53, 1  ;;  %v2286_v13 = vrot.slane %v9856_v0, 1 }
 0x10c   :  { %2334 = vrot.lane.b32.xlu0 %v10091_v34, %s8951_s9  ;;  %v10143_v25 = vpop.permute.xlu1 %2151  ;;  %v10145_v23 = vpop.permute.xlu0 %2153  ;;  %v10155_v6 = vsel %vm2201_vm10, %v2271_v55, %v2272_v60  ;;  %v10162_v30 = vsel %vm2201_vm10, %v2280_v46, %v2281_v3  ;;  %v2287_v58 = vrot.slane %v9866_v12, 1  ;;  %v1059_v42 = vrot.slane %v10044_v21, 4 }
 0x10d   :  { %2332 = vrot.lane.b32.xlu1 %v10101_v28, %s8951_s9  ;;  %14066 = vst [vmem:[#allocation60_spill] sm:$0xff] %v10143_v25  ;;  %14067 = vst [vmem:[#allocation61_spill] sm:$0xff] %v10145_v23  ;;  %v10174_v23 = vsel %vm2201_vm10, %v2277_v37, %v2278_v7  ;;  %v2283_v46 = vrot.slane %v9823_v54, 1  ;;  %v2284_v3 = vrot.slane %v9829_v51, 1  ;;  %v2289_v51 = vrot.slane %v9873_v16, 1 }
 0x10e   :  { %14068 = vst [vmem:[#allocation62_spill] sm:$0xff] %v10162_v30  ;;  %14071 = vst [vmem:[#allocation65_spill] sm:$0xff] %v10174_v23  ;;  %v10183_v21 = vsel %vm2201_vm10, %v2286_v13, %v2287_v58  ;;  %v2290_v7 = vrot.slane %v9875_v41, 1  ;;  %v2296_v41 = vrot.slane %v9906_v24, 1 }
 0x10f   :  { %14072 = vst [vmem:[#allocation66_spill] sm:$0xff] %v10183_v21  ;;  %v10190_v37 = vsel %vm2201_vm10, %v2283_v46, %v2284_v3 }
 0x110   :  { %2338 = vrot.lane.b32.xlu0 %v10109_v17, %s8951_s9  ;;  %v10169_v60 = vpop.permute.xlu1 %2155  ;;  %v10171_v55 = vpop.permute.xlu0 %2157  ;;  %14073 = vst [vmem:[#allocation67_spill] sm:$0xff] %v10190_v37 }
 0x111   :  { %2336 = vrot.lane.b32.xlu1 %v10120_v22, %s8951_s9  ;;  %14069 = vst [vmem:[#allocation63_spill] sm:$0xff] %v10169_v60  ;;  %14070 = vst [vmem:[#allocation64_spill] sm:$0xff] %v10171_v55  ;;  %v1380_v53 = vld [vmem:[#allocation2 + $0x1a0] sm:$0x1]  ;;  %v2292_v55 = vrot.slane %v9890_v35, 1  ;;  %v2293_v60 = vrot.slane %v9894_v29, 1  ;;  %v10206_v29 = vsel %vm2201_vm10, %v2289_v51, %v2290_v7 }
 0x112   :  { %v1381_v12 = vsel %vm8988_vm3, %v1059_v42, %v1380_v53  ;;  %14077 = vst [vmem:[#allocation71_spill] sm:$0xff] %v10206_v29  ;;  %v2295_v53 = vrot.slane %v9904_v9, 1 }
 0x113   :  { %1382 = vst [vmem:[#allocation2 + $0x1a0] sm:$0x1] %v1381_v12  ;;  %v10201_v58 = vsel %vm2201_vm10, %v2292_v55, %v2293_v60 }
 0x114   :  { %2342 = vrot.lane.b32.xlu0 %v10128_v2, %s8951_s9  ;;  %v10196_v42 = vpop.permute.xlu1 %2159  ;;  %v10198_v13 = vpop.permute.xlu0 %2161  ;;  %14076 = vst [vmem:[#allocation70_spill] sm:$0xff] %v10201_v58  ;;  %v10219_v55 = vsel %vm2201_vm10, %v2295_v53, %v2296_v41 }
 0x115   :  { %2340 = vrot.lane.b32.xlu1 %v10137_v31, %s8951_s9  ;;  %14074 = vst [vmem:[#allocation68_spill] sm:$0xff] %v10196_v42  ;;  %14075 = vst [vmem:[#allocation69_spill] sm:$0xff] %v10198_v13  ;;  %v14117_v13 = vld [vmem:[#allocation12_spill] sm:$0xff] }
 0x116   :  { %14080 = vst [vmem:[#allocation74_spill] sm:$0xff] %v10219_v55 }
 0x118   :  { %2346 = vrot.lane.b32.xlu0 %v10148_v61, %s8951_s9  ;;  %v10214_v46 = vpop.permute.xlu1 %2163  ;;  %v10216_v60 = vpop.permute.xlu0 %2165 }
 0x119   :  { %2344 = vrot.lane.b32.xlu1 %v10155_v6, %s8951_s9  ;;  %14078 = vst [vmem:[#allocation72_spill] sm:$0xff] %v10214_v46  ;;  %14079 = vst [vmem:[#allocation73_spill] sm:$0xff] %v10216_v60 }
 0x11c   :  { %2350 = vrot.lane.b32.xlu0 %v10162_v30, %s8951_s9  ;;  %v10227_v24 = vpop.permute.xlu1 %2167  ;;  %v10229_v3 = vpop.permute.xlu0 %2169 }
 0x11d   :  { %2348 = vrot.lane.b32.xlu1 %v10174_v23, %s8951_s9  ;;  %14081 = vst [vmem:[#allocation75_spill] sm:$0xff] %v10227_v24  ;;  %14082 = vst [vmem:[#allocation76_spill] sm:$0xff] %v10229_v3  ;;  %v10273_v3 = vld [vmem:[#allocation2 + $0xc0] sm:$0xff]  }
 0x11e   :  { %v2443_v30 = vshrl.u32 %v10273_v3, 16  ;;  %v14133_v23 = vld [vmem:[#allocation20_spill] sm:$0xff] }
 0x120   :  { %2354 = vrot.lane.b32.xlu0 %v10183_v21, %s8951_s9  ;;  %v10239_v12 = vpop.permute.xlu0 %2173  ;;  %v14122_v21 = vld [vmem:[#allocation13_spill] sm:$0xff] }
 0x121   :  { %2352 = vrot.lane.b32.xlu1 %v10190_v37, %s8951_s9  ;;  %14084 = vst [vmem:[#allocation78_spill] sm:$0xff] %v10239_v12  ;;  %v14126_v37 = vld [vmem:[#allocation15_spill] sm:$0xff] }
 0x124   :  { %2358 = vrot.lane.b32.xlu0 %v10201_v58, %s8951_s9  ;;  %v10249_v7 = vpop.permute.xlu0 %2177 }
 0x125   :  { %2356 = vrot.lane.b32.xlu1 %v10206_v29, %s8951_s9  ;;  %14086 = vst [vmem:[#allocation80_spill] sm:$0xff] %v10249_v7  ;;  %v14121_v29 = vld [vmem:[#allocation14_spill] sm:$0xff] }
 0x128   :  { %2372 = vrot.lane.b32.xlu0 %v9920_v36, %s8952_s19  ;;  %v10237_v36 = vpop.permute.xlu1 %2171  ;;  %v10259_v41 = vpop.permute.xlu0 %2181 }
 0x129   :  { %2360 = vrot.lane.b32.xlu1 %v10219_v55, %s8951_s9  ;;  %14083 = vst [vmem:[#allocation77_spill] sm:$0xff] %v10237_v36  ;;  %14088 = vst [vmem:[#allocation82_spill] sm:$0xff] %v10259_v41  ;;  %v14092_v36 = vld [vmem:[#allocation49_spill] sm:$0xff] }
 0x12c   :  { %2376 = vrot.lane.b32.xlu0 %v9938_v52, %s8952_s19  ;;  %v10247_v51 = vpop.permute.xlu1 %2175 }
 0x12d   :  { %2374 = vrot.lane.b32.xlu1 %v9917_v45, %s8952_s19  ;;  %14085 = vst [vmem:[#allocation79_spill] sm:$0xff] %v10247_v51  ;;  %v14089_v51 = vld [vmem:[#allocation47_spill] sm:$0xff] }
 0x130   :  { %2380 = vrot.lane.b32.xlu0 %v9954_v18, %s8952_s19  ;;  %v10257_v53 = vpop.permute.xlu1 %2179 }
 0x131   :  { %2378 = vrot.lane.b32.xlu1 %v9930_v49, %s8952_s19  ;;  %14087 = vst [vmem:[#allocation81_spill] sm:$0xff] %v10257_v53 }
 0x132   :  { %v10269_v12 = vpop.permute.xlu0 %2185 }
 0x133   :  { %14091 = vst [vmem:[#allocation83_spill] sm:$0xff] %v10269_v12 }
 0x134   :  { %2384 = vrot.lane.b32.xlu0 %v9970_v57, %s8952_s19  ;;  %v10267_v7 = vpop.permute.xlu1 %2183 }
 0x135   :  { %2382 = vrot.lane.b32.xlu1 %v9946_v44, %s8952_s19  ;;  %14090 = vst [vmem:[#allocation47_spill] sm:$0xff] %v10267_v7 }
 0x138   :  { %2388 = vrot.lane.b32.xlu0 %v9986_v38, %s8952_s19  ;;  %v10279_v41 = vpop.permute.xlu1 %2187 }
 0x139   :  { %2386 = vrot.lane.b32.xlu1 %v9962_v40, %s8952_s19  ;;  %14093 = vst [vmem:[#allocation49_spill] sm:$0xff] %v10279_v41 }
 0x13c   :  { %2392 = vrot.lane.b32.xlu0 %v9995_v11, %s8952_s19  ;;  %v10281_v53 = vpop.permute.xlu0 %2189 }
 0x13d   :  { %2390 = vrot.lane.b32.xlu1 %v9978_v8, %s8952_s19  ;;  %14094 = vst [vmem:[#allocation84_spill] sm:$0xff] %v10281_v53  ;;  %v10299_v53 = vld [vmem:[#allocation2 + $0x120] sm:$0xff]  }
 0x13e   :  { %14098 = vst [vmem:[#allocation88_spill] sm:$0xff] %v10299_v53 }
 0x140   :  { %2396 = vrot.lane.b32.xlu0 %v10020_v27, %s8952_s19 }
 0x141   :  { %2394 = vrot.lane.b32.xlu1 %v14089_v51, %s8952_s19 }
 0x144   :  { %2400 = vrot.lane.b32.xlu0 %v10050_v48, %s8952_s19 }
 0x145   :  { %2398 = vrot.lane.b32.xlu1 %v14092_v36, %s8952_s19 }
 0x146   :  { %v10287_v12 = vpop.permute.xlu1 %2191 }
 0x147   :  { %14095 = vst [vmem:[#allocation85_spill] sm:$0xff] %v10287_v12 }
 0x148   :  { %2404 = vrot.lane.b32.xlu0 %v10080_v15, %s8952_s19  ;;  %v10295_v15 = vld [vmem:[#allocation2 + $0x12c] sm:$0xff]  }
 0x149   :  { %2402 = vrot.lane.b32.xlu1 %v10273_v3, %s8952_s19  ;;  %14097 = vst [vmem:[#allocation87_spill] sm:$0xff] %v10295_v15 }
 0x14c   :  { %2408 = vrot.lane.b32.xlu0 %v10103_v5, %s8952_s19 }
 0x14d   :  { %2406 = vrot.lane.b32.xlu1 %v10065_v26, %s8952_s19 }
 0x14f   :  { %v10291_v7 = vpop.permute.xlu0 %2193 }
 0x150   :  { %2412 = vrot.lane.b32.xlu0 %v10122_v43, %s8952_s19  ;;  %14096 = vst [vmem:[#allocation86_spill] sm:$0xff] %v10291_v7  ;;  %v14165_v43 = vld [vmem:[#allocation35_spill] sm:$0xff] }
 0x151   :  { %2410 = vrot.lane.b32.xlu1 %v10093_v47, %s8952_s19  ;;  %v10303_v41 = vpop.permute.xlu1 %2195 }
 0x152   :  { %14099 = vst [vmem:[#allocation89_spill] sm:$0xff] %v10303_v41 }
 0x154   :  { %2416 = vrot.lane.b32.xlu0 %v10295_v15, %s8952_s19 }
 0x155   :  { %2414 = vrot.lane.b32.xlu1 %v10299_v53, %s8952_s19  ;;  %v14157_v53 = vld [vmem:[#allocation30_spill] sm:$0xff] }
 0x156   :  { %v10305_v12 = vpop.permute.xlu0 %2197 }
 0x157   :  { %14100 = vst [vmem:[#allocation90_spill] sm:$0xff] %v10305_v12 }
 0x158   :  { %2420 = vrot.lane.b32.xlu0 %v9758_v63, %s8952_s19 }
 0x159   :  { %2418 = vrot.lane.b32.xlu1 %v9713_v20, %s8952_s19 }
 0x15a   :  { %v10311_v7 = vpop.permute.xlu0 %2298 }
 0x15b   :  { %14101 = vst [vmem:[#allocation91_spill] sm:$0xff] %v10311_v7  ;;  %v10313_v24 = vpop.permute.xlu1 %2199 }
 0x15c   :  { %14102 = vst [vmem:[#allocation92_spill] sm:$0xff] %v10313_v24  ;;  %2424 = vrot.lane.b32.xlu0 %v9823_v54, %s8952_s19 }
 0x15d   :  { %2422 = vrot.lane.b32.xlu1 %v9783_v14, %s8952_s19  ;;  %v10335_v14 = vld [vmem:[#allocation2 + $0x198] sm:$0xff]  }
 0x15e   :  { %v10319_v60 = vpop.permute.xlu0 %2302  ;;  %14107 = vst [vmem:[#allocation97_spill] sm:$0xff] %v10335_v14 }
 0x15f   :  { %14103 = vst [vmem:[#allocation93_spill] sm:$0xff] %v10319_v60  ;;  %v10321_v41 = vpop.permute.xlu1 %2300 }
 0x160   :  { %14104 = vst [vmem:[#allocation94_spill] sm:$0xff] %v10321_v41  ;;  %2428 = vrot.lane.b32.xlu0 %v9873_v16, %s8952_s19  ;;  %v14110_v16 = vld [vmem:[#allocation9_spill] sm:$0xff]  ;;  %v14141_v41 = vld [vmem:[#allocation23_spill] sm:$0xff] }
 0x161   :  { %2426 = vrot.lane.b32.xlu1 %v9856_v0, %s8952_s19 }
 0x162   :  { %v10327_v20 = vpop.permute.xlu0 %2306 }
 0x163   :  { %14105 = vst [vmem:[#allocation95_spill] sm:$0xff] %v10327_v20  ;;  %v10329_v63 = vpop.permute.xlu1 %2304 }
 0x164   :  { %14106 = vst [vmem:[#allocation96_spill] sm:$0xff] %v10329_v63  ;;  %2432 = vrot.lane.b32.xlu0 %v9904_v9, %s8952_s19  ;;  %v14113_v9 = vld [vmem:[#allocation10_spill] sm:$0xff] }
 0x165   :  { %2430 = vrot.lane.b32.xlu1 %v9890_v35, %s8952_s19  ;;  %v14114_v35 = vld [vmem:[#allocation8_spill] sm:$0xff] }
 0x166   :  { %v10337_v54 = vpop.permute.xlu0 %2310 }
 0x167   :  { %14108 = vst [vmem:[#allocation98_spill] sm:$0xff] %v10337_v54  ;;  %v10339_v24 = vpop.permute.xlu1 %2308  ;;  %v14129_v54 = vld [vmem:[#allocation18_spill] sm:$0xff] }
 0x168   :  { %14109 = vst [vmem:[#allocation99_spill] sm:$0xff] %v10339_v24  ;;  %2466 = vrot.lane.b32.xlu0 %v14110_v16, %s8953_s20  ;;  %v14118_v16 = vld [vmem:[#allocation11_spill] sm:$0xff] }
 0x169   :  { %2434 = vrot.lane.b32.xlu1 %v10335_v14, %s8952_s19 }
 0x16a   :  { %v10345_v0 = vpop.permute.xlu0 %2314 }
 0x16b   :  { %14111 = vst [vmem:[#allocation9_spill] sm:$0xff] %v10345_v0  ;;  %v10347_v12 = vpop.permute.xlu1 %2312 }
 0x16c   :  { %14112 = vst [vmem:[#allocation100_spill] sm:$0xff] %v10347_v12  ;;  %2470 = vrot.lane.b32.xlu0 %v14113_v9, %s8953_s20 }
 0x16d   :  { %2468 = vrot.lane.b32.xlu1 %v14114_v35, %s8953_s20 }
 0x16e   :  { %v10353_v46 = vpop.permute.xlu0 %2318 }
 0x16f   :  { %14115 = vst [vmem:[#allocation10_spill] sm:$0xff] %v10353_v46  ;;  %v10355_v55 = vpop.permute.xlu1 %2316 }
 0x170   :  { %14116 = vst [vmem:[#allocation8_spill] sm:$0xff] %v10355_v55  ;;  %2474 = vrot.lane.b32.xlu0 %v14117_v13, %s8953_s20  ;;  %v14125_v55 = vld [vmem:[#allocation16_spill] sm:$0xff] }
 0x171   :  { %2472 = vrot.lane.b32.xlu1 %v14118_v16, %s8953_s20 }
 0x172   :  { %v10361_v58 = vpop.permute.xlu0 %2322 }
 0x173   :  { %14119 = vst [vmem:[#allocation12_spill] sm:$0xff] %v10361_v58  ;;  %v10363_v42 = vpop.permute.xlu1 %2320  ;;  %v10379_v58 = vld [vmem:[#allocation2 + $0xc8] ss:$0 sps:$4 sm:$0x11]  }
 0x174   :  { %14120 = vst [vmem:[#allocation11_spill] sm:$0xff] %v10363_v42  ;;  %2478 = vrot.lane.b32.xlu0 %v14121_v29, %s8953_s20  ;;  %v2445_v42 = vshll.u32 %v10273_v3, 16  ;;  %v2450_v62 = vshll.u32 %v10379_v58, 16 }
 0x175   :  { %2476 = vrot.lane.b32.xlu1 %v14122_v21, %s8953_s20 }
 0x176   :  { %v10369_v0 = vpop.permute.xlu0 %2326  ;;  %v2447_v24 = vrot.slane %v2445_v42, 1  ;;  %v2452_v63 = vrot.slane %v2450_v62, 1  ;;  %v14138_v42 = vld [vmem:[#allocation21_spill] sm:$0xff] }
 0x177   :  { %14123 = vst [vmem:[#allocation14_spill] sm:$0xff] %v10369_v0  ;;  %v10371_v46 = vpop.permute.xlu1 %2324  ;;  %v14130_v0 = vld [vmem:[#allocation17_spill] sm:$0xff] }
 0x178   :  { %14124 = vst [vmem:[#allocation13_spill] sm:$0xff] %v10371_v46  ;;  %2482 = vrot.lane.b32.xlu0 %v14125_v55, %s8953_s20  ;;  %v2448_v32 = vor.u32 %v2447_v24, %v2443_v30  ;;  %v14144_v24 = vld [vmem:[#allocation25_spill] sm:$0xff] }
 0x179   :  { %2480 = vrot.lane.b32.xlu1 %v14126_v37, %s8953_s20 }
 0x17a   :  { %v10377_v12 = vpop.permute.xlu0 %2330 }
 0x17b   :  { %14127 = vst [vmem:[#allocation16_spill] sm:$0xff] %v10377_v12  ;;  %v10382_v25 = vpop.permute.xlu1 %2328 }
 0x17c   :  { %14128 = vst [vmem:[#allocation15_spill] sm:$0xff] %v10382_v25  ;;  %2486 = vrot.lane.b32.xlu0 %v14129_v54, %s8953_s20  ;;  %v14134_v25 = vld [vmem:[#allocation19_spill] sm:$0xff] }
 0x17d   :  { %2484 = vrot.lane.b32.xlu1 %v14130_v0, %s8953_s20 }
 0x17e   :  { %v10388_v46 = vpop.permute.xlu0 %2334 }
 0x17f   :  { %14131 = vst [vmem:[#allocation18_spill] sm:$0xff] %v10388_v46  ;;  %v10392_v12 = vpop.permute.xlu1 %2332  ;;  %v14137_v46 = vld [vmem:[#allocation22_spill] sm:$0xff] }
 0x180   :  { %14132 = vst [vmem:[#allocation17_spill] sm:$0xff] %v10392_v12  ;;  %2490 = vrot.lane.b32.xlu0 %v14133_v23, %s8953_s20  ;;  %v10409_v12 = vsel %vm1752_vm9, %v2448_v32, %v2452_v63 }
 0x181   :  { %2488 = vrot.lane.b32.xlu1 %v14134_v25, %s8953_s20 }
 0x182   :  { %v10398_v20 = vpop.permute.xlu0 %2338 }
 0x183   :  { %14135 = vst [vmem:[#allocation20_spill] sm:$0xff] %v10398_v20  ;;  %v10400_v59 = vpop.permute.xlu1 %2336 }
 0x184   :  { %14136 = vst [vmem:[#allocation19_spill] sm:$0xff] %v10400_v59  ;;  %2494 = vrot.lane.b32.xlu0 %v14137_v46, %s8953_s20  ;;  %v14153_v59 = vld [vmem:[#allocation28_spill] sm:$0xff] }
 0x185   :  { %2492 = vrot.lane.b32.xlu1 %v14138_v42, %s8953_s20 }
 0x186   :  { %v10406_v60 = vpop.permute.xlu0 %2342 }
 0x187   :  { %14139 = vst [vmem:[#allocation22_spill] sm:$0xff] %v10406_v60  ;;  %v10411_v15 = vpop.permute.xlu1 %2340  ;;  %v14145_v60 = vld [vmem:[#allocation24_spill] sm:$0xff] }
 0x188   :  { %14140 = vst [vmem:[#allocation21_spill] sm:$0xff] %v10411_v15  ;;  %2498 = vrot.lane.b32.xlu0 %v14141_v41, %s8953_s20  ;;  %v14148_v15 = vld [vmem:[#allocation27_spill] sm:$0xff]  ;;  %v14149_v41 = vld [vmem:[#allocation26_spill] sm:$0xff] }
 0x189   :  { %2496 = vrot.lane.b32.xlu1 %v10409_v12, %s8953_s20 }
 0x18a   :  { %v10417_v62 = vpop.permute.xlu0 %2346 }
 0x18b   :  { %14142 = vst [vmem:[#allocation23_spill] sm:$0xff] %v10417_v62  ;;  %v10419_v30 = vpop.permute.xlu1 %2344 }
 0x18c   :  { %14143 = vst [vmem:[#allocation101_spill] sm:$0xff] %v10419_v30  ;;  %2502 = vrot.lane.b32.xlu0 %v14144_v24, %s8953_s20  ;;  %v14152_v30 = vld [vmem:[#allocation29_spill] sm:$0xff] }
 0x18d   :  { %2500 = vrot.lane.b32.xlu1 %v14145_v60, %s8953_s20 }
 0x18e   :  { %v10425_v32 = vpop.permute.xlu0 %2350 }
 0x18f   :  { %14146 = vst [vmem:[#allocation24_spill] sm:$0xff] %v10425_v32  ;;  %v10427_v63 = vpop.permute.xlu1 %2348 }
 0x190   :  { %14147 = vst [vmem:[#allocation102_spill] sm:$0xff] %v10427_v63  ;;  %2506 = vrot.lane.b32.xlu0 %v14148_v15, %s8953_s20  ;;  %v14156_v63 = vld [vmem:[#allocation31_spill] sm:$0xff] }
 0x191   :  { %2504 = vrot.lane.b32.xlu1 %v14149_v41, %s8953_s20 }
 0x192   :  { %v10433_v20 = vpop.permute.xlu0 %2354 }
 0x193   :  { %14150 = vst [vmem:[#allocation103_spill] sm:$0xff] %v10433_v20  ;;  %v10435_v62 = vpop.permute.xlu1 %2352  ;;  %v10451_v20 = vld [vmem:[#allocation2 + $0x1a0] ss:$0 sps:$4 sm:$0x11]  }
 0x194   :  { %14151 = vst [vmem:[#allocation104_spill] sm:$0xff] %v10435_v62  ;;  %2510 = vrot.lane.b32.xlu0 %v14152_v30, %s8953_s20  ;;  %14159 = vst [vmem:[#allocation108_spill] sm:$0xff] %v10451_v20  ;;  %v2457_v62 = vshll.u32 %v10335_v14, 16 }
 0x195   :  { %2508 = vrot.lane.b32.xlu1 %v14153_v59, %s8953_s20  ;;  %v14161_v59 = vld [vmem:[#allocation33_spill] sm:$0xff] }
 0x196   :  { %v10441_v39 = vpop.permute.xlu0 %2358  ;;  %v2459_v7 = vrot.slane %v2457_v62, 1  ;;  %v187_v62 = vld [vmem:[#allocation2 + $0xcc] sm:$0x1] }
 0x197   :  { %14154 = vst [vmem:[#allocation105_spill] sm:$0xff] %v10441_v39  ;;  %v10443_v32 = vpop.permute.xlu1 %2356  ;;  %v14162_v39 = vld [vmem:[#allocation32_spill] sm:$0xff] }
 0x198   :  { %14155 = vst [vmem:[#allocation106_spill] sm:$0xff] %v10443_v32  ;;  %2514 = vrot.lane.b32.xlu0 %v14156_v63, %s8953_s20  ;;  %v2455_v63 = vshrl.u32 %v10335_v14, 16  ;;  %v14170_v14 = vld [vmem:[#allocation36_spill] sm:$0xff] }
 0x199   :  { %2512 = vrot.lane.b32.xlu1 %v14157_v53, %s8953_s20  ;;  %v2462_v53 = vshll.u32 %v10451_v20, 16  ;;  %v188_v20 = vsel %vm8988_vm3, 0, %v187_v62 }
 0x19a   :  { %v10449_v15 = vpop.permute.xlu0 %2372  ;;  %189 = vst [vmem:[#allocation2 + $0xcc] sm:$0x1] %v188_v20 }
 0x19b   :  { %14158 = vst [vmem:[#allocation107_spill] sm:$0xff] %v10449_v15  ;;  %v10454_v30 = vpop.permute.xlu1 %2360  ;;  %v2464_v47 = vrot.slane %v2462_v53, 1 }
 0x19c   :  { %14160 = vst [vmem:[#allocation109_spill] sm:$0xff] %v10454_v30  ;;  %2518 = vrot.lane.b32.xlu0 %v14161_v59, %s8953_s20  ;;  %v14166_v30 = vld [vmem:[#allocation34_spill] sm:$0xff]  ;;  %v2460_v59 = vor.u32 %v2459_v7, %v2455_v63  ;;  %v14174_v63 = vld [vmem:[#allocation39_spill] sm:$0xff] }
 0x19d   :  { %2516 = vrot.lane.b32.xlu1 %v14162_v39, %s8953_s20 }
 0x19e   :  { %v10460_v32 = vpop.permute.xlu0 %2376 }
 0x19f   :  { %14163 = vst [vmem:[#allocation110_spill] sm:$0xff] %v10460_v32  ;;  %v10464_v15 = vpop.permute.xlu1 %2374  ;;  %v14169_v32 = vld [vmem:[#allocation37_spill] sm:$0xff] }
 0x1a0   :  { %14164 = vst [vmem:[#allocation111_spill] sm:$0xff] %v10464_v15  ;;  %2522 = vrot.lane.b32.xlu0 %v14165_v43, %s8953_s20 }
 0x1a1   :  { %2520 = vrot.lane.b32.xlu1 %v14166_v30, %s8953_s20  ;;  %v297_v30 = vld [vmem:[#allocation2 + $0xd4] sm:$0x1] }
 0x1a2   :  { %v10470_v41 = vpop.permute.xlu0 %2380  ;;  %v298_v7 = vsel %vm9021_vm5, 0, %v297_v30 }
 0x1a3   :  { %14167 = vst [vmem:[#allocation112_spill] sm:$0xff] %v10470_v41  ;;  %v10472_v39 = vpop.permute.xlu1 %2378  ;;  %v10483_v41 = vsel %vm1752_vm9, %v2460_v59, %v2464_v47  ;;  %299 = vst [vmem:[#allocation2 + $0xd4] sm:$0x1] %v298_v7  ;;  %v14177_v59 = vld [vmem:[#allocation41_spill] sm:$0xff]  ;;  %v14178_v47 = vld [vmem:[#allocation38_spill] sm:$0xff] }
 0x1a4   :  { %14168 = vst [vmem:[#allocation113_spill] sm:$0xff] %v10472_v39  ;;  %2526 = vrot.lane.b32.xlu0 %v14169_v32, %s8953_s20  ;;  %14172 = vst [vmem:[#allocation115_spill] sm:$0xff] %v10483_v41  ;;  %v14182_v7 = vld [vmem:[#allocation40_spill] sm:$0xff] }
 0x1a5   :  { %2524 = vrot.lane.b32.xlu1 %v14170_v14, %s8953_s20 }
 0x1a6   :  { %v10480_v43 = vpop.permute.xlu0 %2384 }
 0x1a7   :  { %14171 = vst [vmem:[#allocation114_spill] sm:$0xff] %v10480_v43  ;;  %v10487_v53 = vpop.permute.xlu1 %2382 }
 0x1a8   :  { %14173 = vst [vmem:[#allocation116_spill] sm:$0xff] %v10487_v53  ;;  %2536 = vrot.lane.b32.xlu0 %v14174_v63, %s8954_s21  ;;  %v14181_v63 = vld [vmem:[#allocation43_spill] sm:$0xff]  ;;  %v14190_v53 = vld [vmem:[#allocation44_spill] sm:$0xff] }
 0x1a9   :  { %2528 = vrot.lane.b32.xlu1 %v10483_v41, %s8953_s20 }
 0x1aa   :  { %v10493_v62 = vpop.permute.xlu0 %2388 }
 0x1ab   :  { %14175 = vst [vmem:[#allocation39_spill] sm:$0xff] %v10493_v62  ;;  %v10495_v20 = vpop.permute.xlu1 %2386  ;;  %v14185_v62 = vld [vmem:[#allocation45_spill] sm:$0xff] }
 0x1ac   :  { %14176 = vst [vmem:[#allocation117_spill] sm:$0xff] %v10495_v20  ;;  %2540 = vrot.lane.b32.xlu0 %v14177_v59, %s8954_s21  ;;  %v14186_v20 = vld [vmem:[#allocation42_spill] sm:$0xff] }
 0x1ad   :  { %2538 = vrot.lane.b32.xlu1 %v14178_v47, %s8954_s21 }
 0x1ae   :  { %v10501_v30 = vpop.permute.xlu0 %2392 }
 0x1af   :  { %14179 = vst [vmem:[#allocation41_spill] sm:$0xff] %v10501_v30  ;;  %v10503_v32 = vpop.permute.xlu1 %2390 }
 0x1b0   :  { %14180 = vst [vmem:[#allocation38_spill] sm:$0xff] %v10503_v32  ;;  %2544 = vrot.lane.b32.xlu0 %v14181_v63, %s8954_s21  ;;  %v14189_v32 = vld [vmem:[#allocation48_spill] sm:$0xff] }
 0x1b1   :  { %2542 = vrot.lane.b32.xlu1 %v14182_v7, %s8954_s21 }
 0x1b2   :  { %v10509_v41 = vpop.permute.xlu0 %2396 }
 0x1b3   :  { %14183 = vst [vmem:[#allocation43_spill] sm:$0xff] %v10509_v41  ;;  %v10511_v14 = vpop.permute.xlu1 %2394 }
 0x1b4   :  { %14184 = vst [vmem:[#allocation40_spill] sm:$0xff] %v10511_v14  ;;  %2548 = vrot.lane.b32.xlu0 %v14185_v62, %s8954_s21  ;;  %v14193_v14 = vld [vmem:[#allocation46_spill] sm:$0xff] }
 0x1b5   :  { %2546 = vrot.lane.b32.xlu1 %v14186_v20, %s8954_s21 }
 0x1b6   :  { %v10517_v43 = vpop.permute.xlu0 %2400 }
 0x1b7   :  { %14187 = vst [vmem:[#allocation45_spill] sm:$0xff] %v10517_v43  ;;  %v10519_v30 = vpop.permute.xlu1 %2398 }
 0x1b8   :  { %14188 = vst [vmem:[#allocation42_spill] sm:$0xff] %v10519_v30  ;;  %2552 = vrot.lane.b32.xlu0 %v14189_v32, %s8954_s21 }
 0x1b9   :  { %2550 = vrot.lane.b32.xlu1 %v14190_v53, %s8954_s21 }
 0x1ba   :  { %v10525_v39 = vpop.permute.xlu0 %2404 }
 0x1bb   :  { %14191 = vst [vmem:[#allocation48_spill] sm:$0xff] %v10525_v39  ;;  %v10527_v41 = vpop.permute.xlu1 %2402  ;;  %v2530_v39 = vrot.slane %v10273_v3, 1 }
 0x1bc   :  { %14192 = vst [vmem:[#allocation44_spill] sm:$0xff] %v10527_v41  ;;  %2556 = vrot.lane.b32.xlu0 %v10018_v33, %s8954_s21  ;;  %v2531_v41 = vrot.slane %v10379_v58, 1 }
 0x1bd   :  { %2554 = vrot.lane.b32.xlu1 %v14193_v14, %s8954_s21 }
 0x1be   :  { %v10533_v15 = vpop.permute.xlu0 %2408 }
 0x1bf   :  { %14194 = vst [vmem:[#allocation46_spill] sm:$0xff] %v10533_v15  ;;  %v10535_v43 = vpop.permute.xlu1 %2406 }
 0x1c0   :  { %14195 = vst [vmem:[#allocation118_spill] sm:$0xff] %v10535_v43  ;;  %2560 = vrot.lane.b32.xlu0 %v10058_v19, %s8954_s21  ;;  %v10554_v43 = vsel %vm2201_vm10, %v2530_v39, %v2531_v41  ;;  %v8650_v39 = vld [vmem:[%s13861_s1] sm:$0xff]  }
 0x1c1   :  { %2558 = vrot.lane.b32.xlu1 %v10033_v50, %s8954_s21  ;;  %8429 = vmatprep.subr.bf16.mxu0 %v8650_v39 }
 0x1c2   :  { %v10541_v30 = vpop.permute.xlu0 %2412  ;;  %8430 = vmatpush3.bf16.msra.mxu0 %v8650_v39  ;;  %v8652_v39 = vld [vmem:[%s13861_s1 + $0x10] ss:$0 sps:$4 sm:$0x33]  }
 0x1c3   :  { %14196 = vst [vmem:[#allocation119_spill] sm:$0xff] %v10541_v30  ;;  %v10545_v24 = vpop.permute.xlu1 %2410 }
 0x1c4   :  { %2564 = vrot.lane.b32.xlu0 %v10078_v10, %s8954_s21 }
 0x1c5   :  { %2562 = vrot.lane.b32.xlu1 %v10042_v56, %s8954_s21 }
 0x1c6   :  { %v10551_v15 = vpop.permute.xlu0 %2416 }
 0x1c7   :  { %14197 = vst [vmem:[#allocation120_spill] sm:$0xff] %v10551_v15  ;;  %v10556_v5 = vpop.permute.xlu1 %2414 }
 0x1c8   :  { %2568 = vrot.lane.b32.xlu0 %v10101_v28, %s8954_s21 }
 0x1c9   :  { %2566 = vrot.lane.b32.xlu1 %v10554_v43, %s8954_s21 }
 0x1ca   :  { %v10562_v58 = vpop.permute.xlu0 %2420 }
 0x1cb   :  { %14198 = vst [vmem:[#allocation121_spill] sm:$0xff] %v10562_v58  ;;  %v10564_v30 = vpop.permute.xlu1 %2418  ;;  %v8651_v58 = vld [vmem:[%s13861_s1 + $0x8] sm:$0xff]   ;;  %s8956_s1 = smov 28  }
 0x1cc   :  { %14199 = vst [vmem:[#allocation122_spill] sm:$0xff] %v10564_v30  ;;  %2572 = vrot.lane.b32.xlu0 %v10120_v22, %s8954_s21  ;;  %8431 = vmatprep.subr.bf16.mxu0 %v8651_v58 }
 0x1cd   :  { %2570 = vrot.lane.b32.xlu1 %v10091_v34, %s8954_s21  ;;  %8432 = vmatpush3.bf16.msra.mxu0 %v8651_v58 }
 0x1ce   :  { %v10573_v41 = vpop.permute.xlu0 %2424  ;;  %8569 = vmatprep.subr.msk.bf16.mxu0 %vm13972_vm11, %v8652_v39 }
 0x1cf   :  { %14200 = vst [vmem:[#allocation123_spill] sm:$0xff] %v10573_v41  ;;  %v10575_v28 = vpop.permute.xlu1 %2422 }
 0x1d0   :  { %14201 = vst [vmem:[#allocation124_spill] sm:$0xff] %v10575_v28  ;;  %2576 = vrot.lane.b32.xlu0 %v10137_v31, %s8954_s21 }
 0x1d1   :  { %2574 = vrot.lane.b32.xlu1 %v10109_v17, %s8954_s21 }
 0x1d2   :  { %v10584_v30 = vpop.permute.xlu0 %2428 }
 0x1d3   :  { %14202 = vst [vmem:[#allocation125_spill] sm:$0xff] %v10584_v30  ;;  %v10586_v15 = vpop.permute.xlu1 %2426  ;;  %v3440_v30 = vsel %vm13972_vm11, %v8652_v39, 0  ;;  %vm3373_vm11 = vcmask 293888  }
 0x1d4   :  { %14203 = vst [vmem:[#allocation126_spill] sm:$0xff] %v10586_v15  ;;  %2580 = vrot.lane.b32.xlu0 %v10155_v6, %s8954_s21  ;;  %8434 = vmatpush3.bf16.msra.mxu0 %v3440_v30 }
 0x1d5   :  { %2578 = vrot.lane.b32.xlu1 %v10128_v2, %s8954_s21 }
 0x1d6   :  { %v10595_v41 = vpop.permute.xlu0 %2432 }
 0x1d7   :  { %14204 = vst [vmem:[#allocation127_spill] sm:$0xff] %v10595_v41  ;;  %v10599_v58 = vpop.permute.xlu1 %2430 }
 0x1d8   :  { %14205 = vst [vmem:[#allocation128_spill] sm:$0xff] %v10599_v58  ;;  %2610 = vrot.lane.b32.xlu0 %v9917_v45, %s8955_s28 }
 0x1d9   :  { %2582 = vrot.lane.b32.xlu1 %v10148_v61, %s8954_s21 }
 0x1da   :  { %v10605_v15 = vpop.permute.xlu0 %2466 }
 0x1db   :  { %v10607_v28 = vpop.permute.xlu1 %2434 }
 0x1dc   :  { %14206 = vst [vmem:[#allocation129_spill] sm:$0xff] %v10607_v28  ;;  %2704 = vrot.lane.b32.xlu0 %v14114_v35, %s8956_s1 }
 0x1dd   :  { %2612 = vrot.lane.b32.xlu1 %v9938_v52, %s8955_s28 }
 0x1de   :  { %v10613_v30 = vpop.permute.xlu0 %2470 }
 0x1df   :  { %v10615_v39 = vpop.permute.xlu1 %2468 }
 0x1e0   :  { %2774 = vrot.lane.b32.xlu0 %v14178_v47, %s8957_s29 }
 0x1e1   :  { %2706 = vrot.lane.b32.xlu1 %v14113_v9, %s8956_s1 }
 0x1e2   :  { %v10621_v45 = vpop.permute.xlu0 %2474 }
 0x1e3   :  { %v10623_v28 = vpop.permute.xlu1 %2472 }
 0x1e4   :  { %2614 = vrot.lane.b32.xlu0 %v9930_v49, %s8955_s28 }
 0x1e5   :  { %2776 = vrot.lane.b32.xlu1 %v14177_v59, %s8957_s29 }
 0x1e6   :  { %v10629_v52 = vpop.permute.xlu0 %2478 }
 0x1e7   :  { %v10631_v35 = vpop.permute.xlu1 %2476 }
 0x1e8   :  { %2708 = vrot.lane.b32.xlu0 %v14118_v16, %s8956_s1 }
 0x1e9   :  { %2616 = vrot.lane.b32.xlu1 %v9954_v18, %s8955_s28 }
 0x1ea   :  { %v10637_v9 = vpop.permute.xlu0 %2482 }
 0x1eb   :  { %v10639_v47 = vpop.permute.xlu1 %2480 }
 0x1ec   :  { %2778 = vrot.lane.b32.xlu0 %v14182_v7, %s8957_s29 }
 0x1ed   :  { %2710 = vrot.lane.b32.xlu1 %v14117_v13, %s8956_s1 }
 0x1ee   :  { %v10645_v49 = vpop.permute.xlu0 %2486 }
 0x1ef   :  { %v10647_v59 = vpop.permute.xlu1 %2484 }
 0x1f0   :  { %2618 = vrot.lane.b32.xlu0 %v9946_v44, %s8955_s28 }
 0x1f1   :  { %2780 = vrot.lane.b32.xlu1 %v14181_v63, %s8957_s29 }
 0x1f2   :  { %v10653_v18 = vpop.permute.xlu0 %2490 }
 0x1f3   :  { %v10655_v16 = vpop.permute.xlu1 %2488 }
 0x1f4   :  { %2712 = vrot.lane.b32.xlu0 %v14122_v21, %s8956_s1 }
 0x1f5   :  { %2620 = vrot.lane.b32.xlu1 %v9970_v57, %s8955_s28 }
 0x1f6   :  { %v10661_v13 = vpop.permute.xlu0 %2494 }
 0x1f7   :  { %v10663_v7 = vpop.permute.xlu1 %2492 }
 0x1f8   :  { %2782 = vrot.lane.b32.xlu0 %v14186_v20, %s8957_s29 }
 0x1f9   :  { %2714 = vrot.lane.b32.xlu1 %v14121_v29, %s8956_s1 }
 0x1fa   :  { %v10669_v44 = vpop.permute.xlu0 %2498 }
 0x1fb   :  { %v10671_v63 = vpop.permute.xlu1 %2496 }
 0x1fc   :  { %2622 = vrot.lane.b32.xlu0 %v9962_v40, %s8955_s28 }
 0x1fd   :  { %2784 = vrot.lane.b32.xlu1 %v14185_v62, %s8957_s29 }
 0x1fe   :  { %v10677_v57 = vpop.permute.xlu0 %2502 }
 0x1ff   :  { %v10679_v21 = vpop.permute.xlu1 %2500 }
 0x200   :  { %2716 = vrot.lane.b32.xlu0 %v14126_v37, %s8956_s1 }
 0x201   :  { %2624 = vrot.lane.b32.xlu1 %v9986_v38, %s8955_s28 }
 0x202   :  { %v10685_v29 = vpop.permute.xlu0 %2506 }
 0x203   :  { %v10687_v20 = vpop.permute.xlu1 %2504 }
 0x204   :  { %2786 = vrot.lane.b32.xlu0 %v14190_v53, %s8957_s29 }
 0x205   :  { %2718 = vrot.lane.b32.xlu1 %v14125_v55, %s8956_s1 }
 0x206   :  { %v10693_v40 = vpop.permute.xlu0 %2510 }
 0x207   :  { %14207 = vst [vmem:[#allocation130_spill] sm:$0xff] %v10693_v40  ;;  %v10695_v62 = vpop.permute.xlu1 %2508 }
 0x208   :  { %2626 = vrot.lane.b32.xlu0 %v9978_v8, %s8955_s28 }
 0x209   :  { %2788 = vrot.lane.b32.xlu1 %v14189_v32, %s8957_s29 }
 0x20a   :  { %v10701_v38 = vpop.permute.xlu0 %2514 }
 0x20b   :  { %14208 = vst [vmem:[#allocation131_spill] sm:$0xff] %v10701_v38  ;;  %v10703_v37 = vpop.permute.xlu1 %2512  ;;  %v14226_v38 = vld [vmem:[#allocation91_spill] sm:$0xff] }
 0x20c   :  { %14209 = vst [vmem:[#allocation132_spill] sm:$0xff] %v10703_v37  ;;  %2720 = vrot.lane.b32.xlu0 %v14130_v0, %s8956_s1  ;;  %v241_v0 = vld [vmem:[#allocation2 + $0x1a4] sm:$0x1]  ;;  %v14227_v37 = vld [vmem:[#allocation107_spill] sm:$0xff] }
 0x20d   :  { %2628 = vrot.lane.b32.xlu1 %v9995_v11, %s8955_s28  ;;  %v242_v11 = vsel %vm8988_vm3, 0, %v241_v0 }
 0x20e   :  { %v10709_v55 = vpop.permute.xlu0 %2518  ;;  %243 = vst [vmem:[#allocation2 + $0x1a4] sm:$0x1] %v242_v11 }
 0x20f   :  { %14210 = vst [vmem:[#allocation133_spill] sm:$0xff] %v10709_v55  ;;  %v10711_v53 = vpop.permute.xlu1 %2516 }
 0x210   :  { %14211 = vst [vmem:[#allocation134_spill] sm:$0xff] %v10711_v53  ;;  %2790 = vrot.lane.b32.xlu0 %v14193_v14, %s8957_s29  ;;  %v351_v14 = vld [vmem:[#allocation2 + $0x1ac] sm:$0x1] }
 0x211   :  { %2722 = vrot.lane.b32.xlu1 %v14129_v54, %s8956_s1  ;;  %v352_v54 = vsel %vm9021_vm5, 0, %v351_v14 }
 0x212   :  { %v10717_v8 = vpop.permute.xlu0 %2522  ;;  %353 = vst [vmem:[#allocation2 + $0x1ac] sm:$0x1] %v352_v54 }
 0x213   :  { %14212 = vst [vmem:[#allocation135_spill] sm:$0xff] %v10717_v8  ;;  %v10719_v32 = vpop.permute.xlu1 %2520 }
 0x214   :  { %14213 = vst [vmem:[#allocation136_spill] sm:$0xff] %v10719_v32  ;;  %2630 = vrot.lane.b32.xlu0 %v14089_v51, %s8955_s28 }
 0x215   :  { %2792 = vrot.lane.b32.xlu1 %v10018_v33, %s8957_s29 }
 0x216   :  { %v10727_v41 = vpop.permute.xlu0 %2526 }
 0x217   :  { %14214 = vst [vmem:[#allocation137_spill] sm:$0xff] %v10727_v41  ;;  %v10731_v58 = vpop.permute.xlu1 %2524 }
 0x218   :  { %14215 = vst [vmem:[#allocation138_spill] sm:$0xff] %v10731_v58  ;;  %2724 = vrot.lane.b32.xlu0 %v14134_v25, %s8956_s1  ;;  %v8648_v25 = vld [vmem:[#allocation2 + $0xcc] sm:$0xff]  }
 0x219   :  { %2632 = vrot.lane.b32.xlu1 %v10020_v27, %s8955_s28  ;;  %v2683_v54 = vshll.u32 %v8648_v25, 16  ;;  %v2768_v55 = vrot.slane %v8648_v25, 1 }
 0x21a   :  { %v10737_v51 = vpop.permute.xlu0 %2536 }
 0x21b   :  { %v10739_v0 = vpop.permute.xlu1 %2528  ;;  %v2685_v41 = vrot.slane %v2683_v54, 1 }
 0x21c   :  { %14216 = vst [vmem:[#allocation139_spill] sm:$0xff] %v10739_v0  ;;  %2794 = vrot.lane.b32.xlu0 %v10033_v50, %s8957_s29 }
 0x21d   :  { %2726 = vrot.lane.b32.xlu1 %v14133_v23, %s8956_s1  ;;  %v8649_v23 = vld [vmem:[#allocation2 + $0xd4] ss:$0 sps:$4 sm:$0x11]  }
 0x21e   :  { %v10745_v33 = vpop.permute.xlu0 %2540 }
 0x21f   :  { %v10747_v11 = vpop.permute.xlu1 %2538 }
 0x220   :  { %2634 = vrot.lane.b32.xlu0 %v14092_v36, %s8955_s28  ;;  %v2681_v36 = vshrl.u32 %v8648_v25, 16 }
 0x221   :  { %2796 = vrot.lane.b32.xlu1 %v10058_v19, %s8957_s29 }
 0x222   :  { %v10753_v27 = vpop.permute.xlu0 %2544  ;;  %v2686_v8 = vor.u32 %v2685_v41, %v2681_v36 }
 0x223   :  { %v10755_v14 = vpop.permute.xlu1 %2542 }
 0x224   :  { %2728 = vrot.lane.b32.xlu0 %v14138_v42, %s8956_s1  ;;  %v2688_v42 = vshll.u32 %v8649_v23, 16 }
 0x225   :  { %2636 = vrot.lane.b32.xlu1 %v10050_v48, %s8955_s28 }
 0x226   :  { %v10761_v50 = vpop.permute.xlu0 %2548 }
 0x227   :  { %v10763_v0 = vpop.permute.xlu1 %2546 }
 0x228   :  { %2798 = vrot.lane.b32.xlu0 %v10042_v56, %s8957_s29  ;;  %v2690_v56 = vrot.slane %v2688_v42, 1 }
 0x229   :  { %2730 = vrot.lane.b32.xlu1 %v14137_v46, %s8956_s1 }
 0x22a   :  { %v10769_v19 = vpop.permute.xlu0 %2552  ;;  %v2691_v54 = vsel %vm1752_vm9, %v2686_v8, %v2690_v56  ;;  %v14219_v56 = vld [vmem:[#allocation55_spill] sm:$0xff] }
 0x22b   :  { %v10771_v58 = vpop.permute.xlu1 %2550 }
 0x22c   :  { %2638 = vrot.lane.b32.xlu0 %v10273_v3, %s8955_s28  ;;  %v2769_v3 = vrot.slane %v8649_v23, 1 }
 0x22d   :  { %2800 = vrot.lane.b32.xlu1 %v10078_v10, %s8957_s29 }
 0x22e   :  { %v10777_v48 = vpop.permute.xlu0 %2556  ;;  %v2770_v41 = vsel %vm2201_vm10, %v2768_v55, %v2769_v3  ;;  %v14222_v3 = vld [vmem:[#allocation26_spill] sm:$0xff] }
 0x22f   :  { %v10779_v32 = vpop.permute.xlu1 %2554 }
 0x230   :  { %2732 = vrot.lane.b32.xlu0 %v10409_v12, %s8956_s1 }
 0x231   :  { %2640 = vrot.lane.b32.xlu1 %v8648_v25, %s8955_s28 }
 0x232   :  { %v10784_v46 = vpop.permute.xlu0 %2560 }
 0x233   :  { %v10787_v53 = vpop.permute.xlu1 %2558 }
 0x234   :  { %2802 = vrot.lane.b32.xlu0 %v10554_v43, %s8957_s29  ;;  %v14217_v43 = vld [vmem:[#allocation56_spill] sm:$0xff] }
 0x235   :  { %2734 = vrot.lane.b32.xlu1 %v2691_v54, %s8956_s1 }
 0x236   :  { %v10792_v10 = vpop.permute.xlu0 %2564 }
 0x237   :  { %v10795_v12 = vpop.permute.xlu1 %2562 }
 0x238   :  { %2642 = vrot.lane.b32.xlu0 %v10065_v26, %s8955_s28  ;;  %v14218_v26 = vld [vmem:[#allocation25_spill] sm:$0xff] }
 0x239   :  { %2804 = vrot.lane.b32.xlu1 %v2770_v41, %s8957_s29 }
 0x23a   :  { %v10800_v8 = vpop.permute.xlu0 %2568 }
 0x23b   :  { %v10802_v25 = vpop.permute.xlu1 %2566 }
 0x23c   :  { %2736 = vrot.lane.b32.xlu0 %v14145_v60, %s8956_s1 }
 0x23d   :  { %2644 = vrot.lane.b32.xlu1 %v14217_v43, %s8955_s28  ;;  %v8776_v43 = vld [vmem:[#allocation2] sm:$0xff]  }
 0x23e   :  { %v10808_v23 = vpop.permute.xlu0 %2572 }
 0x23f   :  { %v10810_v55 = vpop.permute.xlu1 %2570 }
 0x240   :  { %2806 = vrot.lane.b32.xlu0 %v10091_v34, %s8957_s29  ;;  %v14223_v34 = vld [vmem:[#allocation59_spill] sm:$0xff] }
 0x241   :  { %2738 = vrot.lane.b32.xlu1 %v14218_v26, %s8956_s1  ;;  %v14224_v26 = vld [vmem:[#allocation50_spill] sm:$0xff] }
 0x242   :  { %v10816_v36 = vpop.permute.xlu0 %2576 }
 0x243   :  { %v10818_v42 = vpop.permute.xlu1 %2574 }
 0x244   :  { %2646 = vrot.lane.b32.xlu0 %v14219_v56, %s8955_s28  ;;  %v2840_v56 = vsel %vm2838_vm12, %v8776_v43, %v14224_v26 }
 0x245   :  { %2808 = vrot.lane.b32.xlu1 %v10120_v22, %s8957_s29 }
 0x246   :  { %v10824_v60 = vpop.permute.xlu0 %2580 }
 0x247   :  { %14220 = vst [vmem:[#allocation56_spill] sm:$0xff] %v10824_v60  ;;  %v10826_v54 = vpop.permute.xlu1 %2578 }
 0x248   :  { %14221 = vst [vmem:[#allocation25_spill] sm:$0xff] %v10826_v54  ;;  %2740 = vrot.lane.b32.xlu0 %v14222_v3, %s8956_s1  ;;  %v2905_v3 = vsel %vm2903_vm13, %v2840_v56, %v14226_v38  ;;  %v14230_v56 = vld [vmem:[#allocation52_spill] sm:$0xff] }
 0x249   :  { %2648 = vrot.lane.b32.xlu1 %v14223_v34, %s8955_s28  ;;  %v2970_v60 = vsel %vm2968_vm14, %v2905_v3, %v14227_v37  ;;  %v14228_v34 = vld [vmem:[#allocation27_spill] sm:$0xff]  ;;  %v8777_v37 = vld [vmem:[#allocation2 + $0xc] sm:$0xff]  }
 0x24a   :  { %v2611_v41 = vpop.permute.xlu0 %2610  ;;  %v3035_v43 = vsel %vm3033_vm15, %v2970_v60, %v10605_v15  ;;  %v2842_v3 = vsel %vm2838_vm12, %v8777_v37, %v14230_v56 }
 0x24b   :  { %v10834_v22 = vpop.permute.xlu1 %2582  ;;  %v3100_v26 = vsel %vm3098_vm1, %v3035_v43, %v10737_v51 }
 0x24c   :  { %14225 = vst [vmem:[#allocation55_spill] sm:$0xff] %v10834_v22  ;;  %2810 = vrot.lane.b32.xlu0 %v10109_v17, %s8957_s29  ;;  %v14229_v22 = vld [vmem:[#allocation88_spill] sm:$0xff]  ;;  %v3165_v38 = vsel %vm3163_vm2, %v3100_v26, %v2611_v41 }
 0x24d   :  { %2742 = vrot.lane.b32.xlu1 %v14228_v34, %s8956_s1  ;;  %v14231_v34 = vld [vmem:[#allocation94_spill] sm:$0xff]  ;;  %v14233_v26 = vld [vmem:[#allocation28_spill] sm:$0xff] }
 0x24e   :  { %v2705_v40 = vpop.permute.xlu0 %2704  ;;  %v2907_v51 = vsel %vm2903_vm13, %v2842_v3, %v14231_v34  ;;  %v8778_v3 = vld [vmem:[#allocation2 + $0x18] sm:$0xff]  }
 0x24f   :  { %v2613_v17 = vpop.permute.xlu1 %2612  ;;  %v3230_v15 = vsel %vm3228_vm4, %v3165_v38, %v2705_v40  ;;  %v14234_v38 = vld [vmem:[#allocation87_spill] sm:$0xff] }
 0x250   :  { %2650 = vrot.lane.b32.xlu0 %v14229_v22, %s8955_s28  ;;  %v14232_v22 = vld [vmem:[#allocation111_spill] sm:$0xff] }
 0x251   :  { %2812 = vrot.lane.b32.xlu1 %v10137_v31, %s8957_s29  ;;  %v2972_v54 = vsel %vm2968_vm14, %v2907_v51, %v14232_v22 }
 0x252   :  { %v2775_v60 = vpop.permute.xlu0 %2774  ;;  %v3037_v31 = vsel %vm3033_vm15, %v2972_v54, %v10615_v39  ;;  %v14236_v39 = vld [vmem:[#allocation93_spill] sm:$0xff] }
 0x253   :  { %v3295_v43 = vsel %vm3293_vm6, %v3230_v15, %v2775_v60  ;;  %v2707_v41 = vpop.permute.xlu1 %2706  ;;  %v3102_v40 = vsel %vm3098_vm1, %v3037_v31, %v10747_v11  ;;  %v14235_v15 = vld [vmem:[#allocation51_spill] sm:$0xff] }
 0x254   :  { %2744 = vrot.lane.b32.xlu0 %v14233_v26, %s8956_s1  ;;  %8435 = vmatprep.mubr.msk.bf16.mxu0 %vm3373_vm11, %v3295_v43  ;;  %v3167_v56 = vsel %vm3163_vm2, %v3102_v40, %v2613_v17  ;;  %v2844_v60 = vsel %vm2838_vm12, %v8778_v3, %v14235_v15  ;;  %v14237_v43 = vld [vmem:[#allocation110_spill] sm:$0xff]  ;;  %v14238_v17 = vld [vmem:[#allocation29_spill] sm:$0xff]  ;;  %v10888_v40 = vld [vmem:[#allocation2 + $0x138] sm:$0xff]  }
 0x255   :  { %2652 = vrot.lane.b32.xlu1 %v14234_v38, %s8955_s28  ;;  %v3232_v34 = vsel %vm3228_vm4, %v3167_v56, %v2707_v41  ;;  %v2909_v54 = vsel %vm2903_vm13, %v2844_v60, %v14236_v39  ;;  %v8780_v56 = vld [vmem:[#allocation2 + $0x24] sm:$0xff]  }
 0x256   :  { %v2615_v37 = vpop.permute.xlu0 %2614  ;;  %v2974_v22 = vsel %vm2968_vm14, %v2909_v54, %v14237_v43  ;;  %v14239_v3 = vld [vmem:[#allocation53_spill] sm:$0xff] }
 0x257   :  { %v2777_v51 = vpop.permute.xlu1 %2776  ;;  %v3039_v41 = vsel %vm3033_vm15, %v2974_v22, %v10613_v30  ;;  %v2846_v15 = vsel %vm2838_vm12, %v8780_v56, %v14239_v3  ;;  %v14241_v39 = vld [vmem:[#allocation113_spill] sm:$0xff] }
 0x258   :  { %2814 = vrot.lane.b32.xlu0 %v10128_v2, %s8957_s29  ;;  %v3297_v11 = vsel %vm3293_vm6, %v3232_v34, %v2777_v51  ;;  %v3104_v2 = vsel %vm3098_vm1, %v3039_v41, %v10745_v33  ;;  %v14240_v34 = vld [vmem:[#allocation96_spill] sm:$0xff]  ;;  %v8782_v41 = vld [vmem:[#allocation2 + $0x30] sm:$0xff]  }
 0x259   :  { %2746 = vrot.lane.b32.xlu1 %v14238_v17, %s8956_s1  ;;  %8436 = vmatmul.mubr.msk.bf16.vlgmr.msra.gmra.mrb[0].mxu0 %vm3373_vm11, %v3297_v11  ;;  %v3169_v38 = vsel %vm3163_vm2, %v3104_v2, %v2615_v37  ;;  %v2911_v33 = vsel %vm2903_vm13, %v2846_v15, %v14240_v34  ;;  %v14242_v37 = vld [vmem:[#allocation30_spill] sm:$0xff]  ;;  %v10910_v22 = vld [vmem:[#allocation2 + $0x144] sm:$0xff]  }
 0x25a   :  { %v2709_v26 = vpop.permute.xlu0 %2708  ;;  %v2976_v54 = vsel %vm2968_vm14, %v2911_v33, %v14241_v39  ;;  %v14243_v2 = vld [vmem:[#allocation54_spill] sm:$0xff]  ;;  %v14247_v39 = vld [vmem:[#allocation65_spill] sm:$0xff] }
 0x25b   :  { %v2617_v31 = vpop.permute.xlu1 %2616  ;;  %v3234_v30 = vsel %vm3228_vm4, %v3169_v38, %v2709_v26  ;;  %v2848_v38 = vsel %vm2838_vm12, %v8782_v41, %v14243_v2  ;;  %v14250_v2 = vld [vmem:[#allocation116_spill] sm:$0xff] }
 0x25c   :  { %2654 = vrot.lane.b32.xlu0 %v10888_v40, %s8955_s28 }
 0x25d   :  { %2816 = vrot.lane.b32.xlu1 %v10155_v6, %s8957_s29  ;;  %v3041_v6 = vsel %vm3033_vm15, %v2976_v54, %v10623_v28  ;;  %v14244_v28 = vld [vmem:[#allocation95_spill] sm:$0xff] }
 0x25e   :  { %v2779_v60 = vpop.permute.xlu0 %2778  ;;  %v3106_v43 = vsel %vm3098_vm1, %v3041_v6, %v10755_v14  ;;  %v2913_v14 = vsel %vm2903_vm13, %v2848_v38, %v14244_v28 }
 0x25f   :  { %v3299_v51 = vsel %vm3293_vm6, %v3234_v30, %v2779_v60  ;;  %v2711_v11 = vpop.permute.xlu1 %2710  ;;  %v3171_v26 = vsel %vm3163_vm2, %v3106_v43, %v2617_v31  ;;  %v14245_v30 = vld [vmem:[#allocation112_spill] sm:$0xff]  ;;  %v14246_v31 = vld [vmem:[#allocation31_spill] sm:$0xff] }
 0x260   :  { %2748 = vrot.lane.b32.xlu0 %v14242_v37, %s8956_s1  ;;  %8439 = vmatprep.mubr.msk.bf16.mxu0 %vm3373_vm11, %v3299_v51  ;;  %v3236_v56 = vsel %vm3228_vm4, %v3171_v26, %v2711_v11  ;;  %v2978_v60 = vsel %vm2968_vm14, %v2913_v14, %v14245_v30  ;;  %v8783_v11 = vld [vmem:[#allocation2 + $0x3c] sm:$0xff]   ;;  %v14248_v37 = vld [vmem:[#allocation57_spill] sm:$0xff]  ;;  %v14251_v14 = vld [vmem:[#allocation62_spill] sm:$0xff] }
 0x261   :  { %2656 = vrot.lane.b32.xlu1 %v10910_v22, %s8955_s28  ;;  %v3043_v33 = vsel %vm3033_vm15, %v2978_v60, %v10621_v45  ;;  %v2850_v6 = vsel %vm2838_vm12, %v8783_v11, %v14248_v37  ;;  %v14249_v45 = vld [vmem:[#allocation99_spill] sm:$0xff]  ;;  %v8785_v60 = vld [vmem:[#allocation2 + $0x48] sm:$0xff]   ;;  %v14255_v11 = vld [vmem:[#allocation114_spill] sm:$0xff] }
 0x262   :  { %v2619_v17 = vpop.permute.xlu0 %2618  ;;  %v2915_v41 = vsel %vm2903_vm13, %v2850_v6, %v14249_v45  ;;  %v10967_v6 = vld [vmem:[#allocation2 + $0x15c] sm:$0xff]  }
 0x263   :  { %v2781_v3 = vpop.permute.xlu1 %2780  ;;  %v2980_v38 = vsel %vm2968_vm14, %v2915_v41, %v14250_v2  ;;  %v14256_v2 = vld [vmem:[#allocation60_spill] sm:$0xff] }
 0x264   :  { %2818 = vrot.lane.b32.xlu0 %v10148_v61, %s8957_s29  ;;  %v3301_v15 = vsel %vm3293_vm6, %v3236_v56, %v2781_v3  ;;  %v3108_v61 = vsel %vm3098_vm1, %v3043_v33, %v10753_v27  ;;  %v3045_v3 = vsel %vm3033_vm15, %v2980_v38, %v10631_v35  ;;  %v14254_v35 = vld [vmem:[#allocation98_spill] sm:$0xff] }
 0x265   :  { %2750 = vrot.lane.b32.xlu1 %v14246_v31, %s8956_s1  ;;  %8440 = vmatmul.mubr.msk.bf16.gmra.mrb[4].mxu0 %vm3373_vm11, %v3301_v15  ;;  %v3173_v54 = vsel %vm3163_vm2, %v3108_v61, %v2619_v17  ;;  %v10945_v17 = vld [vmem:[#allocation2 + $0x150] sm:$0xff]   ;;  %v3110_v28 = vsel %vm3098_vm1, %v3045_v3, %v10763_v0 }
 0x266   :  { %v2713_v34 = vpop.permute.xlu0 %2712  ;;  %v14252_v31 = vld [vmem:[#allocation58_spill] sm:$0xff] }
 0x267   :  { %v2621_v51 = vpop.permute.xlu1 %2620  ;;  %v3238_v43 = vsel %vm3228_vm4, %v3173_v54, %v2713_v34  ;;  %v2852_v34 = vsel %vm2838_vm12, %v8785_v60, %v14252_v31  ;;  %v14259_v60 = vld [vmem:[#allocation117_spill] sm:$0xff] }
 0x268   :  { %2584 = vrot.lane.b32.xlu0 %v14247_v39, %s8954_s21  ;;  %v3175_v30 = vsel %vm3163_vm2, %v3110_v28, %v2621_v51  ;;  %v2917_v54 = vsel %vm2903_vm13, %v2852_v34, %v14254_v35  ;;  %v8788_v35 = vld [vmem:[#allocation2 + $0x60] sm:$0xff]  }
 0x269   :  { %2820 = vrot.lane.b32.xlu1 %v14247_v39, %s8957_s29  ;;  %v14253_v39 = vld [vmem:[#allocation32_spill] sm:$0xff]  ;;  %v2982_v37 = vsel %vm2968_vm14, %v2917_v54, %v14255_v11  ;;  %v14261_v54 = vld [vmem:[#allocation61_spill] sm:$0xff] }
 0x26a   :  { %v2783_v26 = vpop.permute.xlu0 %2782 }
 0x26b   :  { %v3303_v27 = vsel %vm3293_vm6, %v3238_v43, %v2783_v26  ;;  %v2715_v56 = vpop.permute.xlu1 %2714  ;;  %v3047_v43 = vsel %vm3033_vm15, %v2982_v37, %v10629_v52  ;;  %v14258_v52 = vld [vmem:[#allocation100_spill] sm:$0xff] }
 0x26c   :  { %2658 = vrot.lane.b32.xlu0 %v10945_v17, %s8955_s28  ;;  %8443 = vmatprep.mubr.msk.bf16.mxu0 %vm3373_vm11, %v3303_v27  ;;  %v3240_v33 = vsel %vm3228_vm4, %v3175_v30, %v2715_v56  ;;  %v3112_v26 = vsel %vm3098_vm1, %v3047_v43, %v10761_v50  ;;  %v8787_v27 = vld [vmem:[#allocation2 + $0x54] sm:$0xff]   ;;  %v14257_v56 = vld [vmem:[#allocation33_spill] sm:$0xff] }
 0x26d   :  { %2586 = vrot.lane.b32.xlu1 %v14251_v14, %s8954_s21  ;;  %v2854_v38 = vsel %vm2838_vm12, %v8787_v27, %v14256_v2 }
 0x26e   :  { %v2623_v15 = vpop.permute.xlu0 %2622  ;;  %v2919_v30 = vsel %vm2903_vm13, %v2854_v38, %v14258_v52  ;;  %v8790_v52 = vld [vmem:[#allocation2 + $0x6c] sm:$0xff]  }
 0x26f   :  { %v2785_v61 = vpop.permute.xlu1 %2784  ;;  %v3177_v41 = vsel %vm3163_vm2, %v3112_v26, %v2623_v15  ;;  %v14260_v15 = vld [vmem:[#allocation67_spill] sm:$0xff] }
 0x270   :  { %2752 = vrot.lane.b32.xlu0 %v14253_v39, %s8956_s1  ;;  %v3305_v0 = vsel %vm3293_vm6, %v3240_v33, %v2785_v61  ;;  %v14263_v26 = vld [vmem:[#allocation39_spill] sm:$0xff] }
 0x271   :  { %2660 = vrot.lane.b32.xlu1 %v10967_v6, %s8955_s28  ;;  %8444 = vmatmul.mubr.msk.bf16.gmra.mrb[8].mxu0 %vm3373_vm11, %v3305_v0  ;;  %v2856_v0 = vsel %vm2838_vm12, %v8788_v35, %v14261_v54  ;;  %v14269_v54 = vld [vmem:[#allocation35_spill] sm:$0xff] }
 0x272   :  { %v2717_v51 = vpop.permute.xlu0 %2716 }
 0x273   :  { %v2625_v45 = vpop.permute.xlu1 %2624  ;;  %v3242_v3 = vsel %vm3228_vm4, %v3177_v41, %v2717_v51  ;;  %v11002_v51 = vld [vmem:[#allocation2 + $0x168] sm:$0xff]   ;;  %v14264_v41 = vld [vmem:[#allocation66_spill] sm:$0xff] }
 0x274   :  { %2822 = vrot.lane.b32.xlu0 %v14251_v14, %s8957_s29  ;;  %v2984_v14 = vsel %vm2968_vm14, %v2919_v30, %v14259_v60  ;;  %v14266_v30 = vld [vmem:[#allocation63_spill] sm:$0xff] }
 0x275   :  { %2754 = vrot.lane.b32.xlu1 %v14257_v56, %s8956_s1  ;;  %v3049_v34 = vsel %vm3033_vm15, %v2984_v14, %v10639_v47  ;;  %v14262_v47 = vld [vmem:[#allocation9_spill] sm:$0xff]  ;;  %v11023_v60 = vld [vmem:[#allocation2 + $0x174] sm:$0xff]  }
 0x276   :  { %v2787_v28 = vpop.permute.xlu0 %2786  ;;  %v3114_v33 = vsel %vm3098_vm1, %v3049_v34, %v10771_v58  ;;  %v2921_v58 = vsel %vm2903_vm13, %v2856_v0, %v14262_v47  ;;  %v14268_v34 = vld [vmem:[#allocation38_spill] sm:$0xff]  ;;  %v14270_v47 = vld [vmem:[#allocation64_spill] sm:$0xff] }
 0x277   :  { %v3307_v50 = vsel %vm3293_vm6, %v3242_v3, %v2787_v28  ;;  %v2719_v31 = vpop.permute.xlu1 %2718  ;;  %v3179_v39 = vsel %vm3163_vm2, %v3114_v33, %v2625_v45  ;;  %v2986_v45 = vsel %vm2968_vm14, %v2921_v58, %v14263_v26  ;;  %v14265_v3 = vld [vmem:[#allocation34_spill] sm:$0xff] }
 0x278   :  { %2588 = vrot.lane.b32.xlu0 %v14260_v15, %s8954_s21  ;;  %8447 = vmatprep.mubr.msk.bf16.mxu0 %vm3373_vm11, %v3307_v50  ;;  %v3244_v11 = vsel %vm3228_vm4, %v3179_v39, %v2719_v31  ;;  %v3051_v2 = vsel %vm3033_vm15, %v2986_v45, %v10637_v9  ;;  %v2858_v50 = vsel %vm2838_vm12, %v8790_v52, %v14266_v30  ;;  %v14267_v31 = vld [vmem:[#allocation8_spill] sm:$0xff]  ;;  %v14271_v45 = vld [vmem:[#allocation71_spill] sm:$0xff] }
 0x279   :  { %2824 = vrot.lane.b32.xlu1 %v14260_v15, %s8957_s29  ;;  %v3116_v38 = vsel %vm3098_vm1, %v3051_v2, %v10769_v19  ;;  %v2923_v19 = vsel %vm2903_vm13, %v2858_v50, %v14267_v31  ;;  %v11060_v52 = vld [vmem:[#allocation2 + $0x180] sm:$0xff]   ;;  %v14275_v31 = vld [vmem:[#allocation70_spill] sm:$0xff] }
 0x27a   :  { %v2627_v61 = vpop.permute.xlu0 %2626  ;;  %v2988_v33 = vsel %vm2968_vm14, %v2923_v19, %v14268_v34  ;;  %v8794_v50 = vld [vmem:[#allocation2 + $0x84] sm:$0xff]  }
 0x27b   :  { %v2789_v37 = vpop.permute.xlu1 %2788  ;;  %v3181_v28 = vsel %vm3163_vm2, %v3116_v38, %v2627_v61  ;;  %v3053_v39 = vsel %vm3033_vm15, %v2988_v33, %v10647_v59  ;;  %v14272_v59 = vld [vmem:[#allocation10_spill] sm:$0xff]  ;;  %v14277_v33 = vld [vmem:[#allocation40_spill] sm:$0xff] }
 0x27c   :  { %2662 = vrot.lane.b32.xlu0 %v11002_v51, %s8955_s28  ;;  %v3309_v43 = vsel %vm3293_vm6, %v3244_v11, %v2789_v37  ;;  %v3118_v35 = vsel %vm3098_vm1, %v3053_v39, %v10779_v32  ;;  %v8792_v37 = vld [vmem:[#allocation2 + $0x78] sm:$0xff]  }
 0x27d   :  { %2590 = vrot.lane.b32.xlu1 %v14264_v41, %s8954_s21  ;;  %8448 = vmatmul.mubr.msk.bf16.gmra.mrb[12].mxu0 %vm3373_vm11, %v3309_v43  ;;  %v2860_v58 = vsel %vm2838_vm12, %v8792_v37, %v14270_v47 }
 0x27e   :  { %v2721_v27 = vpop.permute.xlu0 %2720 }
 0x27f   :  { %v2629_v56 = vpop.permute.xlu1 %2628  ;;  %v3246_v9 = vsel %vm3228_vm4, %v3181_v28, %v2721_v27  ;;  %v14273_v27 = vld [vmem:[#allocation41_spill] sm:$0xff] }
 0x280   :  { %2756 = vrot.lane.b32.xlu0 %v14265_v3, %s8956_s1  ;;  %v3183_v11 = vsel %vm3163_vm2, %v3118_v35, %v2629_v56  ;;  %v14278_v35 = vld [vmem:[#allocation36_spill] sm:$0xff] }
 0x281   :  { %2664 = vrot.lane.b32.xlu1 %v11023_v60, %s8955_s28 }
 0x282   :  { %v2791_v14 = vpop.permute.xlu0 %2790 }
 0x283   :  { %v3311_v15 = vsel %vm3293_vm6, %v3246_v9, %v2791_v14  ;;  %v2723_v61 = vpop.permute.xlu1 %2722  ;;  %v14274_v9 = vld [vmem:[#allocation68_spill] sm:$0xff] }
 0x284   :  { %2826 = vrot.lane.b32.xlu0 %v14264_v41, %s8957_s29  ;;  %8451 = vmatprep.mubr.msk.bf16.mxu0 %vm3373_vm11, %v3311_v15  ;;  %v3248_v43 = vsel %vm3228_vm4, %v3183_v11, %v2723_v61  ;;  %v2925_v41 = vsel %vm2903_vm13, %v2860_v58, %v14272_v59  ;;  %v2862_v14 = vsel %vm2838_vm12, %v8794_v50, %v14274_v9  ;;  %v14276_v15 = vld [vmem:[#allocation11_spill] sm:$0xff]  ;;  %v11082_v11 = vld [vmem:[#allocation2 + $0x18c] sm:$0xff]   ;;  %v11087_v58 = vld [vmem:[#allocation2 + $0x1a4] sm:$0xff]  }
 0x285   :  { %2758 = vrot.lane.b32.xlu1 %v14269_v54, %s8956_s1  ;;  %v2990_v2 = vsel %vm2968_vm14, %v2925_v41, %v14273_v27  ;;  %v14281_v27 = vld [vmem:[#allocation43_spill] sm:$0xff] }
 0x286   :  { %v2631_v0 = vpop.permute.xlu0 %2630  ;;  %v3055_v56 = vsel %vm3033_vm15, %v2990_v2, %v10645_v49 }
 0x287   :  { %v2793_v26 = vpop.permute.xlu1 %2792  ;;  %v3120_v3 = vsel %vm3098_vm1, %v3055_v56, %v10777_v48  ;;  %v2927_v48 = vsel %vm2903_vm13, %v2862_v14, %v14276_v15  ;;  %v8654_v14 = vld [vmem:[#allocation2 + $0x1ac] ss:$0 sps:$4 sm:$0x11]   ;;  %v14285_v15 = vld [vmem:[#allocation74_spill] sm:$0xff] }
 0x288   :  { %2592 = vrot.lane.b32.xlu0 %v14271_v45, %s8954_s21  ;;  %v3313_v32 = vsel %vm3293_vm6, %v3248_v43, %v2793_v26  ;;  %v3185_v30 = vsel %vm3163_vm2, %v3120_v3, %v2631_v0  ;;  %v2992_v61 = vsel %vm2968_vm14, %v2927_v48, %v14277_v33  ;;  %v8796_v43 = vld [vmem:[#allocation2 + $0x90] sm:$0xff]   ;;  %v14279_v26 = vld [vmem:[#allocation69_spill] sm:$0xff]  ;;  %v8797_v48 = vld [vmem:[#allocation2 + $0x9c] sm:$0xff]  }
 0x289   :  { %2828 = vrot.lane.b32.xlu1 %v14271_v45, %s8957_s29  ;;  %8452 = vmatmul.mubr.msk.bf16.gmra.mrb[16].mxu0 %vm3373_vm11, %v3313_v32  ;;  %v3057_v54 = vsel %vm3033_vm15, %v2992_v61, %v10655_v16  ;;  %v2864_v45 = vsel %vm2838_vm12, %v8796_v43, %v14279_v26  ;;  %v14283_v3 = vld [vmem:[#allocation97_spill] sm:$0xff]  ;;  %v2700_v26 = vshll.u32 %v8654_v14, 16 }
 0x28a   :  { %v2725_v38 = vpop.permute.xlu0 %2724  ;;  %v3122_v0 = vsel %vm3098_vm1, %v3057_v54, %v10787_v53  ;;  %v14280_v53 = vld [vmem:[#allocation12_spill] sm:$0xff] }
 0x28b   :  { %v2633_v28 = vpop.permute.xlu1 %2632  ;;  %v3250_v49 = vsel %vm3228_vm4, %v3185_v30, %v2725_v38  ;;  %v2929_v41 = vsel %vm2903_vm13, %v2864_v45, %v14280_v53  ;;  %v14282_v38 = vld [vmem:[#allocation37_spill] sm:$0xff]  ;;  %v14284_v30 = vld [vmem:[#allocation108_spill] sm:$0xff]  ;;  %v14288_v45 = vld [vmem:[#allocation42_spill] sm:$0xff] }
 0x28c   :  { %2666 = vrot.lane.b32.xlu0 %v11060_v52, %s8955_s28  ;;  %v3187_v47 = vsel %vm3163_vm2, %v3122_v0, %v2633_v28  ;;  %v2994_v2 = vsel %vm2968_vm14, %v2929_v41, %v14281_v27  ;;  %v2533_v28 = vrot.slane %v14283_v3, 1  ;;  %v2534_v50 = vrot.slane %v14284_v30, 1  ;;  %v14289_v3 = vld [vmem:[#allocation73_spill] sm:$0xff] }
 0x28d   :  { %2594 = vrot.lane.b32.xlu1 %v14275_v31, %s8954_s21  ;;  %v3059_v9 = vsel %vm3033_vm15, %v2994_v2, %v10653_v18 }
 0x28e   :  { %v2795_v19 = vpop.permute.xlu0 %2794 }
 0x28f   :  { %v3315_v34 = vsel %vm3293_vm6, %v3250_v49, %v2795_v19  ;;  %v2727_v39 = vpop.permute.xlu1 %2726  ;;  %v3124_v49 = vsel %vm3098_vm1, %v3059_v9, %v10784_v46  ;;  %v2535_v46 = vsel %vm2201_vm10, %v2533_v28, %v2534_v50  ;;  %v14290_v9 = vld [vmem:[#allocation115_spill] sm:$0xff] }
 0x290   :  { %2760 = vrot.lane.b32.xlu0 %v14278_v35, %s8956_s1  ;;  %8455 = vmatprep.mubr.msk.bf16.mxu0 %vm3373_vm11, %v3315_v34  ;;  %v3252_v59 = vsel %vm3228_vm4, %v3187_v47, %v2727_v39  ;;  %v14286_v34 = vld [vmem:[#allocation72_spill] sm:$0xff]  ;;  %v14287_v39 = vld [vmem:[#allocation13_spill] sm:$0xff]  ;;  %v2693_v47 = vshrl.u32 %v11087_v58, 16 }
 0x291   :  { %2668 = vrot.lane.b32.xlu1 %v11082_v11, %s8955_s28  ;;  %v2866_v33 = vsel %vm2838_vm12, %v8797_v48, %v14286_v34 }
 0x292   :  { %v2635_v37 = vpop.permute.xlu0 %2634  ;;  %v2931_v35 = vsel %vm2903_vm13, %v2866_v33, %v14287_v39  ;;  %v2771_v33 = vrot.slane %v11087_v58, 1 }
 0x293   :  { %v2797_v16 = vpop.permute.xlu1 %2796  ;;  %v3189_v61 = vsel %vm3163_vm2, %v3124_v49, %v2635_v37  ;;  %v2996_v37 = vsel %vm2968_vm14, %v2931_v35, %v14288_v45  ;;  %v14292_v49 = vld [vmem:[#allocation45_spill] sm:$0xff]  ;;  %v14295_v45 = vld [vmem:[#allocation44_spill] sm:$0xff] }
 0x294   :  { %2830 = vrot.lane.b32.xlu0 %v14275_v31, %s8957_s29  ;;  %v3317_v32 = vsel %vm3293_vm6, %v3252_v59, %v2797_v16  ;;  %v2695_v31 = vshll.u32 %v11087_v58, 16  ;;  %v8798_v16 = vld [vmem:[#allocation2 + $0x198] sm:$0xff]   ;;  %v3061_v53 = vsel %vm3033_vm15, %v2996_v37, %v10663_v7  ;;  %v14291_v7 = vld [vmem:[#allocation14_spill] sm:$0xff] }
 0x295   :  { %2762 = vrot.lane.b32.xlu1 %v14282_v38, %s8956_s1  ;;  %8456 = vmatmul.mubr.msk.bf16.gmra.mrb[20].mxu0 %vm3373_vm11, %v3317_v32  ;;  %v3126_v41 = vsel %vm3098_vm1, %v3061_v53, %v10795_v12  ;;  %v2702_v38 = vrot.slane %v2700_v26, 1  ;;  %v14294_v26 = vld [vmem:[#allocation15_spill] sm:$0xff] }
 0x296   :  { %v2729_v56 = vpop.permute.xlu0 %2728  ;;  %v2697_v43 = vrot.slane %v2695_v31, 1 }
 0x297   :  { %v2637_v19 = vpop.permute.xlu1 %2636  ;;  %v3254_v18 = vsel %vm3228_vm4, %v3189_v61, %v2729_v56  ;;  %v8799_v56 = vld [vmem:[#allocation2 + $0xa8] sm:$0xff]   ;;  %v2772_v61 = vrot.slane %v8654_v14, 1 }
 0x298   :  { %2596 = vrot.lane.b32.xlu0 %v14285_v15, %s8954_s21  ;;  %v3191_v27 = vsel %vm3163_vm2, %v3126_v41, %v2637_v19  ;;  %v2698_v2 = vor.u32 %v2697_v43, %v2693_v47  ;;  %v2868_v28 = vsel %vm2838_vm12, %v8799_v56, %v14289_v3  ;;  %v14297_v3 = vld [vmem:[#allocation16_spill] sm:$0xff] }
 0x299   :  { %2832 = vrot.lane.b32.xlu1 %v14285_v15, %s8957_s29  ;;  %v2933_v12 = vsel %vm2903_vm13, %v2868_v28, %v14291_v7  ;;  %v2773_v14 = vsel %vm2201_vm10, %v2771_v33, %v2772_v61  ;;  %v3982_v33 = vld [vmem:[#allocation3 + $0x18] sm:$0x1] }
 0x29a   :  { %v2799_v54 = vpop.permute.xlu0 %2798  ;;  %v2998_v19 = vsel %vm2968_vm14, %v2933_v12, %v14292_v49  ;;  %v2703_v34 = vsel %vm1752_vm9, %v2698_v2, %v2702_v38  ;;  %v8802_v49 = vld [vmem:[#allocation2 + $0xe4] sm:$0xff]  }
 0x29b   :  { %v3319_v0 = vsel %vm3293_vm6, %v3254_v18, %v2799_v54  ;;  %v2731_v59 = vpop.permute.xlu1 %2730  ;;  %v3063_v48 = vsel %vm3033_vm15, %v2998_v19, %v10661_v13  ;;  %v8800_v54 = vld [vmem:[#allocation2 + $0xb4] sm:$0xff]   ;;  %v14299_v19 = vld [vmem:[#allocation77_spill] sm:$0xff] }
 0x29c   :  { %2670 = vrot.lane.b32.xlu0 %v8798_v16, %s8955_s28  ;;  %8459 = vmatprep.mubr.msk.bf16.mxu0 %vm3373_vm11, %v3319_v0  ;;  %v3256_v30 = vsel %vm3228_vm4, %v3191_v27, %v2731_v59  ;;  %v3128_v39 = vsel %vm3098_vm1, %v3063_v48, %v10792_v10  ;;  %v14293_v0 = vld [vmem:[#allocation75_spill] sm:$0xff]  ;;  %v14296_v27 = vld [vmem:[#allocation76_spill] sm:$0xff]  ;;  %v14300_v61 = vld [vmem:[#allocation17_spill] sm:$0xff] }
 0x29d   :  { %2598 = vrot.lane.b32.xlu1 %v2535_v46, %s8954_s21  ;;  %v2870_v47 = vsel %vm2838_vm12, %v8800_v54, %v14293_v0 }
 0x29e   :  { %v2639_v32 = vpop.permute.xlu0 %2638 }
 0x29f   :  { %v2801_v50 = vpop.permute.xlu1 %2800  ;;  %v3193_v18 = vsel %vm3163_vm2, %v3128_v39, %v2639_v32  ;;  %v8801_v32 = vld [vmem:[#allocation2 + $0xd8] sm:$0xff]  }
 0x2a0   :  { %2764 = vrot.lane.b32.xlu0 %v14290_v9, %s8956_s1  ;;  %v3321_v31 = vsel %vm3293_vm6, %v3256_v30, %v2801_v50  ;;  %v2872_v2 = vsel %vm2838_vm12, %v8801_v32, %v14296_v27  ;;  %v14298_v30 = vld [vmem:[#allocation48_spill] sm:$0xff]  ;;  %v14304_v27 = vld [vmem:[#allocation46_spill] sm:$0xff] }
 0x2a1   :  { %2672 = vrot.lane.b32.xlu1 %v11087_v58, %s8955_s28  ;;  %8460 = vmatmul.mubr.msk.bf16.gmra.mrb[24].mxu0 %vm3373_vm11, %v3321_v31  ;;  %v2935_v58 = vsel %vm2903_vm13, %v2870_v47, %v14294_v26  ;;  %v2937_v28 = vsel %vm2903_vm13, %v2872_v2, %v14297_v3  ;;  %v3976_v3 = vld [vmem:[#allocation3] sm:$0x1] }
 0x2a2   :  { %v2733_v15 = vpop.permute.xlu0 %2732 }
 0x2a3   :  { %v2641_v35 = vpop.permute.xlu1 %2640  ;;  %v3258_v13 = vsel %vm3228_vm4, %v3193_v18, %v2733_v15  ;;  %v2874_v15 = vsel %vm2838_vm12, %v8802_v49, %v14299_v19  ;;  %v14301_v18 = vld [vmem:[#allocation118_spill] sm:$0xff] }
 0x2a4   :  { %2834 = vrot.lane.b32.xlu0 %v2535_v46, %s8957_s29  ;;  %v3000_v46 = vsel %vm2968_vm14, %v2935_v58, %v14295_v45  ;;  %v2939_v39 = vsel %vm2903_vm13, %v2874_v15, %v14300_v61  ;;  %v4087_v58 = vld [vmem:[#allocation3 + $0x14] sm:$0x1] }
 0x2a5   :  { %2766 = vrot.lane.b32.xlu1 %v2703_v34, %s8956_s1  ;;  %v3065_v59 = vsel %vm3033_vm15, %v3000_v46, %v10671_v63  ;;  %v3004_v54 = vsel %vm2968_vm14, %v2939_v39, %v14301_v18  ;;  %v4088_v45 = vsel %vm9021_vm5, 0, %v4087_v58 }
 0x2a6   :  { %v2803_v43 = vpop.permute.xlu0 %2802  ;;  %v3130_v16 = vsel %vm3098_vm1, %v3065_v59, %v10802_v25  ;;  %v3002_v25 = vsel %vm2968_vm14, %v2937_v28, %v14298_v30  ;;  %4089 = vst [vmem:[#allocation3 + $0x14] sm:$0x1] %v4088_v45  ;;  %v14302_v59 = vld [vmem:[#allocation78_spill] sm:$0xff]  ;;  %v3977_v30 = vsel %vm8988_vm3, 0, %v3976_v3 }
 0x2a7   :  { %v3323_v10 = vsel %vm3293_vm6, %v3258_v13, %v2803_v43  ;;  %v2735_v37 = vpop.permute.xlu1 %2734  ;;  %v3195_v41 = vsel %vm3163_vm2, %v3130_v16, %v2641_v35  ;;  %v3067_v9 = vsel %vm3033_vm15, %v3002_v25, %v10669_v44  ;;  %v3983_v44 = vsel %vm8988_vm3, 0, %v3982_v33  ;;  %v4090_v13 = vld [vmem:[#allocation3 + $0x20] sm:$0x1]  ;;  %3978 = vst [vmem:[#allocation3] sm:$0x1] %v3977_v30  ;;  %v8806_v3 = vld [vmem:[#allocation2 + $0x114] sm:$0xff]  }
 0x2a8   :  { %8463 = vmatprep.mubr.msk.bf16.mxu0 %vm3373_vm11, %v3323_v10  ;;  %v3260_v38 = vsel %vm3228_vm4, %v3195_v41, %v2735_v37  ;;  %v3132_v7 = vsel %vm3098_vm1, %v3067_v9, %v10800_v8  ;;  %v3979_v8 = vld [vmem:[#allocation3 + $0xc] sm:$0x1]  ;;  %3984 = vst [vmem:[#allocation3 + $0x18] sm:$0x1] %v3983_v44  ;;  %v3069_v43 = vsel %vm3033_vm15, %v3004_v54, %v10679_v21  ;;  %v4091_v26 = vsel %vm9021_vm5, 0, %v4090_v13  ;;  %v8803_v37 = vld [vmem:[#allocation2 + $0xf0] sm:$0xff]  }
 0x2a9   :  { %2836 = vrot.lane.b32.xlu1 %v2773_v14, %s8957_s29  ;;  %v3980_v47 = vsel %vm8988_vm3, 0, %v3979_v8  ;;  %v3134_v14 = vsel %vm3098_vm1, %v3069_v43, %v10810_v55  ;;  %4092 = vst [vmem:[#allocation3 + $0x20] sm:$0x1] %v4091_v26  ;;  %v2876_v21 = vsel %vm2838_vm12, %v8803_v37, %v14302_v59  ;;  %v14303_v41 = vld [vmem:[#allocation18_spill] sm:$0xff]  ;;  %v8804_v9 = vld [vmem:[#allocation2 + $0xfc] sm:$0xff]   ;;  %v8805_v13 = vld [vmem:[#allocation2 + $0x108] sm:$0xff]  }
 0x2aa   :  { %v2643_v53 = vpop.permute.xlu0 %2642  ;;  %3981 = vst [vmem:[#allocation3 + $0xc] sm:$0x1] %v3980_v47  ;;  %v2941_v32 = vsel %vm2903_vm13, %v2876_v21, %v14303_v41  ;;  %v3985_v33 = vld [vmem:[#allocation3 + $0x24] sm:$0x1]  ;;  %v4096_v54 = vld [vmem:[#allocation3 + $0x38] sm:$0x1] }
 0x2ab   :  { %v2805_v56 = vpop.permute.xlu1 %2804  ;;  %v3197_v31 = vsel %vm3163_vm2, %v3132_v7, %v2643_v53  ;;  %v3006_v2 = vsel %vm2968_vm14, %v2941_v32, %v14304_v27  ;;  %v14305_v7 = vld [vmem:[#allocation79_spill] sm:$0xff]  ;;  %v14307_v43 = vld [vmem:[#allocation80_spill] sm:$0xff] }
 0x2ac   :  { %v3325_v63 = vsel %vm3293_vm6, %v3260_v38, %v2805_v56  ;;  %v3071_v56 = vsel %vm3033_vm15, %v3006_v2, %v10677_v57  ;;  %v3988_v57 = vld [vmem:[#allocation3 + $0x30] sm:$0x1]  ;;  %v4093_v47 = vld [vmem:[#allocation3 + $0x2c] sm:$0x1]  ;;  %v2880_v26 = vsel %vm2838_vm12, %v8805_v13, %v14307_v43 }
 0x2ad   :  { %8464 = vmatmul.mubr.msk.bf16.gmra.mrb[28].mxu0 %vm3373_vm11, %v3325_v63  ;;  %v3136_v28 = vsel %vm3098_vm1, %v3071_v56, %v10808_v23  ;;  %v14306_v23 = vld [vmem:[#allocation19_spill] sm:$0xff] }
 0x2ae   :  { %v2737_v50 = vpop.permute.xlu0 %2736  ;;  %v14309_v37 = vld [vmem:[#allocation119_spill] sm:$0xff] }
 0x2af   :  { %v2645_v12 = vpop.permute.xlu1 %2644  ;;  %v3262_v48 = vsel %vm3228_vm4, %v3197_v31, %v2737_v50  ;;  %v4084_v50 = vld [vmem:[#allocation3 + $0x8] sm:$0x1] }
 0x2b0   :  { %v3199_v46 = vsel %vm3163_vm2, %v3134_v14, %v2645_v12  ;;  %v2878_v12 = vsel %vm2838_vm12, %v8804_v9, %v14305_v7  ;;  %v4085_v19 = vsel %vm9021_vm5, 0, %v4084_v50  ;;  %v14311_v7 = vld [vmem:[#allocation21_spill] sm:$0xff] }
 0x2b1   :  { %v2943_v15 = vsel %vm2903_vm13, %v2878_v12, %v14306_v23  ;;  %4086 = vst [vmem:[#allocation3 + $0x8] sm:$0x1] %v4085_v19 }
 0x2b2   :  { %v2807_v34 = vpop.permute.xlu0 %2806  ;;  %v3008_v61 = vsel %vm2968_vm14, %v2943_v15, %v10545_v24  ;;  %v4097_v24 = vsel %vm9021_vm5, 0, %v4096_v54  ;;  %v3991_v15 = vld [vmem:[#allocation3 + $0x3c] sm:$0x1] }
 0x2b3   :  { %v3327_v35 = vsel %vm3293_vm6, %v3262_v48, %v2807_v34  ;;  %v2739_v0 = vpop.permute.xlu1 %2738  ;;  %v3989_v34 = vsel %vm8988_vm3, 0, %v3988_v57  ;;  %v3073_v44 = vsel %vm3033_vm15, %v3008_v61, %v10687_v20  ;;  %4098 = vst [vmem:[#allocation3 + $0x38] sm:$0x1] %v4097_v24  ;;  %v4094_v20 = vsel %vm9021_vm5, 0, %v4093_v47  ;;  %v4102_v61 = vld [vmem:[#allocation3 + $0x50] sm:$0x1] }
 0x2b4   :  { %8467 = vmatprep.mubr.msk.bf16.mxu0 %vm3373_vm11, %v3327_v35  ;;  %v3264_v16 = vsel %vm3228_vm4, %v3199_v46, %v2739_v0  ;;  %3990 = vst [vmem:[#allocation3 + $0x30] sm:$0x1] %v3989_v34  ;;  %v3986_v35 = vsel %vm8988_vm3, 0, %v3985_v33  ;;  %v3138_v8 = vsel %vm3098_vm1, %v3073_v44, %v10818_v42  ;;  %v8655_v42 = vld [vmem:[#allocation3] sm:$0xff]   ;;  %4095 = vst [vmem:[#allocation3 + $0x2c] sm:$0x1] %v4094_v20 }
 0x2b5   :  { %3987 = vst [vmem:[#allocation3 + $0x24] sm:$0x1] %v3986_v35  ;;  %v5587_v27 = vshrl.u32 %v8655_v42, 16  ;;  %v4099_v35 = vld [vmem:[#allocation3 + $0x44] sm:$0x1]  ;;  %v8807_v44 = vld [vmem:[#allocation2 + $0x120] sm:$0xff]  }
 0x2b6   :  { %v2647_v10 = vpop.permute.xlu0 %2646  ;;  %v4100_v24 = vsel %vm9021_vm5, 0, %v4099_v35  ;;  %v14314_v47 = vld [vmem:[#allocation22_spill] sm:$0xff]  ;;  %v3997_v35 = vld [vmem:[#allocation3 + $0x54] sm:$0x1] }
 0x2b7   :  { %v2809_v53 = vpop.permute.xlu1 %2808  ;;  %v3201_v25 = vsel %vm3163_vm2, %v3136_v28, %v2647_v10  ;;  %v14308_v10 = vld [vmem:[#allocation20_spill] sm:$0xff]  ;;  %v14310_v28 = vld [vmem:[#allocation81_spill] sm:$0xff]  ;;  %4101 = vst [vmem:[#allocation3 + $0x44] sm:$0x1] %v4100_v24  ;;  %v14316_v20 = vld [vmem:[#allocation130_spill] sm:$0xff] }
 0x2b8   :  { %v3329_v55 = vsel %vm3293_vm6, %v3264_v16, %v2809_v53  ;;  %v2945_v45 = vsel %vm2903_vm13, %v2880_v26, %v14308_v10  ;;  %v8656_v16 = vld [vmem:[#allocation3 + $0x8] ss:$0 sps:$4 sm:$0x11]   ;;  %v5589_v53 = vshll.u32 %v8655_v42, 16  ;;  %v14315_v26 = vld [vmem:[#allocation120_spill] sm:$0xff] }
 0x2b9   :  { %8468 = vmatmul.mubr.msk.bf16.gmra.mrb[32].mxu0 %vm3373_vm11, %v3329_v55  ;;  %v3010_v59 = vsel %vm2968_vm14, %v2945_v45, %v14309_v37  ;;  %v14317_v10 = vld [vmem:[#allocation56_spill] sm:$0xff] }
 0x2ba   :  { %v2741_v38 = vpop.permute.xlu0 %2740  ;;  %v3075_v41 = vsel %vm3033_vm15, %v3010_v59, %v10685_v29  ;;  %v5591_v2 = vrot.slane %v5589_v53, 1  ;;  %v8808_v59 = vld [vmem:[#allocation2 + $0x12c] sm:$0xff]  }
 0x2bb   :  { %v2649_v63 = vpop.permute.xlu1 %2648  ;;  %v3266_v31 = vsel %vm3228_vm4, %v3201_v25, %v2741_v38  ;;  %v3140_v32 = vsel %vm3098_vm1, %v3075_v41, %v10816_v36  ;;  %v5594_v38 = vshll.u32 %v8656_v16, 16 }
 0x2bc   :  { %v3203_v0 = vsel %vm3163_vm2, %v3138_v8, %v2649_v63  ;;  %v2882_v63 = vsel %vm2838_vm12, %v8806_v3, %v14310_v28  ;;  %v5592_v50 = vor.u32 %v5591_v2, %v5587_v27  ;;  %v14313_v8 = vld [vmem:[#allocation82_spill] sm:$0xff]  ;;  %v14321_v3 = vld [vmem:[#allocation132_spill] sm:$0xff] }
 0x2bd   :  { %v5596_v9 = vrot.slane %v5594_v38, 1  ;;  %v2947_v29 = vsel %vm2903_vm13, %v2882_v63, %v14311_v7  ;;  %v14320_v2 = vld [vmem:[#allocation122_spill] sm:$0xff]  ;;  %v14322_v63 = vld [vmem:[#allocation55_spill] sm:$0xff] }
 0x2be   :  { %v2811_v49 = vpop.permute.xlu0 %2810  ;;  %v3012_v12 = vsel %vm2968_vm14, %v2947_v29, %v10556_v5  ;;  %v3992_v5 = vsel %vm8988_vm3, 0, %v3991_v15  ;;  %v4000_v29 = vld [vmem:[#allocation3 + $0x60] sm:$0x1] }
 0x2bf   :  { %v3331_v48 = vsel %vm3293_vm6, %v3266_v31, %v2811_v49  ;;  %v2743_v39 = vpop.permute.xlu1 %2742  ;;  %v3994_v49 = vld [vmem:[#allocation3 + $0x48] sm:$0x1]  ;;  %v5597_v57 = vsel %vm1752_vm9, %v5592_v50, %v5596_v9  ;;  %v3077_v19 = vsel %vm3033_vm15, %v3012_v12, %v10695_v62  ;;  %3993 = vst [vmem:[#allocation3 + $0x3c] sm:$0x1] %v3992_v5  ;;  %v4103_v62 = vsel %vm9021_vm5, 0, %v4102_v61 }
 0x2c0   :  { %8471 = vmatprep.mubr.msk.bf16.mxu0 %vm3373_vm11, %v3331_v48  ;;  %v3268_v58 = vsel %vm3228_vm4, %v3203_v0, %v2743_v39  ;;  %v3995_v23 = vsel %vm8988_vm3, 0, %v3994_v49  ;;  %5970 = vrot.lane.b32.xlu0 %v5597_v57, %s8950_s13  ;;  %v14312_v48 = vld [vmem:[#allocation25_spill] sm:$0xff]  ;;  %4104 = vst [vmem:[#allocation3 + $0x50] sm:$0x1] %v4103_v62  ;;  %v4001_v12 = vsel %vm8988_vm3, 0, %v4000_v29  ;;  %v14323_v49 = vld [vmem:[#allocation83_spill] sm:$0xff] }
 0x2c1   :  { %v3142_v34 = vsel %vm3098_vm1, %v3077_v19, %v14312_v48  ;;  %3996 = vst [vmem:[#allocation3 + $0x48] sm:$0x1] %v3995_v23  ;;  %4002 = vst [vmem:[#allocation3 + $0x60] sm:$0x1] %v4001_v12  ;;  %v2888_v57 = vsel %vm2838_vm12, %v10888_v40, %v14323_v49  ;;  %v14324_v23 = vld [vmem:[#allocation23_spill] sm:$0xff]  ;;  %v14325_v48 = vld [vmem:[#allocation121_spill] sm:$0xff] }
 0x2c2   :  { %v2651_v18 = vpop.permute.xlu0 %2650  ;;  %v2953_v15 = vsel %vm2903_vm13, %v2888_v57, %v14324_v23  ;;  %v14326_v5 = vld [vmem:[#allocation131_spill] sm:$0xff]  ;;  %v3998_v40 = vsel %vm8988_vm3, 0, %v3997_v35  ;;  %v4111_v29 = vld [vmem:[#allocation3 + $0x74] sm:$0x1]  ;;  %v4012_v35 = vld [vmem:[#allocation3 + $0x90] sm:$0x1] }
 0x2c3   :  { %v2813_v14 = vpop.permute.xlu1 %2812  ;;  %v3205_v56 = vsel %vm3163_vm2, %v3140_v32, %v2651_v18  ;;  %v2884_v18 = vsel %vm2838_vm12, %v8807_v44, %v14313_v8  ;;  %v14319_v32 = vld [vmem:[#allocation101_spill] sm:$0xff]  ;;  %v4108_v8 = vld [vmem:[#allocation3 + $0x68] sm:$0x1]  ;;  %3999 = vst [vmem:[#allocation3 + $0x54] sm:$0x1] %v3998_v40  ;;  %v4112_v12 = vsel %vm9021_vm5, 0, %v4111_v29 }
 0x2c4   :  { %v3333_v46 = vsel %vm3293_vm6, %v3268_v58, %v2813_v14  ;;  %v2949_v13 = vsel %vm2903_vm13, %v2884_v18, %v14314_v47  ;;  %v14327_v18 = vld [vmem:[#allocation49_spill] sm:$0xff]  ;;  %v4109_v47 = vsel %vm9021_vm5, 0, %v4108_v8  ;;  %4113 = vst [vmem:[#allocation3 + $0x74] sm:$0x1] %v4112_v12  ;;  %v14346_v29 = vld [vmem:[#allocation138_spill] sm:$0xff] }
 0x2c5   :  { %8472 = vmatmul.mubr.msk.bf16.gmra.mrb[36].mxu0 %vm3373_vm11, %v3333_v46  ;;  %v3014_v58 = vsel %vm2968_vm14, %v2949_v13, %v14315_v26  ;;  %v4105_v13 = vld [vmem:[#allocation3 + $0x5c] sm:$0x1]  ;;  %4110 = vst [vmem:[#allocation3 + $0x68] sm:$0x1] %v4109_v47 }
 0x2c6   :  { %v2745_v21 = vpop.permute.xlu0 %2744  ;;  %v3079_v42 = vsel %vm3033_vm15, %v3014_v58, %v14316_v20  ;;  %v14329_v20 = vld [vmem:[#allocation124_spill] sm:$0xff] }
 0x2c7   :  { %v2653_v55 = vpop.permute.xlu1 %2652  ;;  %v3270_v30 = vsel %vm3228_vm4, %v3205_v56, %v2745_v21  ;;  %v3144_v45 = vsel %vm3098_vm1, %v3079_v42, %v14317_v10  ;;  %v14318_v21 = vld [vmem:[#allocation47_spill] sm:$0xff]  ;;  %v14330_v10 = vld [vmem:[#allocation134_spill] sm:$0xff] }
 0x2c8   :  { %v3207_v39 = vsel %vm3163_vm2, %v3142_v34, %v2653_v55  ;;  %v2886_v16 = vsel %vm2838_vm12, %v8808_v59, %v14318_v21  ;;  %v3018_v34 = vsel %vm2968_vm14, %v2953_v15, %v14325_v48 }
 0x2c9   :  { %v2951_v55 = vsel %vm2903_vm13, %v2886_v16, %v14319_v32  ;;  %v3083_v61 = vsel %vm3033_vm15, %v3018_v34, %v14326_v5  ;;  %v14336_v34 = vld [vmem:[#allocation104_spill] sm:$0xff] }
 0x2ca   :  { %v2815_v25 = vpop.permute.xlu0 %2814  ;;  %v3016_v38 = vsel %vm2968_vm14, %v2951_v55, %v14320_v2 }
 0x2cb   :  { %v3335_v36 = vsel %vm3293_vm6, %v3270_v30, %v2815_v25  ;;  %v2747_v31 = vpop.permute.xlu1 %2746  ;;  %v3081_v28 = vsel %vm3033_vm15, %v3016_v38, %v14321_v3  ;;  %v14332_v3 = vld [vmem:[#allocation24_spill] sm:$0xff] }
 0x2cc   :  { %8475 = vmatprep.mubr.msk.bf16.mxu0 %vm3373_vm11, %v3335_v36  ;;  %v3272_v54 = vsel %vm3228_vm4, %v3207_v39, %v2747_v31  ;;  %v3146_v30 = vsel %vm3098_vm1, %v3081_v28, %v14322_v63 }
 0x2ce   :  { %v2655_v33 = vpop.permute.xlu0 %2654 }
 0x2cf   :  { %v2817_v0 = vpop.permute.xlu1 %2816  ;;  %v3209_v37 = vsel %vm3163_vm2, %v3144_v45, %v2655_v33 }
 0x2d0   :  { %v3337_v43 = vsel %vm3293_vm6, %v3272_v54, %v2817_v0  ;;  %v2890_v54 = vsel %vm2838_vm12, %v10910_v22, %v14327_v18 }
 0x2d1   :  { %8476 = vmatmul.mubr.msk.bf16.gmra.mrb[40].mxu0 %vm3373_vm11, %v3337_v43  ;;  %v14328_v43 = vld [vmem:[#allocation102_spill] sm:$0xff] }
 0x2d2   :  { %v2749_v14 = vpop.permute.xlu0 %2748  ;;  %v2955_v26 = vsel %vm2903_vm13, %v2890_v54, %v14328_v43  ;;  %v4009_v43 = vld [vmem:[#allocation3 + $0x84] sm:$0x1] }
 0x2d3   :  { %v2657_v46 = vpop.permute.xlu1 %2656  ;;  %v3274_v53 = vsel %vm3228_vm4, %v3209_v37, %v2749_v14  ;;  %v4106_v14 = vsel %vm9021_vm5, 0, %v4105_v13  ;;  %v3020_v22 = vsel %vm2968_vm14, %v2955_v26, %v14329_v20  ;;  %v4010_v26 = vsel %vm8988_vm3, 0, %v4009_v43  ;;  %v14351_v43 = vld [vmem:[#allocation92_spill] sm:$0xff] }
 0x2d4   :  { %v3211_v50 = vsel %vm3163_vm2, %v3146_v30, %v2657_v46  ;;  %4107 = vst [vmem:[#allocation3 + $0x5c] sm:$0x1] %v4106_v14  ;;  %v3085_v45 = vsel %vm3033_vm15, %v3020_v22, %v14330_v10  ;;  %v4006_v46 = vld [vmem:[#allocation3 + $0x78] sm:$0x1]  ;;  %v4114_v30 = vld [vmem:[#allocation3 + $0x80] sm:$0x1] }
 0x2d5   :  { %v4007_v21 = vsel %vm8988_vm3, 0, %v4006_v46  ;;  %v14339_v14 = vld [vmem:[#allocation86_spill] sm:$0xff]  ;;  %4011 = vst [vmem:[#allocation3 + $0x84] sm:$0x1] %v4010_v26  ;;  %v4117_v10 = vld [vmem:[#allocation3 + $0x8c] sm:$0x1]  ;;  %v2902_v26 = vsel %vm2838_vm12, %v11082_v11, %v14351_v43 }
 0x2d6   :  { %v2819_v41 = vpop.permute.xlu0 %2818  ;;  %4008 = vst [vmem:[#allocation3 + $0x78] sm:$0x1] %v4007_v21  ;;  %v2896_v20 = vsel %vm2838_vm12, %v11002_v51, %v14339_v14 }
 0x2d7   :  { %v3339_v27 = vsel %vm3293_vm6, %v3274_v53, %v2819_v41  ;;  %v2751_v56 = vpop.permute.xlu1 %2750 }
 0x2d8   :  { %8479 = vmatprep.mubr.msk.bf16.mxu0 %vm3373_vm11, %v3339_v27  ;;  %v3276_v9 = vsel %vm3228_vm4, %v3211_v50, %v2751_v56  ;;  %v14331_v27 = vld [vmem:[#allocation84_spill] sm:$0xff]  ;;  %v4003_v56 = vld [vmem:[#allocation3 + $0x6c] sm:$0x1] }
 0x2d9   :  { %v2892_v2 = vsel %vm2838_vm12, %v10945_v17, %v14331_v27  ;;  %v4004_v63 = vsel %vm8988_vm3, 0, %v4003_v56  ;;  %v4018_v27 = vld [vmem:[#allocation3 + $0xa8] sm:$0x1] }
 0x2da   :  { %v2585_v25 = vpop.permute.xlu0 %2584  ;;  %v2957_v28 = vsel %vm2903_vm13, %v2892_v2, %v14332_v3  ;;  %4005 = vst [vmem:[#allocation3 + $0x6c] sm:$0x1] %v4004_v63  ;;  %v14343_v2 = vld [vmem:[#allocation89_spill] sm:$0xff]  ;;  %v14344_v63 = vld [vmem:[#allocation106_spill] sm:$0xff] }
 0x2db   :  { %v2821_v7 = vpop.permute.xlu1 %2820  ;;  %v3148_v39 = vsel %vm3098_vm1, %v3083_v61, %v2585_v25  ;;  %v14333_v25 = vld [vmem:[#allocation123_spill] sm:$0xff]  ;;  %v14337_v61 = vld [vmem:[#allocation126_spill] sm:$0xff] }
 0x2dc   :  { %v3341_v36 = vsel %vm3293_vm6, %v3276_v9, %v2821_v7  ;;  %v3022_v50 = vsel %vm2968_vm14, %v2957_v28, %v14333_v25  ;;  %v4115_v7 = vsel %vm9021_vm5, 0, %v4114_v30  ;;  %v4019_v28 = vsel %vm8988_vm3, 0, %v4018_v27 }
 0x2dd   :  { %8480 = vmatmul.mubr.msk.bf16.gmra.mrb[44].mxu0 %vm3373_vm11, %v3341_v36  ;;  %v14334_v36 = vld [vmem:[#allocation133_spill] sm:$0xff]  ;;  %4116 = vst [vmem:[#allocation3 + $0x80] sm:$0x1] %v4115_v7  ;;  %4020 = vst [vmem:[#allocation3 + $0xa8] sm:$0x1] %v4019_v28 }
 0x2de   :  { %v2659_v31 = vpop.permute.xlu0 %2658  ;;  %v3087_v17 = vsel %vm3033_vm15, %v3022_v50, %v14334_v36  ;;  %v14345_v50 = vld [vmem:[#allocation128_spill] sm:$0xff]  ;;  %v4033_v28 = vld [vmem:[#allocation3 + $0xe4] sm:$0x1] }
 0x2df   :  { %v2587_v19 = vpop.permute.xlu1 %2586  ;;  %v3213_v44 = vsel %vm3163_vm2, %v3148_v39, %v2659_v31 }
 0x2e0   :  { %v3150_v37 = vsel %vm3098_vm1, %v3085_v45, %v2587_v19  ;;  %v14335_v19 = vld [vmem:[#allocation85_spill] sm:$0xff]  ;;  %v14340_v45 = vld [vmem:[#allocation103_spill] sm:$0xff] }
 0x2e1   :  { %v2894_v23 = vsel %vm2838_vm12, %v10967_v6, %v14335_v19  ;;  %v4013_v6 = vsel %vm8988_vm3, 0, %v4012_v35  ;;  %v2961_v46 = vsel %vm2903_vm13, %v2896_v20, %v14340_v45  ;;  %v14348_v35 = vld [vmem:[#allocation105_spill] sm:$0xff] }
 0x2e2   :  { %v2753_v33 = vpop.permute.xlu0 %2752  ;;  %4014 = vst [vmem:[#allocation3 + $0x90] sm:$0x1] %v4013_v6  ;;  %v14352_v20 = vld [vmem:[#allocation109_spill] sm:$0xff] }
 0x2e3   :  { %v2661_v62 = vpop.permute.xlu1 %2660  ;;  %v3278_v0 = vsel %vm3228_vm4, %v3213_v44, %v2753_v33  ;;  %v2959_v33 = vsel %vm2903_vm13, %v2894_v23, %v14336_v34  ;;  %v14338_v44 = vld [vmem:[#allocation136_spill] sm:$0xff] }
 0x2e4   :  { %v3215_v16 = vsel %vm3163_vm2, %v3150_v37, %v2661_v62  ;;  %v3024_v39 = vsel %vm2968_vm14, %v2959_v33, %v14337_v61  ;;  %v4118_v37 = vsel %vm9021_vm5, 0, %v4117_v10  ;;  %v4123_v33 = vld [vmem:[#allocation3 + $0xa4] sm:$0x1]  ;;  %v14353_v10 = vld [vmem:[#allocation129_spill] sm:$0xff] }
 0x2e5   :  { %v3089_v40 = vsel %vm3033_vm15, %v3024_v39, %v14338_v44  ;;  %4119 = vst [vmem:[#allocation3 + $0x8c] sm:$0x1] %v4118_v37  ;;  %v14347_v61 = vld [vmem:[#allocation90_spill] sm:$0xff]  ;;  %v4021_v37 = vld [vmem:[#allocation3 + $0xb4] sm:$0x1] }
 0x2e6   :  { %v2823_v24 = vpop.permute.xlu0 %2822  ;;  %v2900_v39 = vsel %vm2838_vm12, %v11060_v52, %v14347_v61  ;;  %v4022_v11 = vsel %vm8988_vm3, 0, %v4021_v37  ;;  %v4030_v61 = vld [vmem:[#allocation3 + $0xd8] sm:$0x1] }
 0x2e7   :  { %v3343_v58 = vsel %vm3293_vm6, %v3278_v0, %v2823_v24  ;;  %v2755_v42 = vpop.permute.xlu1 %2754  ;;  %v2965_v44 = vsel %vm2903_vm13, %v2900_v39, %v14348_v35  ;;  %4023 = vst [vmem:[#allocation3 + $0xb4] sm:$0x1] %v4022_v11  ;;  %v4031_v35 = vsel %vm8988_vm3, 0, %v4030_v61  ;;  %v5004_v11 = vld [vmem:[#allocation3 + $0x20] sm:$0x1] }
 0x2e8   :  { %8483 = vmatprep.mubr.msk.bf16.mxu0 %vm3373_vm11, %v3343_v58  ;;  %v3280_v53 = vsel %vm3228_vm4, %v3215_v16, %v2755_v42  ;;  %v4120_v58 = vld [vmem:[#allocation3 + $0x98] sm:$0x1]  ;;  %4032 = vst [vmem:[#allocation3 + $0xd8] sm:$0x1] %v4031_v35 }
 0x2e9   :  { %v4121_v42 = vsel %vm9021_vm5, 0, %v4120_v58 }
 0x2ea   :  { %v2589_v59 = vpop.permute.xlu0 %2588  ;;  %4122 = vst [vmem:[#allocation3 + $0x98] sm:$0x1] %v4121_v42 }
 0x2eb   :  { %v2825_v41 = vpop.permute.xlu1 %2824  ;;  %v3152_v31 = vsel %vm3098_vm1, %v3087_v17, %v2589_v59  ;;  %v14341_v59 = vld [vmem:[#allocation125_spill] sm:$0xff] }
 0x2ec   :  { %v3345_v32 = vsel %vm3293_vm6, %v3280_v53, %v2825_v41  ;;  %v3026_v21 = vsel %vm2968_vm14, %v2961_v46, %v14341_v59  ;;  %v14342_v53 = vld [vmem:[#allocation135_spill] sm:$0xff] }
 0x2ed   :  { %8484 = vmatmul.mubr.msk.bf16.gmra.mrb[48].mxu0 %vm3373_vm11, %v3345_v32  ;;  %v3091_v51 = vsel %vm3033_vm15, %v3026_v21, %v14342_v53  ;;  %v14354_v59 = vld [vmem:[#allocation139_spill] sm:$0xff] }
 0x2ee   :  { %v2663_v55 = vpop.permute.xlu0 %2662 }
 0x2ef   :  { %v2591_v38 = vpop.permute.xlu1 %2590  ;;  %v3217_v57 = vsel %vm3163_vm2, %v3152_v31, %v2663_v55 }
 0x2f0   :  { %v3154_v8 = vsel %vm3098_vm1, %v3089_v40, %v2591_v38  ;;  %v2898_v38 = vsel %vm2838_vm12, %v11023_v60, %v14343_v2  ;;  %v14349_v40 = vld [vmem:[#allocation127_spill] sm:$0xff] }
 0x2f1   :  { %v2963_v30 = vsel %vm2903_vm13, %v2898_v38, %v14344_v63  ;;  %v3030_v6 = vsel %vm2968_vm14, %v2965_v44, %v14349_v40  ;;  %v4034_v63 = vsel %vm8988_vm3, 0, %v4033_v28 }
 0x2f2   :  { %v2757_v9 = vpop.permute.xlu0 %2756  ;;  %4035 = vst [vmem:[#allocation3 + $0xe4] sm:$0x1] %v4034_v63 }
 0x2f3   :  { %v2665_v49 = vpop.permute.xlu1 %2664  ;;  %v3282_v15 = vsel %vm3228_vm4, %v3217_v57, %v2757_v9  ;;  %v3028_v9 = vsel %vm2968_vm14, %v2963_v30, %v14345_v50  ;;  %v4015_v57 = vld [vmem:[#allocation3 + $0x9c] sm:$0x1]  ;;  %v4144_v30 = vld [vmem:[#allocation3 + $0xf8] sm:$0x1]  ;;  %v4141_v50 = vld [vmem:[#allocation3 + $0xec] sm:$0x1] }
 0x2f4   :  { %v3219_v54 = vsel %vm3163_vm2, %v3154_v8, %v2665_v49  ;;  %v3093_v60 = vsel %vm3033_vm15, %v3028_v9, %v14346_v29  ;;  %v4016_v23 = vsel %vm8988_vm3, 0, %v4015_v57  ;;  %v4142_v9 = vsel %vm9021_vm5, 0, %v4141_v50  ;;  %v11483_v29 = vld [vmem:[%s13862_s3 + $0x1] ss:$0 sm:$0xff] }
 0x2f5   :  { %4017 = vst [vmem:[#allocation3 + $0x9c] sm:$0x1] %v4016_v23  ;;  %4143 = vst [vmem:[#allocation3 + $0xec] sm:$0x1] %v4142_v9 }
 0x2f6   :  { %v2827_v48 = vpop.permute.xlu0 %2826 }
 0x2f7   :  { %v3347_v5 = vsel %vm3293_vm6, %v3282_v15, %v2827_v48  ;;  %v2759_v62 = vpop.permute.xlu1 %2758  ;;  %v4126_v15 = vld [vmem:[#allocation3 + $0xb0] sm:$0x1] }
 0x2f8   :  { %8487 = vmatprep.mubr.msk.bf16.mxu0 %vm3373_vm11, %v3347_v5  ;;  %v3284_v0 = vsel %vm3228_vm4, %v3219_v54, %v2759_v62  ;;  %v4127_v34 = vsel %vm9021_vm5, 0, %v4126_v15  ;;  %v4124_v5 = vsel %vm9021_vm5, 0, %v4123_v33 }
 0x2f9   :  { %4128 = vst [vmem:[#allocation3 + $0xb0] sm:$0x1] %v4127_v34  ;;  %4125 = vst [vmem:[#allocation3 + $0xa4] sm:$0x1] %v4124_v5 }
 0x2fa   :  { %v2593_v18 = vpop.permute.xlu0 %2592 }
 0x2fb   :  { %v2829_v24 = vpop.permute.xlu1 %2828  ;;  %v3156_v41 = vsel %vm3098_vm1, %v3091_v51, %v2593_v18  ;;  %v14350_v18 = vld [vmem:[#allocation137_spill] sm:$0xff] }
 0x2fc   :  { %v3349_v47 = vsel %vm3293_vm6, %v3284_v0, %v2829_v24  ;;  %v3095_v54 = vsel %vm3033_vm15, %v3030_v6, %v14350_v18  ;;  %v4024_v0 = vld [vmem:[#allocation3 + $0xc0] sm:$0x1] }
 0x2fd   :  { %8488 = vmatmul.mubr.msk.bf16.gmra.mrb[52].mxu0 %vm3373_vm11, %v3349_v47  ;;  %v4138_v6 = vld [vmem:[#allocation3 + $0xe0] sm:$0x1] }
 0x2fe   :  { %v2667_v13 = vpop.permute.xlu0 %2666 }
 0x2ff   :  { %v2595_v22 = vpop.permute.xlu1 %2594  ;;  %v3221_v55 = vsel %vm3163_vm2, %v3156_v41, %v2667_v13  ;;  %v4025_v13 = vsel %vm8988_vm3, 0, %v4024_v0  ;;  %v4129_v41 = vld [vmem:[#allocation3 + $0xbc] sm:$0x1] }
 0x300   :  { %v3158_v36 = vsel %vm3098_vm1, %v3093_v60, %v2595_v22  ;;  %4026 = vst [vmem:[#allocation3 + $0xc0] sm:$0x1] %v4025_v13  ;;  %v2967_v22 = vsel %vm2903_vm13, %v2902_v26, %v14352_v20 }
 0x301   :  { %v3032_v45 = vsel %vm2968_vm14, %v2967_v22, %v14353_v10 }
 0x302   :  { %v2761_v16 = vpop.permute.xlu0 %2760  ;;  %v3097_v21 = vsel %vm3033_vm15, %v3032_v45, %v14354_v59 }
 0x303   :  { %v2669_v32 = vpop.permute.xlu1 %2668  ;;  %v3286_v56 = vsel %vm3228_vm4, %v3221_v55, %v2761_v16  ;;  %v4132_v16 = vld [vmem:[#allocation3 + $0xc8] sm:$0x1]  ;;  %v4130_v55 = vsel %vm9021_vm5, 0, %v4129_v41 }
 0x304   :  { %v3223_v12 = vsel %vm3163_vm2, %v3158_v36, %v2669_v32  ;;  %v4133_v51 = vsel %vm9021_vm5, 0, %v4132_v16  ;;  %4131 = vst [vmem:[#allocation3 + $0xbc] sm:$0x1] %v4130_v55  ;;  %v4997_v55 = vld [vmem:[#allocation3 + $0x14] sm:$0x1] }
 0x305   :  { %4134 = vst [vmem:[#allocation3 + $0xc8] sm:$0x1] %v4133_v51 }
 0x306   :  { %v2831_v3 = vpop.permute.xlu0 %2830 }
 0x307   :  { %v3351_v25 = vsel %vm3293_vm6, %v3286_v56, %v2831_v3  ;;  %v2763_v7 = vpop.permute.xlu1 %2762  ;;  %v4036_v56 = vld [vmem:[#allocation3 + $0xf0] sm:$0x1] }
 0x308   :  { %8491 = vmatprep.mubr.msk.bf16.mxu0 %vm3373_vm11, %v3351_v25  ;;  %v3288_v31 = vsel %vm3228_vm4, %v3223_v12, %v2763_v7  ;;  %v4037_v3 = vsel %vm8988_vm3, 0, %v4036_v56  ;;  %v4145_v25 = vsel %vm9021_vm5, 0, %v4144_v30  ;;  %v11478_v7 = vld [vmem:[%s13862_s3] ss:$0 sm:$0xff] }
 0x309   :  { %4038 = vst [vmem:[#allocation3 + $0xf0] sm:$0x1] %v4037_v3  ;;  %4146 = vst [vmem:[#allocation3 + $0xf8] sm:$0x1] %v4145_v25  ;;  %v4039_v25 = vld [vmem:[#allocation3 + $0xfc] sm:$0x1] }
 0x30a   :  { %v2597_v17 = vpop.permute.xlu0 %2596 }
 0x30b   :  { %v2833_v49 = vpop.permute.xlu1 %2832  ;;  %v3160_v24 = vsel %vm3098_vm1, %v3095_v54, %v2597_v17  ;;  %v4139_v54 = vsel %vm9021_vm5, 0, %v4138_v6 }
 0x30c   :  { %v3353_v19 = vsel %vm3293_vm6, %v3288_v31, %v2833_v49  ;;  %v4042_v49 = vld [vmem:[#allocation3 + $0x108] sm:$0x1]  ;;  %4140 = vst [vmem:[#allocation3 + $0xe0] sm:$0x1] %v4139_v54 }
 0x30d   :  { %8492 = vmatmul.mubr.msk.bf16.gmra.mrb[56].mxu0 %vm3373_vm11, %v3353_v19  ;;  %v4043_v15 = vsel %vm8988_vm3, 0, %v4042_v49 }
 0x30e   :  { %v2671_v48 = vpop.permute.xlu0 %2670  ;;  %4044 = vst [vmem:[#allocation3 + $0x108] sm:$0x1] %v4043_v15  ;;  %v4048_v15 = vld [vmem:[#allocation3 + $0x120] sm:$0x1] }
 0x30f   :  { %v2599_v62 = vpop.permute.xlu1 %2598  ;;  %v3225_v52 = vsel %vm3163_vm2, %v3160_v24, %v2671_v48 }
 0x310   :  { %v3162_v53 = vsel %vm3098_vm1, %v3097_v21, %v2599_v62 }
 0x312   :  { %v2765_v8 = vpop.permute.xlu0 %2764 }
 0x313   :  { %v2673_v47 = vpop.permute.xlu1 %2672  ;;  %v3290_v58 = vsel %vm3228_vm4, %v3225_v52, %v2765_v8  ;;  %v11531_v54 = vld [vmem:[#allocation3 + $0xe0] ss:$0 sps:$4 sm:$0x11]  }
 0x314   :  { %v3227_v32 = vsel %vm3163_vm2, %v3162_v53, %v2673_v47  ;;  %v5000_v47 = vld [vmem:[#allocation3 + $0x18] sm:$0xf] }
 0x316   :  { %v2835_v14 = vpop.permute.xlu0 %2834 }
 0x317   :  { %v3355_v42 = vsel %vm3293_vm6, %v3290_v58, %v2835_v14  ;;  %v2767_v46 = vpop.permute.xlu1 %2766  ;;  %v4993_v14 = vld [vmem:[#allocation3 + $0xc] sm:$0xf] }
 0x318   :  { %8495 = vmatprep.mubr.msk.bf16.mxu0 %vm3373_vm11, %v3355_v42  ;;  %v3292_v27 = vsel %vm3228_vm4, %v3227_v32, %v2767_v46 }
 0x31b   :  { %v2837_v2 = vpop.permute.xlu1 %2836 }
 0x31c   :  { %v3357_v38 = vsel %vm3293_vm6, %v3292_v27, %v2837_v2 }
 0x31d   :  { %8496 = vmatmul.mubr.msk.bf16.gmra.mrb[60].mxu0 %vm3373_vm11, %v3357_v38 }
 0x32c   :  { %v8437_v60 = vpop.f32.mrb[0].mxu0 }
 0x32d   :  { %v3737_v36 = vmul.f32 %v8437_v60, %v11478_v7  ;;  %v3476_v17 = vpop.f32.mrb[1].mxu0 }
 0x32e   :  { %v3735_v12 = vmul.f32 %v11478_v7, %v3476_v17  ;;  %v8438_v31 = vpop.f32.mrb[2].mxu0  ;;  %v4150_v17 = vld [vmem:[#allocation3 + $0x110] sm:$0x1] }
 0x32f   :  { %v3805_v57 = vadd.f32 %v11483_v29, %v3737_v36  ;;  %v3738_v19 = vmul.f32 %v8438_v31, %v11478_v7  ;;  %v3479_v23 = vpop.f32.mrb[3].mxu0  ;;  %v4151_v35 = vsel %vm9021_vm5, 0, %v4150_v17 }
 0x330   :  { %v3803_v48 = vadd.f32 %v11483_v29, %v3735_v12  ;;  %v3736_v34 = vmul.f32 %v11478_v7, %v3479_v23  ;;  %v4147_v23 = vld [vmem:[#allocation3 + $0x104] sm:$0x1]  ;;  %4152 = vst [vmem:[#allocation3 + $0x110] sm:$0x1] %v4151_v35 }
 0x331   :  { %v3869_v33 = vmax.f32 %v3805_v57, 0.0  ;;  %v3806_v5 = vadd.f32 %v11483_v29, %v3738_v19  ;;  %v4148_v6 = vsel %vm9021_vm5, 0, %v4147_v23  ;;  %v5011_v23 = vld [vmem:[#allocation3 + $0x2c] sm:$0x1] }
 0x332   :  { %v3867_v39 = vmax.f32 %v3803_v48, 0.0  ;;  %v3804_v62 = vadd.f32 %v11483_v29, %v3736_v34  ;;  %4149 = vst [vmem:[#allocation3 + $0x104] sm:$0x1] %v4148_v6 }
 0x333   :  { %v8297_v44 = vpack.c.bf16 %v3869_v33, %v3869_v33  ;;  %v3870_v40 = vmax.f32 %v3806_v5, 0.0 }
 0x334   :  { %v8295_v8 = vpack.c.bf16 %v3867_v39, %v3867_v39  ;;  %v3868_v18 = vmax.f32 %v3804_v62, 0.0  ;;  %v4040_v62 = vsel %vm8988_vm3, 0, %v4039_v25  ;;  %v5018_v25 = vld [vmem:[#allocation3 + $0x38] sm:$0x1] }
 0x335   :  { %v4370_v0 = vshrl.u32 %v8297_v44, 16  ;;  %v8298_v24 = vpack.c.bf16 %v3870_v40, %v3870_v40  ;;  %v4373_v26 = vshll.u32 %v8297_v44, 16  ;;  %4041 = vst [vmem:[#allocation3 + $0xfc] sm:$0x1] %v4040_v62 }
 0x336   :  { %v4353_v13 = vshrl.u32 %v8295_v8, 16  ;;  %v8296_v52 = vpack.c.bf16 %v3868_v18, %v3868_v18  ;;  %v4356_v58 = vshll.u32 %v8295_v8, 16  ;;  %v4049_v8 = vsel %vm8988_vm3, 0, %v4048_v15  ;;  %v11529_v18 = vld [vmem:[#allocation3 + $0xd8] sm:$0xff]  }
 0x337   :  { %v4372_v43 = vrot.slane %v4370_v0, 7  ;;  %v4378_v20 = vshrl.u32 %v8298_v24, 16  ;;  %v4381_v42 = vshll.u32 %v8298_v24, 16  ;;  %4050 = vst [vmem:[#allocation3 + $0x120] sm:$0x1] %v4049_v8 }
 0x338   :  { %v4355_v22 = vrot.slane %v4353_v13, 7  ;;  %v4361_v10 = vshrl.u32 %v8296_v52, 16  ;;  %v4364_v45 = vshll.u32 %v8296_v52, 16  ;;  %v8441_v46 = vpop.f32.mrb[4].mxu0  ;;  %v4045_v13 = vld [vmem:[#allocation3 + $0x114] sm:$0x1] }
 0x339   :  { %v4375_v37 = vor.u32 %v4373_v26, %v4372_v43  ;;  %v4376_v59 = vrot.slane %v4372_v43, 4  ;;  %v4380_v21 = vrot.slane %v4378_v20, 7  ;;  %v3741_v16 = vmul.f32 %v8441_v46, %v11478_v7  ;;  %v3492_v53 = vpop.f32.mrb[5].mxu0  ;;  %v5014_v52 = vld [vmem:[#allocation3 + $0x30] sm:$0xf] }
 0x33a   :  { %v4358_v51 = vor.u32 %v4356_v58, %v4355_v22  ;;  %v4359_v41 = vrot.slane %v4355_v22, 4  ;;  %v4363_v32 = vrot.slane %v4361_v10, 7  ;;  %v3739_v27 = vmul.f32 %v11478_v7, %v3492_v53  ;;  %v8442_v2 = vpop.f32.mrb[6].mxu0  ;;  %v5007_v10 = vld [vmem:[#allocation3 + $0x24] sm:$0xf] }
 0x33b   :  { %v5001_v56 = vsel %vm9062_vm8, %v4375_v37, %v5000_v47  ;;  %v4383_v3 = vor.u32 %v4381_v42, %v4380_v21  ;;  %v4385_v28 = vrot.slane %v4380_v21, 4  ;;  %v3809_v63 = vadd.f32 %v11483_v29, %v3741_v16  ;;  %v3495_v30 = vpop.f32.mrb[7].mxu0 }
 0x33c   :  { %5002 = vst [vmem:[#allocation3 + $0x18] sm:$0xf] %v5001_v56  ;;  %v4994_v50 = vsel %vm9062_vm8, %v4358_v51, %v4993_v14  ;;  %v4366_v9 = vor.u32 %v4364_v45, %v4363_v32  ;;  %v4368_v60 = vrot.slane %v4363_v32, 4  ;;  %v3807_v36 = vadd.f32 %v11483_v29, %v3739_v27  ;;  %v4156_v14 = vld [vmem:[#allocation3 + $0x128] sm:$0x1] }
 0x33d   :  { %4995 = vst [vmem:[#allocation3 + $0xc] sm:$0xf] %v4994_v50  ;;  %v4384_v31 = vsel %vm9050_vm7, %v4376_v59, %v4383_v3  ;;  %v5005_v49 = vsel %vm8988_vm3, %v4385_v28, %v5004_v11  ;;  %v3873_v57 = vmax.f32 %v3809_v63, 0.0  ;;  %v3742_v19 = vmul.f32 %v8442_v2, %v11478_v7 }
 0x33e   :  { %5003 = vst.msk [vmem:[#allocation3 + $0x1c] sm:$0xf] %vm118_vm0, %v4384_v31  ;;  %5006 = vst [vmem:[#allocation3 + $0x20] sm:$0x1] %v5005_v49  ;;  %v4367_v48 = vsel %vm9050_vm7, %v4359_v41, %v4366_v9  ;;  %v4998_v34 = vsel %vm8988_vm3, %v4368_v60, %v4997_v55  ;;  %v3871_v33 = vmax.f32 %v3807_v36, 0.0  ;;  %v3740_v5 = vmul.f32 %v11478_v7, %v3495_v30 }
 0x33f   :  { %4996 = vst.msk [vmem:[#allocation3 + $0x10] sm:$0xf] %vm118_vm0, %v4367_v48  ;;  %4999 = vst [vmem:[#allocation3 + $0x14] sm:$0x1] %v4998_v34  ;;  %v8301_v61 = vpack.c.bf16 %v3873_v57, %v3873_v57  ;;  %v3810_v39 = vadd.f32 %v11483_v29, %v3742_v19  ;;  %v4046_v58 = vsel %vm8988_vm3, 0, %v4045_v13  ;;  %v5779_v20 = vshrl.u32 %v11529_v18, 16 }
 0x340   :  { %v8299_v44 = vpack.c.bf16 %v3871_v33, %v3871_v33  ;;  %v3808_v40 = vadd.f32 %v11483_v29, %v3740_v5  ;;  %4047 = vst [vmem:[#allocation3 + $0x114] sm:$0x1] %v4046_v58  ;;  %v4157_v46 = vsel %vm9021_vm5, 0, %v4156_v14  ;;  %v5781_v11 = vshll.u32 %v11529_v18, 16 }
 0x341   :  { %v4404_v0 = vshrl.u32 %v8301_v61, 16  ;;  %v4407_v24 = vshll.u32 %v8301_v61, 16  ;;  %v3874_v47 = vmax.f32 %v3810_v39, 0.0  ;;  %4158 = vst [vmem:[#allocation3 + $0x128] sm:$0x1] %v4157_v46  ;;  %v5786_v16 = vshll.u32 %v11531_v54, 16 }
 0x342   :  { %v4387_v43 = vshrl.u32 %v8299_v44, 16  ;;  %v3872_v26 = vmax.f32 %v3808_v40, 0.0  ;;  %v4390_v42 = vshll.u32 %v8299_v44, 16 }
 0x343   :  { %v4406_v22 = vrot.slane %v4404_v0, 7  ;;  %v8302_v45 = vpack.c.bf16 %v3874_v47, %v3874_v47 }
 0x344   :  { %v4389_v37 = vrot.slane %v4387_v43, 7  ;;  %v8300_v59 = vpack.c.bf16 %v3872_v26, %v3872_v26  ;;  %v8445_v21 = vpop.f32.mrb[8].mxu0 }
 0x345   :  { %v4409_v53 = vor.u32 %v4407_v24, %v4406_v22  ;;  %v4410_v51 = vrot.slane %v4406_v22, 4  ;;  %v4412_v41 = vshrl.u32 %v8302_v45, 16  ;;  %v4415_v32 = vshll.u32 %v8302_v45, 16  ;;  %v3508_v55 = vpop.f32.mrb[9].mxu0  ;;  %v11550_v34 = vld [vmem:[#allocation3 + $0x18] sm:$0xff]  }
 0x346   :  { %v4392_v27 = vor.u32 %v4390_v42, %v4389_v37  ;;  %v4393_v2 = vrot.slane %v4389_v37, 4  ;;  %v4395_v56 = vshrl.u32 %v8300_v59, 16  ;;  %v4398_v3 = vshll.u32 %v8300_v59, 16  ;;  %v8446_v28 = vpop.f32.mrb[10].mxu0  ;;  %v11554_v35 = vld [vmem:[#allocation3 + $0xc] sm:$0xff]  }
 0x347   :  { %v5015_v63 = vsel %vm9062_vm8, %v4409_v53, %v5014_v52  ;;  %v4414_v30 = vrot.slane %v4412_v41, 7  ;;  %v3745_v50 = vmul.f32 %v8445_v21, %v11478_v7  ;;  %v3743_v9 = vmul.f32 %v11478_v7, %v3508_v55  ;;  %v3511_v60 = vpop.f32.mrb[11].mxu0  ;;  %v8658_v62 = vld [vmem:[#allocation3 + $0x20] ss:$0 sps:$4 sm:$0x11]  }
 0x348   :  { %5016 = vst [vmem:[#allocation3 + $0x30] sm:$0xf] %v5015_v63  ;;  %v5008_v36 = vsel %vm9062_vm8, %v4392_v27, %v5007_v10  ;;  %v4397_v17 = vrot.slane %v4395_v56, 7  ;;  %v3746_v31 = vmul.f32 %v8446_v28, %v11478_v7  ;;  %v3744_v49 = vmul.f32 %v11478_v7, %v3511_v60  ;;  %v8660_v10 = vld [vmem:[#allocation3 + $0x14] ss:$0 sps:$4 sm:$0x11]  }
 0x349   :  { %5009 = vst [vmem:[#allocation3 + $0x24] sm:$0xf] %v5008_v36  ;;  %v4417_v57 = vor.u32 %v4415_v32, %v4414_v30  ;;  %v4419_v19 = vrot.slane %v4414_v30, 4  ;;  %v3813_v15 = vadd.f32 %v11483_v29, %v3745_v50  ;;  %v3811_v48 = vadd.f32 %v11483_v29, %v3743_v9  ;;  %v5028_v53 = vld [vmem:[#allocation3 + $0x48] sm:$0xf] }
 0x34a   :  { %v4400_v33 = vor.u32 %v4398_v3, %v4397_v17  ;;  %v4402_v5 = vrot.slane %v4397_v17, 4  ;;  %v3814_v61 = vadd.f32 %v11483_v29, %v3746_v31  ;;  %v3812_v39 = vadd.f32 %v11483_v29, %v3744_v49  ;;  %v5032_v28 = vld [vmem:[#allocation3 + $0x50] sm:$0x1]  ;;  %v5025_v63 = vld [vmem:[#allocation3 + $0x44] sm:$0x1] }
 0x34b   :  { %v4418_v44 = vsel %vm9050_vm7, %v4410_v51, %v4417_v57  ;;  %v5019_v40 = vsel %vm8988_vm3, %v4419_v19, %v5018_v25  ;;  %v3877_v6 = vmax.f32 %v3813_v15, 0.0  ;;  %v3875_v8 = vmax.f32 %v3811_v48, 0.0  ;;  %v5021_v51 = vld [vmem:[#allocation3 + $0x3c] sm:$0xf] }
 0x34c   :  { %5017 = vst.msk [vmem:[#allocation3 + $0x34] sm:$0xf] %vm118_vm0, %v4418_v44  ;;  %5020 = vst [vmem:[#allocation3 + $0x38] sm:$0x1] %v5019_v40  ;;  %v4401_v0 = vsel %vm9050_vm7, %v4393_v2, %v4400_v33  ;;  %v5012_v24 = vsel %vm8988_vm3, %v4402_v5, %v5011_v23  ;;  %v3878_v47 = vmax.f32 %v3814_v61, 0.0  ;;  %v3876_v13 = vmax.f32 %v3812_v39, 0.0 }
 0x34d   :  { %5010 = vst.msk [vmem:[#allocation3 + $0x28] sm:$0xf] %vm118_vm0, %v4401_v0  ;;  %5013 = vst [vmem:[#allocation3 + $0x2c] sm:$0x1] %v5012_v24  ;;  %v8305_v52 = vpack.c.bf16 %v3877_v6, %v3877_v6  ;;  %v8303_v43 = vpack.c.bf16 %v3875_v8, %v3875_v8  ;;  %v5611_v26 = vshrl.u32 %v11550_v34, 16  ;;  %v5613_v58 = vshll.u32 %v11550_v34, 16 }
 0x34e   :  { %v8306_v14 = vpack.c.bf16 %v3878_v47, %v3878_v47  ;;  %v8304_v22 = vpack.c.bf16 %v3876_v13, %v3876_v13  ;;  %v5618_v42 = vshll.u32 %v8658_v62, 16  ;;  %v5599_v45 = vshrl.u32 %v11554_v35, 16 }
 0x34f   :  { %v4438_v46 = vshrl.u32 %v8305_v52, 16  ;;  %v4441_v37 = vshll.u32 %v8305_v52, 16  ;;  %v4421_v59 = vshrl.u32 %v8303_v43, 16  ;;  %v4424_v21 = vshll.u32 %v8303_v43, 16 }
 0x350   :  { %v4446_v41 = vshrl.u32 %v8306_v14, 16  ;;  %v4449_v32 = vshll.u32 %v8306_v14, 16  ;;  %v4429_v55 = vshrl.u32 %v8304_v22, 16  ;;  %v4432_v27 = vshll.u32 %v8304_v22, 16  ;;  %v8449_v2 = vpop.f32.mrb[12].mxu0 }
 0x351   :  { %v4440_v56 = vrot.slane %v4438_v46, 7  ;;  %v4423_v3 = vrot.slane %v4421_v59, 7  ;;  %v5615_v30 = vrot.slane %v5613_v58, 1  ;;  %v5620_v25 = vrot.slane %v5618_v42, 1  ;;  %v3524_v50 = vpop.f32.mrb[13].mxu0 }
 0x352   :  { %v4448_v9 = vrot.slane %v4446_v41, 7  ;;  %v4431_v60 = vrot.slane %v4429_v55, 7  ;;  %v5601_v36 = vshll.u32 %v11554_v35, 16  ;;  %v5606_v17 = vshll.u32 %v8660_v10, 16  ;;  %v8450_v31 = vpop.f32.mrb[14].mxu0 }
 0x353   :  { %v4443_v49 = vor.u32 %v4441_v37, %v4440_v56  ;;  %v4444_v57 = vrot.slane %v4440_v56, 4  ;;  %v4426_v19 = vor.u32 %v4424_v21, %v4423_v3  ;;  %v4427_v23 = vrot.slane %v4423_v3, 4  ;;  %v3527_v15 = vpop.f32.mrb[15].mxu0  ;;  %v8661_v48 = vld [vmem:[#allocation3 + $0x30] sm:$0xff]  }
 0x354   :  { %v4451_v34 = vor.u32 %v4449_v32, %v4448_v9  ;;  %v4453_v33 = vrot.slane %v4448_v9, 4  ;;  %v4434_v5 = vor.u32 %v4432_v27, %v4431_v60  ;;  %v4436_v61 = vrot.slane %v4431_v60, 4  ;;  %v8662_v40 = vld [vmem:[#allocation3 + $0x38] ss:$0 sps:$4 sm:$0x11]   ;;  %v8663_v47 = vld [vmem:[#allocation3 + $0x24] sm:$0xff]  }
 0x355   :  { %v5029_v39 = vsel %vm9062_vm8, %v4443_v49, %v5028_v53  ;;  %v5022_v62 = vsel %vm9062_vm8, %v4426_v19, %v5021_v51  ;;  %v5616_v44 = vor.u32 %v5615_v30, %v5611_v26  ;;  %v5603_v35 = vrot.slane %v5601_v36, 1  ;;  %v8664_v10 = vld [vmem:[#allocation3 + $0x2c] ss:$0 sps:$4 sm:$0x11]  }
 0x356   :  { %5030 = vst [vmem:[#allocation3 + $0x48] sm:$0xf] %v5029_v39  ;;  %5023 = vst [vmem:[#allocation3 + $0x3c] sm:$0xf] %v5022_v62  ;;  %v4452_v6 = vsel %vm9050_vm7, %v4444_v57, %v4451_v34  ;;  %v5033_v8 = vsel %vm8988_vm3, %v4453_v33, %v5032_v28  ;;  %v4435_v0 = vsel %vm9050_vm7, %v4427_v23, %v4434_v5  ;;  %v5608_v43 = vrot.slane %v5606_v17, 1 }
 0x357   :  { %v5026_v24 = vsel %vm8988_vm3, %v4436_v61, %v5025_v63  ;;  %5031 = vst.msk [vmem:[#allocation3 + $0x4c] sm:$0xf] %vm118_vm0, %v4452_v6  ;;  %5034 = vst [vmem:[#allocation3 + $0x50] sm:$0x1] %v5033_v8  ;;  %v11585_v13 = vsel %vm1752_vm9, %v5616_v44, %v5620_v25  ;;  %v5604_v52 = vor.u32 %v5603_v35, %v5599_v45  ;;  %v5635_v42 = vshrl.u32 %v8661_v48, 16 }
 0x358   :  { %5024 = vst.msk [vmem:[#allocation3 + $0x40] sm:$0xf] %vm118_vm0, %v4435_v0  ;;  %5027 = vst [vmem:[#allocation3 + $0x44] sm:$0x1] %v5026_v24  ;;  %v3749_v26 = vmul.f32 %v8449_v2, %v11478_v7  ;;  %5974 = vrot.lane.b32.xlu0 %v11585_v13, %s8950_s13  ;;  %v3747_v58 = vmul.f32 %v11478_v7, %v3524_v50  ;;  %v3750_v14 = vmul.f32 %v8450_v31, %v11478_v7  ;;  %v5042_v8 = vld [vmem:[#allocation3 + $0x60] sm:$0xf] }
 0x359   :  { %v3748_v22 = vmul.f32 %v11478_v7, %v3527_v15  ;;  %v11594_v46 = vsel %vm1752_vm9, %v5604_v52, %v5608_v43  ;;  %v5637_v45 = vshll.u32 %v8661_v48, 16  ;;  %v5642_v59 = vshll.u32 %v8662_v40, 16 }
 0x35a   :  { %v3817_v37 = vadd.f32 %v11483_v29, %v3749_v26  ;;  %5972 = vrot.lane.b32.xlu1 %v11594_v46, %s8950_s13  ;;  %v3815_v21 = vadd.f32 %v11483_v29, %v3747_v58  ;;  %v3818_v53 = vadd.f32 %v11483_v29, %v3750_v14  ;;  %v5623_v41 = vshrl.u32 %v8663_v47, 16  ;;  %v5035_v58 = vld [vmem:[#allocation3 + $0x54] sm:$0xf]  ;;  %v5046_v14 = vld [vmem:[#allocation3 + $0x68] sm:$0x1] }
 0x35b   :  { %v3816_v51 = vadd.f32 %v11483_v29, %v3748_v22  ;;  %v5639_v55 = vrot.slane %v5637_v45, 1  ;;  %v5644_v27 = vrot.slane %v5642_v59, 1  ;;  %v5625_v2 = vshll.u32 %v8663_v47, 16 }
 0x35c   :  { %v3881_v32 = vmax.f32 %v3817_v37, 0.0  ;;  %v3879_v56 = vmax.f32 %v3815_v21, 0.0  ;;  %v3882_v3 = vmax.f32 %v3818_v53, 0.0  ;;  %v5630_v63 = vshll.u32 %v8664_v10, 16  ;;  %v8453_v30 = vpop.f32.mrb[16].mxu0 }
 0x35d   :  { %v3880_v28 = vmax.f32 %v3816_v51, 0.0  ;;  %v5640_v50 = vor.u32 %v5639_v55, %v5635_v42  ;;  %v5627_v9 = vrot.slane %v5625_v2, 1  ;;  %v3753_v60 = vmul.f32 %v8453_v30, %v11478_v7  ;;  %v3540_v36 = vpop.f32.mrb[17].mxu0  ;;  %v5039_v21 = vld [vmem:[#allocation3 + $0x5c] sm:$0x1] }
 0x35e   :  { %v8309_v25 = vpack.c.bf16 %v3881_v32, %v3881_v32  ;;  %v8307_v17 = vpack.c.bf16 %v3879_v56, %v3879_v56  ;;  %v8310_v31 = vpack.c.bf16 %v3882_v3, %v3882_v3  ;;  %v5632_v57 = vrot.slane %v5630_v63, 1  ;;  %v8454_v19 = vpop.f32.mrb[18].mxu0  ;;  %v8665_v53 = vld [vmem:[#allocation3 + $0x48] sm:$0xff]  }
 0x35f   :  { %v8308_v49 = vpack.c.bf16 %v3880_v28, %v3880_v28  ;;  %v11604_v48 = vsel %vm1752_vm9, %v5640_v50, %v5644_v27  ;;  %v5628_v34 = vor.u32 %v5627_v9, %v5623_v41  ;;  %v3543_v33 = vpop.f32.mrb[19].mxu0  ;;  %v3821_v47 = vadd.f32 %v11483_v29, %v3753_v60  ;;  %v8666_v27 = vld [vmem:[#allocation3 + $0x50] ss:$0 sps:$4 sm:$0x11]   ;;  %v8667_v63 = vld [vmem:[#allocation3 + $0x3c] sm:$0xff]  }
 0x360   :  { %v4472_v23 = vshrl.u32 %v8309_v25, 16  ;;  %v4475_v15 = vshll.u32 %v8309_v25, 16  ;;  %v4455_v5 = vshrl.u32 %v8307_v17, 16  ;;  %v4458_v61 = vshll.u32 %v8307_v17, 16  ;;  %5978 = vrot.lane.b32.xlu0 %v11604_v48, %s8950_s13 }
 0x361   :  { %v4480_v39 = vshrl.u32 %v8310_v31, 16  ;;  %v4483_v62 = vshll.u32 %v8310_v31, 16  ;;  %v4463_v35 = vshrl.u32 %v8308_v49, 16  ;;  %v4466_v40 = vshll.u32 %v8308_v49, 16 }
 0x362   :  { %v4474_v44 = vrot.slane %v4472_v23, 7  ;;  %v11609_v6 = vsel %vm1752_vm9, %v5628_v34, %v5632_v57  ;;  %v4457_v0 = vrot.slane %v4455_v5, 7  ;;  %v3751_v52 = vmul.f32 %v11478_v7, %v3540_v36 }
 0x363   :  { %v4482_v24 = vrot.slane %v4480_v39, 7  ;;  %5976 = vrot.lane.b32.xlu1 %v11609_v6, %s8950_s13  ;;  %v4465_v22 = vrot.slane %v4463_v35, 7  ;;  %v3754_v42 = vmul.f32 %v8454_v19, %v11478_v7  ;;  %v3885_v55 = vmax.f32 %v3821_v47, 0.0  ;;  %v5056_v47 = vld [vmem:[#allocation3 + $0x78] sm:$0xf] }
 0x364   :  { %v4477_v43 = vor.u32 %v4475_v15, %v4474_v44  ;;  %v4478_v26 = vrot.slane %v4474_v44, 4  ;;  %v4460_v10 = vor.u32 %v4458_v61, %v4457_v0  ;;  %v4461_v37 = vrot.slane %v4457_v0, 4 }
 0x365   :  { %v4485_v45 = vor.u32 %v4483_v62, %v4482_v24  ;;  %v4487_v59 = vrot.slane %v4482_v24, 4  ;;  %v4468_v41 = vor.u32 %v4466_v40, %v4465_v22  ;;  %v4470_v32 = vrot.slane %v4465_v22, 4  ;;  %v8668_v62 = vld [vmem:[#allocation3 + $0x44] ss:$0 sps:$4 sm:$0x11]  }
 0x366   :  { %v5043_v51 = vsel %vm9062_vm8, %v4477_v43, %v5042_v8  ;;  %v5036_v2 = vsel %vm9062_vm8, %v4460_v10, %v5035_v58  ;;  %v3819_v28 = vadd.f32 %v11483_v29, %v3751_v52  ;;  %v8313_v50 = vpack.c.bf16 %v3885_v55, %v3885_v55 }
 0x367   :  { %5044 = vst [vmem:[#allocation3 + $0x60] sm:$0xf] %v5043_v51  ;;  %v4486_v56 = vsel %vm9050_vm7, %v4478_v26, %v4485_v45  ;;  %v5047_v3 = vsel %vm8988_vm3, %v4487_v59, %v5046_v14  ;;  %5037 = vst [vmem:[#allocation3 + $0x54] sm:$0xf] %v5036_v2  ;;  %v4469_v30 = vsel %vm9050_vm7, %v4461_v37, %v4468_v41  ;;  %v5659_v17 = vshrl.u32 %v8665_v53, 16 }
 0x368   :  { %5045 = vst.msk [vmem:[#allocation3 + $0x64] sm:$0xf] %vm118_vm0, %v4486_v56  ;;  %5048 = vst [vmem:[#allocation3 + $0x68] sm:$0x1] %v5047_v3  ;;  %v5040_v25 = vsel %vm8988_vm3, %v4470_v32, %v5039_v21  ;;  %v3822_v9 = vadd.f32 %v11483_v29, %v3754_v42  ;;  %v3883_v60 = vmax.f32 %v3819_v28, 0.0  ;;  %v3752_v36 = vmul.f32 %v11478_v7, %v3543_v33  ;;  %v8457_v49 = vpop.f32.mrb[20].mxu0 }
 0x369   :  { %5038 = vst.msk [vmem:[#allocation3 + $0x58] sm:$0xf] %vm118_vm0, %v4469_v30  ;;  %5041 = vst [vmem:[#allocation3 + $0x5c] sm:$0x1] %v5040_v25  ;;  %v5661_v31 = vshll.u32 %v8665_v53, 16  ;;  %v4506_v57 = vshrl.u32 %v8313_v50, 16 }
 0x36a   :  { %v4509_v19 = vshll.u32 %v8313_v50, 16  ;;  %v3886_v23 = vmax.f32 %v3822_v9, 0.0  ;;  %v5666_v15 = vshll.u32 %v8666_v27, 16  ;;  %v3556_v34 = vpop.f32.mrb[21].mxu0  ;;  %v8311_v5 = vpack.c.bf16 %v3883_v60, %v3883_v60  ;;  %v5049_v51 = vld [vmem:[#allocation3 + $0x6c] sm:$0xf] }
 0x36b   :  { %v3820_v61 = vadd.f32 %v11483_v29, %v3752_v36  ;;  %v5663_v39 = vrot.slane %v5661_v31, 1  ;;  %v5647_v44 = vshrl.u32 %v8667_v63, 16  ;;  %v8458_v35 = vpop.f32.mrb[22].mxu0  ;;  %v4508_v40 = vrot.slane %v4506_v57, 7  ;;  %v5060_v32 = vld [vmem:[#allocation3 + $0x80] sm:$0x1] }
 0x36c   :  { %v8314_v8 = vpack.c.bf16 %v3886_v23, %v3886_v23  ;;  %v5668_v0 = vrot.slane %v5666_v15, 1  ;;  %v5649_v24 = vshll.u32 %v8667_v63, 16  ;;  %v3559_v33 = vpop.f32.mrb[23].mxu0  ;;  %v4489_v52 = vshrl.u32 %v8311_v5, 16 }
 0x36d   :  { %v4492_v43 = vshll.u32 %v8311_v5, 16  ;;  %v3884_v26 = vmax.f32 %v3820_v61, 0.0  ;;  %v5664_v58 = vor.u32 %v5663_v39, %v5659_v17  ;;  %v4511_v14 = vor.u32 %v4509_v19, %v4508_v40  ;;  %v5053_v19 = vld [vmem:[#allocation3 + $0x74] sm:$0x1] }
 0x36e   :  { %v4512_v22 = vrot.slane %v4508_v40, 4  ;;  %v4514_v42 = vshrl.u32 %v8314_v8, 16  ;;  %v4517_v10 = vshll.u32 %v8314_v8, 16  ;;  %v4491_v37 = vrot.slane %v4489_v52, 7 }
 0x36f   :  { %v8312_v45 = vpack.c.bf16 %v3884_v26, %v3884_v26  ;;  %v11635_v59 = vsel %vm1752_vm9, %v5664_v58, %v5668_v0  ;;  %v5651_v21 = vrot.slane %v5649_v24, 1  ;;  %v5057_v53 = vsel %vm9062_vm8, %v4511_v14, %v5056_v47  ;;  %v8669_v63 = vld [vmem:[#allocation3 + $0x60] sm:$0xff]   ;;  %v8670_v5 = vld [vmem:[#allocation3 + $0x68] ss:$0 sps:$4 sm:$0x11]  }
 0x370   :  { %v4516_v41 = vrot.slane %v4514_v42, 7  ;;  %5982 = vrot.lane.b32.xlu0 %v11635_v59, %s8950_s13  ;;  %v5654_v55 = vshll.u32 %v8668_v62, 16  ;;  %v3757_v27 = vmul.f32 %v8457_v49, %v11478_v7  ;;  %5058 = vst [vmem:[#allocation3 + $0x78] sm:$0xf] %v5057_v53  ;;  %v4494_v2 = vor.u32 %v4492_v43, %v4491_v37 }
 0x371   :  { %v4495_v56 = vrot.slane %v4491_v37, 4  ;;  %v4497_v3 = vshrl.u32 %v8312_v45, 16  ;;  %v4500_v28 = vshll.u32 %v8312_v45, 16  ;;  %v5652_v50 = vor.u32 %v5651_v21, %v5647_v44  ;;  %v8671_v44 = vld [vmem:[#allocation3 + $0x54] sm:$0xff]  }
 0x372   :  { %v4519_v30 = vor.u32 %v4517_v10, %v4516_v41  ;;  %v4521_v25 = vrot.slane %v4516_v41, 4  ;;  %v5656_v9 = vrot.slane %v5654_v55, 1  ;;  %v5050_v60 = vsel %vm9062_vm8, %v4494_v2, %v5049_v51  ;;  %v5070_v41 = vld [vmem:[#allocation3 + $0x90] sm:$0xf] }
 0x373   :  { %v4499_v36 = vrot.slane %v4497_v3, 7  ;;  %v3825_v17 = vadd.f32 %v11483_v29, %v3757_v27  ;;  %v3755_v31 = vmul.f32 %v11478_v7, %v3556_v34  ;;  %5051 = vst [vmem:[#allocation3 + $0x6c] sm:$0xf] %v5050_v60  ;;  %v3758_v15 = vmul.f32 %v8458_v35, %v11478_v7 }
 0x374   :  { %v4520_v49 = vsel %vm9050_vm7, %v4512_v22, %v4519_v30  ;;  %v5061_v57 = vsel %vm8988_vm3, %v4521_v25, %v5060_v32  ;;  %v11651_v23 = vsel %vm1752_vm9, %v5652_v50, %v5656_v9  ;;  %v8461_v40 = vpop.f32.mrb[24].mxu0  ;;  %v3756_v0 = vmul.f32 %v11478_v7, %v3559_v33 }
 0x375   :  { %5059 = vst.msk [vmem:[#allocation3 + $0x7c] sm:$0xf] %vm118_vm0, %v4520_v49  ;;  %5062 = vst [vmem:[#allocation3 + $0x80] sm:$0x1] %v5061_v57  ;;  %v4502_v61 = vor.u32 %v4500_v28, %v4499_v36  ;;  %v4504_v39 = vrot.slane %v4499_v36, 4  ;;  %5980 = vrot.lane.b32.xlu1 %v11651_v23, %s8950_s13  ;;  %v3889_v34 = vmax.f32 %v3825_v17, 0.0  ;;  %v3823_v62 = vadd.f32 %v11483_v29, %v3755_v31 }
 0x376   :  { %v3826_v8 = vadd.f32 %v11483_v29, %v3758_v15  ;;  %v5683_v24 = vshrl.u32 %v8669_v63, 16  ;;  %v5685_v35 = vshll.u32 %v8669_v63, 16  ;;  %v3572_v47 = vpop.f32.mrb[25].mxu0  ;;  %v3824_v42 = vadd.f32 %v11483_v29, %v3756_v0  ;;  %v5063_v57 = vld [vmem:[#allocation3 + $0x84] sm:$0xf] }
 0x377   :  { %v4503_v52 = vsel %vm9050_vm7, %v4495_v56, %v4502_v61  ;;  %v5054_v43 = vsel %vm8988_vm3, %v4504_v39, %v5053_v19  ;;  %v8317_v26 = vpack.c.bf16 %v3889_v34, %v3889_v34  ;;  %v3887_v58 = vmax.f32 %v3823_v62, 0.0  ;;  %v8462_v14 = vpop.f32.mrb[26].mxu0  ;;  %v8672_v56 = vld [vmem:[#allocation3 + $0x5c] ss:$0 sps:$4 sm:$0x11]  }
 0x378   :  { %5052 = vst.msk [vmem:[#allocation3 + $0x70] sm:$0xf] %vm118_vm0, %v4503_v52  ;;  %5055 = vst [vmem:[#allocation3 + $0x74] sm:$0x1] %v5054_v43  ;;  %v3890_v22 = vmax.f32 %v3826_v8, 0.0  ;;  %v5687_v10 = vrot.slane %v5685_v35, 1 }
 0x379   :  { %v5690_v33 = vshll.u32 %v8670_v5, 16  ;;  %v11666_v37 = vpop.f32.mrb[27].mxu0  ;;  %v4540_v45 = vshrl.u32 %v8317_v26, 16  ;;  %v4543_v21 = vshll.u32 %v8317_v26, 16  ;;  %v8315_v53 = vpack.c.bf16 %v3887_v58, %v3887_v58  ;;  %v5067_v58 = vld [vmem:[#allocation3 + $0x8c] sm:$0x1] }
 0x37a   :  { %v5671_v51 = vshrl.u32 %v8671_v44, 16  ;;  %v8318_v32 = vpack.c.bf16 %v3890_v22, %v3890_v22  ;;  %v3888_v55 = vmax.f32 %v3824_v42, 0.0  ;;  %v5688_v27 = vor.u32 %v5687_v10, %v5683_v24 }
 0x37b   :  { %v5692_v2 = vrot.slane %v5690_v33, 1  ;;  %v4542_v3 = vrot.slane %v4540_v45, 7  ;;  %v4523_v28 = vshrl.u32 %v8315_v53, 16  ;;  %v4526_v63 = vshll.u32 %v8315_v53, 16 }
 0x37c   :  { %v5673_v30 = vshll.u32 %v8671_v44, 16  ;;  %v4548_v25 = vshrl.u32 %v8318_v32, 16  ;;  %v4551_v50 = vshll.u32 %v8318_v32, 16  ;;  %v8316_v9 = vpack.c.bf16 %v3888_v55, %v3888_v55  ;;  %v5074_v44 = vld [vmem:[#allocation3 + $0x98] sm:$0x1] }
 0x37d   :  { %v11669_v60 = vsel %vm1752_vm9, %v5688_v27, %v5692_v2  ;;  %v4545_v36 = vor.u32 %v4543_v21, %v4542_v3  ;;  %v4546_v17 = vrot.slane %v4542_v3, 4  ;;  %v4525_v31 = vrot.slane %v4523_v28, 7  ;;  %v8673_v43 = vld [vmem:[#allocation3 + $0x78] sm:$0xff]  }
 0x37e   :  { %5986 = vrot.lane.b32.xlu0 %v11669_v60, %s8950_s13  ;;  %v5675_v49 = vrot.slane %v5673_v30, 1  ;;  %v4550_v19 = vrot.slane %v4548_v25, 7  ;;  %v4531_v15 = vshrl.u32 %v8316_v9, 16  ;;  %v4534_v5 = vshll.u32 %v8316_v9, 16 }
 0x37f   :  { %v5678_v61 = vshll.u32 %v8672_v56, 16  ;;  %v5071_v39 = vsel %vm9062_vm8, %v4545_v36, %v5070_v41  ;;  %v4528_v34 = vor.u32 %v4526_v63, %v4525_v31  ;;  %v4529_v62 = vrot.slane %v4525_v31, 4  ;;  %v8674_v41 = vld [vmem:[#allocation3 + $0x80] ss:$0 sps:$4 sm:$0x11]   ;;  %v8675_v32 = vld [vmem:[#allocation3 + $0x6c] sm:$0xff]  }
 0x380   :  { %v5676_v8 = vor.u32 %v5675_v49, %v5671_v51  ;;  %5072 = vst [vmem:[#allocation3 + $0x90] sm:$0xf] %v5071_v39  ;;  %v4553_v0 = vor.u32 %v4551_v50, %v4550_v19  ;;  %v4555_v24 = vrot.slane %v4550_v19, 4  ;;  %v4533_v35 = vrot.slane %v4531_v15, 7  ;;  %v11680_v33 = vpop.f32.mrb[28].mxu0 }
 0x381   :  { %v5680_v52 = vrot.slane %v5678_v61, 1  ;;  %v5064_v26 = vsel %vm9062_vm8, %v4528_v34, %v5063_v57  ;;  %v3761_v22 = vmul.f32 %v8461_v40, %v11478_v7  ;;  %v3759_v42 = vmul.f32 %v11478_v7, %v3572_v47  ;;  %v11686_v55 = vpop.f32.mrb[29].mxu0  ;;  %v8676_v30 = vld [vmem:[#allocation3 + $0x74] ss:$0 sps:$4 sm:$0x11]  }
 0x382   :  { %v3762_v10 = vmul.f32 %v8462_v14, %v11478_v7  ;;  %5065 = vst [vmem:[#allocation3 + $0x84] sm:$0xf] %v5064_v26  ;;  %v4554_v45 = vsel %vm9050_vm7, %v4546_v17, %v4553_v0  ;;  %v5075_v21 = vsel %vm8988_vm3, %v4555_v24, %v5074_v44  ;;  %v4536_v53 = vor.u32 %v4534_v5, %v4533_v35  ;;  %v11695_v2 = vpop.f32.mrb[30].mxu0 }
 0x383   :  { %v4538_v51 = vrot.slane %v4533_v35, 4  ;;  %5073 = vst.msk [vmem:[#allocation3 + $0x94] sm:$0xf] %vm118_vm0, %v4554_v45  ;;  %5076 = vst [vmem:[#allocation3 + $0x98] sm:$0x1] %v5075_v21  ;;  %v11690_v40 = vsel %vm1752_vm9, %v5676_v8, %v5680_v52  ;;  %v3829_v47 = vadd.f32 %v11483_v29, %v3761_v22  ;;  %v3827_v14 = vadd.f32 %v11483_v29, %v3759_v42  ;;  %v11705_v25 = vpop.f32.mrb[31].mxu0 }
 0x384   :  { %v3830_v27 = vadd.f32 %v11483_v29, %v3762_v10  ;;  %v4537_v56 = vsel %vm9050_vm7, %v4529_v62, %v4536_v53  ;;  %5984 = vrot.lane.b32.xlu1 %v11690_v40, %s8950_s13  ;;  %v3760_v28 = vmul.f32 %v11478_v7, %v11666_v37  ;;  %v5707_v63 = vshrl.u32 %v8673_v43, 16  ;;  %v5084_v35 = vld [vmem:[#allocation3 + $0xa8] sm:$0xf]  ;;  %v5077_v42 = vld [vmem:[#allocation3 + $0x9c] sm:$0xf] }
 0x385   :  { %v5068_v3 = vsel %vm8988_vm3, %v4538_v51, %v5067_v58  ;;  %5066 = vst.msk [vmem:[#allocation3 + $0x88] sm:$0xf] %vm118_vm0, %v4537_v56  ;;  %v3893_v50 = vmax.f32 %v3829_v47, 0.0  ;;  %v3891_v9 = vmax.f32 %v3827_v14, 0.0  ;;  %v5709_v17 = vshll.u32 %v8673_v43, 16 }
 0x386   :  { %5069 = vst [vmem:[#allocation3 + $0x8c] sm:$0x1] %v5068_v3  ;;  %v3894_v36 = vmax.f32 %v3830_v27, 0.0  ;;  %v3828_v31 = vadd.f32 %v11483_v29, %v3760_v28  ;;  %v5714_v49 = vshll.u32 %v8674_v41, 16  ;;  %v5695_v57 = vshrl.u32 %v8675_v32, 16 }
 0x387   :  { %v5697_v19 = vshll.u32 %v8675_v32, 16  ;;  %v8321_v15 = vpack.c.bf16 %v3893_v50, %v3893_v50  ;;  %v8319_v5 = vpack.c.bf16 %v3891_v9, %v3891_v9  ;;  %v5711_v7 = vrot.slane %v5709_v17, 1  ;;  %v5088_v53 = vld [vmem:[#allocation3 + $0xb0] sm:$0x1]  ;;  %v5081_v17 = vld [vmem:[#allocation3 + $0xa4] sm:$0x1] }
 0x388   :  { %v8322_v61 = vpack.c.bf16 %v3894_v36, %v3894_v36  ;;  %v3892_v37 = vmax.f32 %v3828_v31, 0.0  ;;  %v5716_v39 = vrot.slane %v5714_v49, 1  ;;  %v5702_v62 = vshll.u32 %v8676_v30, 16  ;;  %v11726_v31 = vld [vmem:[%s13862_s3] ss:$0 sm:$0xff] }
 0x389   :  { %v5699_v34 = vrot.slane %v5697_v19, 1  ;;  %v4574_v44 = vshrl.u32 %v8321_v15, 16  ;;  %v4577_v8 = vshll.u32 %v8321_v15, 16  ;;  %v4557_v0 = vshrl.u32 %v8319_v5, 16 }
 0x38a   :  { %v4560_v24 = vshll.u32 %v8319_v5, 16  ;;  %v4582_v52 = vshrl.u32 %v8322_v61, 16  ;;  %v4585_v43 = vshll.u32 %v8322_v61, 16  ;;  %v8320_v26 = vpack.c.bf16 %v3892_v37, %v3892_v37  ;;  %v8677_v50 = vld [vmem:[#allocation3 + $0x90] sm:$0xff]  }
 0x38b   :  { %v5712_v29 = vor.u32 %v5711_v7, %v5707_v63  ;;  %v4576_v58 = vrot.slane %v4574_v44, 7  ;;  %v4559_v22 = vrot.slane %v4557_v0, 7  ;;  %v5700_v10 = vor.u32 %v5699_v34, %v5695_v57  ;;  %v8678_v37 = vld [vmem:[#allocation3 + $0x98] ss:$0 sps:$4 sm:$0x11]  }
 0x38c   :  { %v5704_v45 = vrot.slane %v5702_v62, 1  ;;  %v4584_v21 = vrot.slane %v4582_v52, 7  ;;  %v4565_v51 = vshrl.u32 %v8320_v26, 16  ;;  %v4568_v41 = vshll.u32 %v8320_v26, 16  ;;  %v8469_v19 = vpop.f32.mrb[32].mxu0 }
 0x38d   :  { %v11710_v32 = vsel %vm1752_vm9, %v5712_v29, %v5716_v39  ;;  %v4579_v47 = vor.u32 %v4577_v8, %v4576_v58  ;;  %v4580_v14 = vrot.slane %v4576_v58, 4  ;;  %v4562_v27 = vor.u32 %v4560_v24, %v4559_v22  ;;  %v8679_v39 = vld [vmem:[#allocation3 + $0x84] sm:$0xff]   ;;  %v11736_v34 = vpop.f32.mrb[33].mxu0  ;;  %v8680_v26 = vld [vmem:[#allocation3 + $0x8c] ss:$0 sps:$4 sm:$0x11]  }
 0x38e   :  { %v4563_v56 = vrot.slane %v4559_v22, 4  ;;  %5990 = vrot.lane.b32.xlu0 %v11710_v32, %s8950_s13  ;;  %v4587_v3 = vor.u32 %v4585_v43, %v4584_v21  ;;  %v4589_v28 = vrot.slane %v4584_v21, 4  ;;  %v4567_v63 = vrot.slane %v4565_v51, 7  ;;  %v8470_v0 = vpop.f32.mrb[34].mxu0 }
 0x38f   :  { %v11715_v30 = vsel %vm1752_vm9, %v5700_v10, %v5704_v45  ;;  %v5085_v9 = vsel %vm9062_vm8, %v4579_v47, %v5084_v35  ;;  %v5078_v36 = vsel %vm9062_vm8, %v4562_v27, %v5077_v42  ;;  %v3765_v49 = vmul.f32 %v11726_v31, %v11680_v33  ;;  %v11742_v33 = vld [vmem:[%s13862_s3 + $0x1] ss:$0 sm:$0xff]  ;;  %v11754_v29 = vpop.f32.mrb[35].mxu0 }
 0x390   :  { %5988 = vrot.lane.b32.xlu1 %v11715_v30, %s8950_s13  ;;  %v3763_v57 = vmul.f32 %v11726_v31, %v11686_v55  ;;  %5086 = vst [vmem:[#allocation3 + $0xa8] sm:$0xf] %v5085_v9  ;;  %5079 = vst [vmem:[#allocation3 + $0x9c] sm:$0xf] %v5078_v36  ;;  %v4588_v15 = vsel %vm9050_vm7, %v4580_v14, %v4587_v3  ;;  %v5089_v5 = vsel %vm8988_vm3, %v4589_v28, %v5088_v53  ;;  %v5098_v36 = vld [vmem:[#allocation3 + $0xc0] sm:$0xf] }
 0x391   :  { %v4570_v61 = vor.u32 %v4568_v41, %v4567_v63  ;;  %v4572_v7 = vrot.slane %v4567_v63, 4  ;;  %5087 = vst.msk [vmem:[#allocation3 + $0xac] sm:$0xf] %vm118_vm0, %v4588_v15  ;;  %5090 = vst [vmem:[#allocation3 + $0xb0] sm:$0x1] %v5089_v5  ;;  %v3833_v55 = vadd.f32 %v11742_v33, %v3765_v49  ;;  %v3766_v44 = vmul.f32 %v11726_v31, %v11695_v2 }
 0x392   :  { %v3831_v62 = vadd.f32 %v11742_v33, %v3763_v57  ;;  %v3764_v8 = vmul.f32 %v11726_v31, %v11705_v25  ;;  %v5731_v52 = vshrl.u32 %v8677_v50, 16  ;;  %v5733_v43 = vshll.u32 %v8677_v50, 16 }
 0x393   :  { %v4571_v24 = vsel %vm9050_vm7, %v4563_v56, %v4570_v61  ;;  %v5082_v35 = vsel %vm8988_vm3, %v4572_v7, %v5081_v17  ;;  %v3897_v58 = vmax.f32 %v3833_v55, 0.0  ;;  %v3834_v22 = vadd.f32 %v11742_v33, %v3766_v44  ;;  %v5091_v7 = vld [vmem:[#allocation3 + $0xb4] sm:$0xf] }
 0x394   :  { %5080 = vst.msk [vmem:[#allocation3 + $0xa0] sm:$0xf] %vm118_vm0, %v4571_v24  ;;  %5083 = vst [vmem:[#allocation3 + $0xa4] sm:$0x1] %v5082_v35  ;;  %v3895_v2 = vmax.f32 %v3831_v62, 0.0  ;;  %v3832_v25 = vadd.f32 %v11742_v33, %v3764_v8  ;;  %v5735_v42 = vrot.slane %v5733_v43, 1 }
 0x395   :  { %v5738_v10 = vshll.u32 %v8678_v37, 16  ;;  %v5719_v45 = vshrl.u32 %v8679_v39, 16  ;;  %v5721_v21 = vshll.u32 %v8679_v39, 16  ;;  %v8325_v53 = vpack.c.bf16 %v3897_v58, %v3897_v58  ;;  %v5102_v58 = vld [vmem:[#allocation3 + $0xc8] sm:$0x1] }
 0x396   :  { %v8323_v51 = vpack.c.bf16 %v3895_v2, %v3895_v2  ;;  %v3898_v41 = vmax.f32 %v3834_v22, 0.0  ;;  %v3896_v47 = vmax.f32 %v3832_v25, 0.0  ;;  %v5736_v14 = vor.u32 %v5735_v42, %v5731_v52 }
 0x397   :  { %v5740_v27 = vrot.slane %v5738_v10, 1  ;;  %v5723_v56 = vrot.slane %v5721_v21, 1  ;;  %v5726_v3 = vshll.u32 %v8680_v26, 16  ;;  %v4608_v28 = vshrl.u32 %v8325_v53, 16  ;;  %v5095_v10 = vld [vmem:[#allocation3 + $0xbc] sm:$0x1] }
 0x398   :  { %v4611_v63 = vshll.u32 %v8325_v53, 16  ;;  %v4591_v50 = vshrl.u32 %v8323_v51, 16  ;;  %v4594_v9 = vshll.u32 %v8323_v51, 16  ;;  %v8326_v17 = vpack.c.bf16 %v3898_v41, %v3898_v41  ;;  %v8682_v53 = vld [vmem:[#allocation3 + $0xb0] ss:$0 sps:$4 sm:$0x11]  }
 0x399   :  { %v8324_v49 = vpack.c.bf16 %v3896_v47, %v3896_v47  ;;  %v11760_v57 = vsel %vm1752_vm9, %v5736_v14, %v5740_v27  ;;  %v5724_v15 = vor.u32 %v5723_v56, %v5719_v45  ;;  %v4610_v5 = vrot.slane %v4608_v28, 7  ;;  %v11778_v51 = vpop.f32.mrb[36].mxu0  ;;  %v8681_v56 = vld [vmem:[#allocation3 + $0xa8] sm:$0xff]  }
 0x39a   :  { %v4593_v61 = vrot.slane %v4591_v50, 7  ;;  %5994 = vrot.lane.b32.xlu0 %v11760_v57, %s8950_s13  ;;  %v5728_v37 = vrot.slane %v5726_v3, 1  ;;  %v3769_v39 = vmul.f32 %v11726_v31, %v8469_v19  ;;  %v4616_v55 = vshrl.u32 %v8326_v17, 16  ;;  %v11780_v28 = vpop.f32.mrb[37].mxu0 }
 0x39b   :  { %v4619_v62 = vshll.u32 %v8326_v17, 16  ;;  %v4599_v44 = vshrl.u32 %v8324_v49, 16  ;;  %v4602_v8 = vshll.u32 %v8324_v49, 16  ;;  %v4613_v24 = vor.u32 %v4611_v63, %v4610_v5  ;;  %v8683_v3 = vld [vmem:[#allocation3 + $0x9c] sm:$0xff]  }
 0x39c   :  { %v4614_v35 = vrot.slane %v4610_v5, 4  ;;  %v4596_v52 = vor.u32 %v4594_v9, %v4593_v61  ;;  %v4597_v43 = vrot.slane %v4593_v61, 4  ;;  %v4618_v26 = vrot.slane %v4616_v55, 7  ;;  %v11786_v9 = vpop.f32.mrb[38].mxu0 }
 0x39d   :  { %v4601_v2 = vrot.slane %v4599_v44, 7  ;;  %v11766_v22 = vsel %vm1752_vm9, %v5724_v15, %v5728_v37  ;;  %v3837_v25 = vadd.f32 %v11742_v33, %v3769_v39  ;;  %v5099_v42 = vsel %vm9062_vm8, %v4613_v24, %v5098_v36  ;;  %v11796_v5 = vpop.f32.mrb[39].mxu0 }
 0x39e   :  { %v5092_v19 = vsel %vm9062_vm8, %v4596_v52, %v5091_v7  ;;  %5992 = vrot.lane.b32.xlu1 %v11766_v22, %s8950_s13  ;;  %v3767_v45 = vmul.f32 %v11726_v31, %v11736_v34  ;;  %v3770_v21 = vmul.f32 %v11726_v31, %v8470_v0  ;;  %5100 = vst [vmem:[#allocation3 + $0xc0] sm:$0xf] %v5099_v42  ;;  %v4623_v47 = vrot.slane %v4618_v26, 4 }
 0x39f   :  { %5093 = vst [vmem:[#allocation3 + $0xb4] sm:$0xf] %v5092_v19  ;;  %v4621_v41 = vor.u32 %v4619_v62, %v4618_v26  ;;  %v4604_v14 = vor.u32 %v4602_v8, %v4601_v2  ;;  %v4606_v27 = vrot.slane %v4601_v2, 4  ;;  %v3901_v63 = vmax.f32 %v3837_v25, 0.0 }
 0x3a0   :  { %v3835_v50 = vadd.f32 %v11742_v33, %v3767_v45  ;;  %v3838_v34 = vadd.f32 %v11742_v33, %v3770_v21  ;;  %v3768_v0 = vmul.f32 %v11726_v31, %v11754_v29  ;;  %v5103_v17 = vsel %vm8988_vm3, %v4623_v47, %v5102_v58  ;;  %v8684_v25 = vld [vmem:[#allocation3 + $0xa4] ss:$0 sps:$4 sm:$0x11]  }
 0x3a1   :  { %v4622_v36 = vsel %vm9050_vm7, %v4614_v35, %v4621_v41  ;;  %v4605_v49 = vsel %vm9050_vm7, %v4597_v43, %v4604_v14  ;;  %v5096_v15 = vsel %vm8988_vm3, %v4606_v27, %v5095_v10  ;;  %5104 = vst [vmem:[#allocation3 + $0xc8] sm:$0x1] %v5103_v17  ;;  %v8329_v29 = vpack.c.bf16 %v3901_v63, %v3901_v63  ;;  %v5112_v43 = vld [vmem:[#allocation3 + $0xf0] sm:$0xf] }
 0x3a2   :  { %5101 = vst.msk [vmem:[#allocation3 + $0xc4] sm:$0xf] %vm118_vm0, %v4622_v36  ;;  %5094 = vst.msk [vmem:[#allocation3 + $0xb8] sm:$0xf] %vm118_vm0, %v4605_v49  ;;  %v3899_v61 = vmax.f32 %v3835_v50, 0.0  ;;  %v3902_v7 = vmax.f32 %v3838_v34, 0.0  ;;  %v3836_v37 = vadd.f32 %v11742_v33, %v3768_v0 }
 0x3a3   :  { %5097 = vst [vmem:[#allocation3 + $0xbc] sm:$0x1] %v5096_v15  ;;  %v5755_v39 = vshrl.u32 %v8681_v56, 16  ;;  %v5757_v55 = vshll.u32 %v8681_v56, 16  ;;  %v5762_v62 = vshll.u32 %v8682_v53, 16  ;;  %v5743_v44 = vshrl.u32 %v8683_v3, 16 }
 0x3a4   :  { %v4642_v8 = vshrl.u32 %v8329_v29, 16  ;;  %v4645_v24 = vshll.u32 %v8329_v29, 16  ;;  %v8327_v35 = vpack.c.bf16 %v3899_v61, %v3899_v61  ;;  %v8330_v52 = vpack.c.bf16 %v3902_v7, %v3902_v7  ;;  %v8477_v53 = vpop.f32.mrb[40].mxu0  ;;  %v5105_v34 = vld [vmem:[#allocation3 + $0xe4] sm:$0xf] }
 0x3a5   :  { %v3900_v26 = vmax.f32 %v3836_v37, 0.0  ;;  %v5759_v58 = vrot.slane %v5757_v55, 1  ;;  %v5764_v2 = vrot.slane %v5762_v62, 1  ;;  %v5745_v42 = vshll.u32 %v8683_v3, 16  ;;  %v3636_v36 = vpop.f32.mrb[41].mxu0 }
 0x3a6   :  { %v4644_v19 = vrot.slane %v4642_v8, 7  ;;  %v4625_v10 = vshrl.u32 %v8327_v35, 16  ;;  %v4628_v45 = vshll.u32 %v8327_v35, 16  ;;  %v4650_v21 = vshrl.u32 %v8330_v52, 16  ;;  %v11808_v62 = vpop.f32.mrb[42].mxu0 }
 0x3a7   :  { %v4653_v41 = vshll.u32 %v8330_v52, 16  ;;  %v8328_v47 = vpack.c.bf16 %v3900_v26, %v3900_v26  ;;  %v5760_v14 = vor.u32 %v5759_v58, %v5755_v39  ;;  %v5747_v27 = vrot.slane %v5745_v42, 1  ;;  %v5116_v39 = vld [vmem:[#allocation3 + $0xf8] sm:$0x1]  ;;  %v11812_v52 = vpop.f32.mrb[43].mxu0 }
 0x3a8   :  { %v4647_v56 = vor.u32 %v4645_v24, %v4644_v19  ;;  %v4648_v63 = vrot.slane %v4644_v19, 4  ;;  %v4627_v50 = vrot.slane %v4625_v10, 7  ;;  %v4652_v0 = vrot.slane %v4650_v21, 7  ;;  %v5109_v58 = vld [vmem:[#allocation3 + $0xec] sm:$0x1] }
 0x3a9   :  { %v4633_v17 = vshrl.u32 %v8328_v47, 16  ;;  %v4636_v49 = vshll.u32 %v8328_v47, 16  ;;  %v11802_v15 = vsel %vm1752_vm9, %v5760_v14, %v5764_v2  ;;  %v5748_v3 = vor.u32 %v5747_v27, %v5743_v44  ;;  %v8685_v55 = vld [vmem:[#allocation3 + $0xb4] sm:$0xff]  }
 0x3aa   :  { %v5113_v29 = vsel %vm9062_vm8, %v4647_v56, %v5112_v43  ;;  %v4630_v61 = vor.u32 %v4628_v45, %v4627_v50  ;;  %v4631_v7 = vrot.slane %v4627_v50, 4  ;;  %v4655_v37 = vor.u32 %v4653_v41, %v4652_v0  ;;  %5998 = vrot.lane.b32.xlu0 %v11802_v15, %s8950_s13  ;;  %v8686_v45 = vld [vmem:[#allocation3 + $0xbc] ss:$0 sps:$4 sm:$0x11]  }
 0x3ab   :  { %5114 = vst [vmem:[#allocation3 + $0xf0] sm:$0xf] %v5113_v29  ;;  %v4657_v8 = vrot.slane %v4652_v0, 4  ;;  %v4635_v24 = vrot.slane %v4633_v17, 7  ;;  %v5750_v35 = vshll.u32 %v8684_v25, 16  ;;  %v3773_v44 = vmul.f32 %v11726_v31, %v11778_v51 }
 0x3ac   :  { %v5106_v43 = vsel %vm9062_vm8, %v4630_v61, %v5105_v34  ;;  %v4656_v26 = vsel %vm9050_vm7, %v4648_v63, %v4655_v37  ;;  %v3771_v2 = vmul.f32 %v11726_v31, %v11780_v28  ;;  %v3774_v42 = vmul.f32 %v11726_v31, %v11786_v9 }
 0x3ad   :  { %5107 = vst [vmem:[#allocation3 + $0xe4] sm:$0xf] %v5106_v43  ;;  %5115 = vst.msk [vmem:[#allocation3 + $0xf4] sm:$0xf] %vm118_vm0, %v4656_v26  ;;  %v5117_v51 = vsel %vm8988_vm3, %v4657_v8, %v5116_v39  ;;  %v4638_v25 = vor.u32 %v4636_v49, %v4635_v24  ;;  %v4640_v19 = vrot.slane %v4635_v24, 4  ;;  %v5752_v10 = vrot.slane %v5750_v35, 1 }
 0x3ae   :  { %5118 = vst [vmem:[#allocation3 + $0xf8] sm:$0x1] %v5117_v51  ;;  %v3841_v21 = vadd.f32 %v11742_v33, %v3773_v44  ;;  %v3839_v41 = vadd.f32 %v11742_v33, %v3771_v2  ;;  %v3842_v28 = vadd.f32 %v11742_v33, %v3774_v42  ;;  %v3772_v9 = vmul.f32 %v11726_v31, %v11796_v5  ;;  %v5126_v2 = vld [vmem:[#allocation3 + $0x108] sm:$0xf] }
 0x3af   :  { %v4639_v47 = vsel %vm9050_vm7, %v4631_v7, %v4638_v25  ;;  %v5110_v14 = vsel %vm8988_vm3, %v4640_v19, %v5109_v58  ;;  %v11835_v27 = vsel %vm1752_vm9, %v5748_v3, %v5752_v10  ;;  %v5767_v56 = vshrl.u32 %v8685_v55, 16 }
 0x3b0   :  { %5108 = vst.msk [vmem:[#allocation3 + $0xe8] sm:$0xf] %vm118_vm0, %v4639_v47  ;;  %5111 = vst [vmem:[#allocation3 + $0xec] sm:$0x1] %v5110_v14  ;;  %5996 = vrot.lane.b32.xlu1 %v11835_v27, %s8950_s13  ;;  %v3905_v63 = vmax.f32 %v3841_v21, 0.0  ;;  %v3903_v50 = vmax.f32 %v3839_v41, 0.0  ;;  %v3840_v5 = vadd.f32 %v11742_v33, %v3772_v9  ;;  %v3777_v49 = vmul.f32 %v11726_v31, %v8477_v53 }
 0x3b1   :  { %v3906_v34 = vmax.f32 %v3842_v28, 0.0  ;;  %v5769_v0 = vshll.u32 %v8685_v55, 16  ;;  %v5774_v17 = vshll.u32 %v8686_v45, 16  ;;  %v3775_v29 = vmul.f32 %v11726_v31, %v3636_v36  ;;  %v11843_v39 = vpop.f32.mrb[44].mxu0  ;;  %v5119_v36 = vld [vmem:[#allocation3 + $0xfc] sm:$0xf] }
 0x3b2   :  { %v8333_v3 = vpack.c.bf16 %v3905_v63, %v3905_v63  ;;  %v8331_v61 = vpack.c.bf16 %v3903_v50, %v3903_v50  ;;  %v3904_v37 = vmax.f32 %v3840_v5, 0.0  ;;  %v3845_v35 = vadd.f32 %v11742_v33, %v3777_v49  ;;  %v11847_v43 = vpop.f32.mrb[45].mxu0  ;;  %v5130_v47 = vld [vmem:[#allocation3 + $0x110] sm:$0x1] }
 0x3b3   :  { %v8334_v7 = vpack.c.bf16 %v3906_v34, %v3906_v34  ;;  %v5771_v8 = vrot.slane %v5769_v0, 1  ;;  %v5776_v24 = vrot.slane %v5774_v17, 1  ;;  %v3843_v44 = vadd.f32 %v11742_v33, %v3775_v29  ;;  %v11849_v10 = vpop.f32.mrb[46].mxu0 }
 0x3b4   :  { %v4676_v55 = vshrl.u32 %v8333_v3, 16  ;;  %v4679_v26 = vshll.u32 %v8333_v3, 16  ;;  %v4659_v58 = vshrl.u32 %v8331_v61, 16  ;;  %v4662_v53 = vshll.u32 %v8331_v61, 16 }
 0x3b5   :  { %v4684_v42 = vshrl.u32 %v8334_v7, 16  ;;  %v4687_v51 = vshll.u32 %v8334_v7, 16  ;;  %v8332_v25 = vpack.c.bf16 %v3904_v37, %v3904_v37  ;;  %v5772_v19 = vor.u32 %v5771_v8, %v5767_v56  ;;  %v5123_v37 = vld [vmem:[#allocation3 + $0x104] sm:$0x1] }
 0x3b6   :  { %v4678_v45 = vrot.slane %v4676_v55, 7  ;;  %v4661_v21 = vrot.slane %v4659_v58, 7  ;;  %v3909_v41 = vmax.f32 %v3845_v35, 0.0  ;;  %v3907_v28 = vmax.f32 %v3843_v44, 0.0  ;;  %v11862_v35 = vpop.f32.mrb[47].mxu0 }
 0x3b7   :  { %v4686_v9 = vrot.slane %v4684_v42, 7  ;;  %v4667_v14 = vshrl.u32 %v8332_v25, 16  ;;  %v4670_v63 = vshll.u32 %v8332_v25, 16  ;;  %v11852_v50 = vsel %vm1752_vm9, %v5772_v19, %v5776_v24 }
 0x3b8   :  { %v4681_v34 = vor.u32 %v4679_v26, %v4678_v45  ;;  %v4682_v5 = vrot.slane %v4678_v45, 4  ;;  %v4664_v0 = vor.u32 %v4662_v53, %v4661_v21  ;;  %v4665_v17 = vrot.slane %v4661_v21, 4  ;;  %6000 = vrot.lane.b32.xlu1 %v11852_v50, %s8950_s13  ;;  %v4153_v53 = vld [vmem:[#allocation3 + $0x11c] sm:$0x1]  ;;  %v5140_v45 = vld [vmem:[#allocation3 + $0x120] sm:$0xf] }
 0x3b9   :  { %v4689_v56 = vor.u32 %v4687_v51, %v4686_v9  ;;  %v4691_v49 = vrot.slane %v4686_v9, 4  ;;  %v4669_v29 = vrot.slane %v4667_v14, 7  ;;  %v8337_v3 = vpack.c.bf16 %v3909_v41, %v3909_v41 }
 0x3ba   :  { %v5127_v61 = vsel %vm9062_vm8, %v4681_v34, %v5126_v2  ;;  %v5120_v7 = vsel %vm9062_vm8, %v4664_v0, %v5119_v36  ;;  %v8335_v8 = vpack.c.bf16 %v3907_v28, %v3907_v28  ;;  %v3778_v24 = vmul.f32 %v11726_v31, %v11808_v62  ;;  %v8689_v2 = vld [vmem:[#allocation3 + $0xf0] sm:$0xff]   ;;  %v8690_v28 = vld [vmem:[#allocation3 + $0xf8] ss:$0 sps:$4 sm:$0x11]   ;;  %v8691_v34 = vld [vmem:[#allocation3 + $0xe4] sm:$0xff]  }
 0x3bb   :  { %5128 = vst [vmem:[#allocation3 + $0x108] sm:$0xf] %v5127_v61  ;;  %5121 = vst [vmem:[#allocation3 + $0xfc] sm:$0xf] %v5120_v7  ;;  %v4690_v44 = vsel %vm9050_vm7, %v4682_v5, %v4689_v56  ;;  %v5131_v55 = vsel %vm8988_vm3, %v4691_v49, %v5130_v47  ;;  %v4672_v26 = vor.u32 %v4670_v63, %v4669_v29  ;;  %v4674_v58 = vrot.slane %v4669_v29, 4 }
 0x3bc   :  { %5129 = vst.msk [vmem:[#allocation3 + $0x10c] sm:$0xf] %vm118_vm0, %v4690_v44  ;;  %5132 = vst [vmem:[#allocation3 + $0x110] sm:$0x1] %v5131_v55  ;;  %v4710_v36 = vshrl.u32 %v8337_v3, 16  ;;  %v4713_v42 = vshll.u32 %v8337_v3, 16  ;;  %v3846_v21 = vadd.f32 %v11742_v33, %v3778_v24  ;;  %v3776_v41 = vmul.f32 %v11726_v31, %v11812_v52 }
 0x3bd   :  { %v4693_v62 = vshrl.u32 %v8335_v8, 16  ;;  %v4696_v51 = vshll.u32 %v8335_v8, 16  ;;  %v4673_v25 = vsel %vm9050_vm7, %v4665_v17, %v4672_v26  ;;  %v5124_v19 = vsel %vm8988_vm3, %v4674_v58, %v5123_v37  ;;  %v5133_v5 = vld [vmem:[#allocation3 + $0x114] sm:$0xf]  ;;  %v4054_v44 = vld [vmem:[#allocation3 + $0x138] sm:$0x1] }
 0x3be   :  { %5122 = vst.msk [vmem:[#allocation3 + $0x100] sm:$0xf] %vm118_vm0, %v4673_v25  ;;  %5125 = vst [vmem:[#allocation3 + $0x104] sm:$0x1] %v5124_v19  ;;  %v4712_v9 = vrot.slane %v4710_v36, 7  ;;  %v4154_v14 = vsel %vm9021_vm5, 0, %v4153_v53  ;;  %v3844_v17 = vadd.f32 %v11742_v33, %v3776_v41  ;;  %v3781_v41 = vmul.f32 %v11726_v31, %v11843_v39 }
 0x3bf   :  { %v11877_v47 = vrot.slane %v4693_v62, 7  ;;  %v5783_v63 = vrot.slane %v5781_v11, 1  ;;  %v3910_v0 = vmax.f32 %v3846_v21, 0.0  ;;  %4155 = vst [vmem:[#allocation3 + $0x11c] sm:$0x1] %v4154_v14  ;;  %v5788_v52 = vrot.slane %v5786_v16, 1 }
 0x3c0   :  { %v5803_v56 = vshrl.u32 %v8689_v2, 16  ;;  %v4715_v49 = vor.u32 %v4713_v42, %v4712_v9  ;;  %v4716_v29 = vrot.slane %v4712_v9, 4  ;;  %v8692_v7 = vld [vmem:[#allocation3 + $0xec] ss:$0 sps:$4 sm:$0x11]   ;;  %v3908_v8 = vmax.f32 %v3844_v17, 0.0 }
 0x3c1   :  { %v4698_v3 = vor.u32 %v4696_v51, %v11877_v47  ;;  %v4699_v61 = vrot.slane %v11877_v47, 4  ;;  %v8338_v37 = vpack.c.bf16 %v3910_v0, %v3910_v0  ;;  %v5784_v11 = vor.u32 %v5783_v63, %v5779_v20  ;;  %v5144_v62 = vld [vmem:[#allocation3 + $0x128] sm:$0x1]  ;;  %v11896_v25 = vpop.f32.mrb[48].mxu0  ;;  %v4162_v0 = vld [vmem:[#allocation3 + $0x140] sm:$0x1] }
 0x3c2   :  { %v5805_v24 = vshll.u32 %v8689_v2, 16  ;;  %v5141_v55 = vsel %vm9062_vm8, %v4715_v49, %v5140_v45  ;;  %v5810_v16 = vshll.u32 %v8690_v28, 16  ;;  %v5791_v26 = vshrl.u32 %v8691_v34, 16  ;;  %v4051_v28 = vld [vmem:[#allocation3 + $0x12c] sm:$0x1] }
 0x3c3   :  { %v5134_v54 = vsel %vm9062_vm8, %v4698_v3, %v5133_v5  ;;  %5142 = vst [vmem:[#allocation3 + $0x120] sm:$0xf] %v5141_v55  ;;  %v4718_v58 = vshrl.u32 %v8338_v37, 16  ;;  %v4721_v53 = vshll.u32 %v8338_v37, 16  ;;  %v8336_v36 = vpack.c.bf16 %v3908_v8, %v3908_v8  ;;  %v4159_v8 = vld [vmem:[#allocation3 + $0x134] sm:$0x1] }
 0x3c4   :  { %5135 = vst [vmem:[#allocation3 + $0x114] sm:$0xf] %v5134_v54  ;;  %v5789_v42 = vsel %vm1752_vm9, %v5784_v11, %v5788_v52  ;;  %v5807_v18 = vrot.slane %v5805_v24, 1  ;;  %v5812_v20 = vrot.slane %v5810_v16, 1  ;;  %v5793_v2 = vshll.u32 %v8691_v34, 16  ;;  %v11910_v11 = vpop.f32.mrb[49].mxu0 }
 0x3c5   :  { %6002 = vrot.lane.b32.xlu0 %v5789_v42, %s8950_s13  ;;  %v5798_v51 = vshll.u32 %v8692_v7, 16  ;;  %v4720_v19 = vrot.slane %v4718_v58, 7  ;;  %v4701_v45 = vshrl.u32 %v8336_v36, 16  ;;  %v4704_v21 = vshll.u32 %v8336_v36, 16  ;;  %v8693_v16 = vld [vmem:[#allocation3 + $0x108] sm:$0xff]  }
 0x3c6   :  { %v5808_v9 = vor.u32 %v5807_v18, %v5803_v56  ;;  %v5795_v14 = vrot.slane %v5793_v2, 1  ;;  %v4055_v5 = vsel %vm8988_vm3, 0, %v4054_v44  ;;  %v3849_v49 = vadd.f32 %v11742_v33, %v3781_v41  ;;  %v5137_v3 = vld [vmem:[#allocation3 + $0x11c] sm:$0x1] }
 0x3c7   :  { %v5800_v63 = vrot.slane %v5798_v51, 1  ;;  %v4723_v17 = vor.u32 %v4721_v53, %v4720_v19  ;;  %v4725_v52 = vrot.slane %v4720_v19, 4  ;;  %v4703_v34 = vrot.slane %v4701_v45, 7  ;;  %4056 = vst [vmem:[#allocation3 + $0x138] sm:$0x1] %v4055_v5  ;;  %v8695_v19 = vld [vmem:[#allocation3 + $0xfc] sm:$0xff]  }
 0x3c8   :  { %v11904_v7 = vsel %vm1752_vm9, %v5808_v9, %v5812_v20  ;;  %v5796_v37 = vor.u32 %v5795_v14, %v5791_v26  ;;  %v3779_v39 = vmul.f32 %v11726_v31, %v11847_v43  ;;  %v4052_v56 = vsel %vm8988_vm3, 0, %v4051_v28  ;;  %v8694_v43 = vld [vmem:[#allocation3 + $0x110] ss:$0 sps:$4 sm:$0x11]   ;;  %v11918_v26 = vpop.f32.mrb[50].mxu0 }
 0x3c9   :  { %v4724_v24 = vsel %vm9050_vm7, %v4716_v29, %v4723_v17  ;;  %v5145_v44 = vsel %vm8988_vm3, %v4725_v52, %v5144_v62  ;;  %v4706_v55 = vor.u32 %v4704_v21, %v4703_v34  ;;  %v4708_v54 = vrot.slane %v4703_v34, 4  ;;  %6006 = vrot.lane.b32.xlu0 %v11904_v7, %s8950_s13  ;;  %4053 = vst [vmem:[#allocation3 + $0x12c] sm:$0x1] %v4052_v56  ;;  %v11927_v42 = vpop.f32.mrb[51].mxu0 }
 0x3ca   :  { %5143 = vst.msk [vmem:[#allocation3 + $0x124] sm:$0xf] %vm118_vm0, %v4724_v24  ;;  %5146 = vst [vmem:[#allocation3 + $0x128] sm:$0x1] %v5145_v44  ;;  %v11922_v58 = vsel %vm1752_vm9, %v5796_v37, %v5800_v63  ;;  %v3913_v29 = vmax.f32 %v3849_v49, 0.0  ;;  %v3847_v53 = vadd.f32 %v11742_v33, %v3779_v39  ;;  %v3782_v36 = vmul.f32 %v11726_v31, %v11849_v10 }
 0x3cb   :  { %v4707_v62 = vsel %vm9050_vm7, %v4699_v61, %v4706_v55  ;;  %v5138_v18 = vsel %vm8988_vm3, %v4708_v54, %v5137_v3  ;;  %6004 = vrot.lane.b32.xlu1 %v11922_v58, %s8950_s13  ;;  %v4163_v20 = vsel %vm9021_vm5, 0, %v4162_v0  ;;  %v3780_v2 = vmul.f32 %v11726_v31, %v11862_v35  ;;  %v8696_v28 = vld [vmem:[#allocation3 + $0x104] ss:$0 sps:$4 sm:$0x11]  }
 0x3cc   :  { %5136 = vst.msk [vmem:[#allocation3 + $0x118] sm:$0xf] %vm118_vm0, %v4707_v62  ;;  %5139 = vst [vmem:[#allocation3 + $0x11c] sm:$0x1] %v5138_v18  ;;  %v8341_v10 = vpack.c.bf16 %v3913_v29, %v3913_v29  ;;  %v3911_v47 = vmax.f32 %v3847_v53, 0.0  ;;  %v3850_v51 = vadd.f32 %v11742_v33, %v3782_v36  ;;  %v4160_v61 = vsel %vm9021_vm5, 0, %v4159_v8 }
 0x3cd   :  { %4164 = vst [vmem:[#allocation3 + $0x140] sm:$0x1] %v4163_v20  ;;  %v3848_v45 = vadd.f32 %v11742_v33, %v3780_v2  ;;  %4161 = vst [vmem:[#allocation3 + $0x134] sm:$0x1] %v4160_v61  ;;  %v5829_v21 = vshll.u32 %v8693_v16, 16  ;;  %v5834_v41 = vshll.u32 %v8694_v43, 16 }
 0x3ce   :  { %v4744_v9 = vshrl.u32 %v8341_v10, 16  ;;  %v8339_v35 = vpack.c.bf16 %v3911_v47, %v3911_v47  ;;  %v3914_v14 = vmax.f32 %v3850_v51, 0.0  ;;  %v5827_v63 = vshrl.u32 %v8693_v16, 16  ;;  %v5154_v49 = vld [vmem:[#allocation3 + $0x138] sm:$0xf] }
 0x3cf   :  { %v4747_v5 = vshll.u32 %v8341_v10, 16  ;;  %v3912_v0 = vmax.f32 %v3848_v45, 0.0  ;;  %v5831_v17 = vrot.slane %v5829_v21, 1  ;;  %v5836_v52 = vrot.slane %v5834_v41, 1  ;;  %v4060_v53 = vld [vmem:[#allocation3 + $0x150] sm:$0x1] }
 0x3d0   :  { %v4746_v34 = vrot.slane %v4744_v9, 7  ;;  %v4727_v3 = vshrl.u32 %v8339_v35, 16  ;;  %v8342_v37 = vpack.c.bf16 %v3914_v14, %v3914_v14  ;;  %v5815_v39 = vshrl.u32 %v8695_v19, 16  ;;  %v11946_v36 = vpop.f32.mrb[52].mxu0  ;;  %v5147_v62 = vld [vmem:[#allocation3 + $0x12c] sm:$0xf] }
 0x3d1   :  { %v8340_v56 = vpack.c.bf16 %v3912_v0, %v3912_v0  ;;  %v5832_v8 = vor.u32 %v5831_v17, %v5827_v63  ;;  %v5817_v24 = vshll.u32 %v8695_v19, 16  ;;  %v5822_v44 = vshll.u32 %v8696_v28, 16  ;;  %v4057_v19 = vld [vmem:[#allocation3 + $0x144] sm:$0x1] }
 0x3d2   :  { %v4749_v55 = vor.u32 %v4747_v5, %v4746_v34  ;;  %v4729_v54 = vrot.slane %v4727_v3, 7  ;;  %v4730_v43 = vshll.u32 %v8339_v35, 16  ;;  %v4752_v29 = vshrl.u32 %v8342_v37, 16  ;;  %v11961_v3 = vpop.f32.mrb[53].mxu0 }
 0x3d3   :  { %v4750_v16 = vrot.slane %v4746_v34, 4  ;;  %v4755_v18 = vshll.u32 %v8342_v37, 16  ;;  %v4735_v20 = vshrl.u32 %v8340_v56, 16  ;;  %v11949_v2 = vsel %vm1752_vm9, %v5832_v8, %v5836_v52 }
 0x3d4   :  { %14357 = vst [vmem:[#allocation26_spill] sm:$0xff] %v11949_v2  ;;  %v5155_v10 = vsel %vm9062_vm8, %v4749_v55, %v5154_v49  ;;  %v4732_v47 = vor.u32 %v4730_v43, %v4729_v54  ;;  %v4754_v51 = vrot.slane %v4752_v29, 7  ;;  %v4738_v61 = vshll.u32 %v8340_v56, 16  ;;  %6010 = vrot.lane.b32.xlu0 %v11949_v2, %s8950_s13  ;;  %v5158_v21 = vld [vmem:[#allocation3 + $0x140] sm:$0x1]  ;;  %v11970_v55 = vpop.f32.mrb[54].mxu0 }
 0x3d5   :  { %5156 = vst [vmem:[#allocation3 + $0x138] sm:$0xf] %v5155_v10  ;;  %v4733_v45 = vrot.slane %v4729_v54, 4  ;;  %v4737_v41 = vrot.slane %v4735_v20, 7  ;;  %v5819_v28 = vrot.slane %v5817_v24, 1  ;;  %v5824_v9 = vrot.slane %v5822_v44, 1 }
 0x3d6   :  { %v5148_v35 = vsel %vm9062_vm8, %v4732_v47, %v5147_v62  ;;  %v4757_v14 = vor.u32 %v4755_v18, %v4754_v51  ;;  %v4759_v63 = vrot.slane %v4754_v51, 4  ;;  %v5151_v5 = vld [vmem:[#allocation3 + $0x134] sm:$0x1]  ;;  %v3785_v0 = vmul.f32 %v11726_v31, %v11896_v25  ;;  %v4168_v24 = vld [vmem:[#allocation3 + $0x158] sm:$0x1] }
 0x3d7   :  { %5149 = vst [vmem:[#allocation3 + $0x12c] sm:$0xf] %v5148_v35  ;;  %v4740_v17 = vor.u32 %v4738_v61, %v4737_v41  ;;  %v4742_v52 = vrot.slane %v4737_v41, 4  ;;  %v5820_v34 = vor.u32 %v5819_v28, %v5815_v39  ;;  %v4061_v49 = vsel %vm8988_vm3, 0, %v4060_v53  ;;  %v4165_v44 = vld [vmem:[#allocation3 + $0x14c] sm:$0x1] }
 0x3d8   :  { %v4758_v37 = vsel %vm9050_vm7, %v4750_v16, %v4757_v14  ;;  %v5159_v56 = vsel %vm8988_vm3, %v4759_v63, %v5158_v21  ;;  %v3853_v8 = vadd.f32 %v11742_v33, %v3785_v0  ;;  %4062 = vst [vmem:[#allocation3 + $0x150] sm:$0x1] %v4061_v49  ;;  %v3783_v25 = vmul.f32 %v11726_v31, %v11910_v11  ;;  %v8697_v39 = vld [vmem:[#allocation3 + $0x120] sm:$0xff]   ;;  %v8698_v53 = vld [vmem:[#allocation3 + $0x128] ss:$0 sps:$4 sm:$0x11]  }
 0x3d9   :  { %5157 = vst.msk [vmem:[#allocation3 + $0x13c] sm:$0xf] %vm118_vm0, %v4758_v37  ;;  %5160 = vst [vmem:[#allocation3 + $0x140] sm:$0x1] %v5159_v56  ;;  %v4741_v54 = vsel %vm9050_vm7, %v4733_v45, %v4740_v17  ;;  %v5152_v43 = vsel %vm8988_vm3, %v4742_v52, %v5151_v5  ;;  %v11978_v29 = vsel %vm1752_vm9, %v5820_v34, %v5824_v9  ;;  %v4058_v11 = vsel %vm8988_vm3, 0, %v4057_v19  ;;  %v11982_v16 = vpop.f32.mrb[55].mxu0 }
 0x3da   :  { %5150 = vst.msk [vmem:[#allocation3 + $0x130] sm:$0xf] %vm118_vm0, %v4741_v54  ;;  %5153 = vst [vmem:[#allocation3 + $0x134] sm:$0x1] %v5152_v43  ;;  %6008 = vrot.lane.b32.xlu1 %v11978_v29, %s8950_s13  ;;  %v3917_v62 = vmax.f32 %v3853_v8, 0.0  ;;  %v3851_v18 = vadd.f32 %v11742_v33, %v3783_v25  ;;  %v8699_v20 = vld [vmem:[#allocation3 + $0x114] sm:$0xff]   ;;  %v3786_v10 = vmul.f32 %v11726_v31, %v11918_v26 }
 0x3db   :  { %4059 = vst [vmem:[#allocation3 + $0x144] sm:$0x1] %v4058_v11  ;;  %v4169_v47 = vsel %vm9021_vm5, 0, %v4168_v24  ;;  %v3784_v51 = vmul.f32 %v11726_v31, %v11927_v42  ;;  %v4166_v61 = vsel %vm9021_vm5, 0, %v4165_v44  ;;  %v5853_v21 = vshll.u32 %v8697_v39, 16 }
 0x3dc   :  { %v8345_v19 = vpack.c.bf16 %v3917_v62, %v3917_v62  ;;  %v3915_v45 = vmax.f32 %v3851_v18, 0.0  ;;  %4170 = vst [vmem:[#allocation3 + $0x158] sm:$0x1] %v4169_v47  ;;  %4167 = vst [vmem:[#allocation3 + $0x14c] sm:$0x1] %v4166_v61  ;;  %v3854_v41 = vadd.f32 %v11742_v33, %v3786_v10  ;;  %v5851_v9 = vshrl.u32 %v8697_v39, 16 }
 0x3dd   :  { %v3852_v28 = vadd.f32 %v11742_v33, %v3784_v51  ;;  %v5858_v26 = vshll.u32 %v8698_v53, 16  ;;  %v8700_v35 = vld [vmem:[#allocation3 + $0x11c] ss:$0 sps:$4 sm:$0x11]   ;;  %v5855_v5 = vrot.slane %v5853_v21, 1  ;;  %v5839_v0 = vshrl.u32 %v8699_v20, 16 }
 0x3de   :  { %v4778_v14 = vshrl.u32 %v8345_v19, 16  ;;  %v8343_v63 = vpack.c.bf16 %v3915_v45, %v3915_v45  ;;  %v4781_v31 = vshll.u32 %v8345_v19, 16  ;;  %v3918_v42 = vmax.f32 %v3854_v41, 0.0  ;;  %v4066_v53 = vld [vmem:[#allocation3 + $0x168] sm:$0x1] }
 0x3df   :  { %v3916_v17 = vmax.f32 %v3852_v28, 0.0  ;;  %v5841_v52 = vshll.u32 %v8699_v20, 16  ;;  %v5856_v37 = vor.u32 %v5855_v5, %v5851_v9  ;;  %v5860_v56 = vrot.slane %v5858_v26, 1  ;;  %v5168_v8 = vld [vmem:[#allocation3 + $0x150] sm:$0xf] }
 0x3e0   :  { %v4780_v34 = vrot.slane %v4778_v14, 7  ;;  %v4761_v49 = vshrl.u32 %v8343_v63, 16  ;;  %v4764_v25 = vshll.u32 %v8343_v63, 16  ;;  %v8346_v24 = vpack.c.bf16 %v3918_v42, %v3918_v42  ;;  %v4063_v51 = vld [vmem:[#allocation3 + $0x15c] sm:$0x1]  ;;  %v12005_v28 = vpop.f32.mrb[56].mxu0 }
 0x3e1   :  { %v8344_v44 = vpack.c.bf16 %v3916_v17, %v3916_v17  ;;  %v5843_v33 = vrot.slane %v5841_v52, 1  ;;  %v11999_v43 = vsel %vm1752_vm9, %v5856_v37, %v5860_v56  ;;  %v5846_v11 = vshll.u32 %v8700_v35, 16  ;;  %v4174_v14 = vld [vmem:[#allocation3 + $0x170] sm:$0x1]  ;;  %v12007_v63 = vpop.f32.mrb[57].mxu0 }
 0x3e2   :  { %v4783_v39 = vor.u32 %v4781_v31, %v4780_v34  ;;  %v4763_v54 = vrot.slane %v4761_v49, 7  ;;  %14358 = vst [vmem:[#allocation59_spill] sm:$0xff] %v11999_v43  ;;  %v4784_v62 = vrot.slane %v4780_v34, 4  ;;  %v5161_v18 = vld [vmem:[#allocation3 + $0x144] sm:$0xf]  ;;  %v4786_v10 = vshrl.u32 %v8346_v24, 16  ;;  %6014 = vrot.lane.b32.xlu0 %v11999_v43, %s8950_s13 }
 0x3e3   :  { %v4789_v20 = vshll.u32 %v8346_v24, 16  ;;  %v4769_v47 = vshrl.u32 %v8344_v44, 16  ;;  %v5172_v45 = vld [vmem:[#allocation3 + $0x158] sm:$0x1]  ;;  %v4772_v21 = vshll.u32 %v8344_v44, 16  ;;  %v5844_v41 = vor.u32 %v5843_v33, %v5839_v0  ;;  %v12020_v49 = vpop.f32.mrb[58].mxu0 }
 0x3e4   :  { %v5169_v61 = vsel %vm9062_vm8, %v4783_v39, %v5168_v8  ;;  %v4766_v19 = vor.u32 %v4764_v25, %v4763_v54  ;;  %v4767_v9 = vrot.slane %v4763_v54, 4  ;;  %v4788_v26 = vrot.slane %v4786_v10, 7  ;;  %v5165_v31 = vld [vmem:[#allocation3 + $0x14c] sm:$0x1]  ;;  %v12014_v17 = vld [vmem:[%s13862_s3] ss:$0 sm:$0xff] }
 0x3e5   :  { %5170 = vst [vmem:[#allocation3 + $0x150] sm:$0xf] %v5169_v61  ;;  %v4771_v35 = vrot.slane %v4769_v47, 7  ;;  %v5848_v42 = vrot.slane %v5846_v11, 1  ;;  %v3789_v0 = vmul.f32 %v12014_v17, %v11946_v36  ;;  %v4067_v52 = vsel %vm8988_vm3, 0, %v4066_v53  ;;  %v8701_v34 = vld [vmem:[#allocation3 + $0x138] sm:$0xff]  }
 0x3e6   :  { %v5162_v5 = vsel %vm9062_vm8, %v4766_v19, %v5161_v18  ;;  %v4791_v37 = vor.u32 %v4789_v20, %v4788_v26  ;;  %v4793_v56 = vrot.slane %v4788_v26, 4  ;;  %4068 = vst [vmem:[#allocation3 + $0x168] sm:$0x1] %v4067_v52  ;;  %v8702_v24 = vld [vmem:[#allocation3 + $0x140] ss:$0 sps:$4 sm:$0x11]   ;;  %v3787_v54 = vmul.f32 %v12014_v17, %v11961_v3 }
 0x3e7   :  { %5163 = vst [vmem:[#allocation3 + $0x144] sm:$0xf] %v5162_v5  ;;  %v4774_v8 = vor.u32 %v4772_v21, %v4771_v35  ;;  %v4776_v25 = vrot.slane %v4771_v35, 4  ;;  %v12022_v44 = vpop.f32.mrb[59].mxu0  ;;  %v12025_v33 = vsel %vm1752_vm9, %v5844_v41, %v5848_v42  ;;  %v12030_v36 = vld [vmem:[%s13862_s3 + $0x1] ss:$0 sm:$0xff]  ;;  %v3788_v21 = vmul.f32 %v12014_v17, %v11982_v16 }
 0x3e8   :  { %14359 = vst [vmem:[#allocation50_spill] sm:$0xff] %v12025_v33  ;;  %v3857_v39 = vadd.f32 %v12030_v36, %v3789_v0  ;;  %v4064_v11 = vsel %vm8988_vm3, 0, %v4063_v51  ;;  %v4792_v53 = vsel %vm9050_vm7, %v4784_v62, %v4791_v37  ;;  %v5173_v18 = vsel %vm8988_vm3, %v4793_v56, %v5172_v45  ;;  %6012 = vrot.lane.b32.xlu1 %v12025_v33, %s8950_s13  ;;  %v4171_v3 = vld [vmem:[#allocation3 + $0x164] sm:$0x1]  ;;  %v8703_v41 = vld [vmem:[#allocation3 + $0x12c] sm:$0xff]   ;;  %v12345_v33 = vpop.permute.xlu0 %5970 }
 0x3e9   :  { %v4775_v10 = vsel %vm9050_vm7, %v4767_v9, %v4774_v8  ;;  %v5166_v20 = vsel %vm8988_vm3, %v4776_v25, %v5165_v31  ;;  %4065 = vst [vmem:[#allocation3 + $0x15c] sm:$0x1] %v4064_v11  ;;  %5171 = vst.msk [vmem:[#allocation3 + $0x154] sm:$0xf] %vm118_vm0, %v4792_v53  ;;  %v3855_v47 = vadd.f32 %v12030_v36, %v3787_v54  ;;  %v4175_v61 = vsel %vm9021_vm5, 0, %v4174_v14 }
 0x3ea   :  { %5174 = vst [vmem:[#allocation3 + $0x158] sm:$0x1] %v5173_v18  ;;  %5164 = vst.msk [vmem:[#allocation3 + $0x148] sm:$0xf] %vm118_vm0, %v4775_v10  ;;  %v3921_v62 = vmax.f32 %v3857_v39, 0.0  ;;  %v3790_v51 = vmul.f32 %v12014_v17, %v11970_v55  ;;  %v5877_v19 = vshll.u32 %v8701_v34, 16  ;;  %v3856_v0 = vadd.f32 %v12030_v36, %v3788_v21 }
 0x3eb   :  { %5167 = vst [vmem:[#allocation3 + $0x14c] sm:$0x1] %v5166_v20  ;;  %4176 = vst [vmem:[#allocation3 + $0x170] sm:$0x1] %v4175_v61  ;;  %v5882_v45 = vshll.u32 %v8702_v24, 16  ;;  %v3919_v35 = vmax.f32 %v3855_v47, 0.0 }
 0x3ec   :  { %v8704_v9 = vld [vmem:[#allocation3 + $0x134] ss:$0 sps:$4 sm:$0x11]   ;;  %v8349_v26 = vpack.c.bf16 %v3921_v62, %v3921_v62  ;;  %v3858_v5 = vadd.f32 %v12030_v36, %v3790_v51  ;;  %v4172_v31 = vsel %vm9021_vm5, 0, %v4171_v3  ;;  %v5875_v42 = vshrl.u32 %v8701_v34, 16 }
 0x3ed   :  { %v5879_v55 = vrot.slane %v5877_v19, 1  ;;  %4173 = vst [vmem:[#allocation3 + $0x164] sm:$0x1] %v4172_v31  ;;  %v8347_v52 = vpack.c.bf16 %v3919_v35, %v3919_v35  ;;  %v5884_v56 = vrot.slane %v5882_v45, 1  ;;  %v3920_v16 = vmax.f32 %v3856_v0, 0.0 }
 0x3ee   :  { %v4812_v14 = vshrl.u32 %v8349_v26, 16  ;;  %v3922_v37 = vmax.f32 %v3858_v5, 0.0  ;;  %v5865_v25 = vshll.u32 %v8703_v41, 16  ;;  %v5870_v24 = vshll.u32 %v8704_v9, 16  ;;  %v5182_v11 = vld [vmem:[#allocation3 + $0x168] sm:$0xf] }
 0x3ef   :  { %v5880_v8 = vor.u32 %v5879_v55, %v5875_v42  ;;  %v4815_v54 = vshll.u32 %v8349_v26, 16  ;;  %v4795_v53 = vshrl.u32 %v8347_v52, 16  ;;  %v8348_v34 = vpack.c.bf16 %v3920_v16, %v3920_v16  ;;  %v4072_v19 = vld [vmem:[#allocation3 + $0x180] sm:$0x1]  ;;  %v4069_v5 = vld [vmem:[#allocation3 + $0x174] sm:$0x1] }
 0x3f0   :  { %v4814_v39 = vrot.slane %v4812_v14, 7  ;;  %v8350_v18 = vpack.c.bf16 %v3922_v37, %v3922_v37  ;;  %v5863_v20 = vshrl.u32 %v8703_v41, 16  ;;  %v5867_v3 = vrot.slane %v5865_v25, 1  ;;  %v5175_v21 = vld [vmem:[#allocation3 + $0x15c] sm:$0xf]  ;;  %v12070_v16 = vpop.f32.mrb[60].mxu0 }
 0x3f1   :  { %v12061_v10 = vsel %vm1752_vm9, %v5880_v8, %v5884_v56  ;;  %v4797_v47 = vrot.slane %v4795_v53, 7  ;;  %v4798_v51 = vshll.u32 %v8347_v52, 16  ;;  %v4803_v9 = vshrl.u32 %v8348_v34, 16  ;;  %v4180_v8 = vld [vmem:[#allocation3 + $0x188] sm:$0x1]  ;;  %v8705_v53 = vld [vmem:[#allocation3 + $0x150] sm:$0xff]  }
 0x3f2   :  { %14360 = vst [vmem:[#allocation91_spill] sm:$0xff] %v12061_v10  ;;  %v4817_v62 = vor.u32 %v4815_v54, %v4814_v39  ;;  %v4820_v61 = vshrl.u32 %v8350_v18, 16  ;;  %6018 = vrot.lane.b32.xlu0 %v12061_v10, %s8950_s13  ;;  %v4818_v45 = vrot.slane %v4814_v39, 4  ;;  %v5868_v26 = vor.u32 %v5867_v3, %v5863_v20  ;;  %v5186_v0 = vld [vmem:[#allocation3 + $0x170] sm:$0x1] }
 0x3f3   :  { %v5872_v35 = vrot.slane %v5870_v24, 1  ;;  %v4800_v42 = vor.u32 %v4798_v51, %v4797_v47  ;;  %v4823_v55 = vshll.u32 %v8350_v18, 16  ;;  %v4801_v14 = vrot.slane %v4797_v47, 4  ;;  %v12078_v18 = vpop.f32.mrb[61].mxu0 }
 0x3f4   :  { %v5183_v31 = vsel %vm9062_vm8, %v4817_v62, %v5182_v11  ;;  %v4822_v41 = vrot.slane %v4820_v61, 7  ;;  %v4805_v52 = vrot.slane %v4803_v9, 7  ;;  %v4806_v37 = vshll.u32 %v8348_v34, 16  ;;  %v5179_v54 = vld [vmem:[#allocation3 + $0x164] sm:$0x1]  ;;  %v12084_v51 = vpop.f32.mrb[62].mxu0 }
 0x3f5   :  { %5184 = vst [vmem:[#allocation3 + $0x168] sm:$0xf] %v5183_v31  ;;  %v12068_v56 = vsel %vm1752_vm9, %v5868_v26, %v5872_v35  ;;  %v5176_v25 = vsel %vm9062_vm8, %v4800_v42, %v5175_v21  ;;  %v3793_v11 = vmul.f32 %v12014_v17, %v12005_v28  ;;  %v4073_v3 = vsel %vm8988_vm3, 0, %v4072_v19  ;;  %v8706_v47 = vld [vmem:[#allocation3 + $0x158] ss:$0 sps:$4 sm:$0x11]  }
 0x3f6   :  { %14361 = vst [vmem:[#allocation107_spill] sm:$0xff] %v12068_v56  ;;  %v4825_v24 = vor.u32 %v4823_v55, %v4822_v41  ;;  %v4827_v39 = vrot.slane %v4822_v41, 4  ;;  %6016 = vrot.lane.b32.xlu1 %v12068_v56, %s8950_s13  ;;  %5177 = vst [vmem:[#allocation3 + $0x15c] sm:$0xf] %v5176_v25  ;;  %v4808_v34 = vor.u32 %v4806_v37, %v4805_v52  ;;  %v4810_v20 = vrot.slane %v4805_v52, 4  ;;  %v12093_v26 = vpop.f32.mrb[63].mxu0 }
 0x3f7   :  { %v3791_v62 = vmul.f32 %v12014_v17, %v12007_v63  ;;  %v3861_v21 = vadd.f32 %v12030_v36, %v3793_v11  ;;  %4074 = vst [vmem:[#allocation3 + $0x180] sm:$0x1] %v4073_v3  ;;  %v4070_v9 = vsel %vm8988_vm3, 0, %v4069_v5  ;;  %v3794_v35 = vmul.f32 %v12014_v17, %v12020_v49  ;;  %v4177_v31 = vld [vmem:[#allocation3 + $0x17c] sm:$0x1]  ;;  %v8707_v42 = vld [vmem:[#allocation3 + $0x144] sm:$0xff]  }
 0x3f8   :  { %v4826_v61 = vsel %vm9050_vm7, %v4818_v45, %v4825_v24  ;;  %v5187_v28 = vsel %vm8988_vm3, %v4827_v39, %v5186_v0  ;;  %v4809_v63 = vsel %vm9050_vm7, %v4801_v14, %v4808_v34  ;;  %v5180_v19 = vsel %vm8988_vm3, %v4810_v20, %v5179_v54  ;;  %4071 = vst [vmem:[#allocation3 + $0x174] sm:$0x1] %v4070_v9  ;;  %v8708_v25 = vld [vmem:[#allocation3 + $0x14c] ss:$0 sps:$4 sm:$0x11]   ;;  %v12340_v56 = vld [vmem:[#allocation3 + $0xfc] sm:$0xff]  }
 0x3f9   :  { %5185 = vst.msk [vmem:[#allocation3 + $0x16c] sm:$0xf] %vm118_vm0, %v4826_v61  ;;  %5188 = vst [vmem:[#allocation3 + $0x170] sm:$0x1] %v5187_v28  ;;  %v3859_v45 = vadd.f32 %v12030_v36, %v3791_v62  ;;  %v3925_v5 = vmax.f32 %v3861_v21, 0.0  ;;  %v4181_v41 = vsel %vm9021_vm5, 0, %v4180_v8  ;;  %v3862_v14 = vadd.f32 %v12030_v36, %v3794_v35 }
 0x3fa   :  { %5178 = vst.msk [vmem:[#allocation3 + $0x160] sm:$0xf] %vm118_vm0, %v4809_v63  ;;  %5181 = vst [vmem:[#allocation3 + $0x164] sm:$0x1] %v5180_v19  ;;  %v5901_v55 = vshll.u32 %v8705_v53, 16  ;;  %v5906_v52 = vshll.u32 %v8706_v47, 16  ;;  %v3792_v37 = vmul.f32 %v12014_v17, %v12022_v44 }
 0x3fb   :  { %v3923_v0 = vmax.f32 %v3859_v45, 0.0  ;;  %4182 = vst [vmem:[#allocation3 + $0x188] sm:$0x1] %v4181_v41  ;;  %v8353_v49 = vpack.c.bf16 %v3925_v5, %v3925_v5  ;;  %v5899_v24 = vshrl.u32 %v8705_v53, 16  ;;  %v4178_v54 = vsel %vm9021_vm5, 0, %v4177_v31 }
 0x3fc   :  { %v5903_v39 = vrot.slane %v5901_v55, 1  ;;  %v3926_v34 = vmax.f32 %v3862_v14, 0.0  ;;  %v3860_v8 = vadd.f32 %v12030_v36, %v3792_v37  ;;  %4179 = vst [vmem:[#allocation3 + $0x17c] sm:$0x1] %v4178_v54  ;;  %v5887_v20 = vshrl.u32 %v8707_v42, 16 }
 0x3fd   :  { %v8351_v11 = vpack.c.bf16 %v3923_v0, %v3923_v0  ;;  %v4846_v3 = vshrl.u32 %v8353_v49, 16  ;;  %v5908_v61 = vrot.slane %v5906_v52, 1  ;;  %v5889_v47 = vshll.u32 %v8707_v42, 16  ;;  %v4078_v54 = vld [vmem:[#allocation3 + $0x198] sm:$0x1] }
 0x3fe   :  { %v5904_v62 = vor.u32 %v5903_v39, %v5899_v24  ;;  %v4849_v28 = vshll.u32 %v8353_v49, 16  ;;  %v8354_v44 = vpack.c.bf16 %v3926_v34, %v3926_v34  ;;  %v3924_v9 = vmax.f32 %v3860_v8, 0.0  ;;  %v5196_v53 = vld [vmem:[#allocation3 + $0x180] sm:$0xf] }
 0x3ff   :  { %v4829_v21 = vshrl.u32 %v8351_v11, 16  ;;  %v4848_v63 = vrot.slane %v4846_v3, 7  ;;  %v5891_v45 = vrot.slane %v5889_v47, 1  ;;  %v5894_v35 = vshll.u32 %v8708_v25, 16  ;;  %v5189_v42 = vld [vmem:[#allocation3 + $0x174] sm:$0xf] }
 0x400   :  { %v12113_v19 = vsel %vm1752_vm9, %v5904_v62, %v5908_v61  ;;  %v4832_v5 = vshll.u32 %v8351_v11, 16  ;;  %v4854_v41 = vshrl.u32 %v8354_v44, 16  ;;  %v8352_v55 = vpack.c.bf16 %v3924_v9, %v3924_v9 }
 0x401   :  { %14362 = vst [vmem:[#allocation27_spill] sm:$0xff] %v12113_v19  ;;  %v4831_v31 = vrot.slane %v4829_v21, 7  ;;  %6022 = vrot.lane.b32.xlu0 %v12113_v19, %s8950_s13  ;;  %v4851_v0 = vor.u32 %v4849_v28, %v4848_v63  ;;  %v5892_v14 = vor.u32 %v5891_v45, %v5887_v20  ;;  %v5896_v52 = vrot.slane %v5894_v35, 1  ;;  %v4075_v28 = vld [vmem:[#allocation3 + $0x18c] sm:$0x1] }
 0x402   :  { %v4856_v49 = vrot.slane %v4854_v41, 7  ;;  %v4857_v24 = vshll.u32 %v8354_v44, 16  ;;  %v4837_v39 = vshrl.u32 %v8352_v55, 16  ;;  %v4852_v34 = vrot.slane %v4848_v63, 4  ;;  %v5200_v8 = vld [vmem:[#allocation3 + $0x188] sm:$0x1] }
 0x403   :  { %v4834_v37 = vor.u32 %v4832_v5, %v4831_v31  ;;  %v5197_v25 = vsel %vm9062_vm8, %v4851_v0, %v5196_v53  ;;  %v4840_v11 = vshll.u32 %v8352_v55, 16  ;;  %v12120_v3 = vsel %vm1752_vm9, %v5892_v14, %v5896_v52  ;;  %v5193_v44 = vld [vmem:[#allocation3 + $0x17c] sm:$0x1]  ;;  %v4186_v45 = vld [vmem:[#allocation3 + $0x1a0] sm:$0x1]  ;;  %v8709_v55 = vld [vmem:[#allocation3 + $0x168] sm:$0xff]  }
 0x404   :  { %14363 = vst [vmem:[#allocation88_spill] sm:$0xff] %v12120_v3  ;;  %5198 = vst [vmem:[#allocation3 + $0x180] sm:$0xf] %v5197_v25  ;;  %v4859_v20 = vor.u32 %v4857_v24, %v4856_v49  ;;  %v4861_v61 = vrot.slane %v4856_v49, 4  ;;  %v4839_v47 = vrot.slane %v4837_v39, 7  ;;  %6020 = vrot.lane.b32.xlu1 %v12120_v3, %s8950_s13  ;;  %v4835_v21 = vrot.slane %v4831_v31, 4 }
 0x405   :  { %v5190_v62 = vsel %vm9062_vm8, %v4834_v37, %v5189_v42  ;;  %v3797_v9 = vmul.f32 %v12014_v17, %v12070_v16  ;;  %v4079_v63 = vsel %vm8988_vm3, 0, %v4078_v54  ;;  %v3795_v53 = vmul.f32 %v12014_v17, %v12078_v18  ;;  %v8710_v0 = vld [vmem:[#allocation3 + $0x170] ss:$0 sps:$4 sm:$0x11]   ;;  %v4183_v49 = vld [vmem:[#allocation3 + $0x194] sm:$0x1] }
 0x406   :  { %5191 = vst [vmem:[#allocation3 + $0x174] sm:$0xf] %v5190_v62  ;;  %v4860_v35 = vsel %vm9050_vm7, %v4852_v34, %v4859_v20  ;;  %v5201_v5 = vsel %vm8988_vm3, %v4861_v61, %v5200_v8  ;;  %v4842_v41 = vor.u32 %v4840_v11, %v4839_v47  ;;  %v4844_v31 = vrot.slane %v4839_v47, 4  ;;  %4080 = vst [vmem:[#allocation3 + $0x198] sm:$0x1] %v4079_v63  ;;  %v8711_v34 = vld [vmem:[#allocation3 + $0x15c] sm:$0xff]  }
 0x407   :  { %5199 = vst.msk [vmem:[#allocation3 + $0x184] sm:$0xf] %vm118_vm0, %v4860_v35  ;;  %5202 = vst [vmem:[#allocation3 + $0x188] sm:$0x1] %v5201_v5  ;;  %v3865_v16 = vadd.f32 %v12030_v36, %v3797_v9  ;;  %v3863_v42 = vadd.f32 %v12030_v36, %v3795_v53  ;;  %v4076_v18 = vsel %vm8988_vm3, 0, %v4075_v28  ;;  %v3798_v37 = vmul.f32 %v12014_v17, %v12084_v51 }
 0x408   :  { %v4843_v14 = vsel %vm9050_vm7, %v4835_v21, %v4842_v41  ;;  %v5194_v52 = vsel %vm8988_vm3, %v4844_v31, %v5193_v44  ;;  %4077 = vst [vmem:[#allocation3 + $0x18c] sm:$0x1] %v4076_v18  ;;  %v4187_v54 = vsel %vm9021_vm5, 0, %v4186_v45  ;;  %v5925_v8 = vshll.u32 %v8709_v55, 16 }
 0x409   :  { %5192 = vst.msk [vmem:[#allocation3 + $0x178] sm:$0xf] %vm118_vm0, %v4843_v14  ;;  %5195 = vst [vmem:[#allocation3 + $0x17c] sm:$0x1] %v5194_v52  ;;  %v3929_v24 = vmax.f32 %v3865_v16, 0.0  ;;  %v3927_v39 = vmax.f32 %v3863_v42, 0.0  ;;  %v3866_v25 = vadd.f32 %v12030_v36, %v3798_v37  ;;  %v3796_v62 = vmul.f32 %v12014_v17, %v12093_v26 }
 0x40a   :  { %4188 = vst [vmem:[#allocation3 + $0x1a0] sm:$0x1] %v4187_v54  ;;  %v5930_v11 = vshll.u32 %v8710_v0, 16  ;;  %v4184_v61 = vsel %vm9021_vm5, 0, %v4183_v49  ;;  %v5923_v21 = vshrl.u32 %v8709_v55, 16  ;;  %v5927_v44 = vrot.slane %v5925_v8, 1 }
 0x40b   :  { %v8357_v20 = vpack.c.bf16 %v3929_v24, %v3929_v24  ;;  %v8355_v51 = vpack.c.bf16 %v3927_v39, %v3927_v39  ;;  %v8712_v47 = vld [vmem:[#allocation3 + $0x164] ss:$0 sps:$4 sm:$0x11]   ;;  %v3930_v28 = vmax.f32 %v3866_v25, 0.0  ;;  %v3864_v9 = vadd.f32 %v12030_v36, %v3796_v62  ;;  %4185 = vst [vmem:[#allocation3 + $0x194] sm:$0x1] %v4184_v61 }
 0x40c   :  { %v5932_v45 = vrot.slane %v5930_v11, 1  ;;  %v5911_v35 = vshrl.u32 %v8711_v34, 16  ;;  %v5928_v41 = vor.u32 %v5927_v44, %v5923_v21  ;;  %v5913_v17 = vshll.u32 %v8711_v34, 16  ;;  %v8846_v3 = vld [vmem:[#allocation3 + $0xa4] ss:$0 sps:$4 sm:$0x11]  }
 0x40d   :  { %v4880_v63 = vshrl.u32 %v8357_v20, 16  ;;  %v4863_v53 = vshrl.u32 %v8355_v51, 16  ;;  %v8358_v5 = vpack.c.bf16 %v3930_v28, %v3930_v28  ;;  %v3928_v31 = vmax.f32 %v3864_v9, 0.0  ;;  %v5210_v16 = vld [vmem:[#allocation3 + $0x198] sm:$0xf] }
 0x40e   :  { %v4883_v0 = vshll.u32 %v8357_v20, 16  ;;  %v4866_v18 = vshll.u32 %v8355_v51, 16  ;;  %v12157_v55 = vsel %vm1752_vm9, %v5928_v41, %v5932_v45  ;;  %v5918_v37 = vshll.u32 %v8712_v47, 16  ;;  %v8713_v49 = vld [vmem:[#allocation3 + $0x180] sm:$0xff]  }
 0x40f   :  { %v4882_v26 = vrot.slane %v4880_v63, 7  ;;  %v4865_v42 = vrot.slane %v4863_v53, 7  ;;  %v5203_v14 = vld [vmem:[#allocation3 + $0x18c] sm:$0xf]  ;;  %v4888_v52 = vshrl.u32 %v8358_v5, 16  ;;  %14364 = vst [vmem:[#allocation52_spill] sm:$0xff] %v12157_v55  ;;  %v8356_v36 = vpack.c.bf16 %v3928_v31, %v3928_v31  ;;  %6026 = vrot.lane.b32.xlu0 %v12157_v55, %s8950_s13 }
 0x410   :  { %v4891_v54 = vshll.u32 %v8358_v5, 16  ;;  %v8714_v34 = vld [vmem:[#allocation3 + $0x188] ss:$0 sps:$4 sm:$0x11]   ;;  %v5915_v62 = vrot.slane %v5913_v17, 1  ;;  %v8715_v21 = vld [vmem:[#allocation3 + $0x174] sm:$0xff]  }
 0x411   :  { %v4885_v24 = vor.u32 %v4883_v0, %v4882_v26  ;;  %v4868_v39 = vor.u32 %v4866_v18, %v4865_v42  ;;  %v4886_v25 = vrot.slane %v4882_v26, 4  ;;  %v4890_v8 = vrot.slane %v4888_v52, 7  ;;  %v5214_v47 = vld [vmem:[#allocation3 + $0x1a0] sm:$0x1] }
 0x412   :  { %v4871_v11 = vshrl.u32 %v8356_v36, 16  ;;  %v4869_v51 = vrot.slane %v4865_v42, 4  ;;  %v4874_v28 = vshll.u32 %v8356_v36, 16  ;;  %v5916_v53 = vor.u32 %v5915_v62, %v5911_v35  ;;  %v8716_v45 = vld [vmem:[#allocation3 + $0x17c] ss:$0 sps:$4 sm:$0x11]  }
 0x413   :  { %v5211_v20 = vsel %vm9062_vm8, %v4885_v24, %v5210_v16  ;;  %v5204_v61 = vsel %vm9062_vm8, %v4868_v39, %v5203_v14  ;;  %v4893_v44 = vor.u32 %v4891_v54, %v4890_v8  ;;  %v4895_v9 = vrot.slane %v4890_v8, 4  ;;  %v5207_v5 = vld [vmem:[#allocation3 + $0x194] sm:$0x1]  ;;  %v8814_v8 = vld [vmem:[#allocation3 + $0x8] ss:$0 sps:$4 sm:$0x11]  }
 0x414   :  { %5212 = vst [vmem:[#allocation3 + $0x198] sm:$0xf] %v5211_v20  ;;  %5205 = vst [vmem:[#allocation3 + $0x18c] sm:$0xf] %v5204_v61  ;;  %v4873_v63 = vrot.slane %v4871_v11, 7  ;;  %v5920_v41 = vrot.slane %v5918_v37, 1 }
 0x415   :  { %v5947_v31 = vshrl.u32 %v8713_v49, 16  ;;  %v5949_v17 = vshll.u32 %v8713_v49, 16  ;;  %v5954_v26 = vshll.u32 %v8714_v34, 16  ;;  %v4894_v0 = vsel %vm9050_vm7, %v4886_v25, %v4893_v44  ;;  %v12180_v34 = vld [vmem:[#allocation3] sm:$0xff]  }
 0x416   :  { %v5215_v38 = vsel %vm8988_vm3, %v4895_v9, %v5214_v47  ;;  %v4876_v16 = vor.u32 %v4874_v28, %v4873_v63  ;;  %v4878_v42 = vrot.slane %v4873_v63, 4  ;;  %5213 = vst.msk [vmem:[#allocation3 + $0x19c] sm:$0xf] %vm118_vm0, %v4894_v0  ;;  %v12171_v18 = vsel %vm1752_vm9, %v5916_v53, %v5920_v41  ;;  %v12194_v47 = vld [vmem:[#allocation3 + $0x18] sm:$0xff]  }
 0x417   :  { %5216 = vst [vmem:[#allocation3 + $0x1a0] sm:$0x1] %v5215_v38  ;;  %14365 = vst [vmem:[#allocation94_spill] sm:$0xff] %v12171_v18  ;;  %v5951_v35 = vrot.slane %v5949_v17, 1  ;;  %v5935_v14 = vshrl.u32 %v8715_v21, 16  ;;  %v5937_v52 = vshll.u32 %v8715_v21, 16  ;;  %6024 = vrot.lane.b32.xlu1 %v12171_v18, %s8950_s13 }
 0x418   :  { %v4877_v36 = vsel %vm9050_vm7, %v4869_v51, %v4876_v16  ;;  %v5208_v37 = vsel %vm8988_vm3, %v4878_v42, %v5207_v5  ;;  %v5956_v49 = vrot.slane %v5954_v26, 1  ;;  %v5942_v24 = vshll.u32 %v8716_v45, 16  ;;  %v8816_v21 = vld [vmem:[#allocation3 + $0x20] ss:$0 sps:$4 sm:$0x11]   ;;  %v12201_v5 = vld [vmem:[#allocation3 + $0x30] sm:$0xff]  }
 0x419   :  { %5206 = vst.msk [vmem:[#allocation3 + $0x190] sm:$0xf] %vm118_vm0, %v4877_v36  ;;  %5209 = vst [vmem:[#allocation3 + $0x194] sm:$0x1] %v5208_v37  ;;  %v5952_v39 = vor.u32 %v5951_v35, %v5947_v31  ;;  %v5939_v54 = vrot.slane %v5937_v52, 1  ;;  %v6034_v25 = vrot.slane %v12180_v34, 1 }
 0x41a   :  { %v6035_v12 = vrot.slane %v8814_v8, 1  ;;  %v5944_v20 = vrot.slane %v5942_v24, 1  ;;  %v6040_v28 = vrot.slane %v12194_v47, 1  ;;  %v6041_v44 = vrot.slane %v8816_v21, 1  ;;  %v12217_v24 = vld [vmem:[#allocation3 + $0xc] sm:$0xff]   ;;  %v12233_v21 = vld [vmem:[#allocation3 + $0x24] sm:$0xff]  }
 0x41b   :  { %v12184_v11 = vsel %vm1752_vm9, %v5952_v39, %v5956_v49  ;;  %v5940_v62 = vor.u32 %v5939_v54, %v5935_v14  ;;  %v6046_v41 = vrot.slane %v12201_v5, 1  ;;  %v8818_v31 = vld [vmem:[#allocation3 + $0x38] ss:$0 sps:$4 sm:$0x11]   ;;  %v12209_v14 = vld [vmem:[#allocation3 + $0x48] sm:$0xff]   ;;  %v6037_v39 = vrot.slane %v12217_v24, 1 }
 0x41c   :  { %14366 = vst [vmem:[#allocation111_spill] sm:$0xff] %v12184_v11  ;;  %6030 = vrot.lane.b32.xlu0 %v12184_v11, %s8950_s13  ;;  %v6036_v61 = vsel %vm2201_vm10, %v6034_v25, %v6035_v12  ;;  %v12199_v45 = vsel %vm2201_vm10, %v6040_v28, %v6041_v44  ;;  %v6047_v17 = vrot.slane %v8818_v31, 1  ;;  %v6052_v52 = vrot.slane %v12209_v14, 1  ;;  %v8820_v36 = vld [vmem:[#allocation3 + $0x50] ss:$0 sps:$4 sm:$0x11]  }
 0x41d   :  { %v12189_v51 = vsel %vm1752_vm9, %v5940_v62, %v5944_v20  ;;  %v6053_v37 = vrot.slane %v8820_v36, 1  ;;  %v8822_v54 = vld [vmem:[#allocation3 + $0x14] ss:$0 sps:$4 sm:$0x11]   ;;  %v12225_v12 = vld [vmem:[#allocation3 + $0x60] sm:$0xff]   ;;  %v6043_v44 = vrot.slane %v12233_v21, 1 }
 0x41e   :  { %14367 = vst [vmem:[#allocation28_spill] sm:$0xff] %v12189_v51  ;;  %6028 = vrot.lane.b32.xlu1 %v12189_v51, %s8950_s13  ;;  %v12207_v35 = vsel %vm2201_vm10, %v6046_v41, %v6047_v17  ;;  %v6038_v25 = vrot.slane %v8822_v54, 1  ;;  %v6058_v62 = vrot.slane %v12225_v12, 1  ;;  %v8824_v20 = vld [vmem:[#allocation3 + $0x68] ss:$0 sps:$4 sm:$0x11]  }
 0x41f   :  { %v12223_v8 = vsel %vm2201_vm10, %v6052_v52, %v6053_v37  ;;  %v12241_v41 = vld [vmem:[#allocation3 + $0x78] sm:$0xff]   ;;  %v8828_v17 = vld [vmem:[#allocation3 + $0x80] ss:$0 sps:$4 sm:$0x11]   ;;  %v12257_v37 = vld [vmem:[#allocation3 + $0x90] sm:$0xff]   ;;  %vm14371_vm0 = vcmask 1041408  }
 0x420   :  { %6130 = vrot.lane.b32.xlu0 %v6036_v61, %s8951_s9  ;;  %v8717_v9 = vld [vmem:[#allocation3 + $0x18c] sm:$0xff]   ;;  %v8718_v63 = vld [vmem:[#allocation3 + $0x194] ss:$0 sps:$4 sm:$0x11]   ;;  %v6059_v61 = vrot.slane %v8824_v20, 1  ;;  %v12231_v28 = vsel %vm2201_vm10, %v6037_v39, %v6038_v25  ;;  %v6064_v31 = vrot.slane %v12241_v41, 1  ;;  %vm14372_vm7 = vmmov %vm14371_vm0 }
 0x421   :  { %v5961_v53 = vshll.u32 %v8717_v9, 16  ;;  %v5966_v26 = vshll.u32 %v8718_v63, 16  ;;  %v5959_v0 = vshrl.u32 %v8717_v9, 16  ;;  %v8826_v9 = vld [vmem:[#allocation3 + $0x2c] ss:$0 sps:$4 sm:$0x11]  }
 0x422   :  { %v6044_v63 = vrot.slane %v8826_v9, 1  ;;  %v6070_v39 = vrot.slane %v12257_v37, 1  ;;  %v8832_v54 = vld [vmem:[#allocation3 + $0x98] ss:$0 sps:$4 sm:$0x11]  }
 0x423   :  { %v5963_v38 = vrot.slane %v5961_v53, 1  ;;  %v5968_v42 = vrot.slane %v5966_v26, 1  ;;  %v12239_v53 = vsel %vm2201_vm10, %v6058_v62, %v6059_v61  ;;  %v6065_v26 = vrot.slane %v8828_v17, 1  ;;  %v12265_v20 = vld [vmem:[#allocation3 + $0x54] sm:$0xff]  }
 0x424   :  { %6134 = vrot.lane.b32.xlu0 %v12199_v45, %s8951_s9  ;;  %v6071_v25 = vrot.slane %v8832_v54, 1  ;;  %v6055_v61 = vrot.slane %v12265_v20, 1  ;;  %v8840_v11 = vld [vmem:[#allocation3 + $0xe0] ss:$0 sps:$4 sm:$0x11]  }
 0x425   :  { %v5964_v16 = vor.u32 %v5963_v38, %v5959_v0  ;;  %v12247_v0 = vsel %vm2201_vm10, %v6043_v44, %v6044_v63  ;;  %v12249_v38 = vld [vmem:[#allocation3 + $0x3c] sm:$0xff]   ;;  %v12255_v36 = vsel %vm2201_vm10, %v6064_v31, %v6065_v26  ;;  %v12273_v31 = vld [vmem:[#allocation3 + $0xa8] sm:$0xff]   ;;  %v8836_v26 = vld [vmem:[#allocation3 + $0xb0] ss:$0 sps:$4 sm:$0x11]   ;;  %v6083_v51 = vrot.slane %v8840_v11, 1 }
 0x426   :  { %v8834_v44 = vld [vmem:[#allocation3 + $0x5c] ss:$0 sps:$4 sm:$0x11]   ;;  %v12271_v63 = vsel %vm2201_vm10, %v6070_v39, %v6071_v25  ;;  %v6076_v17 = vrot.slane %v12273_v31, 1  ;;  %v12300_v11 = vld [vmem:[#allocation3 + $0xf0] sm:$0xff]  }
 0x427   :  { %v12215_v49 = vsel %vm1752_vm9, %v5964_v16, %v5968_v42  ;;  %v6049_v16 = vrot.slane %v12249_v38, 1  ;;  %v8830_v42 = vld [vmem:[#allocation3 + $0x44] ss:$0 sps:$4 sm:$0x11]   ;;  %v6056_v9 = vrot.slane %v8834_v44, 1  ;;  %v8839_v39 = vld [vmem:[#allocation3 + $0xd8] sm:$0xff]  }
 0x428   :  { %6138 = vrot.lane.b32.xlu0 %v12207_v35, %s8951_s9  ;;  %14368 = vst [vmem:[#allocation87_spill] sm:$0xff] %v12215_v49  ;;  %6032 = vrot.lane.b32.xlu1 %v12215_v49, %s8950_s13  ;;  %v6050_v52 = vrot.slane %v8830_v42, 1  ;;  %v6077_v42 = vrot.slane %v8836_v26, 1  ;;  %v8838_v44 = vld [vmem:[#allocation3 + $0x74] ss:$0 sps:$4 sm:$0x11]  }
 0x429   :  { %v6062_v49 = vrot.slane %v8838_v44, 1  ;;  %v6082_v25 = vrot.slane %v8839_v39, 1  ;;  %v8842_v55 = vld [vmem:[#allocation3 + $0x8c] ss:$0 sps:$4 sm:$0x11]  }
 0x42a   :  { %v12263_v62 = vsel %vm2201_vm10, %v6049_v16, %v6050_v52  ;;  %v12279_v16 = vsel %vm2201_vm10, %v6055_v61, %v6056_v9  ;;  %v12281_v52 = vld [vmem:[#allocation3 + $0x6c] sm:$0xff]   ;;  %v12287_v26 = vsel %vm2201_vm10, %v6076_v17, %v6077_v42  ;;  %v12294_v9 = vld [vmem:[#allocation3 + $0x84] sm:$0xff]   ;;  %v6068_v18 = vrot.slane %v8842_v55, 1  ;;  %v8844_v42 = vld [vmem:[#allocation3 + $0xf8] ss:$0 sps:$4 sm:$0x11]  }
 0x42b   :  { %v6061_v54 = vrot.slane %v12281_v52, 1  ;;  %14369 = vst [vmem:[#allocation51_spill] sm:$0xff] %v12294_v9  ;;  %v6067_v44 = vrot.slane %v12294_v9, 1  ;;  %v6084_v19 = vsel %vm2201_vm10, %v6082_v25, %v6083_v51  ;;  %v6088_v17 = vrot.slane %v12300_v11, 1 }
 0x42c   :  { %6142 = vrot.lane.b32.xlu0 %v12223_v8, %s8951_s9  ;;  %6132 = vrot.lane.b32.xlu1 %v12231_v28, %s8951_s9  ;;  %v6089_v39 = vrot.slane %v8844_v42, 1  ;;  %v6074_v51 = vrot.slane %v8846_v3, 1  ;;  %v8848_v42 = vld [vmem:[#allocation3 + $0xbc] ss:$0 sps:$4 sm:$0x11]  }
 0x42d   :  { %v12292_v61 = vsel %vm2201_vm10, %v6061_v54, %v6062_v49  ;;  %v12305_v49 = vsel %vm2201_vm10, %v6067_v44, %v6068_v18  ;;  %v12307_v54 = vld [vmem:[#allocation3 + $0x9c] sm:$0xff]   ;;  %v12320_v18 = vld [vmem:[#allocation3 + $0xb4] sm:$0xff]   ;;  %v6080_v10 = vrot.slane %v8848_v42, 1 }
 0x42e   :  { %v6073_v55 = vrot.slane %v12307_v54, 1  ;;  %v12313_v25 = vsel %vm2201_vm10, %v6088_v17, %v6089_v39  ;;  %v6079_v44 = vrot.slane %v12320_v18, 1  ;;  %v12330_v17 = vld [vmem:[#allocation3 + $0xe4] sm:$0xff]  }
 0x42f   :  { %v6085_v39 = vrot.slane %v12330_v17, 1 }
 0x430   :  { %6146 = vrot.lane.b32.xlu0 %v12239_v53, %s8951_s9  ;;  %6136 = vrot.lane.b32.xlu1 %v12247_v0, %s8951_s9  ;;  %v12328_v3 = vsel %vm2201_vm10, %v6079_v44, %v6080_v10  ;;  %v6091_v10 = vrot.slane %v12340_v56, 1  ;;  %v8852_v44 = vld [vmem:[#allocation3 + $0x104] ss:$0 sps:$4 sm:$0x11]  }
 0x431   :  { %v6092_v43 = vrot.slane %v8852_v44, 1 }
 0x434   :  { %6150 = vrot.lane.b32.xlu0 %v12255_v36, %s8951_s9  ;;  %6140 = vrot.lane.b32.xlu1 %v12263_v62, %s8951_s9 }
 0x438   :  { %6154 = vrot.lane.b32.xlu0 %v12271_v63, %s8951_s9  ;;  %6144 = vrot.lane.b32.xlu1 %v12279_v16, %s8951_s9 }
 0x43c   :  { %6158 = vrot.lane.b32.xlu0 %v12287_v26, %s8951_s9  ;;  %6148 = vrot.lane.b32.xlu1 %v12292_v61, %s8951_s9 }
 0x440   :  { %6162 = vrot.lane.b32.xlu0 %v6084_v19, %s8951_s9  ;;  %6152 = vrot.lane.b32.xlu1 %v12305_v49, %s8951_s9  ;;  %v12318_v19 = vsel %vm2201_vm10, %v6073_v55, %v6074_v51  ;;  %v8850_v55 = vld [vmem:[#allocation3 + $0xec] ss:$0 sps:$4 sm:$0x11]  }
 0x441   :  { %v6086_v51 = vrot.slane %v8850_v55, 1  ;;  %v12350_v55 = vsel %vm2201_vm10, %v6091_v10, %v6092_v43  ;;  %v8720_v43 = vld [vmem:[%s13863_s2 + $0x8] sm:$0xff]   ;;  %v8721_v10 = vld [vmem:[%s13863_s2 + $0x10] ss:$0 sps:$4 sm:$0x33]  }
 0x442   :  { %14370 = vst [vmem:[#allocation93_spill] sm:$0xff] %v12350_v55  ;;  %v7262_v44 = vsel %vm14372_vm7, %v8721_v10, 0 }
 0x443   :  { %v12338_v42 = vsel %vm2201_vm10, %v6085_v39, %v6086_v51  ;;  %v8719_v39 = vld [vmem:[%s13863_s2] sm:$0xff]  }
 0x444   :  { %6166 = vrot.lane.b32.xlu0 %v12313_v25, %s8951_s9  ;;  %6156 = vrot.lane.b32.xlu1 %v12318_v19, %s8951_s9 }
 0x445   :  { %8499 = vmatprep.subr.bf16.mxu1 %v8719_v39 }
 0x446   :  { %8500 = vmatpush3.bf16.msra.mxu1 %v8719_v39  ;;  %v12383_v39 = vpop.permute.xlu1 %5972 }
 0x447   :  { %8501 = vmatprep.subr.bf16.mxu1 %v8720_v43 }
 0x448   :  { %6204 = vrot.lane.b32.xlu0 %v12217_v24, %s8952_s19  ;;  %6160 = vrot.lane.b32.xlu1 %v12328_v3, %s8951_s9 }
 0x44a   :  { %8502 = vmatpush3.bf16.msra.mxu1 %v8720_v43  ;;  %v12391_v43 = vpop.permute.xlu1 %5976 }
 0x44b   :  { %8570 = vmatprep.subr.msk.bf16.mxu1 %vm14371_vm0, %v8721_v10 }
 0x44c   :  { %6298 = vrot.lane.b32.xlu0 %v11594_v46, %s8953_s20  ;;  %6164 = vrot.lane.b32.xlu1 %v12338_v42, %s8951_s9  ;;  %v12354_v46 = vpop.permute.xlu0 %5974 }
 0x44e   :  { %8504 = vmatpush3.bf16.msra.mxu1 %v7262_v44 }
 0x450   :  { %6368 = vrot.lane.b32.xlu0 %v12231_v28, %s8954_s21  ;;  %6168 = vrot.lane.b32.xlu1 %v12350_v55, %s8951_s9  ;;  %v12363_v28 = vpop.permute.xlu0 %5978 }
 0x454   :  { %6442 = vrot.lane.b32.xlu0 %v12194_v47, %s8955_s28  ;;  %6206 = vrot.lane.b32.xlu1 %v12194_v47, %s8952_s19  ;;  %v12372_v51 = vpop.permute.xlu0 %5982 }
 0x458   :  { %6536 = vrot.lane.b32.xlu0 %v11585_v13, %s8956_s1  ;;  %6300 = vrot.lane.b32.xlu1 %v11585_v13, %s8953_s20  ;;  %v12385_v13 = vpop.permute.xlu0 %5986 }
 0x45c   :  { %6606 = vrot.lane.b32.xlu0 %v12199_v45, %s8957_s29  ;;  %6370 = vrot.lane.b32.xlu1 %v12199_v45, %s8954_s21  ;;  %v12393_v2 = vpop.permute.xlu0 %5990  ;;  %v12399_v45 = vpop.permute.xlu1 %5980 }
 0x45d   :  { %14373 = vst [vmem:[#allocation110_spill] sm:$0xff] %v12393_v2 }
 0x460   :  { %6208 = vrot.lane.b32.xlu0 %v12233_v21, %s8952_s19  ;;  %6444 = vrot.lane.b32.xlu1 %v12233_v21, %s8955_s28  ;;  %v12401_v10 = vpop.permute.xlu0 %5994  ;;  %v12407_v44 = vpop.permute.xlu1 %5984 }
 0x461   :  { %14374 = vst [vmem:[#allocation29_spill] sm:$0xff] %v12401_v10 }
 0x464   :  { %6302 = vrot.lane.b32.xlu0 %v11609_v6, %s8953_s20  ;;  %6538 = vrot.lane.b32.xlu1 %v11609_v6, %s8956_s1  ;;  %v12409_v55 = vpop.permute.xlu0 %5998  ;;  %v12415_v6 = vpop.permute.xlu1 %5988 }
 0x465   :  { %14375 = vst [vmem:[#allocation53_spill] sm:$0xff] %v12409_v55 }
 0x468   :  { %6372 = vrot.lane.b32.xlu0 %v12247_v0, %s8954_s21  ;;  %6608 = vrot.lane.b32.xlu1 %v12247_v0, %s8957_s29  ;;  %v12417_v2 = vpop.permute.xlu0 %6002  ;;  %v12423_v0 = vpop.permute.xlu1 %5992 }
 0x469   :  { %14376 = vst [vmem:[#allocation96_spill] sm:$0xff] %v12417_v2  ;;  %14377 = vst [vmem:[#allocation113_spill] sm:$0xff] %v12423_v0 }
 0x46c   :  { %6446 = vrot.lane.b32.xlu0 %v12201_v5, %s8955_s28  ;;  %6210 = vrot.lane.b32.xlu1 %v12201_v5, %s8952_s19  ;;  %v12429_v55 = vpop.permute.xlu0 %6006  ;;  %v12431_v10 = vpop.permute.xlu1 %5996 }
 0x46d   :  { %14378 = vst [vmem:[#allocation30_spill] sm:$0xff] %v12429_v55  ;;  %14379 = vst [vmem:[#allocation54_spill] sm:$0xff] %v12431_v10 }
 0x470   :  { %6540 = vrot.lane.b32.xlu0 %v11604_v48, %s8956_s1  ;;  %6304 = vrot.lane.b32.xlu1 %v11604_v48, %s8953_s20  ;;  %v12437_v2 = vpop.permute.xlu0 %6010  ;;  %v12439_v48 = vpop.permute.xlu1 %6000 }
 0x471   :  { %14380 = vst [vmem:[#allocation95_spill] sm:$0xff] %v12437_v2  ;;  %14381 = vst [vmem:[#allocation112_spill] sm:$0xff] %v12439_v48 }
 0x474   :  { %6610 = vrot.lane.b32.xlu0 %v12207_v35, %s8957_s29  ;;  %6374 = vrot.lane.b32.xlu1 %v12207_v35, %s8954_s21  ;;  %v12445_v35 = vpop.permute.xlu0 %6014  ;;  %v12447_v55 = vpop.permute.xlu1 %6004 }
 0x475   :  { %14382 = vst [vmem:[#allocation31_spill] sm:$0xff] %v12445_v35  ;;  %14383 = vst [vmem:[#allocation65_spill] sm:$0xff] %v12447_v55 }
 0x478   :  { %6212 = vrot.lane.b32.xlu0 %v12249_v38, %s8952_s19  ;;  %6448 = vrot.lane.b32.xlu1 %v12249_v38, %s8955_s28  ;;  %v12453_v10 = vpop.permute.xlu0 %6018  ;;  %v12455_v2 = vpop.permute.xlu1 %6008 }
 0x479   :  { %14384 = vst [vmem:[#allocation57_spill] sm:$0xff] %v12453_v10  ;;  %14385 = vst [vmem:[#allocation99_spill] sm:$0xff] %v12455_v2  ;;  %v4027_v2 = vld [vmem:[#allocation3 + $0xcc] sm:$0x1] }
 0x47c   :  { %6306 = vrot.lane.b32.xlu0 %v11651_v23, %s8953_s20  ;;  %6542 = vrot.lane.b32.xlu1 %v11651_v23, %s8956_s1  ;;  %v12461_v23 = vpop.permute.xlu0 %6022  ;;  %v12463_v35 = vpop.permute.xlu1 %6012 }
 0x47d   :  { %14386 = vst [vmem:[#allocation116_spill] sm:$0xff] %v12461_v23  ;;  %14387 = vst [vmem:[#allocation62_spill] sm:$0xff] %v12463_v35  ;;  %v4028_v23 = vsel %vm8988_vm3, 0, %v4027_v2 }
 0x47e   :  { %4029 = vst [vmem:[#allocation3 + $0xcc] sm:$0x1] %v4028_v23 }
 0x480   :  { %6376 = vrot.lane.b32.xlu0 %v12263_v62, %s8954_s21  ;;  %6612 = vrot.lane.b32.xlu1 %v12263_v62, %s8957_s29  ;;  %v12471_v10 = vpop.permute.xlu1 %6016 }
 0x481   :  { %v12469_v62 = vpop.permute.xlu0 %6026  ;;  %14389 = vst [vmem:[#allocation32_spill] sm:$0xff] %v12471_v10 }
 0x482   :  { %14388 = vst [vmem:[#allocation58_spill] sm:$0xff] %v12469_v62 }
 0x484   :  { %6450 = vrot.lane.b32.xlu0 %v12209_v14, %s8955_s28  ;;  %6214 = vrot.lane.b32.xlu1 %v12209_v14, %s8952_s19  ;;  %v12481_v55 = vpop.permute.xlu1 %6020 }
 0x485   :  { %14391 = vst [vmem:[#allocation114_spill] sm:$0xff] %v12481_v55 }
 0x488   :  { %6544 = vrot.lane.b32.xlu0 %v11635_v59, %s8956_s1  ;;  %6308 = vrot.lane.b32.xlu1 %v11635_v59, %s8953_s20  ;;  %v4135_v59 = vld [vmem:[#allocation3 + $0xd4] sm:$0x1] }
 0x489   :  { %v4136_v62 = vsel %vm9021_vm5, 0, %v4135_v59 }
 0x48a   :  { %4137 = vst [vmem:[#allocation3 + $0xd4] sm:$0x1] %v4136_v62 }
 0x48c   :  { %6614 = vrot.lane.b32.xlu0 %v12223_v8, %s8957_s29  ;;  %6378 = vrot.lane.b32.xlu1 %v12223_v8, %s8954_s21  ;;  %v12489_v8 = vpop.permute.xlu1 %6024 }
 0x48d   :  { %14392 = vst [vmem:[#allocation60_spill] sm:$0xff] %v12489_v8 }
 0x48e   :  { %v12479_v35 = vpop.permute.xlu0 %6030 }
 0x48f   :  { %14390 = vst [vmem:[#allocation98_spill] sm:$0xff] %v12479_v35 }
 0x490   :  { %6216 = vrot.lane.b32.xlu0 %v12265_v20, %s8952_s19  ;;  %6452 = vrot.lane.b32.xlu1 %v12265_v20, %s8955_s28  ;;  %v12497_v23 = vpop.permute.xlu1 %6028 }
 0x491   :  { %14393 = vst [vmem:[#allocation33_spill] sm:$0xff] %v12497_v23 }
 0x492   :  { %v6131_v10 = vpop.permute.xlu0 %6130 }
 0x494   :  { %6310 = vrot.lane.b32.xlu0 %v11690_v40, %s8953_s20  ;;  %6546 = vrot.lane.b32.xlu1 %v11690_v40, %s8956_s1 }
 0x496   :  { %v12495_v2 = vpop.permute.xlu0 %6134 }
 0x498   :  { %6380 = vrot.lane.b32.xlu0 %v12279_v16, %s8954_s21  ;;  %6616 = vrot.lane.b32.xlu1 %v12279_v16, %s8957_s29 }
 0x49a   :  { %v12503_v59 = vpop.permute.xlu0 %6138  ;;  %v12505_v62 = vpop.permute.xlu1 %6032 }
 0x49b   :  { %14394 = vst [vmem:[#allocation100_spill] sm:$0xff] %v12505_v62 }
 0x49c   :  { %6454 = vrot.lane.b32.xlu0 %v12225_v12, %s8955_s28  ;;  %6218 = vrot.lane.b32.xlu1 %v12225_v12, %s8952_s19 }
 0x49e   :  { %v12511_v40 = vpop.permute.xlu0 %6142  ;;  %v12513_v35 = vpop.permute.xlu1 %6132 }
 0x4a0   :  { %6548 = vrot.lane.b32.xlu0 %v11669_v60, %s8956_s1  ;;  %6312 = vrot.lane.b32.xlu1 %v11669_v60, %s8953_s20 }
 0x4a2   :  { %v12519_v16 = vpop.permute.xlu0 %6146  ;;  %v12521_v23 = vpop.permute.xlu1 %6136 }
 0x4a4   :  { %6618 = vrot.lane.b32.xlu0 %v12239_v53, %s8957_s29  ;;  %6382 = vrot.lane.b32.xlu1 %v12239_v53, %s8954_s21 }
 0x4a6   :  { %v12527_v62 = vpop.permute.xlu0 %6150  ;;  %v12529_v8 = vpop.permute.xlu1 %6140 }
 0x4a7   :  { %14395 = vst [vmem:[#allocation117_spill] sm:$0xff] %v12527_v62 }
 0x4a8   :  { %6220 = vrot.lane.b32.xlu0 %v12281_v52, %s8952_s19  ;;  %6456 = vrot.lane.b32.xlu1 %v12281_v52, %s8955_s28 }
 0x4aa   :  { %v12535_v60 = vpop.permute.xlu0 %6154  ;;  %v12537_v55 = vpop.permute.xlu1 %6144 }
 0x4ab   :  { %14396 = vst [vmem:[#allocation67_spill] sm:$0xff] %v12535_v60 }
 0x4ac   :  { %6314 = vrot.lane.b32.xlu0 %v11715_v30, %s8953_s20  ;;  %6550 = vrot.lane.b32.xlu1 %v11715_v30, %s8956_s1 }
 0x4ae   :  { %v12543_v53 = vpop.permute.xlu0 %6158  ;;  %v12545_v48 = vpop.permute.xlu1 %6148 }
 0x4af   :  { %14397 = vst [vmem:[#allocation61_spill] sm:$0xff] %v12543_v53 }
 0x4b0   :  { %6384 = vrot.lane.b32.xlu0 %v12292_v61, %s8954_s21  ;;  %6620 = vrot.lane.b32.xlu1 %v12292_v61, %s8957_s29 }
 0x4b2   :  { %v12551_v4 = vpop.permute.xlu0 %6162  ;;  %v12553_v1 = vpop.permute.xlu1 %6152 }
 0x4b3   :  { %14398 = vst [vmem:[#allocation9_spill] sm:$0xff] %v12551_v4  ;;  %14399 = vst [vmem:[#allocation39_spill] sm:$0xff] %v12553_v1 }
 0x4b4   :  { %6458 = vrot.lane.b32.xlu0 %v12241_v41, %s8955_s28  ;;  %6222 = vrot.lane.b32.xlu1 %v12241_v41, %s8952_s19 }
 0x4b6   :  { %v12559_v30 = vpop.permute.xlu0 %6166  ;;  %v12561_v53 = vpop.permute.xlu1 %6156 }
 0x4b7   :  { %14400 = vst [vmem:[#allocation66_spill] sm:$0xff] %v12559_v30  ;;  %14401 = vst [vmem:[#allocation34_spill] sm:$0xff] %v12561_v53 }
 0x4b8   :  { %6552 = vrot.lane.b32.xlu0 %v11710_v32, %s8956_s1  ;;  %6316 = vrot.lane.b32.xlu1 %v11710_v32, %s8953_s20 }
 0x4ba   :  { %v6205_v61 = vpop.permute.xlu0 %6204  ;;  %v12567_v4 = vpop.permute.xlu1 %6160 }
 0x4bb   :  { %14402 = vst [vmem:[#allocation63_spill] sm:$0xff] %v12567_v4 }
 0x4bc   :  { %6622 = vrot.lane.b32.xlu0 %v12255_v36, %s8957_s29  ;;  %6386 = vrot.lane.b32.xlu1 %v12255_v36, %s8954_s21 }
 0x4be   :  { %v6299_v60 = vpop.permute.xlu0 %6298  ;;  %v12573_v1 = vpop.permute.xlu1 %6164 }
 0x4bf   :  { %14403 = vst [vmem:[#allocation8_spill] sm:$0xff] %v12573_v1  ;;  %v6671_v1 = vsel %vm2838_vm12, %v12180_v34, %v12345_v33 }
 0x4c0   :  { %6224 = vrot.lane.b32.xlu0 %v12294_v9, %s8952_s19  ;;  %6460 = vrot.lane.b32.xlu1 %v12294_v9, %s8955_s28  ;;  %v6735_v53 = vsel %vm2903_vm13, %v6671_v1, %v6131_v10 }
 0x4c2   :  { %v6369_v30 = vpop.permute.xlu0 %6368  ;;  %v12579_v32 = vpop.permute.xlu1 %6168 }
 0x4c3   :  { %14404 = vst [vmem:[#allocation38_spill] sm:$0xff] %v12579_v32  ;;  %v6799_v32 = vsel %vm2968_vm14, %v6735_v53, %v6205_v61 }
 0x4c4   :  { %6318 = vrot.lane.b32.xlu0 %v11766_v22, %s8953_s20  ;;  %6554 = vrot.lane.b32.xlu1 %v11766_v22, %s8956_s1  ;;  %v6863_v0 = vsel %vm3033_vm15, %v6799_v32, %v6299_v60 }
 0x4c5   :  { %v6927_v62 = vsel %vm3098_vm1, %v6863_v0, %v6369_v30 }
 0x4c6   :  { %v6443_v4 = vpop.permute.xlu0 %6442  ;;  %v6207_v36 = vpop.permute.xlu1 %6206 }
 0x4c7   :  { %v6991_v33 = vsel %vm3163_vm2, %v6927_v62, %v6443_v4  ;;  %v6673_v4 = vsel %vm2838_vm12, %v12217_v24, %v12383_v39 }
 0x4c8   :  { %6388 = vrot.lane.b32.xlu0 %v12305_v49, %s8954_s21  ;;  %6624 = vrot.lane.b32.xlu1 %v12305_v49, %s8957_s29 }
 0x4ca   :  { %v6537_v9 = vpop.permute.xlu0 %6536  ;;  %v6301_v22 = vpop.permute.xlu1 %6300 }
 0x4cb   :  { %v7055_v1 = vsel %vm3228_vm4, %v6991_v33, %v6537_v9  ;;  %v6737_v9 = vsel %vm2903_vm13, %v6673_v4, %v12513_v35  ;;  %v6675_v33 = vsel %vm2838_vm12, %v12194_v47, %v12354_v46 }
 0x4cc   :  { %6462 = vrot.lane.b32.xlu0 %v12257_v37, %s8955_s28  ;;  %6226 = vrot.lane.b32.xlu1 %v12257_v37, %s8952_s19  ;;  %v6801_v53 = vsel %vm2968_vm14, %v6737_v9, %v6207_v36 }
 0x4ce   :  { %v6607_v34 = vpop.permute.xlu0 %6606  ;;  %v6371_v10 = vpop.permute.xlu1 %6370 }
 0x4cf   :  { %v7119_v49 = vsel %vm3293_vm6, %v7055_v1, %v6607_v34  ;;  %v6739_v1 = vsel %vm2903_vm13, %v6675_v33, %v12495_v2 }
 0x4d0   :  { %6556 = vrot.lane.b32.xlu0 %v11760_v57, %s8956_s1  ;;  %8505 = vmatprep.mubr.msk.bf16.mxu1 %vm3373_vm11, %v7119_v49 }
 0x4d1   :  { %6320 = vrot.lane.b32.xlu1 %v11760_v57, %s8953_s20  ;;  %v6865_v57 = vsel %vm3033_vm15, %v6801_v53, %v6301_v22 }
 0x4d2   :  { %v6209_v0 = vpop.permute.xlu0 %6208  ;;  %v6445_v60 = vpop.permute.xlu1 %6444  ;;  %v6929_v61 = vsel %vm3098_vm1, %v6865_v57, %v6371_v10 }
 0x4d3   :  { %v6993_v24 = vsel %vm3163_vm2, %v6929_v61, %v6445_v60  ;;  %v6803_v34 = vsel %vm2968_vm14, %v6739_v1, %v6209_v0 }
 0x4d4   :  { %6626 = vrot.lane.b32.xlu0 %v12271_v63, %s8957_s29 }
 0x4d5   :  { %6390 = vrot.lane.b32.xlu1 %v12271_v63, %s8954_s21 }
 0x4d6   :  { %v6303_v62 = vpop.permute.xlu0 %6302  ;;  %v6539_v30 = vpop.permute.xlu1 %6538 }
 0x4d7   :  { %v7057_v39 = vsel %vm3228_vm4, %v6993_v24, %v6539_v30  ;;  %v6867_v49 = vsel %vm3033_vm15, %v6803_v34, %v6303_v62 }
 0x4d8   :  { %6228 = vrot.lane.b32.xlu0 %v12307_v54, %s8952_s19 }
 0x4d9   :  { %6464 = vrot.lane.b32.xlu1 %v12307_v54, %s8955_s28 }
 0x4da   :  { %v6373_v63 = vpop.permute.xlu0 %6372  ;;  %v6609_v35 = vpop.permute.xlu1 %6608 }
 0x4db   :  { %v7121_v32 = vsel %vm3293_vm6, %v7057_v39, %v6609_v35  ;;  %v6931_v60 = vsel %vm3098_vm1, %v6867_v49, %v6373_v63  ;;  %v8723_v35 = vld [vmem:[#allocation3 + $0xc8] ss:$0 sps:$4 sm:$0x11]   ;;  %v8724_v49 = vld [vmem:[#allocation3 + $0xcc] sm:$0xff]  }
 0x4dc   :  { %6322 = vrot.lane.b32.xlu0 %v11835_v27, %s8953_s20  ;;  %8506 = vmatmul.mubr.msk.bf16.vlgmr.msra.gmra.mrb[0].mxu1 %vm3373_vm11, %v7121_v32  ;;  %v6282_v1 = vshll.u32 %v8723_v35, 16 }
 0x4dd   :  { %6558 = vrot.lane.b32.xlu1 %v11835_v27, %s8956_s1 }
 0x4de   :  { %v6447_v36 = vpop.permute.xlu0 %6446  ;;  %v6211_v22 = vpop.permute.xlu1 %6210 }
 0x4df   :  { %v6995_v47 = vsel %vm3163_vm2, %v6931_v60, %v6447_v36 }
 0x4e0   :  { %6392 = vrot.lane.b32.xlu0 %v12318_v19, %s8954_s21 }
 0x4e1   :  { %6628 = vrot.lane.b32.xlu1 %v12318_v19, %s8957_s29 }
 0x4e2   :  { %v6541_v27 = vpop.permute.xlu0 %6540  ;;  %v6305_v10 = vpop.permute.xlu1 %6304 }
 0x4e3   :  { %v7059_v46 = vsel %vm3228_vm4, %v6995_v47, %v6541_v27 }
 0x4e4   :  { %6466 = vrot.lane.b32.xlu0 %v12273_v31, %s8955_s28 }
 0x4e5   :  { %6230 = vrot.lane.b32.xlu1 %v12273_v31, %s8952_s19  ;;  %v6677_v31 = vsel %vm2838_vm12, %v12233_v21, %v12391_v43 }
 0x4e6   :  { %v6611_v2 = vpop.permute.xlu0 %6610  ;;  %v6375_v0 = vpop.permute.xlu1 %6374  ;;  %v6741_v62 = vsel %vm2903_vm13, %v6677_v31, %v12521_v23 }
 0x4e7   :  { %v7123_v19 = vsel %vm3293_vm6, %v7059_v46, %v6611_v2  ;;  %v6805_v30 = vsel %vm2968_vm14, %v6741_v62, %v6211_v22  ;;  %v6679_v22 = vsel %vm2838_vm12, %v12201_v5, %v12363_v28  ;;  %v8725_v2 = vld [vmem:[#allocation3 + $0xd4] ss:$0 sps:$4 sm:$0x11]   ;;  %v6363_v62 = vrot.slane %v8723_v35, 1 }
 0x4e8   :  { %6560 = vrot.lane.b32.xlu0 %v11802_v15, %s8956_s1  ;;  %8509 = vmatprep.mubr.msk.bf16.mxu1 %vm3373_vm11, %v7123_v19  ;;  %v6869_v61 = vsel %vm3033_vm15, %v6805_v30, %v6305_v10  ;;  %v6743_v33 = vsel %vm2903_vm13, %v6679_v22, %v12503_v59  ;;  %v6284_v59 = vrot.slane %v6282_v1, 1  ;;  %v6515_v19 = vshll.u32 %v8724_v49, 16 }
 0x4e9   :  { %6324 = vrot.lane.b32.xlu1 %v11802_v15, %s8953_s20  ;;  %v8722_v15 = vld [vmem:[#allocation3 + $0xc0] sm:$0xff]   ;;  %v6933_v24 = vsel %vm3098_vm1, %v6869_v61, %v6375_v0  ;;  %v6513_v30 = vshrl.u32 %v8724_v49, 16  ;;  %v6520_v61 = vshll.u32 %v8725_v2, 16  ;;  %v6600_v22 = vrot.slane %v8724_v49, 1 }
 0x4ea   :  { %v6213_v4 = vpop.permute.xlu0 %6212  ;;  %v6449_v9 = vpop.permute.xlu1 %6448  ;;  %v6277_v63 = vshll.u32 %v8722_v15, 16  ;;  %v6362_v31 = vrot.slane %v8722_v15, 1 }
 0x4eb   :  { %v6997_v21 = vsel %vm3163_vm2, %v6933_v24, %v6449_v9  ;;  %v6807_v34 = vsel %vm2968_vm14, %v6743_v33, %v6213_v4  ;;  %v6601_v33 = vrot.slane %v8725_v2, 1 }
 0x4ec   :  { %6630 = vrot.lane.b32.xlu0 %v12287_v26, %s8957_s29  ;;  %v6279_v36 = vrot.slane %v6277_v63, 1  ;;  %v6364_v24 = vsel %vm2201_vm10, %v6362_v31, %v6363_v62  ;;  %v6522_v63 = vrot.slane %v6520_v61, 1 }
 0x4ed   :  { %6394 = vrot.lane.b32.xlu1 %v12287_v26, %s8954_s21 }
 0x4ee   :  { %v6307_v53 = vpop.permute.xlu0 %6306  ;;  %v6543_v57 = vpop.permute.xlu1 %6542 }
 0x4ef   :  { %v7061_v43 = vsel %vm3228_vm4, %v6997_v21, %v6543_v57  ;;  %v6871_v10 = vsel %vm3033_vm15, %v6807_v34, %v6307_v53  ;;  %v6517_v57 = vrot.slane %v6515_v19, 1  ;;  %v6602_v34 = vsel %vm2201_vm10, %v6600_v22, %v6601_v33 }
 0x4f0   :  { %6232 = vrot.lane.b32.xlu0 %v12320_v18, %s8952_s19 }
 0x4f1   :  { %6468 = vrot.lane.b32.xlu1 %v12320_v18, %s8955_s28 }
 0x4f2   :  { %v6377_v26 = vpop.permute.xlu0 %6376  ;;  %v6613_v23 = vpop.permute.xlu1 %6612 }
 0x4f3   :  { %v7125_v39 = vsel %vm3293_vm6, %v7061_v43, %v6613_v23  ;;  %v6935_v5 = vsel %vm3098_vm1, %v6871_v10, %v6377_v26  ;;  %v6518_v23 = vor.u32 %v6517_v57, %v6513_v30  ;;  %v14405_v30 = vld [vmem:[#allocation93_spill] sm:$0xff] }
 0x4f4   :  { %6326 = vrot.lane.b32.xlu0 %v11852_v50, %s8953_s20  ;;  %8510 = vmatmul.mubr.msk.bf16.gmra.mrb[4].mxu1 %vm3373_vm11, %v7125_v39 }
 0x4f5   :  { %6562 = vrot.lane.b32.xlu1 %v11852_v50, %s8956_s1  ;;  %v6275_v50 = vshrl.u32 %v8722_v15, 16 }
 0x4f6   :  { %v6451_v32 = vpop.permute.xlu0 %6450  ;;  %v6215_v18 = vpop.permute.xlu1 %6214 }
 0x4f7   :  { %v6280_v47 = vor.u32 %v6279_v36, %v6275_v50  ;;  %v6999_v28 = vsel %vm3163_vm2, %v6935_v5, %v6451_v32 }
 0x4f8   :  { %6396 = vrot.lane.b32.xlu0 %v12328_v3, %s8954_s21 }
 0x4f9   :  { %6632 = vrot.lane.b32.xlu1 %v12328_v3, %s8957_s29  ;;  %v6285_v4 = vsel %vm1752_vm9, %v6280_v47, %v6284_v59 }
 0x4fa   :  { %v6545_v27 = vpop.permute.xlu0 %6544  ;;  %v6309_v60 = vpop.permute.xlu1 %6308 }
 0x4fb   :  { %v7063_v3 = vsel %vm3228_vm4, %v6999_v28, %v6545_v27 }
 0x4fc   :  { %6470 = vrot.lane.b32.xlu0 %v8722_v15, %s8955_s28 }
 0x4fd   :  { %6234 = vrot.lane.b32.xlu1 %v8722_v15, %s8952_s19  ;;  %v6681_v15 = vsel %vm2838_vm12, %v12249_v38, %v12399_v45 }
 0x4fe   :  { %v6615_v46 = vpop.permute.xlu0 %6614  ;;  %v6379_v9 = vpop.permute.xlu1 %6378  ;;  %v6745_v26 = vsel %vm2903_vm13, %v6681_v15, %v12529_v8  ;;  %v6523_v8 = vsel %vm1752_vm9, %v6518_v23, %v6522_v63 }
 0x4ff   :  { %v7127_v0 = vsel %vm3293_vm6, %v7063_v3, %v6615_v46  ;;  %v6809_v39 = vsel %vm2968_vm14, %v6745_v26, %v6215_v18  ;;  %v12783_v26 = vld [vmem:[#allocation3 + $0x108] sm:$0xff]  }
 0x500   :  { %6564 = vrot.lane.b32.xlu0 %v6285_v4, %s8956_s1  ;;  %8513 = vmatprep.mubr.msk.bf16.mxu1 %vm3373_vm11, %v7127_v0  ;;  %v6873_v32 = vsel %vm3033_vm15, %v6809_v39, %v6309_v60  ;;  %v6094_v63 = vrot.slane %v12783_v26, 1  ;;  %v8854_v39 = vld [vmem:[#allocation3 + $0x110] ss:$0 sps:$4 sm:$0x11]  }
 0x501   :  { %6328 = vrot.lane.b32.xlu1 %v6285_v4, %s8953_s20  ;;  %v6937_v36 = vsel %vm3098_vm1, %v6873_v32, %v6379_v9  ;;  %v14406_v32 = vld [vmem:[#allocation26_spill] sm:$0xff] }
 0x502   :  { %v6217_v53 = vpop.permute.xlu0 %6216  ;;  %v6453_v21 = vpop.permute.xlu1 %6452 }
 0x503   :  { %v7001_v38 = vsel %vm3163_vm2, %v6937_v36, %v6453_v21 }
 0x504   :  { %6634 = vrot.lane.b32.xlu0 %v6364_v24, %s8957_s29 }
 0x505   :  { %6398 = vrot.lane.b32.xlu1 %v6364_v24, %s8954_s21 }
 0x506   :  { %v6311_v43 = vpop.permute.xlu0 %6310  ;;  %v6547_v35 = vpop.permute.xlu1 %6546 }
 0x507   :  { %v7065_v50 = vsel %vm3228_vm4, %v7001_v38, %v6547_v35  ;;  %v6095_v35 = vrot.slane %v8854_v39, 1 }
 0x508   :  { %6236 = vrot.lane.b32.xlu0 %v12330_v17, %s8952_s19 }
 0x509   :  { %6472 = vrot.lane.b32.xlu1 %v8724_v49, %s8955_s28  ;;  %v6683_v49 = vsel %vm2838_vm12, %v12209_v14, %v12372_v51  ;;  %v6096_v38 = vsel %vm2201_vm10, %v6094_v63, %v6095_v35 }
 0x50a   :  { %v6381_v45 = vpop.permute.xlu0 %6380  ;;  %v6617_v18 = vpop.permute.xlu1 %6616 }
 0x50b   :  { %v7129_v1 = vsel %vm3293_vm6, %v7065_v50, %v6617_v18 }
 0x50c   :  { %6330 = vrot.lane.b32.xlu0 %v11922_v58, %s8953_s20  ;;  %8514 = vmatmul.mubr.msk.bf16.gmra.mrb[8].mxu1 %vm3373_vm11, %v7129_v1  ;;  %v6747_v58 = vsel %vm2903_vm13, %v6683_v49, %v12511_v40 }
 0x50d   :  { %6566 = vrot.lane.b32.xlu1 %v6523_v8, %s8956_s1  ;;  %v6811_v10 = vsel %vm2968_vm14, %v6747_v58, %v6217_v53  ;;  %v6689_v8 = vsel %vm2838_vm12, %v12281_v52, %v12415_v6 }
 0x50e   :  { %v6455_v17 = vpop.permute.xlu0 %6454  ;;  %v6219_v27 = vpop.permute.xlu1 %6218  ;;  %v6875_v47 = vsel %vm3033_vm15, %v6811_v10, %v6311_v43  ;;  %v6753_v22 = vsel %vm2903_vm13, %v6689_v8, %v12545_v48  ;;  %v8856_v10 = vld [vmem:[#allocation3 + $0x11c] ss:$0 sps:$4 sm:$0x11]  }
 0x50f   :  { %v6939_v28 = vsel %vm3098_vm1, %v6875_v47, %v6381_v45  ;;  %v14407_v47 = vld [vmem:[#allocation50_spill] sm:$0xff] }
 0x510   :  { %6400 = vrot.lane.b32.xlu0 %v12338_v42, %s8954_s21  ;;  %v7003_v14 = vsel %vm3163_vm2, %v6939_v28, %v6455_v17 }
 0x511   :  { %6636 = vrot.lane.b32.xlu1 %v6602_v34, %s8957_s29  ;;  %v12810_v34 = vld [vmem:[#allocation3 + $0x114] sm:$0xff]  }
 0x512   :  { %v6549_v60 = vpop.permute.xlu0 %6548  ;;  %v6313_v5 = vpop.permute.xlu1 %6312  ;;  %v6097_v58 = vrot.slane %v12810_v34, 1 }
 0x513   :  { %v7067_v42 = vsel %vm3228_vm4, %v7003_v14, %v6549_v60  ;;  %v6098_v60 = vrot.slane %v8856_v10, 1  ;;  %v14408_v14 = vld [vmem:[#allocation110_spill] sm:$0xff] }
 0x514   :  { %6474 = vrot.lane.b32.xlu0 %v12300_v11, %s8955_s28 }
 0x515   :  { %6238 = vrot.lane.b32.xlu1 %v12300_v11, %s8952_s19  ;;  %v6685_v11 = vsel %vm2838_vm12, %v12265_v20, %v12407_v44 }
 0x516   :  { %v6619_v51 = vpop.permute.xlu0 %6618  ;;  %v6383_v59 = vpop.permute.xlu1 %6382  ;;  %v6749_v2 = vsel %vm2903_vm13, %v6685_v11, %v12537_v55 }
 0x517   :  { %v7131_v40 = vsel %vm3293_vm6, %v7067_v42, %v6619_v51  ;;  %v6813_v0 = vsel %vm2968_vm14, %v6749_v2, %v6219_v27  ;;  %v6691_v42 = vsel %vm2838_vm12, %v12241_v41, %v14408_v14  ;;  %v6099_v51 = vsel %vm2201_vm10, %v6097_v58, %v6098_v60 }
 0x518   :  { %6568 = vrot.lane.b32.xlu0 %v11904_v7, %s8956_s1  ;;  %8517 = vmatprep.mubr.msk.bf16.mxu1 %vm3373_vm11, %v7131_v40  ;;  %v14409_v40 = vld [vmem:[#allocation117_spill] sm:$0xff] }
 0x519   :  { %6332 = vrot.lane.b32.xlu1 %v11904_v7, %s8953_s20  ;;  %v6877_v7 = vsel %vm3033_vm15, %v6813_v0, %v6313_v5 }
 0x51a   :  { %v6221_v3 = vpop.permute.xlu0 %6220  ;;  %v6457_v46 = vpop.permute.xlu1 %6456  ;;  %v6941_v9 = vsel %vm3098_vm1, %v6877_v7, %v6383_v59  ;;  %v6755_v59 = vsel %vm2903_vm13, %v6691_v42, %v14409_v40  ;;  %v12895_v42 = vld [vmem:[#allocation3 + $0x138] sm:$0xff]  }
 0x51b   :  { %v7005_v20 = vsel %vm3163_vm2, %v6941_v9, %v6457_v46 }
 0x51c   :  { %6638 = vrot.lane.b32.xlu0 %v12313_v25, %s8957_s29 }
 0x51d   :  { %6402 = vrot.lane.b32.xlu1 %v12313_v25, %s8954_s21 }
 0x51e   :  { %v6315_v19 = vpop.permute.xlu0 %6314  ;;  %v6551_v4 = vpop.permute.xlu1 %6550 }
 0x51f   :  { %v7069_v44 = vsel %vm3228_vm4, %v7005_v20, %v6551_v4  ;;  %v12840_v20 = vld [vmem:[#allocation3 + $0x120] sm:$0xff]  }
 0x520   :  { %6240 = vrot.lane.b32.xlu0 %v12340_v56, %s8952_s19 }
 0x521   :  { %6476 = vrot.lane.b32.xlu1 %v12340_v56, %s8955_s28  ;;  %v6687_v56 = vsel %vm2838_vm12, %v12225_v12, %v12385_v13 }
 0x522   :  { %v6385_v25 = vpop.permute.xlu0 %6384  ;;  %v6621_v55 = vpop.permute.xlu1 %6620  ;;  %v6751_v57 = vsel %vm2903_vm13, %v6687_v56, %v12519_v16  ;;  %v14411_v56 = vld [vmem:[#allocation113_spill] sm:$0xff] }
 0x523   :  { %v7133_v31 = vsel %vm3293_vm6, %v7069_v44, %v6621_v55  ;;  %v6815_v61 = vsel %vm2968_vm14, %v6751_v57, %v6221_v3  ;;  %v6100_v55 = vrot.slane %v12840_v20, 1 }
 0x524   :  { %6334 = vrot.lane.b32.xlu0 %v11978_v29, %s8953_s20  ;;  %8518 = vmatmul.mubr.msk.bf16.gmra.mrb[12].mxu1 %vm3373_vm11, %v7133_v31  ;;  %v6879_v24 = vsel %vm3033_vm15, %v6815_v61, %v6315_v19  ;;  %v8858_v31 = vld [vmem:[#allocation3 + $0x128] ss:$0 sps:$4 sm:$0x11]  }
 0x525   :  { %6570 = vrot.lane.b32.xlu1 %v11978_v29, %s8956_s1  ;;  %v6943_v15 = vsel %vm3098_vm1, %v6879_v24, %v6385_v25  ;;  %v14413_v61 = vld [vmem:[#allocation39_spill] sm:$0xff] }
 0x526   :  { %v6459_v62 = vpop.permute.xlu0 %6458  ;;  %v6223_v53 = vpop.permute.xlu1 %6222 }
 0x527   :  { %v7007_v12 = vsel %vm3163_vm2, %v6943_v15, %v6459_v62  ;;  %v6817_v50 = vsel %vm2968_vm14, %v6753_v22, %v6223_v53  ;;  %v6101_v62 = vrot.slane %v8858_v31, 1  ;;  %v14410_v53 = vld [vmem:[#allocation59_spill] sm:$0xff] }
 0x528   :  { %6404 = vrot.lane.b32.xlu0 %v14405_v30, %s8954_s21 }
 0x529   :  { %6640 = vrot.lane.b32.xlu1 %v14405_v30, %s8957_s29  ;;  %v14412_v30 = vld [vmem:[#allocation51_spill] sm:$0xff]  ;;  %v6102_v15 = vsel %vm2201_vm10, %v6100_v55, %v6101_v62 }
 0x52a   :  { %v6553_v29 = vpop.permute.xlu0 %6552  ;;  %v6317_v21 = vpop.permute.xlu1 %6316  ;;  %v6693_v57 = vsel %vm2838_vm12, %v14412_v30, %v14411_v56 }
 0x52b   :  { %v7071_v13 = vsel %vm3228_vm4, %v7007_v12, %v6553_v29  ;;  %v6881_v1 = vsel %vm3033_vm15, %v6817_v50, %v6317_v21  ;;  %v6757_v29 = vsel %vm2903_vm13, %v6693_v57, %v14413_v61  ;;  %v4189_v57 = vld [vmem:[#allocation3 + $0x1ac] sm:$0x1] }
 0x52c   :  { %6478 = vrot.lane.b32.xlu0 %v12783_v26, %s8955_s28 }
 0x52d   :  { %6242 = vrot.lane.b32.xlu1 %v12783_v26, %s8952_s19 }
 0x52e   :  { %v6623_v16 = vpop.permute.xlu0 %6622  ;;  %v6387_v23 = vpop.permute.xlu1 %6386 }
 0x52f   :  { %v7135_v43 = vsel %vm3293_vm6, %v7071_v13, %v6623_v16  ;;  %v6945_v17 = vsel %vm3098_vm1, %v6881_v1, %v6387_v23 }
 0x530   :  { %6572 = vrot.lane.b32.xlu0 %v14406_v32, %s8956_s1  ;;  %8521 = vmatprep.mubr.msk.bf16.mxu1 %vm3373_vm11, %v7135_v43 }
 0x531   :  { %6336 = vrot.lane.b32.xlu1 %v14406_v32, %s8953_s20  ;;  %v12867_v32 = vld [vmem:[#allocation3 + $0x12c] sm:$0xff]  }
 0x532   :  { %v6225_v36 = vpop.permute.xlu0 %6224  ;;  %v6461_v45 = vpop.permute.xlu1 %6460  ;;  %v6103_v22 = vrot.slane %v12867_v32, 1 }
 0x533   :  { %v7009_v52 = vsel %vm3163_vm2, %v6945_v17, %v6461_v45  ;;  %v6819_v3 = vsel %vm2968_vm14, %v6755_v59, %v6225_v36  ;;  %v14414_v45 = vld [vmem:[#allocation29_spill] sm:$0xff]  ;;  %v14416_v17 = vld [vmem:[#allocation107_spill] sm:$0xff]  ;;  %v14418_v59 = vld [vmem:[#allocation34_spill] sm:$0xff] }
 0x534   :  { %6642 = vrot.lane.b32.xlu0 %v6096_v38, %s8957_s29  ;;  %v6695_v8 = vsel %vm2838_vm12, %v12257_v37, %v14414_v45 }
 0x535   :  { %6406 = vrot.lane.b32.xlu1 %v6096_v38, %s8954_s21 }
 0x536   :  { %v6319_v33 = vpop.permute.xlu0 %6318  ;;  %v6555_v18 = vpop.permute.xlu1 %6554 }
 0x537   :  { %v7073_v48 = vsel %vm3228_vm4, %v7009_v52, %v6555_v18  ;;  %v6883_v11 = vsel %vm3033_vm15, %v6819_v3, %v6319_v33  ;;  %v8860_v33 = vld [vmem:[#allocation3 + $0x134] ss:$0 sps:$4 sm:$0x11]   ;;  %v14415_v18 = vld [vmem:[#allocation67_spill] sm:$0xff] }
 0x538   :  { %6170 = vrot.lane.b32.xlu0 %v6096_v38, %s8951_s9  ;;  %v6104_v50 = vrot.slane %v8860_v33, 1  ;;  %v6759_v1 = vsel %vm2903_vm13, %v6695_v8, %v14415_v18  ;;  %v8865_v8 = vld [vmem:[#allocation3 + $0x14c] ss:$0 sps:$4 sm:$0x11]  }
 0x539   :  { %6480 = vrot.lane.b32.xlu1 %v12810_v34, %s8955_s28 }
 0x53a   :  { %v6389_v6 = vpop.permute.xlu0 %6388  ;;  %v6625_v27 = vpop.permute.xlu1 %6624 }
 0x53b   :  { %v7137_v49 = vsel %vm3293_vm6, %v7073_v48, %v6625_v27  ;;  %v6947_v19 = vsel %vm3098_vm1, %v6883_v11, %v6389_v6 }
 0x53c   :  { %6244 = vrot.lane.b32.xlu0 %v12810_v34, %s8952_s19  ;;  %8522 = vmatmul.mubr.msk.bf16.gmra.mrb[16].mxu1 %vm3373_vm11, %v7137_v49  ;;  %v6105_v49 = vsel %vm2201_vm10, %v6103_v22, %v6104_v50  ;;  %v6110_v22 = vrot.slane %v8865_v8, 1  ;;  %v14424_v50 = vld [vmem:[#allocation88_spill] sm:$0xff]  ;;  %v14431_v8 = vld [vmem:[#allocation65_spill] sm:$0xff] }
 0x53d   :  { %6574 = vrot.lane.b32.xlu1 %v14407_v47, %s8956_s1 }
 0x53e   :  { %v6463_v5 = vpop.permute.xlu0 %6462  ;;  %v6227_v28 = vpop.permute.xlu1 %6226 }
 0x53f   :  { %v7011_v41 = vsel %vm3163_vm2, %v6947_v19, %v6463_v5  ;;  %v6821_v21 = vsel %vm2968_vm14, %v6757_v29, %v6227_v28  ;;  %v6106_v19 = vrot.slane %v12895_v42, 1  ;;  %v4190_v29 = vsel %vm9021_vm5, 0, %v4189_v57 }
 0x540   :  { %6338 = vrot.lane.b32.xlu0 %v14407_v47, %s8953_s20  ;;  %4191 = vst [vmem:[#allocation3 + $0x1ac] sm:$0x1] %v4190_v29 }
 0x541   :  { %6644 = vrot.lane.b32.xlu1 %v6099_v51, %s8957_s29 }
 0x542   :  { %v6557_v46 = vpop.permute.xlu0 %6556 }
 0x543   :  { %v6321_v2 = vpop.permute.xlu1 %6320  ;;  %v7075_v0 = vsel %vm3228_vm4, %v7011_v41, %v6557_v46  ;;  %v8862_v41 = vld [vmem:[#allocation3 + $0x140] ss:$0 sps:$4 sm:$0x11]  }
 0x544   :  { %6408 = vrot.lane.b32.xlu0 %v6099_v51, %s8954_s21  ;;  %v6885_v13 = vsel %vm3033_vm15, %v6821_v21, %v6321_v2 }
 0x545   :  { %6172 = vrot.lane.b32.xlu1 %v6099_v51, %s8951_s9  ;;  %v14417_v51 = vld [vmem:[#allocation54_spill] sm:$0xff] }
 0x546   :  { %v6627_v4 = vpop.permute.xlu0 %6626  ;;  %v6697_v40 = vsel %vm2838_vm12, %v12307_v54, %v14417_v51  ;;  %v12958_v51 = vld [vmem:[#allocation3 + $0x150] sm:$0xff]  }
 0x547   :  { %v7139_v7 = vsel %vm3293_vm6, %v7075_v0, %v6627_v4  ;;  %v6391_v9 = vpop.permute.xlu1 %6390  ;;  %v6761_v3 = vsel %vm2903_vm13, %v6697_v40, %v14418_v59  ;;  %v6107_v0 = vrot.slane %v8862_v41, 1 }
 0x548   :  { %6482 = vrot.lane.b32.xlu0 %v12840_v20, %s8955_s28  ;;  %8525 = vmatprep.mubr.msk.bf16.mxu1 %vm3373_vm11, %v7139_v7  ;;  %v6949_v16 = vsel %vm3098_vm1, %v6885_v13, %v6391_v9  ;;  %v14419_v7 = vld [vmem:[#allocation91_spill] sm:$0xff]  ;;  %v4081_v9 = vld [vmem:[#allocation3 + $0x1a4] sm:$0x1] }
 0x549   :  { %6246 = vrot.lane.b32.xlu1 %v12840_v20, %s8952_s19  ;;  %v4082_v31 = vsel %vm8988_vm3, 0, %v4081_v9 }
 0x54a   :  { %v6229_v25 = vpop.permute.xlu0 %6228  ;;  %4083 = vst [vmem:[#allocation3 + $0x1a4] sm:$0x1] %v4082_v31  ;;  %v14429_v31 = vld [vmem:[#allocation9_spill] sm:$0xff] }
 0x54b   :  { %v6465_v44 = vpop.permute.xlu1 %6464  ;;  %v6823_v52 = vsel %vm2968_vm14, %v6759_v1, %v6229_v25 }
 0x54c   :  { %6576 = vrot.lane.b32.xlu0 %v14410_v53, %s8956_s1  ;;  %v7013_v43 = vsel %vm3163_vm2, %v6949_v16, %v6465_v44  ;;  %v14423_v16 = vld [vmem:[#allocation61_spill] sm:$0xff] }
 0x54d   :  { %6340 = vrot.lane.b32.xlu1 %v14410_v53, %s8953_s20  ;;  %v6108_v53 = vsel %vm2201_vm10, %v6106_v19, %v6107_v0  ;;  %v8868_v19 = vld [vmem:[#allocation3 + $0x158] ss:$0 sps:$4 sm:$0x11]   ;;  %v14427_v0 = vld [vmem:[#allocation27_spill] sm:$0xff] }
 0x54e   :  { %v6323_v24 = vpop.permute.xlu0 %6322  ;;  %v6113_v41 = vrot.slane %v8868_v19, 1 }
 0x54f   :  { %v6559_v12 = vpop.permute.xlu1 %6558  ;;  %v6887_v48 = vsel %vm3033_vm15, %v6823_v52, %v6323_v24 }
 0x550   :  { %6646 = vrot.lane.b32.xlu0 %v6102_v15, %s8957_s29  ;;  %v7077_v63 = vsel %vm3228_vm4, %v7013_v43, %v6559_v12  ;;  %v14422_v12 = vld [vmem:[#allocation53_spill] sm:$0xff] }
 0x551   :  { %6410 = vrot.lane.b32.xlu1 %v6102_v15, %s8954_s21 }
 0x552   :  { %v6393_v23 = vpop.permute.xlu0 %6392 }
 0x553   :  { %v6629_v39 = vpop.permute.xlu1 %6628  ;;  %v6951_v37 = vsel %vm3098_vm1, %v6887_v48, %v6393_v23  ;;  %v12930_v23 = vld [vmem:[#allocation3 + $0x144] sm:$0xff]  }
 0x554   :  { %6174 = vrot.lane.b32.xlu0 %v6102_v15, %s8951_s9  ;;  %v7141_v35 = vsel %vm3293_vm6, %v7077_v63, %v6629_v39  ;;  %v8863_v15 = vld [vmem:[#allocation3 + $0xa8] sm:$0xff]   ;;  %v6109_v45 = vrot.slane %v12930_v23, 1 }
 0x555   :  { %6484 = vrot.lane.b32.xlu1 %v12867_v32, %s8955_s28  ;;  %8526 = vmatmul.mubr.msk.bf16.gmra.mrb[20].mxu1 %vm3373_vm11, %v7141_v35  ;;  %v6699_v13 = vsel %vm2838_vm12, %v8863_v15, %v14422_v12 }
 0x556   :  { %v6467_v36 = vpop.permute.xlu0 %6466  ;;  %v6763_v43 = vsel %vm2903_vm13, %v6699_v13, %v14423_v16 }
 0x557   :  { %v6231_v38 = vpop.permute.xlu1 %6230  ;;  %v7015_v58 = vsel %vm3163_vm2, %v6951_v37, %v6467_v36  ;;  %v8866_v37 = vld [vmem:[#allocation3 + $0xb4] sm:$0xff]  }
 0x558   :  { %6248 = vrot.lane.b32.xlu0 %v12867_v32, %s8952_s19  ;;  %v6825_v11 = vsel %vm2968_vm14, %v6761_v3, %v6231_v38 }
 0x559   :  { %6578 = vrot.lane.b32.xlu1 %v14416_v17, %s8956_s1 }
 0x55a   :  { %v6561_v6 = vpop.permute.xlu0 %6560 }
 0x55b   :  { %v6325_v27 = vpop.permute.xlu1 %6324  ;;  %v7079_v10 = vsel %vm3228_vm4, %v7015_v58, %v6561_v6  ;;  %v6111_v6 = vsel %vm2201_vm10, %v6109_v45, %v6110_v22  ;;  %v8872_v45 = vld [vmem:[#allocation3 + $0xe4] sm:$0xff]  }
 0x55c   :  { %6342 = vrot.lane.b32.xlu0 %v14416_v17, %s8953_s20  ;;  %v6889_v4 = vsel %vm3033_vm15, %v6825_v11, %v6325_v27  ;;  %v6705_v22 = vsel %vm2838_vm12, %v8872_v45, %v14431_v8 }
 0x55d   :  { %6648 = vrot.lane.b32.xlu1 %v6105_v49, %s8957_s29 }
 0x55e   :  { %v6631_v60 = vpop.permute.xlu0 %6630 }
 0x55f   :  { %v7143_v47 = vsel %vm3293_vm6, %v7079_v10, %v6631_v60  ;;  %v6395_v5 = vpop.permute.xlu1 %6394  ;;  %v14426_v10 = vld [vmem:[#allocation63_spill] sm:$0xff] }
 0x560   :  { %6412 = vrot.lane.b32.xlu0 %v6105_v49, %s8954_s21  ;;  %8529 = vmatprep.mubr.msk.bf16.mxu1 %vm3373_vm11, %v7143_v47  ;;  %v6953_v54 = vsel %vm3098_vm1, %v6889_v4, %v6395_v5 }
 0x561   :  { %6176 = vrot.lane.b32.xlu1 %v6105_v49, %s8951_s9  ;;  %v14425_v49 = vld [vmem:[#allocation112_spill] sm:$0xff] }
 0x562   :  { %v6233_v28 = vpop.permute.xlu0 %6232  ;;  %v6701_v58 = vsel %vm2838_vm12, %v8866_v37, %v14425_v49 }
 0x563   :  { %v6469_v14 = vpop.permute.xlu1 %6468  ;;  %v6827_v63 = vsel %vm2968_vm14, %v6763_v43, %v6233_v28  ;;  %v6765_v60 = vsel %vm2903_vm13, %v6701_v58, %v14426_v10  ;;  %v8871_v43 = vld [vmem:[#allocation3 + $0x164] ss:$0 sps:$4 sm:$0x11]   ;;  %v13013_v58 = vld [vmem:[#allocation3 + $0x168] sm:$0xff]  }
 0x564   :  { %6486 = vrot.lane.b32.xlu0 %v12895_v42, %s8955_s28  ;;  %v7017_v25 = vsel %vm3163_vm2, %v6953_v54, %v6469_v14 }
 0x565   :  { %6250 = vrot.lane.b32.xlu1 %v12895_v42, %s8952_s19 }
 0x566   :  { %v6327_v46 = vpop.permute.xlu0 %6326 }
 0x567   :  { %v6563_v2 = vpop.permute.xlu1 %6562  ;;  %v6891_v35 = vsel %vm3033_vm15, %v6827_v63, %v6327_v46  ;;  %v6116_v63 = vrot.slane %v8871_v43, 1 }
 0x568   :  { %6580 = vrot.lane.b32.xlu0 %v14419_v7, %s8956_s1  ;;  %v7081_v62 = vsel %vm3228_vm4, %v7017_v25, %v6563_v2  ;;  %v6112_v2 = vrot.slane %v12958_v51, 1  ;;  %v8869_v25 = vld [vmem:[#allocation3 + $0xd8] sm:$0xff]  }
 0x569   :  { %6344 = vrot.lane.b32.xlu1 %v14419_v7, %s8953_s20 }
 0x56a   :  { %v6397_v44 = vpop.permute.xlu0 %6396  ;;  %v6114_v54 = vsel %vm2201_vm10, %v6112_v2, %v6113_v41 }
 0x56b   :  { %v6633_v56 = vpop.permute.xlu1 %6632  ;;  %v6955_v38 = vsel %vm3098_vm1, %v6891_v35, %v6397_v44  ;;  %v14428_v44 = vld [vmem:[#allocation96_spill] sm:$0xff] }
 0x56c   :  { %6650 = vrot.lane.b32.xlu0 %v6108_v53, %s8957_s29  ;;  %v7145_v30 = vsel %vm3293_vm6, %v7081_v62, %v6633_v56  ;;  %v6703_v55 = vsel %vm2838_vm12, %v8869_v25, %v14428_v44 }
 0x56d   :  { %6414 = vrot.lane.b32.xlu1 %v6108_v53, %s8954_s21  ;;  %8530 = vmatmul.mubr.msk.bf16.gmra.mrb[24].mxu1 %vm3373_vm11, %v7145_v30  ;;  %v6767_v62 = vsel %vm2903_vm13, %v6703_v55, %v14429_v31 }
 0x56e   :  { %v6471_v24 = vpop.permute.xlu0 %6470 }
 0x56f   :  { %v6235_v21 = vpop.permute.xlu1 %6234  ;;  %v7019_v33 = vsel %vm3163_vm2, %v6955_v38, %v6471_v24  ;;  %v12986_v24 = vld [vmem:[#allocation3 + $0x15c] sm:$0xff]  }
 0x570   :  { %6178 = vrot.lane.b32.xlu0 %v6108_v53, %s8951_s9  ;;  %v6829_v5 = vsel %vm2968_vm14, %v6765_v60, %v6235_v21  ;;  %v6115_v16 = vrot.slane %v12986_v24, 1 }
 0x571   :  { %6488 = vrot.lane.b32.xlu1 %v12930_v23, %s8955_s28 }
 0x572   :  { %v6565_v39 = vpop.permute.xlu0 %6564  ;;  %v6117_v38 = vsel %vm2201_vm10, %v6115_v16, %v6116_v63  ;;  %v13059_v63 = vld [vmem:[%s13862_s3 + $0x2] ss:$0 sm:$0xff] }
 0x573   :  { %v6329_v36 = vpop.permute.xlu1 %6328  ;;  %v7083_v18 = vsel %vm3228_vm4, %v7019_v33, %v6565_v39  ;;  %v14430_v39 = vld [vmem:[#allocation94_spill] sm:$0xff]  ;;  %v14432_v33 = vld [vmem:[#allocation8_spill] sm:$0xff] }
 0x574   :  { %6252 = vrot.lane.b32.xlu0 %v12930_v23, %s8952_s19  ;;  %v6893_v14 = vsel %vm3033_vm15, %v6829_v5, %v6329_v36  ;;  %v6118_v5 = vrot.slane %v13013_v58, 1 }
 0x575   :  { %6582 = vrot.lane.b32.xlu1 %v14424_v50, %s8956_s1 }
 0x576   :  { %v6635_v1 = vpop.permute.xlu0 %6634 }
 0x577   :  { %v7147_v17 = vsel %vm3293_vm6, %v7083_v18, %v6635_v1  ;;  %v6399_v52 = vpop.permute.xlu1 %6398 }
 0x578   :  { %6346 = vrot.lane.b32.xlu0 %v14424_v50, %s8953_s20  ;;  %8533 = vmatprep.mubr.msk.bf16.mxu1 %vm3373_vm11, %v7147_v17  ;;  %v6957_v40 = vsel %vm3098_vm1, %v6893_v14, %v6399_v52  ;;  %v6769_v50 = vsel %vm2903_vm13, %v6705_v22, %v14432_v33 }
 0x579   :  { %6652 = vrot.lane.b32.xlu1 %v6111_v6, %s8957_s29 }
 0x57a   :  { %v6237_v48 = vpop.permute.xlu0 %6236 }
 0x57b   :  { %v6473_v27 = vpop.permute.xlu1 %6472  ;;  %v6831_v53 = vsel %vm2968_vm14, %v6767_v62, %v6237_v48  ;;  %v13041_v62 = vld [vmem:[#allocation3 + $0x174] sm:$0xff]  }
 0x57c   :  { %6416 = vrot.lane.b32.xlu0 %v6111_v6, %s8954_s21  ;;  %v7021_v59 = vsel %vm3163_vm2, %v6957_v40, %v6473_v27  ;;  %v8875_v40 = vld [vmem:[#allocation3 + $0xf0] sm:$0xff]  }
 0x57d   :  { %6180 = vrot.lane.b32.xlu1 %v6111_v6, %s8951_s9 }
 0x57e   :  { %v6331_v47 = vpop.permute.xlu0 %6330 }
 0x57f   :  { %v6567_v28 = vpop.permute.xlu1 %6566  ;;  %v6895_v30 = vsel %vm3033_vm15, %v6831_v53, %v6331_v47 }
 0x580   :  { %6490 = vrot.lane.b32.xlu0 %v12958_v51, %s8955_s28  ;;  %v7085_v46 = vsel %vm3228_vm4, %v7021_v59, %v6567_v28  ;;  %v8874_v28 = vld [vmem:[#allocation3 + $0x170] ss:$0 sps:$4 sm:$0x11]   ;;  %v14433_v59 = vld [vmem:[#allocation30_spill] sm:$0xff] }
 0x581   :  { %6254 = vrot.lane.b32.xlu1 %v12958_v51, %s8952_s19  ;;  %v6119_v14 = vrot.slane %v8874_v28, 1 }
 0x582   :  { %v6401_v3 = vpop.permute.xlu0 %6400 }
 0x583   :  { %v6637_v11 = vpop.permute.xlu1 %6636  ;;  %v6959_v61 = vsel %vm3098_vm1, %v6895_v30, %v6401_v3  ;;  %v6707_v3 = vsel %vm2838_vm12, %v8875_v40, %v14433_v59  ;;  %v6121_v30 = vrot.slane %v13041_v62, 1  ;;  %v8880_v40 = vld [vmem:[%s13860_s0] sm:$0xff] }
 0x584   :  { %6584 = vrot.lane.b32.xlu0 %v14427_v0, %s8956_s1  ;;  %v7149_v4 = vsel %vm3293_vm6, %v7085_v46, %v6637_v11  ;;  %v14434_v46 = vld [vmem:[#allocation52_spill] sm:$0xff]  ;;  %v14435_v11 = vld [vmem:[#allocation66_spill] sm:$0xff] }
 0x585   :  { %6348 = vrot.lane.b32.xlu1 %v14427_v0, %s8953_s20  ;;  %8534 = vmatmul.mubr.msk.bf16.gmra.mrb[28].mxu1 %vm3373_vm11, %v7149_v4  ;;  %v6771_v2 = vsel %vm2903_vm13, %v6707_v3, %v14435_v11  ;;  %v6120_v4 = vsel %vm2201_vm10, %v6118_v5, %v6119_v14  ;;  %v8879_v5 = vld [vmem:[%s13860_s0 + $0x10] sm:$0xff] }
 0x586   :  { %v6475_v7 = vpop.permute.xlu0 %6474 }
 0x587   :  { %v6239_v9 = vpop.permute.xlu1 %6238  ;;  %v7023_v29 = vsel %vm3163_vm2, %v6959_v61, %v6475_v7 }
 0x588   :  { %6654 = vrot.lane.b32.xlu0 %v6114_v54, %s8957_s29  ;;  %v6833_v1 = vsel %vm2968_vm14, %v6769_v50, %v6239_v9 }
 0x589   :  { %6418 = vrot.lane.b32.xlu1 %v6114_v54, %s8954_s21 }
 0x58a   :  { %v6569_v56 = vpop.permute.xlu0 %6568 }
 0x58b   :  { %v6333_v57 = vpop.permute.xlu1 %6332  ;;  %v7087_v21 = vsel %vm3228_vm4, %v7023_v29, %v6569_v56  ;;  %v8878_v29 = vld [vmem:[#allocation3 + $0xfc] sm:$0xff]  }
 0x58c   :  { %6182 = vrot.lane.b32.xlu0 %v6114_v54, %s8951_s9  ;;  %v6897_v52 = vsel %vm3033_vm15, %v6833_v1, %v6333_v57  ;;  %v8877_v57 = vld [vmem:[#allocation3 + $0x17c] ss:$0 sps:$4 sm:$0x11]  }
 0x58d   :  { %6492 = vrot.lane.b32.xlu1 %v12986_v24, %s8955_s28  ;;  %v6122_v61 = vrot.slane %v8877_v57, 1  ;;  %v14439_v57 = vld [vmem:[#allocation95_spill] sm:$0xff] }
 0x58e   :  { %v6639_v15 = vpop.permute.xlu0 %6638 }
 0x58f   :  { %v7151_v12 = vsel %vm3293_vm6, %v7087_v21, %v6639_v15  ;;  %v6403_v13 = vpop.permute.xlu1 %6402  ;;  %v14436_v21 = vld [vmem:[#allocation99_spill] sm:$0xff]  ;;  %v6123_v8 = vsel %vm2201_vm10, %v6121_v30, %v6122_v61  ;;  %v6711_v61 = vsel %vm2838_vm12, %v12783_v26, %v14439_v57 }
 0x590   :  { %6256 = vrot.lane.b32.xlu0 %v12986_v24, %s8952_s19  ;;  %8537 = vmatprep.mubr.msk.bf16.mxu1 %vm3373_vm11, %v7151_v12  ;;  %v6961_v6 = vsel %vm3098_vm1, %v6897_v52, %v6403_v13  ;;  %v6709_v15 = vsel %vm2838_vm12, %v8878_v29, %v14436_v21  ;;  %v14437_v12 = vld [vmem:[#allocation28_spill] sm:$0xff]  ;;  %v14438_v13 = vld [vmem:[#allocation38_spill] sm:$0xff]  ;;  %v14440_v29 = vld [vmem:[#allocation111_spill] sm:$0xff] }
 0x591   :  { %6586 = vrot.lane.b32.xlu1 %v14430_v39, %s8956_s1  ;;  %v6773_v16 = vsel %vm2903_vm13, %v6709_v15, %v14438_v13  ;;  %v8889_v57 = vld [vmem:[%s13860_s0 + $0x38] sm:$0xff] }
 0x592   :  { %v6241_v35 = vpop.permute.xlu0 %6240 }
 0x593   :  { %v6477_v36 = vpop.permute.xlu1 %6476  ;;  %v6835_v19 = vsel %vm2968_vm14, %v6771_v2, %v6241_v35  ;;  %v8881_v2 = vld [vmem:[%s13860_s0 + $0x18] sm:$0xff] }
 0x594   :  { %6350 = vrot.lane.b32.xlu0 %v14430_v39, %s8953_s20  ;;  %v7025_v48 = vsel %vm3163_vm2, %v6961_v6, %v6477_v36 }
 0x595   :  { %6656 = vrot.lane.b32.xlu1 %v6117_v38, %s8957_s29 }
 0x596   :  { %v6335_v18 = vpop.permute.xlu0 %6334 }
 0x597   :  { %v6571_v17 = vpop.permute.xlu1 %6570  ;;  %v6899_v0 = vsel %vm3033_vm15, %v6835_v19, %v6335_v18 }
 0x598   :  { %6420 = vrot.lane.b32.xlu0 %v6117_v38, %s8954_s21  ;;  %v7089_v37 = vsel %vm3228_vm4, %v7025_v48, %v6571_v17 }
 0x599   :  { %6184 = vrot.lane.b32.xlu1 %v6117_v38, %s8951_s9  ;;  %v13068_v38 = vld [vmem:[%s13862_s3 + $0x3] ss:$0 sm:$0xff] }
 0x59a   :  { %v6405_v27 = vpop.permute.xlu0 %6404 }
 0x59b   :  { %v6641_v49 = vpop.permute.xlu1 %6640  ;;  %v6963_v54 = vsel %vm3098_vm1, %v6899_v0, %v6405_v27 }
 0x59c   :  { %6494 = vrot.lane.b32.xlu0 %v13013_v58, %s8955_s28  ;;  %v7153_v10 = vsel %vm3293_vm6, %v7089_v37, %v6641_v49 }
 0x59d   :  { %6258 = vrot.lane.b32.xlu1 %v13013_v58, %s8952_s19  ;;  %8538 = vmatmul.mubr.msk.bf16.gmra.mrb[32].mxu1 %vm3373_vm11, %v7153_v10 }
 0x59e   :  { %v6479_v60 = vpop.permute.xlu0 %6478 }
 0x59f   :  { %v6243_v47 = vpop.permute.xlu1 %6242  ;;  %v7027_v9 = vsel %vm3163_vm2, %v6963_v54, %v6479_v60  ;;  %v13099_v54 = vld [vmem:[#allocation3 + $0x180] sm:$0xff]  }
 0x5a0   :  { %6588 = vrot.lane.b32.xlu0 %v14434_v46, %s8956_s1  ;;  %v6837_v39 = vsel %vm2968_vm14, %v6773_v16, %v6243_v47 }
 0x5a1   :  { %6352 = vrot.lane.b32.xlu1 %v14434_v46, %s8953_s20 }
 0x5a2   :  { %v6573_v41 = vpop.permute.xlu0 %6572 }
 0x5a3   :  { %v6337_v7 = vpop.permute.xlu1 %6336  ;;  %v7091_v25 = vsel %vm3228_vm4, %v7027_v9, %v6573_v41 }
 0x5a4   :  { %6658 = vrot.lane.b32.xlu0 %v6120_v4, %s8957_s29  ;;  %v6901_v36 = vsel %vm3033_vm15, %v6837_v39, %v6337_v7 }
 0x5a5   :  { %6422 = vrot.lane.b32.xlu1 %v6120_v4, %s8954_s21 }
 0x5a6   :  { %v6643_v44 = vpop.permute.xlu0 %6642 }
 0x5a7   :  { %v7155_v55 = vsel %vm3293_vm6, %v7091_v25, %v6643_v44  ;;  %v6407_v31 = vpop.permute.xlu1 %6406 }
 0x5a8   :  { %6186 = vrot.lane.b32.xlu0 %v6120_v4, %s8951_s9  ;;  %8541 = vmatprep.mubr.msk.bf16.mxu1 %vm3373_vm11, %v7155_v55  ;;  %v6965_v22 = vsel %vm3098_vm1, %v6901_v36, %v6407_v31  ;;  %v8882_v4 = vld [vmem:[%s13860_s0 + $0x8] sm:$0xff]  ;;  %v6124_v31 = vrot.slane %v13099_v54, 1 }
 0x5a9   :  { %6496 = vrot.lane.b32.xlu1 %v13041_v62, %s8955_s28 }
 0x5aa   :  { %v13045_v53 = vpop.permute.xlu0 %6170 }
 0x5ab   :  { %v6481_v56 = vpop.permute.xlu1 %6480  ;;  %v6775_v21 = vsel %vm2903_vm13, %v6711_v61, %v13045_v53 }
 0x5ac   :  { %6260 = vrot.lane.b32.xlu0 %v13041_v62, %s8952_s19  ;;  %v7029_v18 = vsel %vm3163_vm2, %v6965_v22, %v6481_v56  ;;  %v8884_v56 = vld [vmem:[#allocation3 + $0x188] ss:$0 sps:$4 sm:$0x11]  }
 0x5ad   :  { %6590 = vrot.lane.b32.xlu1 %v14437_v12, %s8956_s1  ;;  %v6125_v30 = vrot.slane %v8884_v56, 1 }
 0x5ae   :  { %v6245_v43 = vpop.permute.xlu0 %6244 }
 0x5af   :  { %v6575_v35 = vpop.permute.xlu1 %6574  ;;  %v8507_v45 = vpop.f32.mrb[0].mxu1  ;;  %v6839_v15 = vsel %vm2968_vm14, %v6775_v21, %v6245_v43  ;;  %v6126_v26 = vsel %vm2201_vm10, %v6124_v31, %v6125_v30 }
 0x5b0   :  { %6354 = vrot.lane.b32.xlu0 %v14437_v12, %s8953_s20  ;;  %v7559_v33 = vmul.f32 %v8507_v45, %v13059_v63  ;;  %v7298_v50 = vpop.f32.mrb[1].mxu1  ;;  %v7093_v6 = vsel %vm3228_vm4, %v7029_v18, %v6575_v35 }
 0x5b1   :  { %6660 = vrot.lane.b32.xlu1 %v6123_v8, %s8957_s29  ;;  %v7557_v17 = vmul.f32 %v13059_v63, %v7298_v50  ;;  %v8508_v52 = vpop.f32.mrb[2].mxu1  ;;  %v13148_v50 = vld [vmem:[#allocation3 + $0x198] sm:$0xff]  }
 0x5b2   :  { %v6339_v1 = vpop.permute.xlu0 %6338  ;;  %v7627_v48 = vadd.f32 %v13068_v38, %v7559_v33  ;;  %v7560_v27 = vmul.f32 %v8508_v52, %v13059_v63  ;;  %v7301_v49 = vpop.f32.mrb[3].mxu1 }
 0x5b3   :  { %v6645_v37 = vpop.permute.xlu1 %6644  ;;  %v7625_v10 = vadd.f32 %v13068_v38, %v7557_v17  ;;  %v7558_v47 = vmul.f32 %v13059_v63, %v7301_v49  ;;  %v6903_v13 = vsel %vm3033_vm15, %v6839_v15, %v6339_v1  ;;  %v8886_v17 = vld [vmem:[#allocation3 + $0x194] ss:$0 sps:$4 sm:$0x11]  }
 0x5b4   :  { %6424 = vrot.lane.b32.xlu0 %v6123_v8, %s8954_s21  ;;  %v7157_v60 = vsel %vm3293_vm6, %v7093_v6, %v6645_v37  ;;  %v7691_v28 = vadd.f32 %v8879_v5, %v7627_v48  ;;  %v7628_v14 = vadd.f32 %v13068_v38, %v7560_v27  ;;  %v6128_v52 = vrot.slane %v8886_v17, 1  ;;  %v14441_v6 = vld [vmem:[#allocation62_spill] sm:$0xff]  ;;  %v14442_v37 = vld [vmem:[#allocation87_spill] sm:$0xff] }
 0x5b5   :  { %6188 = vrot.lane.b32.xlu1 %v6123_v8, %s8951_s9  ;;  %8542 = vmatmul.mubr.msk.bf16.gmra.mrb[36].mxu1 %vm3373_vm11, %v7157_v60  ;;  %v7689_v59 = vadd.f32 %v8880_v40, %v7625_v10  ;;  %v7626_v46 = vadd.f32 %v13068_v38, %v7558_v47  ;;  %v13142_v8 = vld [vmem:[#allocation3 + $0x18c] sm:$0xff]   ;;  %v6713_v48 = vsel %vm2838_vm12, %v12810_v34, %v14441_v6 }
 0x5b6   :  { %v6409_v3 = vpop.permute.xlu0 %6408  ;;  %v7755_v11 = vmax.f32 %v7691_v28, 0.0  ;;  %v7692_v19 = vadd.f32 %v8881_v2, %v7628_v14  ;;  %v6127_v1 = vrot.slane %v13142_v8, 1 }
 0x5b7   :  { %v6173_v41 = vpop.permute.xlu1 %6172  ;;  %v7753_v0 = vmax.f32 %v7689_v59, 0.0  ;;  %v7690_v7 = vadd.f32 %v8882_v4, %v7626_v46  ;;  %v6967_v39 = vsel %vm3098_vm1, %v6903_v13, %v6409_v3  ;;  %v6289_v3 = vshll.u32 %v13148_v50, 16  ;;  %v8890_v13 = vld [vmem:[%s13860_s0 + $0x28] sm:$0xff] }
 0x5b8   :  { %6498 = vrot.lane.b32.xlu0 %v13099_v54, %s8955_s28  ;;  %7819 = vst.msk [vmem:[%s13864_s4 + $0x10] sm:$0xff] %vm2838_vm12, %v7755_v11  ;;  %v7756_v9 = vmax.f32 %v7692_v19, 0.0  ;;  %v6777_v10 = vsel %vm2903_vm13, %v6713_v48, %v6173_v41  ;;  %v6129_v19 = vsel %vm2201_vm10, %v6127_v1, %v6128_v52  ;;  %v8729_v52 = vld [vmem:[#allocation3 + $0x1ac] ss:$0 sps:$4 sm:$0x11]  }
 0x5b9   :  { %6262 = vrot.lane.b32.xlu1 %v13099_v54, %s8952_s19  ;;  %7817 = vst.msk [vmem:[%s13864_s4] sm:$0xff] %vm2838_vm12, %v7753_v0  ;;  %v7754_v25 = vmax.f32 %v7690_v7, 0.0  ;;  %v8887_v0 = vld [vmem:[%s13860_s0 + $0x30] sm:$0xff]  ;;  %v6291_v15 = vrot.slane %v6289_v3, 1 }
 0x5ba   :  { %v6483_v44 = vpop.permute.xlu0 %6482  ;;  %7820 = vst.msk [vmem:[%s13864_s4 + $0x18] sm:$0xff] %vm2838_vm12, %v7756_v9  ;;  %v8727_v9 = vld [vmem:[#allocation3 + $0x1a0] ss:$0 sps:$4 sm:$0x11]  }
 0x5bb   :  { %v6247_v55 = vpop.permute.xlu1 %6246  ;;  %7818 = vst.msk [vmem:[%s13864_s4 + $0x8] sm:$0xff] %vm2838_vm12, %v7754_v25  ;;  %v7031_v35 = vsel %vm3163_vm2, %v6967_v39, %v6483_v44  ;;  %v8888_v44 = vld [vmem:[%s13860_s0 + $0x20] sm:$0xff] }
 0x5bc   :  { %6592 = vrot.lane.b32.xlu0 %v14440_v29, %s8956_s1  ;;  %v6841_v28 = vsel %vm2968_vm14, %v6777_v10, %v6247_v55  ;;  %v14443_v10 = vld [vmem:[#allocation31_spill] sm:$0xff] }
 0x5bd   :  { %6356 = vrot.lane.b32.xlu1 %v14440_v29, %s8953_s20 }
 0x5be   :  { %v6577_v12 = vpop.permute.xlu0 %6576 }
 0x5bf   :  { %v6341_v16 = vpop.permute.xlu1 %6340  ;;  %v7095_v53 = vsel %vm3228_vm4, %v7031_v35, %v6577_v12  ;;  %v6287_v35 = vshrl.u32 %v13148_v50, 16 }
 0x5c0   :  { %6662 = vrot.lane.b32.xlu0 %v6126_v26, %s8957_s29  ;;  %v6905_v46 = vsel %vm3033_vm15, %v6841_v28, %v6341_v16 }
 0x5c1   :  { %6426 = vrot.lane.b32.xlu1 %v6126_v26, %s8954_s21 }
 0x5c2   :  { %v6647_v36 = vpop.permute.xlu0 %6646 }
 0x5c3   :  { %v7159_v45 = vsel %vm3293_vm6, %v7095_v53, %v6647_v36  ;;  %v6411_v43 = vpop.permute.xlu1 %6410  ;;  %v6294_v53 = vshll.u32 %v8727_v9, 16 }
 0x5c4   :  { %6190 = vrot.lane.b32.xlu0 %v6126_v26, %s8951_s9  ;;  %8545 = vmatprep.mubr.msk.bf16.mxu1 %vm3373_vm11, %v7159_v45  ;;  %v6969_v41 = vsel %vm3098_vm1, %v6905_v46, %v6411_v43  ;;  %v13204_v43 = vld [vmem:[#allocation3 + $0x1a4] sm:$0xff]  }
 0x5c5   :  { %6500 = vrot.lane.b32.xlu1 %v13142_v8, %s8955_s28  ;;  %v6296_v1 = vrot.slane %v6294_v53, 1  ;;  %v6527_v6 = vshll.u32 %v13204_v43, 16 }
 0x5c6   :  { %v13146_v22 = vpop.permute.xlu0 %6174 }
 0x5c7   :  { %v6485_v33 = vpop.permute.xlu1 %6484  ;;  %v8511_v18 = vpop.f32.mrb[4].mxu1 }
 0x5c8   :  { %6264 = vrot.lane.b32.xlu0 %v13142_v8, %s8952_s19  ;;  %v7563_v27 = vmul.f32 %v8511_v18, %v13059_v63  ;;  %v7314_v49 = vpop.f32.mrb[5].mxu1  ;;  %v7033_v25 = vsel %vm3163_vm2, %v6969_v41, %v6485_v33  ;;  %v6292_v18 = vor.u32 %v6291_v15, %v6287_v35 }
 0x5c9   :  { %6594 = vrot.lane.b32.xlu1 %v14442_v37, %s8956_s1  ;;  %v7561_v47 = vmul.f32 %v13059_v63, %v7314_v49  ;;  %v8512_v5 = vpop.f32.mrb[6].mxu1  ;;  %v6366_v49 = vrot.slane %v8727_v9, 1 }
 0x5ca   :  { %v13160_v60 = vpop.permute.xlu0 %6248  ;;  %v7631_v14 = vadd.f32 %v13068_v38, %v7563_v27  ;;  %v7564_v40 = vmul.f32 %v8512_v5, %v13059_v63  ;;  %v7317_v59 = vpop.f32.mrb[7].mxu1  ;;  %v6297_v48 = vsel %vm1752_vm9, %v6292_v18, %v6296_v1 }
 0x5cb   :  { %v6579_v34 = vpop.permute.xlu1 %6578  ;;  %v7629_v11 = vadd.f32 %v13068_v38, %v7561_v47  ;;  %v7562_v2 = vmul.f32 %v13059_v63, %v7317_v59  ;;  %v6715_v47 = vsel %vm2838_vm12, %v12840_v20, %v14443_v10 }
 0x5cc   :  { %6358 = vrot.lane.b32.xlu0 %v14442_v37, %s8953_s20  ;;  %v7695_v4 = vadd.f32 %v8887_v0, %v7631_v14  ;;  %v7632_v7 = vadd.f32 %v13068_v38, %v7564_v40  ;;  %v7097_v29 = vsel %vm3228_vm4, %v7033_v25, %v6579_v34  ;;  %v6365_v37 = vrot.slane %v13148_v50, 1 }
 0x5cd   :  { %6664 = vrot.lane.b32.xlu1 %v6129_v19, %s8957_s29  ;;  %v7693_v55 = vadd.f32 %v8888_v44, %v7629_v11  ;;  %v7630_v56 = vadd.f32 %v13068_v38, %v7562_v2  ;;  %v6779_v5 = vsel %vm2903_vm13, %v6715_v47, %v13146_v22  ;;  %v6525_v40 = vshrl.u32 %v13204_v43, 16 }
 0x5ce   :  { %v6343_v31 = vpop.permute.xlu0 %6342  ;;  %v7759_v30 = vmax.f32 %v7695_v4, 0.0  ;;  %v7696_v61 = vadd.f32 %v8889_v57, %v7632_v7  ;;  %v6843_v28 = vsel %vm2968_vm14, %v6779_v5, %v13160_v60  ;;  %v6529_v34 = vrot.slane %v6527_v6, 1 }
 0x5cf   :  { %v6649_v21 = vpop.permute.xlu1 %6648  ;;  %v7757_v12 = vmax.f32 %v7693_v55, 0.0  ;;  %v7694_v26 = vadd.f32 %v8890_v13, %v7630_v56  ;;  %v6907_v59 = vsel %vm3033_vm15, %v6843_v28, %v6343_v31  ;;  %v6367_v3 = vsel %vm2201_vm10, %v6365_v37, %v6366_v49  ;;  %v14444_v13 = vld [vmem:[#allocation32_spill] sm:$0xff]  ;;  %v8894_v49 = vld [vmem:[%s13860_s0 + $0x48] sm:$0xff] }
 0x5d0   :  { %6428 = vrot.lane.b32.xlu0 %v6129_v19, %s8954_s21  ;;  %v7161_v16 = vsel %vm3293_vm6, %v7097_v29, %v6649_v21  ;;  %7823 = vst.msk [vmem:[%s13864_s4 + $0x30] sm:$0xff] %vm2838_vm12, %v7759_v30  ;;  %v7760_v39 = vmax.f32 %v7696_v61, 0.0  ;;  %v6530_v2 = vor.u32 %v6529_v34, %v6525_v40  ;;  %v6603_v56 = vrot.slane %v13204_v43, 1 }
 0x5d1   :  { %6192 = vrot.lane.b32.xlu1 %v6129_v19, %s8951_s9  ;;  %8546 = vmatmul.mubr.msk.bf16.gmra.mrb[40].mxu1 %vm3373_vm11, %v7161_v16  ;;  %7821 = vst.msk [vmem:[%s13864_s4 + $0x20] sm:$0xff] %vm2838_vm12, %v7757_v12  ;;  %v7758_v36 = vmax.f32 %v7694_v26, 0.0  ;;  %v6604_v30 = vrot.slane %v8729_v52, 1  ;;  %v6717_v26 = vsel %vm2838_vm12, %v12867_v32, %v14444_v13  ;;  %v8891_v16 = vld [vmem:[%s13860_s0 + $0x50] sm:$0xff] }
 0x5d2   :  { %v6413_v45 = vpop.permute.xlu0 %6412  ;;  %7824 = vst.msk [vmem:[%s13864_s4 + $0x38] sm:$0xff] %vm2838_vm12, %v7760_v39  ;;  %v8895_v13 = vld [vmem:[%s13860_s0 + $0x70] sm:$0xff] }
 0x5d3   :  { %v6177_v33 = vpop.permute.xlu1 %6176  ;;  %7822 = vst.msk [vmem:[%s13864_s4 + $0x28] sm:$0xff] %vm2838_vm12, %v7758_v36  ;;  %v6971_v46 = vsel %vm3098_vm1, %v6907_v59, %v6413_v45  ;;  %v8892_v36 = vld [vmem:[%s13860_s0 + $0x40] sm:$0xff]  ;;  %v6605_v32 = vsel %vm2201_vm10, %v6603_v56, %v6604_v30 }
 0x5d4   :  { %6502 = vrot.lane.b32.xlu0 %v13148_v50, %s8955_s28  ;;  %v6781_v53 = vsel %vm2903_vm13, %v6717_v26, %v6177_v33 }
 0x5d5   :  { %6266 = vrot.lane.b32.xlu1 %v13148_v50, %s8952_s19  ;;  %v6532_v50 = vshll.u32 %v8729_v52, 16  ;;  %v8893_v52 = vld [vmem:[%s13860_s0 + $0x58] sm:$0xff] }
 0x5d6   :  { %v6487_v17 = vpop.permute.xlu0 %6486 }
 0x5d7   :  { %v6251_v27 = vpop.permute.xlu1 %6250  ;;  %v7035_v22 = vsel %vm3163_vm2, %v6971_v46, %v6487_v17  ;;  %v6534_v19 = vrot.slane %v6532_v50, 1 }
 0x5d8   :  { %6596 = vrot.lane.b32.xlu0 %v6297_v48, %s8956_s1  ;;  %v6845_v1 = vsel %vm2968_vm14, %v6781_v53, %v6251_v27 }
 0x5d9   :  { %6360 = vrot.lane.b32.xlu1 %v6297_v48, %s8953_s20  ;;  %v6535_v31 = vsel %vm1752_vm9, %v6530_v2, %v6534_v19 }
 0x5da   :  { %v6581_v14 = vpop.permute.xlu0 %6580 }
 0x5db   :  { %v6345_v20 = vpop.permute.xlu1 %6344  ;;  %v7099_v60 = vsel %vm3228_vm4, %v7035_v22, %v6581_v14  ;;  %v14445_v22 = vld [vmem:[#allocation57_spill] sm:$0xff] }
 0x5dc   :  { %6666 = vrot.lane.b32.xlu0 %v6367_v3, %s8957_s29  ;;  %v6909_v33 = vsel %vm3033_vm15, %v6845_v1, %v6345_v20 }
 0x5dd   :  { %6430 = vrot.lane.b32.xlu1 %v6367_v3, %s8954_s21 }
 0x5de   :  { %v6651_v11 = vpop.permute.xlu0 %6650 }
 0x5df   :  { %v7163_v41 = vsel %vm3293_vm6, %v7099_v60, %v6651_v11  ;;  %v6415_v0 = vpop.permute.xlu1 %6414  ;;  %v8515_v4 = vpop.f32.mrb[8].mxu1  ;;  %v6719_v60 = vsel %vm2838_vm12, %v12895_v42, %v14445_v22  ;;  %v14447_v22 = vld [vmem:[#allocation116_spill] sm:$0xff] }
 0x5e0   :  { %8549 = vmatprep.mubr.msk.bf16.mxu1 %vm3373_vm11, %v7163_v41  ;;  %v7567_v7 = vmul.f32 %v8515_v4, %v13059_v63  ;;  %v7330_v9 = vpop.f32.mrb[9].mxu1  ;;  %v6973_v47 = vsel %vm3098_vm1, %v6909_v33, %v6415_v0 }
 0x5e1   :  { %6504 = vrot.lane.b32.xlu1 %v13204_v43, %s8955_s28  ;;  %v7565_v44 = vmul.f32 %v13059_v63, %v7330_v9  ;;  %v8516_v55 = vpop.f32.mrb[10].mxu1 }
 0x5e2   :  { %v6179_v25 = vpop.permute.xlu0 %6178  ;;  %v7635_v57 = vadd.f32 %v13068_v38, %v7567_v7  ;;  %v7568_v61 = vmul.f32 %v8516_v55, %v13059_v63  ;;  %v7333_v21 = vpop.f32.mrb[11].mxu1 }
 0x5e3   :  { %v6489_v29 = vpop.permute.xlu1 %6488  ;;  %v7633_v15 = vadd.f32 %v13068_v38, %v7565_v44  ;;  %v7566_v12 = vmul.f32 %v13059_v63, %v7333_v21  ;;  %v6783_v11 = vsel %vm2903_vm13, %v6719_v60, %v6179_v25  ;;  %v6723_v60 = vsel %vm2838_vm12, %v12958_v51, %v14447_v22 }
 0x5e4   :  { %v7699_v39 = vadd.f32 %v8891_v16, %v7635_v57  ;;  %v7636_v35 = vadd.f32 %v13068_v38, %v7568_v61  ;;  %v7037_v5 = vsel %vm3163_vm2, %v6973_v47, %v6489_v29 }
 0x5e5   :  { %6598 = vrot.lane.b32.xlu1 %v6535_v31, %s8956_s1  ;;  %v7697_v45 = vadd.f32 %v8892_v36, %v7633_v15  ;;  %v7634_v18 = vadd.f32 %v13068_v38, %v7566_v12 }
 0x5e6   :  { %v6253_v43 = vpop.permute.xlu0 %6252  ;;  %v7763_v17 = vmax.f32 %v7699_v39, 0.0  ;;  %v7700_v6 = vadd.f32 %v8893_v52, %v7636_v35  ;;  %v8896_v39 = vld [vmem:[%s13860_s0 + $0x60] sm:$0xff] }
 0x5e7   :  { %v6583_v48 = vpop.permute.xlu1 %6582  ;;  %v7761_v37 = vmax.f32 %v7697_v45, 0.0  ;;  %v7698_v10 = vadd.f32 %v8894_v49, %v7634_v18  ;;  %v6847_v2 = vsel %vm2968_vm14, %v6783_v11, %v6253_v43  ;;  %v8897_v43 = vld [vmem:[%s13860_s0 + $0x78] sm:$0xff] }
 0x5e8   :  { %7827 = vst.msk [vmem:[%s13864_s4 + $0x50] sm:$0xff] %vm2838_vm12, %v7763_v17  ;;  %v7764_v27 = vmax.f32 %v7700_v6, 0.0  ;;  %v7101_v40 = vsel %vm3228_vm4, %v7037_v5, %v6583_v48  ;;  %v8898_v17 = vld [vmem:[%s13860_s0 + $0x68] sm:$0xff]  ;;  %v14446_v6 = vld [vmem:[#allocation114_spill] sm:$0xff] }
 0x5e9   :  { %6668 = vrot.lane.b32.xlu1 %v6605_v32, %s8957_s29  ;;  %7825 = vst.msk [vmem:[%s13864_s4 + $0x40] sm:$0xff] %vm2838_vm12, %v7761_v37  ;;  %v7762_v28 = vmax.f32 %v7698_v10, 0.0  ;;  %v6721_v48 = vsel %vm2838_vm12, %v12930_v23, %v14446_v6 }
 0x5ea   :  { %v6347_v14 = vpop.permute.xlu0 %6346  ;;  %7828 = vst.msk [vmem:[%s13864_s4 + $0x58] sm:$0xff] %vm2838_vm12, %v7764_v27 }
 0x5eb   :  { %v6653_v34 = vpop.permute.xlu1 %6652  ;;  %7826 = vst.msk [vmem:[%s13864_s4 + $0x48] sm:$0xff] %vm2838_vm12, %v7762_v28  ;;  %v6911_v41 = vsel %vm3033_vm15, %v6847_v2, %v6347_v14 }
 0x5ec   :  { %v7165_v50 = vsel %vm3293_vm6, %v7101_v40, %v6653_v34 }
 0x5ed   :  { %8550 = vmatmul.mubr.msk.bf16.gmra.mrb[44].mxu1 %vm3373_vm11, %v7165_v50 }
 0x5ee   :  { %v6417_v59 = vpop.permute.xlu0 %6416 }
 0x5ef   :  { %v6181_v3 = vpop.permute.xlu1 %6180  ;;  %v6975_v4 = vsel %vm3098_vm1, %v6911_v41, %v6417_v59 }
 0x5f0   :  { %v6785_v37 = vsel %vm2903_vm13, %v6721_v48, %v6181_v3  ;;  %v14448_v48 = vld [vmem:[#allocation60_spill] sm:$0xff] }
 0x5f2   :  { %v6491_v20 = vpop.permute.xlu0 %6490 }
 0x5f3   :  { %v6255_v46 = vpop.permute.xlu1 %6254  ;;  %v7039_v9 = vsel %vm3163_vm2, %v6975_v4, %v6491_v20 }
 0x5f4   :  { %v6849_v47 = vsel %vm2968_vm14, %v6785_v37, %v6255_v46 }
 0x5f6   :  { %v6585_v19 = vpop.permute.xlu0 %6584 }
 0x5f7   :  { %v6349_v0 = vpop.permute.xlu1 %6348  ;;  %v8519_v7 = vpop.f32.mrb[12].mxu1  ;;  %v7103_v31 = vsel %vm3228_vm4, %v7039_v9, %v6585_v19 }
 0x5f8   :  { %v7571_v44 = vmul.f32 %v8519_v7, %v13059_v63  ;;  %v7346_v55 = vpop.f32.mrb[13].mxu1  ;;  %v6913_v27 = vsel %vm3033_vm15, %v6849_v47, %v6349_v0 }
 0x5f9   :  { %v7569_v42 = vmul.f32 %v13059_v63, %v7346_v55  ;;  %v8520_v25 = vpop.f32.mrb[14].mxu1 }
 0x5fa   :  { %v6655_v56 = vpop.permute.xlu0 %6654  ;;  %v7639_v57 = vadd.f32 %v13068_v38, %v7571_v44  ;;  %v7572_v61 = vmul.f32 %v8520_v25, %v13059_v63  ;;  %v7349_v21 = vpop.f32.mrb[15].mxu1 }
 0x5fb   :  { %v7167_v30 = vsel %vm3293_vm6, %v7103_v31, %v6655_v56  ;;  %v6419_v29 = vpop.permute.xlu1 %6418  ;;  %v7637_v15 = vadd.f32 %v13068_v38, %v7569_v42  ;;  %v7570_v12 = vmul.f32 %v13059_v63, %v7349_v21 }
 0x5fc   :  { %8553 = vmatprep.mubr.msk.bf16.mxu1 %vm3373_vm11, %v7167_v30  ;;  %v7703_v26 = vadd.f32 %v8895_v13, %v7639_v57  ;;  %v7640_v16 = vadd.f32 %v13068_v38, %v7572_v61  ;;  %v6977_v5 = vsel %vm3098_vm1, %v6913_v27, %v6419_v29  ;;  %v8899_v61 = vld [vmem:[%s13860_s0 + $0x90] sm:$0xff] }
 0x5fd   :  { %v7701_v35 = vadd.f32 %v8896_v39, %v7637_v15  ;;  %v7638_v36 = vadd.f32 %v13068_v38, %v7570_v12  ;;  %v8900_v12 = vld [vmem:[%s13860_s0 + $0x80] sm:$0xff] }
 0x5fe   :  { %v6183_v53 = vpop.permute.xlu0 %6182  ;;  %v7767_v45 = vmax.f32 %v7703_v26, 0.0  ;;  %v7704_v18 = vadd.f32 %v8897_v43, %v7640_v16 }
 0x5ff   :  { %v6493_v32 = vpop.permute.xlu1 %6492  ;;  %v7765_v1 = vmax.f32 %v7701_v35, 0.0  ;;  %v7702_v52 = vadd.f32 %v8898_v17, %v7638_v36  ;;  %v6787_v2 = vsel %vm2903_vm13, %v6723_v60, %v6183_v53  ;;  %v8901_v35 = vld [vmem:[%s13860_s0 + $0x98] sm:$0xff] }
 0x600   :  { %7831 = vst.msk [vmem:[%s13864_s4 + $0x70] sm:$0xff] %vm2838_vm12, %v7767_v45  ;;  %v7768_v33 = vmax.f32 %v7704_v18, 0.0  ;;  %v7041_v28 = vsel %vm3163_vm2, %v6977_v5, %v6493_v32  ;;  %v8902_v18 = vld [vmem:[%s13860_s0 + $0x88] sm:$0xff] }
 0x601   :  { %7829 = vst.msk [vmem:[%s13864_s4 + $0x60] sm:$0xff] %vm2838_vm12, %v7765_v1  ;;  %v7766_v49 = vmax.f32 %v7702_v52, 0.0 }
 0x602   :  { %v6257_v10 = vpop.permute.xlu0 %6256  ;;  %7832 = vst.msk [vmem:[%s13864_s4 + $0x78] sm:$0xff] %vm2838_vm12, %v7768_v33  ;;  %v6725_v33 = vsel %vm2838_vm12, %v12986_v24, %v14448_v48 }
 0x603   :  { %v6587_v23 = vpop.permute.xlu1 %6586  ;;  %7830 = vst.msk [vmem:[%s13864_s4 + $0x68] sm:$0xff] %vm2838_vm12, %v7766_v49  ;;  %v6851_v0 = vsel %vm2968_vm14, %v6787_v2, %v6257_v10 }
 0x604   :  { %v7105_v40 = vsel %vm3228_vm4, %v7041_v28, %v6587_v23 }
 0x606   :  { %v6351_v14 = vpop.permute.xlu0 %6350 }
 0x607   :  { %v6657_v34 = vpop.permute.xlu1 %6656  ;;  %v6915_v44 = vsel %vm3033_vm15, %v6851_v0, %v6351_v14  ;;  %v14449_v0 = vld [vmem:[#allocation58_spill] sm:$0xff] }
 0x608   :  { %v7169_v50 = vsel %vm3293_vm6, %v7105_v40, %v6657_v34 }
 0x609   :  { %8554 = vmatmul.mubr.msk.bf16.gmra.mrb[48].mxu1 %vm3373_vm11, %v7169_v50 }
 0x60a   :  { %v6421_v59 = vpop.permute.xlu0 %6420 }
 0x60b   :  { %v6185_v3 = vpop.permute.xlu1 %6184  ;;  %v6979_v42 = vsel %vm3098_vm1, %v6915_v44, %v6421_v59 }
 0x60c   :  { %v6789_v37 = vsel %vm2903_vm13, %v6725_v33, %v6185_v3 }
 0x60e   :  { %v6495_v20 = vpop.permute.xlu0 %6494 }
 0x60f   :  { %v6259_v46 = vpop.permute.xlu1 %6258  ;;  %v8523_v11 = vpop.f32.mrb[16].mxu1  ;;  %v7043_v57 = vsel %vm3163_vm2, %v6979_v42, %v6495_v20  ;;  %v8904_v42 = vld [vmem:[%s13860_s0 + $0xa0] sm:$0xff] }
 0x610   :  { %v7575_v19 = vmul.f32 %v8523_v11, %v13059_v63  ;;  %v7362_v41 = vpop.f32.mrb[17].mxu1  ;;  %v6853_v10 = vsel %vm2968_vm14, %v6789_v37, %v6259_v46 }
 0x611   :  { %v7573_v7 = vmul.f32 %v13059_v63, %v7362_v41  ;;  %v8524_v9 = vpop.f32.mrb[18].mxu1 }
 0x612   :  { %v6589_v4 = vpop.permute.xlu0 %6588  ;;  %v7643_v55 = vadd.f32 %v13068_v38, %v7575_v19  ;;  %v7576_v31 = vmul.f32 %v8524_v9, %v13059_v63  ;;  %v7365_v51 = vpop.f32.mrb[19].mxu1 }
 0x613   :  { %v6353_v56 = vpop.permute.xlu1 %6352  ;;  %v7641_v25 = vadd.f32 %v13068_v38, %v7573_v7  ;;  %v7574_v30 = vmul.f32 %v13059_v63, %v7365_v51  ;;  %v7107_v15 = vsel %vm3228_vm4, %v7043_v57, %v6589_v4  ;;  %v6727_v4 = vsel %vm2838_vm12, %v13013_v58, %v14449_v0 }
 0x614   :  { %v7707_v29 = vadd.f32 %v8899_v61, %v7643_v55  ;;  %v7644_v21 = vadd.f32 %v13068_v38, %v7576_v31  ;;  %v6917_v23 = vsel %vm3033_vm15, %v6853_v10, %v6353_v56  ;;  %v8903_v55 = vld [vmem:[%s13860_s0 + $0xb0] sm:$0xff] }
 0x615   :  { %v7705_v13 = vadd.f32 %v8900_v12, %v7641_v25  ;;  %v7642_v16 = vadd.f32 %v13068_v38, %v7574_v30 }
 0x616   :  { %v6659_v26 = vpop.permute.xlu0 %6658  ;;  %v7771_v39 = vmax.f32 %v7707_v29, 0.0  ;;  %v7708_v53 = vadd.f32 %v8901_v35, %v7644_v21  ;;  %v8905_v29 = vld [vmem:[%s13860_s0 + $0xb8] sm:$0xff] }
 0x617   :  { %v7171_v36 = vsel %vm3293_vm6, %v7107_v15, %v6659_v26  ;;  %v6423_v45 = vpop.permute.xlu1 %6422  ;;  %v7769_v43 = vmax.f32 %v7705_v13, 0.0  ;;  %v7706_v32 = vadd.f32 %v8902_v18, %v7642_v16  ;;  %v8906_v26 = vld [vmem:[%s13860_s0 + $0xa8] sm:$0xff] }
 0x618   :  { %8557 = vmatprep.mubr.msk.bf16.mxu1 %vm3373_vm11, %v7171_v36  ;;  %7835 = vst.msk [vmem:[%s13864_s4 + $0x90] sm:$0xff] %vm2838_vm12, %v7771_v39  ;;  %v7772_v1 = vmax.f32 %v7708_v53, 0.0  ;;  %v6981_v27 = vsel %vm3098_vm1, %v6917_v23, %v6423_v45 }
 0x619   :  { %7833 = vst.msk [vmem:[%s13864_s4 + $0x80] sm:$0xff] %vm2838_vm12, %v7769_v43  ;;  %v7770_v17 = vmax.f32 %v7706_v32, 0.0 }
 0x61a   :  { %v6187_v52 = vpop.permute.xlu0 %6186  ;;  %7836 = vst.msk [vmem:[%s13864_s4 + $0x98] sm:$0xff] %vm2838_vm12, %v7772_v1 }
 0x61b   :  { %v6497_v6 = vpop.permute.xlu1 %6496  ;;  %7834 = vst.msk [vmem:[%s13864_s4 + $0x88] sm:$0xff] %vm2838_vm12, %v7770_v17  ;;  %v6791_v44 = vsel %vm2903_vm13, %v6727_v4, %v6187_v52  ;;  %v14450_v17 = vld [vmem:[#allocation33_spill] sm:$0xff] }
 0x61c   :  { %v7045_v5 = vsel %vm3163_vm2, %v6981_v27, %v6497_v6  ;;  %v6729_v52 = vsel %vm2838_vm12, %v13041_v62, %v14450_v17 }
 0x61e   :  { %v6261_v49 = vpop.permute.xlu0 %6260 }
 0x61f   :  { %v6591_v47 = vpop.permute.xlu1 %6590  ;;  %v6855_v51 = vsel %vm2968_vm14, %v6791_v44, %v6261_v49  ;;  %v8909_v44 = vld [vmem:[%s13860_s0 + $0xd8] sm:$0xff] }
 0x620   :  { %v7109_v14 = vsel %vm3228_vm4, %v7045_v5, %v6591_v47 }
 0x622   :  { %v6355_v28 = vpop.permute.xlu0 %6354 }
 0x623   :  { %v6661_v40 = vpop.permute.xlu1 %6660  ;;  %v6919_v57 = vsel %vm3033_vm15, %v6855_v51, %v6355_v28 }
 0x624   :  { %v7173_v34 = vsel %vm3293_vm6, %v7109_v14, %v6661_v40 }
 0x625   :  { %8558 = vmatmul.mubr.msk.bf16.gmra.mrb[52].mxu1 %vm3373_vm11, %v7173_v34 }
 0x626   :  { %v6425_v24 = vpop.permute.xlu0 %6424 }
 0x627   :  { %v6189_v50 = vpop.permute.xlu1 %6188  ;;  %v6983_v12 = vsel %vm3098_vm1, %v6919_v57, %v6425_v24 }
 0x628   :  { %v8527_v59 = vpop.f32.mrb[20].mxu1  ;;  %v6793_v6 = vsel %vm2903_vm13, %v6729_v52, %v6189_v50 }
 0x629   :  { %v7579_v3 = vmul.f32 %v8527_v59, %v13059_v63  ;;  %v7378_v20 = vpop.f32.mrb[21].mxu1 }
 0x62a   :  { %v6499_v46 = vpop.permute.xlu0 %6498  ;;  %v7577_v22 = vmul.f32 %v13059_v63, %v7378_v20  ;;  %v8528_v60 = vpop.f32.mrb[22].mxu1 }
 0x62b   :  { %v7647_v11 = vadd.f32 %v13068_v38, %v7579_v3  ;;  %v7580_v2 = vmul.f32 %v8528_v60, %v13059_v63  ;;  %v6263_v19 = vpop.permute.xlu1 %6262  ;;  %v7381_v41 = vpop.f32.mrb[23].mxu1  ;;  %v7047_v39 = vsel %vm3163_vm2, %v6983_v12, %v6499_v46 }
 0x62c   :  { %v7645_v7 = vadd.f32 %v13068_v38, %v7577_v22  ;;  %v7578_v9 = vmul.f32 %v13059_v63, %v7381_v41  ;;  %v6857_v33 = vsel %vm2968_vm14, %v6793_v6, %v6263_v19  ;;  %v8908_v41 = vld [vmem:[%s13860_s0 + $0xc0] sm:$0xff] }
 0x62d   :  { %v7711_v31 = vadd.f32 %v8903_v55, %v7647_v11  ;;  %v7648_v56 = vadd.f32 %v13068_v38, %v7580_v2  ;;  %v8907_v11 = vld [vmem:[%s13860_s0 + $0xd0] sm:$0xff] }
 0x62e   :  { %v7709_v58 = vadd.f32 %v8904_v42, %v7645_v7  ;;  %v6593_v25 = vpop.permute.xlu0 %6592  ;;  %v7646_v30 = vadd.f32 %v13068_v38, %v7578_v9 }
 0x62f   :  { %v7775_v61 = vmax.f32 %v7711_v31, 0.0  ;;  %v7712_v21 = vadd.f32 %v8905_v29, %v7648_v56  ;;  %v6357_v15 = vpop.permute.xlu1 %6356  ;;  %v7111_v53 = vsel %vm3228_vm4, %v7047_v39, %v6593_v25  ;;  %v14451_v56 = vld [vmem:[#allocation98_spill] sm:$0xff] }
 0x630   :  { %v7773_v13 = vmax.f32 %v7709_v58, 0.0  ;;  %v7710_v16 = vadd.f32 %v8906_v26, %v7646_v30  ;;  %v6921_v49 = vsel %vm3033_vm15, %v6857_v33, %v6357_v15  ;;  %v6731_v51 = vsel %vm2838_vm12, %v13099_v54, %v14451_v56  ;;  %v8910_v58 = vld [vmem:[%s13860_s0 + $0xc8] sm:$0xff] }
 0x631   :  { %7839 = vst.msk [vmem:[%s13864_s4 + $0xb0] sm:$0xff] %vm2838_vm12, %v7775_v61  ;;  %v7776_v35 = vmax.f32 %v7712_v21, 0.0 }
 0x632   :  { %7837 = vst.msk [vmem:[%s13864_s4 + $0xa0] sm:$0xff] %vm2838_vm12, %v7773_v13  ;;  %v7774_v36 = vmax.f32 %v7710_v16, 0.0  ;;  %v6663_v45 = vpop.permute.xlu0 %6662 }
 0x633   :  { %7840 = vst.msk [vmem:[%s13864_s4 + $0xb8] sm:$0xff] %vm2838_vm12, %v7776_v35  ;;  %v7175_v43 = vsel %vm3293_vm6, %v7111_v53, %v6663_v45  ;;  %v6427_v18 = vpop.permute.xlu1 %6426 }
 0x634   :  { %7838 = vst.msk [vmem:[%s13864_s4 + $0xa8] sm:$0xff] %vm2838_vm12, %v7774_v36  ;;  %8561 = vmatprep.mubr.msk.bf16.mxu1 %vm3373_vm11, %v7175_v43  ;;  %v6985_v10 = vsel %vm3098_vm1, %v6921_v49, %v6427_v18  ;;  %v14452_v36 = vld [vmem:[#allocation100_spill] sm:$0xff] }
 0x635   :  { %v6733_v45 = vsel %vm2838_vm12, %v13142_v8, %v14452_v36 }
 0x636   :  { %v6191_v32 = vpop.permute.xlu0 %6190 }
 0x637   :  { %v6501_v1 = vpop.permute.xlu1 %6500  ;;  %v6795_v30 = vsel %vm2903_vm13, %v6731_v51, %v6191_v32 }
 0x638   :  { %v7049_v47 = vsel %vm3163_vm2, %v6985_v10, %v6501_v1 }
 0x63a   :  { %v6265_v48 = vpop.permute.xlu0 %6264 }
 0x63b   :  { %v6595_v37 = vpop.permute.xlu1 %6594  ;;  %v6859_v61 = vsel %vm2968_vm14, %v6795_v30, %v6265_v48  ;;  %v8916_v30 = vld [vmem:[%s13860_s0 + $0x100] sm:$0xff] }
 0x63c   :  { %v7113_v27 = vsel %vm3228_vm4, %v7049_v47, %v6595_v37 }
 0x63e   :  { %v6359_v23 = vpop.permute.xlu0 %6358 }
 0x63f   :  { %v6665_v5 = vpop.permute.xlu1 %6664  ;;  %v6923_v21 = vsel %vm3033_vm15, %v6859_v61, %v6359_v23 }
 0x640   :  { %v7177_v28 = vsel %vm3293_vm6, %v7113_v27, %v6665_v5  ;;  %v8531_v14 = vpop.f32.mrb[24].mxu1 }
 0x641   :  { %v7583_v62 = vmul.f32 %v8531_v14, %v13059_v63  ;;  %v7394_v40 = vpop.f32.mrb[25].mxu1  ;;  %8562 = vmatmul.mubr.msk.bf16.gmra.mrb[56].mxu1 %vm3373_vm11, %v7177_v28 }
 0x642   :  { %v6429_v34 = vpop.permute.xlu0 %6428  ;;  %v7581_v24 = vmul.f32 %v13059_v63, %v7394_v40  ;;  %v8532_v50 = vpop.f32.mrb[26].mxu1 }
 0x643   :  { %v7651_v59 = vadd.f32 %v13068_v38, %v7583_v62  ;;  %v7584_v3 = vmul.f32 %v8532_v50, %v13059_v63  ;;  %v6193_v20 = vpop.permute.xlu1 %6192  ;;  %v7397_v46 = vpop.f32.mrb[27].mxu1  ;;  %v6987_v12 = vsel %vm3098_vm1, %v6923_v21, %v6429_v34  ;;  %v8911_v62 = vld [vmem:[%s13860_s0 + $0xf0] sm:$0xff] }
 0x644   :  { %v7649_v22 = vadd.f32 %v13068_v38, %v7581_v24  ;;  %v7582_v60 = vmul.f32 %v13059_v63, %v7397_v46  ;;  %v6797_v43 = vsel %vm2903_vm13, %v6733_v45, %v6193_v20  ;;  %v8912_v24 = vld [vmem:[%s13860_s0 + $0xe0] sm:$0xff]  ;;  %v8913_v20 = vld [vmem:[%s13860_s0 + $0xf8] sm:$0xff] }
 0x645   :  { %v7715_v2 = vadd.f32 %v8907_v11, %v7651_v59  ;;  %v7652_v19 = vadd.f32 %v13068_v38, %v7584_v3 }
 0x646   :  { %v7713_v0 = vadd.f32 %v8908_v41, %v7649_v22  ;;  %v6503_v4 = vpop.permute.xlu0 %6502  ;;  %v7650_v7 = vadd.f32 %v13068_v38, %v7582_v60  ;;  %v8914_v60 = vld [vmem:[%s13860_s0 + $0xe8] sm:$0xff] }
 0x647   :  { %v7779_v9 = vmax.f32 %v7715_v2, 0.0  ;;  %v7716_v55 = vadd.f32 %v8909_v44, %v7652_v19  ;;  %v6267_v31 = vpop.permute.xlu1 %6266  ;;  %v7051_v13 = vsel %vm3163_vm2, %v6987_v12, %v6503_v4  ;;  %v8918_v12 = vld [vmem:[%s13860_s0 + $0x108] sm:$0xff] }
 0x648   :  { %v7777_v42 = vmax.f32 %v7713_v0, 0.0  ;;  %v7714_v25 = vadd.f32 %v8910_v58, %v7650_v7  ;;  %v6861_v18 = vsel %vm2968_vm14, %v6797_v43, %v6267_v31 }
 0x649   :  { %7843 = vst.msk [vmem:[%s13864_s4 + $0xd0] sm:$0xff] %vm2838_vm12, %v7779_v9  ;;  %v7780_v57 = vmax.f32 %v7716_v55, 0.0 }
 0x64a   :  { %7841 = vst.msk [vmem:[%s13864_s4 + $0xc0] sm:$0xff] %vm2838_vm12, %v7777_v42  ;;  %v7778_v54 = vmax.f32 %v7714_v25, 0.0  ;;  %v6597_v29 = vpop.permute.xlu0 %6596  ;;  %v8915_v42 = vld [vmem:[%s13860_s0 + $0x110] sm:$0xff] }
 0x64b   :  { %7844 = vst.msk [vmem:[%s13864_s4 + $0xd8] sm:$0xff] %vm2838_vm12, %v7780_v57  ;;  %v6361_v15 = vpop.permute.xlu1 %6360  ;;  %v7115_v26 = vsel %vm3228_vm4, %v7051_v13, %v6597_v29  ;;  %v8917_v29 = vld [vmem:[%s13860_s0 + $0x118] sm:$0xff] }
 0x64c   :  { %7842 = vst.msk [vmem:[%s13864_s4 + $0xc8] sm:$0xff] %vm2838_vm12, %v7778_v54  ;;  %v6925_v1 = vsel %vm3033_vm15, %v6861_v18, %v6361_v15 }
 0x64e   :  { %v6667_v16 = vpop.permute.xlu0 %6666 }
 0x64f   :  { %v7179_v39 = vsel %vm3293_vm6, %v7115_v26, %v6667_v16  ;;  %v6431_v35 = vpop.permute.xlu1 %6430 }
 0x650   :  { %8565 = vmatprep.mubr.msk.bf16.mxu1 %vm3373_vm11, %v7179_v39  ;;  %v6989_v52 = vsel %vm3098_vm1, %v6925_v1, %v6431_v35 }
 0x653   :  { %v6505_v53 = vpop.permute.xlu1 %6504 }
 0x654   :  { %v7053_v33 = vsel %vm3163_vm2, %v6989_v52, %v6505_v53  ;;  %v8919_v52 = vld [vmem:[%s13860_s0 + $0x130] sm:$0xff] }
 0x657   :  { %v6599_v32 = vpop.permute.xlu1 %6598 }
 0x658   :  { %v8535_v17 = vpop.f32.mrb[28].mxu1  ;;  %v7117_v8 = vsel %vm3228_vm4, %v7053_v33, %v6599_v32  ;;  %v8920_v33 = vld [vmem:[%s13860_s0 + $0x120] sm:$0xff] }
 0x659   :  { %v7587_v6 = vmul.f32 %v8535_v17, %v13059_v63  ;;  %v7410_v48 = vpop.f32.mrb[29].mxu1 }
 0x65a   :  { %v7585_v37 = vmul.f32 %v13059_v63, %v7410_v48  ;;  %v8536_v49 = vpop.f32.mrb[30].mxu1 }
 0x65b   :  { %v7655_v10 = vadd.f32 %v13068_v38, %v7587_v6  ;;  %v7588_v47 = vmul.f32 %v8536_v49, %v13059_v63  ;;  %v6669_v23 = vpop.permute.xlu1 %6668  ;;  %v7413_v27 = vpop.f32.mrb[31].mxu1 }
 0x65c   :  { %v7653_v5 = vadd.f32 %v13068_v38, %v7585_v37  ;;  %v7181_v28 = vsel %vm3293_vm6, %v7117_v8, %v6669_v23  ;;  %v7586_v14 = vmul.f32 %v13059_v63, %v7413_v27  ;;  %v8922_v27 = vld [vmem:[%s13860_s0 + $0x128] sm:$0xff] }
 0x65d   :  { %v7719_v40 = vadd.f32 %v8911_v62, %v7655_v10  ;;  %v7656_v34 = vadd.f32 %v13068_v38, %v7588_v47  ;;  %8566 = vmatmul.mubr.msk.bf16.gmra.mrb[60].mxu1 %vm3373_vm11, %v7181_v28  ;;  %v8921_v10 = vld [vmem:[%s13860_s0 + $0x138] sm:$0xff] }
 0x65e   :  { %v7717_v50 = vadd.f32 %v8912_v24, %v7653_v5  ;;  %v7654_v59 = vadd.f32 %v13068_v38, %v7586_v14 }
 0x65f   :  { %v7783_v3 = vmax.f32 %v7719_v40, 0.0  ;;  %v7720_v46 = vadd.f32 %v8913_v20, %v7656_v34 }
 0x660   :  { %v7781_v22 = vmax.f32 %v7717_v50, 0.0  ;;  %v7718_v11 = vadd.f32 %v8914_v60, %v7654_v59  ;;  %v8923_v60 = vld [vmem:[%s13860_s0 + $0x150] sm:$0xff] }
 0x661   :  { %7847 = vst.msk [vmem:[%s13864_s4 + $0xf0] sm:$0xff] %vm2838_vm12, %v7783_v3  ;;  %v7784_v2 = vmax.f32 %v7720_v46, 0.0 }
 0x662   :  { %7845 = vst.msk [vmem:[%s13864_s4 + $0xe0] sm:$0xff] %vm2838_vm12, %v7781_v22  ;;  %v7782_v19 = vmax.f32 %v7718_v11, 0.0 }
 0x663   :  { %7848 = vst.msk [vmem:[%s13864_s4 + $0xf8] sm:$0xff] %vm2838_vm12, %v7784_v2 }
 0x664   :  { %7846 = vst.msk [vmem:[%s13864_s4 + $0xe8] sm:$0xff] %vm2838_vm12, %v7782_v19  ;;  %v8924_v19 = vld [vmem:[%s13860_s0 + $0x140] sm:$0xff] }
 0x670   :  { %v8539_v41 = vpop.f32.mrb[32].mxu1 }
 0x671   :  { %v7591_v0 = vmul.f32 %v8539_v41, %v13059_v63  ;;  %v7426_v4 = vpop.f32.mrb[33].mxu1 }
 0x672   :  { %v7589_v7 = vmul.f32 %v13059_v63, %v7426_v4  ;;  %v8540_v9 = vpop.f32.mrb[34].mxu1 }
 0x673   :  { %v7659_v44 = vadd.f32 %v13068_v38, %v7591_v0  ;;  %v7592_v55 = vmul.f32 %v8540_v9, %v13059_v63  ;;  %v7429_v31 = vpop.f32.mrb[35].mxu1 }
 0x674   :  { %v7657_v56 = vadd.f32 %v13068_v38, %v7589_v7  ;;  %v7590_v51 = vmul.f32 %v13059_v63, %v7429_v31  ;;  %v8925_v7 = vld [vmem:[%s13860_s0 + $0x158] sm:$0xff] }
 0x675   :  { %v7723_v58 = vadd.f32 %v8915_v42, %v7659_v44  ;;  %v7660_v25 = vadd.f32 %v13068_v38, %v7592_v55  ;;  %v8926_v44 = vld [vmem:[%s13860_s0 + $0x148] sm:$0xff] }
 0x676   :  { %v7721_v57 = vadd.f32 %v8916_v30, %v7657_v56  ;;  %v7658_v61 = vadd.f32 %v13068_v38, %v7590_v51  ;;  %v13673_v51 = vld [vmem:[%s13862_s3 + $0x2] ss:$0 sm:$0xff] }
 0x677   :  { %v7787_v54 = vmax.f32 %v7723_v58, 0.0  ;;  %v7724_v21 = vadd.f32 %v8917_v29, %v7660_v25 }
 0x678   :  { %v7785_v15 = vmax.f32 %v7721_v57, 0.0  ;;  %v7722_v13 = vadd.f32 %v8918_v12, %v7658_v61  ;;  %v13680_v57 = vld [vmem:[%s13862_s3 + $0x3] ss:$0 sm:$0xff]  ;;  %v8929_v12 = vld [vmem:[%s13860_s0 + $0x170] sm:$0xff] }
 0x679   :  { %7851 = vst.msk [vmem:[%s13864_s4 + $0x110] sm:$0xff] %vm2838_vm12, %v7787_v54  ;;  %v7788_v26 = vmax.f32 %v7724_v21, 0.0 }
 0x67a   :  { %7849 = vst.msk [vmem:[%s13864_s4 + $0x100] sm:$0xff] %vm2838_vm12, %v7785_v15  ;;  %v7786_v16 = vmax.f32 %v7722_v13, 0.0 }
 0x67b   :  { %7852 = vst.msk [vmem:[%s13864_s4 + $0x118] sm:$0xff] %vm2838_vm12, %v7788_v26 }
 0x67c   :  { %7850 = vst.msk [vmem:[%s13864_s4 + $0x108] sm:$0xff] %vm2838_vm12, %v7786_v16  ;;  %v8930_v16 = vld [vmem:[%s13860_s0 + $0x160] sm:$0xff] }
 0x688   :  { %v8543_v39 = vpop.f32.mrb[36].mxu1 }
 0x689   :  { %v7595_v35 = vmul.f32 %v8543_v39, %v13059_v63  ;;  %v7442_v53 = vpop.f32.mrb[37].mxu1 }
 0x68a   :  { %v7593_v36 = vmul.f32 %v13059_v63, %v7442_v53  ;;  %v8544_v45 = vpop.f32.mrb[38].mxu1 }
 0x68b   :  { %v7663_v43 = vadd.f32 %v13068_v38, %v7595_v35  ;;  %v7596_v18 = vmul.f32 %v8544_v45, %v13059_v63  ;;  %v7445_v32 = vpop.f32.mrb[39].mxu1 }
 0x68c   :  { %v7661_v1 = vadd.f32 %v13068_v38, %v7593_v36  ;;  %v7594_v17 = vmul.f32 %v13059_v63, %v7445_v32  ;;  %v8931_v36 = vld [vmem:[%s13860_s0 + $0x178] sm:$0xff] }
 0x68d   :  { %v7727_v6 = vadd.f32 %v8919_v52, %v7663_v43  ;;  %v7664_v48 = vadd.f32 %v13068_v38, %v7596_v18  ;;  %v8932_v18 = vld [vmem:[%s13860_s0 + $0x168] sm:$0xff] }
 0x68e   :  { %v7725_v37 = vadd.f32 %v8920_v33, %v7661_v1  ;;  %v7662_v49 = vadd.f32 %v13068_v38, %v7594_v17 }
 0x68f   :  { %v7791_v8 = vmax.f32 %v7727_v6, 0.0  ;;  %v7728_v47 = vadd.f32 %v8921_v10, %v7664_v48 }
 0x690   :  { %v7789_v23 = vmax.f32 %v7725_v37, 0.0  ;;  %v7726_v5 = vadd.f32 %v8922_v27, %v7662_v49  ;;  %v8933_v27 = vld [vmem:[%s13860_s0 + $0x190] sm:$0xff] }
 0x691   :  { %7855 = vst.msk [vmem:[%s13864_s4 + $0x130] sm:$0xff] %vm2838_vm12, %v7791_v8  ;;  %v7792_v28 = vmax.f32 %v7728_v47, 0.0 }
 0x692   :  { %7853 = vst.msk [vmem:[%s13864_s4 + $0x120] sm:$0xff] %vm2838_vm12, %v7789_v23  ;;  %v7790_v14 = vmax.f32 %v7726_v5, 0.0 }
 0x693   :  { %7856 = vst.msk [vmem:[%s13864_s4 + $0x138] sm:$0xff] %vm2838_vm12, %v7792_v28 }
 0x694   :  { %7854 = vst.msk [vmem:[%s13864_s4 + $0x128] sm:$0xff] %vm2838_vm12, %v7790_v14  ;;  %v8934_v14 = vld [vmem:[%s13860_s0 + $0x180] sm:$0xff] }
 0x6a4   :  { %v8547_v62 = vpop.f32.mrb[40].mxu1 }
 0x6a5   :  { %v7599_v40 = vmul.f32 %v8547_v62, %v13059_v63  ;;  %v7458_v34 = vpop.f32.mrb[41].mxu1 }
 0x6a6   :  { %v7597_v24 = vmul.f32 %v13059_v63, %v7458_v34  ;;  %v8548_v50 = vpop.f32.mrb[42].mxu1 }
 0x6a7   :  { %v7667_v59 = vadd.f32 %v13068_v38, %v7599_v40  ;;  %v7600_v3 = vmul.f32 %v8548_v50, %v13059_v63  ;;  %v7461_v20 = vpop.f32.mrb[43].mxu1 }
 0x6a8   :  { %v7665_v46 = vadd.f32 %v13068_v38, %v7597_v24  ;;  %v7598_v22 = vmul.f32 %v13059_v63, %v7461_v20  ;;  %v8935_v24 = vld [vmem:[%s13860_s0 + $0x198] sm:$0xff] }
 0x6a9   :  { %v7731_v11 = vadd.f32 %v8923_v60, %v7667_v59  ;;  %v7668_v2 = vadd.f32 %v13068_v38, %v7600_v3  ;;  %v8936_v3 = vld [vmem:[%s13860_s0 + $0x188] sm:$0xff] }
 0x6aa   :  { %v7729_v41 = vadd.f32 %v8924_v19, %v7665_v46  ;;  %v7666_v0 = vadd.f32 %v13068_v38, %v7598_v22 }
 0x6ab   :  { %v7795_v4 = vmax.f32 %v7731_v11, 0.0  ;;  %v7732_v63 = vadd.f32 %v8925_v7, %v7668_v2 }
 0x6ac   :  { %v7793_v9 = vmax.f32 %v7729_v41, 0.0  ;;  %v7730_v55 = vadd.f32 %v8926_v44, %v7666_v0  ;;  %v8937_v44 = vld [vmem:[%s13860_s0 + $0x1b0] sm:$0xff] }
 0x6ad   :  { %7859 = vst.msk [vmem:[%s13864_s4 + $0x150] sm:$0xff] %vm2838_vm12, %v7795_v4  ;;  %v7796_v31 = vmax.f32 %v7732_v63, 0.0 }
 0x6ae   :  { %7857 = vst.msk [vmem:[%s13864_s4 + $0x140] sm:$0xff] %vm2838_vm12, %v7793_v9  ;;  %v7794_v38 = vmax.f32 %v7730_v55, 0.0 }
 0x6af   :  { %7860 = vst.msk [vmem:[%s13864_s4 + $0x158] sm:$0xff] %vm2838_vm12, %v7796_v31 }
 0x6b0   :  { %7858 = vst.msk [vmem:[%s13864_s4 + $0x148] sm:$0xff] %vm2838_vm12, %v7794_v38  ;;  %v8938_v38 = vld [vmem:[%s13860_s0 + $0x1a0] sm:$0xff] }
 0x6c0   :  { %v8551_v56 = vpop.f32.mrb[44].mxu1 }
 0x6c1   :  { %v7603_v42 = vmul.f32 %v13673_v51, %v8551_v56  ;;  %v7474_v58 = vpop.f32.mrb[45].mxu1 }
 0x6c2   :  { %v7601_v25 = vmul.f32 %v13673_v51, %v7474_v58  ;;  %v8552_v30 = vpop.f32.mrb[46].mxu1 }
 0x6c3   :  { %v7671_v61 = vadd.f32 %v13680_v57, %v7603_v42  ;;  %v7604_v54 = vmul.f32 %v13673_v51, %v8552_v30  ;;  %v7477_v29 = vpop.f32.mrb[47].mxu1 }
 0x6c4   :  { %v7669_v21 = vadd.f32 %v13680_v57, %v7601_v25  ;;  %v7602_v15 = vmul.f32 %v13673_v51, %v7477_v29  ;;  %v8939_v25 = vld [vmem:[%s13860_s0 + $0x1b8] sm:$0xff] }
 0x6c5   :  { %v7735_v13 = vadd.f32 %v8929_v12, %v7671_v61  ;;  %v7672_v26 = vadd.f32 %v13680_v57, %v7604_v54  ;;  %v8940_v54 = vld [vmem:[%s13860_s0 + $0x1a8] sm:$0xff] }
 0x6c6   :  { %v7733_v39 = vadd.f32 %v8930_v16, %v7669_v21  ;;  %v7670_v35 = vadd.f32 %v13680_v57, %v7602_v15 }
 0x6c7   :  { %v7799_v53 = vmax.f32 %v7735_v13, 0.0  ;;  %v7736_v45 = vadd.f32 %v8931_v36, %v7672_v26 }
 0x6c8   :  { %v7797_v43 = vmax.f32 %v7733_v39, 0.0  ;;  %v7734_v32 = vadd.f32 %v8932_v18, %v7670_v35  ;;  %v8941_v18 = vld [vmem:[%s13860_s0 + $0x1d0] sm:$0xff] }
 0x6c9   :  { %7863 = vst.msk [vmem:[%s13864_s4 + $0x170] sm:$0xff] %vm2838_vm12, %v7799_v53  ;;  %v7800_v1 = vmax.f32 %v7736_v45, 0.0 }
 0x6ca   :  { %7861 = vst.msk [vmem:[%s13864_s4 + $0x160] sm:$0xff] %vm2838_vm12, %v7797_v43  ;;  %v7798_v17 = vmax.f32 %v7734_v32, 0.0 }
 0x6cb   :  { %7864 = vst.msk [vmem:[%s13864_s4 + $0x178] sm:$0xff] %vm2838_vm12, %v7800_v1 }
 0x6cc   :  { %7862 = vst.msk [vmem:[%s13864_s4 + $0x168] sm:$0xff] %vm2838_vm12, %v7798_v17  ;;  %v8942_v17 = vld [vmem:[%s13860_s0 + $0x1c0] sm:$0xff] }
 0x6dc   :  { %v8555_v52 = vpop.f32.mrb[48].mxu1 }
 0x6dd   :  { %v7607_v6 = vmul.f32 %v13673_v51, %v8555_v52  ;;  %v7490_v48 = vpop.f32.mrb[49].mxu1 }
 0x6de   :  { %v7605_v33 = vmul.f32 %v13673_v51, %v7490_v48  ;;  %v8556_v37 = vpop.f32.mrb[50].mxu1 }
 0x6df   :  { %v7675_v49 = vadd.f32 %v13680_v57, %v7607_v6  ;;  %v7608_v8 = vmul.f32 %v13673_v51, %v8556_v37  ;;  %v7493_v10 = vpop.f32.mrb[51].mxu1 }
 0x6e0   :  { %v7673_v47 = vadd.f32 %v13680_v57, %v7605_v33  ;;  %v7606_v23 = vmul.f32 %v13673_v51, %v7493_v10  ;;  %v8943_v33 = vld [vmem:[%s13860_s0 + $0x1d8] sm:$0xff] }
 0x6e1   :  { %v7739_v5 = vadd.f32 %v8933_v27, %v7675_v49  ;;  %v7676_v28 = vadd.f32 %v13680_v57, %v7608_v8  ;;  %v8944_v8 = vld [vmem:[%s13860_s0 + $0x1c8] sm:$0xff] }
 0x6e2   :  { %v7737_v62 = vadd.f32 %v8934_v14, %v7673_v47  ;;  %v7674_v40 = vadd.f32 %v13680_v57, %v7606_v23 }
 0x6e3   :  { %v7803_v34 = vmax.f32 %v7739_v5, 0.0  ;;  %v7740_v50 = vadd.f32 %v8935_v24, %v7676_v28 }
 0x6e4   :  { %v7801_v59 = vmax.f32 %v7737_v62, 0.0  ;;  %v7738_v20 = vadd.f32 %v8936_v3, %v7674_v40  ;;  %v8945_v3 = vld [vmem:[%s13860_s0 + $0x1f0] sm:$0xff] }
 0x6e5   :  { %7867 = vst.msk [vmem:[%s13864_s4 + $0x190] sm:$0xff] %vm2838_vm12, %v7803_v34  ;;  %v7804_v46 = vmax.f32 %v7740_v50, 0.0 }
 0x6e6   :  { %7865 = vst.msk [vmem:[%s13864_s4 + $0x180] sm:$0xff] %vm2838_vm12, %v7801_v59  ;;  %v7802_v22 = vmax.f32 %v7738_v20, 0.0 }
 0x6e7   :  { %7868 = vst.msk [vmem:[%s13864_s4 + $0x198] sm:$0xff] %vm2838_vm12, %v7804_v46 }
 0x6e8   :  { %7866 = vst.msk [vmem:[%s13864_s4 + $0x188] sm:$0xff] %vm2838_vm12, %v7802_v22  ;;  %v8946_v22 = vld [vmem:[%s13860_s0 + $0x1e0] sm:$0xff] }
 0x6f8   :  { %v8559_v60 = vpop.f32.mrb[52].mxu1 }
 0x6f9   :  { %v7611_v11 = vmul.f32 %v13673_v51, %v8559_v60  ;;  %v7506_v2 = vpop.f32.mrb[53].mxu1 }
 0x6fa   :  { %v7609_v19 = vmul.f32 %v13673_v51, %v7506_v2  ;;  %v8560_v41 = vpop.f32.mrb[54].mxu1 }
 0x6fb   :  { %v7679_v0 = vadd.f32 %v13680_v57, %v7611_v11  ;;  %v7612_v4 = vmul.f32 %v13673_v51, %v8560_v41  ;;  %v7509_v7 = vpop.f32.mrb[55].mxu1 }
 0x6fc   :  { %v7677_v63 = vadd.f32 %v13680_v57, %v7609_v19  ;;  %v7610_v9 = vmul.f32 %v13673_v51, %v7509_v7  ;;  %v8947_v19 = vld [vmem:[%s13860_s0 + $0x1f8] sm:$0xff] }
 0x6fd   :  { %v7743_v55 = vadd.f32 %v8937_v44, %v7679_v0  ;;  %v7680_v31 = vadd.f32 %v13680_v57, %v7612_v4  ;;  %v8948_v0 = vld [vmem:[%s13860_s0 + $0x1e8] sm:$0xff] }
 0x6fe   :  { %v7741_v56 = vadd.f32 %v8938_v38, %v7677_v63  ;;  %v7678_v42 = vadd.f32 %v13680_v57, %v7610_v9 }
 0x6ff   :  { %v7807_v58 = vmax.f32 %v7743_v55, 0.0  ;;  %v7744_v30 = vadd.f32 %v8939_v25, %v7680_v31 }
 0x700   :  { %v7805_v61 = vmax.f32 %v7741_v56, 0.0  ;;  %v7742_v29 = vadd.f32 %v8940_v54, %v7678_v42 }
 0x701   :  { %7871 = vst.msk [vmem:[%s13864_s4 + $0x1b0] sm:$0xff] %vm2838_vm12, %v7807_v58  ;;  %v7808_v21 = vmax.f32 %v7744_v30, 0.0 }
 0x702   :  { %7869 = vst.msk [vmem:[%s13864_s4 + $0x1a0] sm:$0xff] %vm2838_vm12, %v7805_v61  ;;  %v7806_v15 = vmax.f32 %v7742_v29, 0.0 }
 0x703   :  { %7872 = vst.msk [vmem:[%s13864_s4 + $0x1b8] sm:$0xff] %vm2838_vm12, %v7808_v21 }
 0x704   :  { %7870 = vst.msk [vmem:[%s13864_s4 + $0x1a8] sm:$0xff] %vm2838_vm12, %v7806_v15 }
 0x714   :  { %v8563_v12 = vpop.f32.mrb[56].mxu1 }
 0x715   :  { %v7615_v13 = vmul.f32 %v13673_v51, %v8563_v12  ;;  %v7522_v26 = vpop.f32.mrb[57].mxu1 }
 0x716   :  { %v7613_v16 = vmul.f32 %v13673_v51, %v7522_v26  ;;  %v8564_v39 = vpop.f32.mrb[58].mxu1 }
 0x717   :  { %v7683_v35 = vadd.f32 %v13680_v57, %v7615_v13  ;;  %v7616_v53 = vmul.f32 %v13673_v51, %v8564_v39  ;;  %v7525_v36 = vpop.f32.mrb[59].mxu1 }
 0x718   :  { %v7681_v45 = vadd.f32 %v13680_v57, %v7613_v16  ;;  %v7614_v43 = vmul.f32 %v13673_v51, %v7525_v36 }
 0x719   :  { %v7747_v32 = vadd.f32 %v8941_v18, %v7683_v35  ;;  %v7684_v1 = vadd.f32 %v13680_v57, %v7616_v53 }
 0x71a   :  { %v7745_v52 = vadd.f32 %v8942_v17, %v7681_v45  ;;  %v7682_v6 = vadd.f32 %v13680_v57, %v7614_v43 }
 0x71b   :  { %v7811_v48 = vmax.f32 %v7747_v32, 0.0  ;;  %v7748_v37 = vadd.f32 %v8943_v33, %v7684_v1 }
 0x71c   :  { %v7809_v49 = vmax.f32 %v7745_v52, 0.0  ;;  %v7746_v10 = vadd.f32 %v8944_v8, %v7682_v6 }
 0x71d   :  { %7875 = vst.msk [vmem:[%s13864_s4 + $0x1d0] sm:$0xff] %vm2838_vm12, %v7811_v48  ;;  %v7812_v47 = vmax.f32 %v7748_v37, 0.0 }
 0x71e   :  { %7873 = vst.msk [vmem:[%s13864_s4 + $0x1c0] sm:$0xff] %vm2838_vm12, %v7809_v49  ;;  %v7810_v23 = vmax.f32 %v7746_v10, 0.0 }
 0x71f   :  { %7876 = vst.msk [vmem:[%s13864_s4 + $0x1d8] sm:$0xff] %vm2838_vm12, %v7812_v47 }
 0x720   :  { %7874 = vst.msk [vmem:[%s13864_s4 + $0x1c8] sm:$0xff] %vm2838_vm12, %v7810_v23 }
 0x730   :  { %v8567_v27 = vpop.f32.mrb[60].mxu1 }
 0x731   :  { %v7619_v5 = vmul.f32 %v13673_v51, %v8567_v27  ;;  %v7538_v28 = vpop.f32.mrb[61].mxu1 }
 0x732   :  { %v7617_v14 = vmul.f32 %v13673_v51, %v7538_v28  ;;  %v8568_v62 = vpop.f32.mrb[62].mxu1 }
 0x733   :  { %v7687_v40 = vadd.f32 %v13680_v57, %v7619_v5  ;;  %v7620_v34 = vmul.f32 %v13673_v51, %v8568_v62  ;;  %v7541_v24 = vpop.f32.mrb[63].mxu1 }
 0x734   :  { %v7685_v50 = vadd.f32 %v13680_v57, %v7617_v14  ;;  %v7618_v59 = vmul.f32 %v13673_v51, %v7541_v24 }
 0x735   :  { %v7751_v20 = vadd.f32 %v8945_v3, %v7687_v40  ;;  %v7688_v46 = vadd.f32 %v13680_v57, %v7620_v34 }
 0x736   :  { %v7749_v60 = vadd.f32 %v8946_v22, %v7685_v50  ;;  %v7686_v11 = vadd.f32 %v13680_v57, %v7618_v59 }
 0x737   :  { %v7815_v2 = vmax.f32 %v7751_v20, 0.0  ;;  %v7752_v51 = vadd.f32 %v8947_v19, %v7688_v46 }
 0x738   :  { %v7813_v41 = vmax.f32 %v7749_v60, 0.0  ;;  %v7750_v4 = vadd.f32 %v8948_v0, %v7686_v11 }
 0x739   :  { %7879 = vst.msk [vmem:[%s13864_s4 + $0x1f0] sm:$0xff] %vm2838_vm12, %v7815_v2  ;;  %v7816_v7 = vmax.f32 %v7752_v51, 0.0 }
 0x73a   :  { %7877 = vst.msk [vmem:[%s13864_s4 + $0x1e0] sm:$0xff] %vm2838_vm12, %v7813_v41  ;;  %v7814_v57 = vmax.f32 %v7750_v4, 0.0 }
 0x73b   :  { %7880 = vst.msk [vmem:[%s13864_s4 + $0x1f8] sm:$0xff] %vm2838_vm12, %v7816_v7 }
 0x73c   :  { %7878 = vst.msk [vmem:[%s13864_s4 + $0x1e8] sm:$0xff] %vm2838_vm12, %v7814_v57 }

</bundles_post_ra>
